<compile_context>
chip_gen: v5e
topology: v5e:2x2
jax: 0.10.0
libtpu: 0.0.40
codegen_flags: <defaults>
</compile_context>

<pallas_src>
import functools

import jax
import jax.numpy as jnp
from jax import lax
from jax.experimental import pallas as pl
from jax.experimental.pallas import tpu as pltpu

MAX_DISP = 4
NEIGH = 2 * MAX_DISP + 1          # 9
N_DISP = NEIGH * NEIGH            # 81


def _cdiv(a, b):
    return -(-a // b)


def _round_up(x, m):
    return _cdiv(x, m) * m


def _correlation_kernel(f_ref, s_ref, o_ref, *scratch, H, W, true_C,
                        chunked, mode, use_mxu):
    # f_ref : (c_chunk, S)   first,  spatially flattened (one batch / channel-chunk block)
    # s_ref : (c_chunk, S)   second
    # o_ref : (81, S)        output block, resident across the channel-chunk axis
    # scratch:
    #   fqs_ref : (9, c_chunk, S)   the 9 dx-shifted copies of `first`
    #   acc_ref : (81, S) float32   only in "scratch_acc" mode
    S = H * W

    if mode == "scratch_acc":
        fqs_ref, acc_ref = scratch
    else:
        (fqs_ref,) = scratch
        acc_ref = o_ref if mode == "out_acc" else None

    if chunked:
        k = pl.program_id(1)
        is_first = k == 0
        is_last = k == pl.num_programs(1) - 1

    if mode == "out_acc" or (mode == "scratch_acc" and chunked):
        @pl.when(is_first)
        def _init():
            acc_ref[...] = jnp.zeros_like(acc_ref)

    f = f_ref[...]
    s = s_ref[...]
    c_chunk = f.shape[0]

    # Flattened spatial coordinates (one (1, S) int32 row, computed once per grid step).
    nn = lax.broadcasted_iota(jnp.int32, (1, S), 1)
    xw = nn % W

    # Hoisted constants (broadcasts are not CSE'd by JAX -> build once, outside the loops).
    ones_blk = jnp.ones((8, c_chunk), dtype=f.dtype) if use_mxu else None
    inv_c = jnp.float32(1.0 / true_C)

    # Hoist the 9 dx shifts of `first` (unmasked lane rolls; wrap garbage only ever lands
    # on output positions that are masked below).
    for q in range(-MAX_DISP, MAX_DISP + 1):
        fqs_ref[q + MAX_DISP] = f if q == 0 else pltpu.roll(f, q % S, 1)

    for p in range(-MAX_DISP, MAX_DISP + 1):            # dy
        p_idx = p + MAX_DISP
        # Row shift of `second` on the flattened layout (unmasked roll, see above).
        sp = s if p == 0 else pltpu.roll(s, (-p * W) % S, 1)
        # 0 <= y + p < H  <=>  -p*W <= n < S - p*W  (no division needed)
        y_ok = None if p == 0 else (nn >= -p * W) & (nn < S - p * W)

        for q in range(-MAX_DISP, MAX_DISP + 1):        # dx
            q_idx = q + MAX_DISP
            row = p_idx * NEIGH + q_idx                 # == tc of the reference kernel

            prod = fqs_ref[q_idx] * sp                  # (c_chunk, S), input dtype (VPU)
            if use_mxu:
                # Channel reduce on the otherwise-idle MXU; all 8 result rows are
                # identical, keep row 0.
                u = jnp.dot(ones_blk, prod,
                            preferred_element_type=jnp.float32)[0:1, :]
            else:
                u = jnp.sum(prod, axis=0, keepdims=True, dtype=jnp.float32)

            valid = y_ok
            if q != 0:
                u = pltpu.roll(u, (-q) % S, 1)          # tiny (1, S) roll back to x
                x_ok = (xw >= -q) & (xw < W - q)
                valid = x_ok if valid is None else (valid & x_ok)
            if valid is not None:
                u = jnp.where(valid, u, 0.0)

            if mode == "direct":
                o_ref[pl.ds(row, 1), :] = (u * inv_c).astype(o_ref.dtype)
            elif mode == "scratch_acc" and not chunked:
                acc_ref[pl.ds(row, 1), :] = u
            else:
                acc_ref[pl.ds(row, 1), :] += u

    if mode == "out_acc":
        @pl.when(is_last)
        def _scale():
            o_ref[...] = o_ref[...] * inv_c
    elif mode == "scratch_acc":
        if chunked:
            @pl.when(is_last)
            def _finalize():
                o_ref[...] = (acc_ref[...] * inv_c).astype(o_ref.dtype)
        else:
            o_ref[...] = (acc_ref[...] * inv_c).astype(o_ref.dtype)


def _vmem_capacity_bytes():
    try:
        info = pltpu.get_tpu_info()
        cap = getattr(info, "vmem_capacity_bytes", None)
        if cap:
            return int(cap)
    except Exception:
        pass
    return 64 * 1024 * 1024        # conservative default (v7x per-core VMEM)


def module_correlation(first, second, *, c_chunk_target=None):
    """Pallas implementation of ModuleCorrelation.forward (NCHW in, (B, 81, H, W) out)."""
    assert first.shape == second.shape
    assert first.dtype == second.dtype
    B, C, H, W = first.shape
    S = H * W
    dtype = first.dtype
    isz = jnp.dtype(dtype).itemsize

    f2 = first.reshape(B, C, S)    # contiguous reshape, no HBM copy
    s2 = second.reshape(B, C, S)

    cap = _vmem_capacity_bytes()
    budget = int(cap * 0.7)
    s_lane = _round_up(S, 128)
    out_rows = _round_up(N_DISP, 8)          # 81 -> 88 sublanes

    def vmem_need(c_chunk):
        cpad = max(8, _round_up(c_chunk, 8))
        n_in = 2 * 2 * cpad * s_lane * isz                  # 2 inputs, double-buffered
        n_out = out_rows * s_lane * isz                      # resident output block
        n_fqs = NEIGH * cpad * s_lane * isz                  # dx-shifted `first` scratch
        n_acc = 0 if dtype == jnp.float32 else out_rows * s_lane * 4
        n_tmp = 4 * cpad * s_lane * isz                      # f, s, sp, prod live values
        return n_in + n_out + n_fqs + n_acc + n_tmp

    if c_chunk_target is None:
        c_chunk_target = 64 if cap >= (96 << 20) else 32

    # Channel chunking: single chunk when it fits, otherwise size the chunk against the
    # VMEM budget and pad only to a multiple of 8 (minimal wasted VALU work).
    if C <= c_chunk_target and vmem_need(C) <= budget:
        c_chunk, n_k = C, 1
    else:
        n_k = max(2, _cdiv(C, c_chunk_target))
        while True:
            c_chunk = min(_round_up(_cdiv(C, n_k), 8), _round_up(C, 8))
            if vmem_need(c_chunk) <= budget or c_chunk <= 8:
                break
            n_k += 1

    c_pad = c_chunk * n_k
    if c_pad != C:
        pad = ((0, 0), (0, c_pad - C), (0, 0))
        f2 = jnp.pad(f2, pad)      # zero channels contribute nothing to the sums
        s2 = jnp.pad(s2, pad)

    chunked = n_k > 1
    if dtype == jnp.float32:
        mode = "out_acc" if chunked else "direct"
    else:
        mode = "scratch_acc"
    use_mxu = (dtype == jnp.bfloat16) and (c_chunk >= 8)

    kernel = functools.partial(
        _correlation_kernel, H=H, W=W, true_C=C,
        chunked=chunked, mode=mode, use_mxu=use_mxu)

    scratch_shapes = [pltpu.VMEM((NEIGH, c_chunk, S), dtype)]        # fqs
    if mode == "scratch_acc":
        scratch_shapes.append(pltpu.VMEM((N_DISP, S), jnp.float32))  # f32 accumulator

    need = vmem_need(c_chunk)
    vmem_limit = int(min(cap * 0.85, max(32 * 1024 * 1024, need * 1.5)))

    if chunked:
        grid = (B, n_k)
        in_specs = [pl.BlockSpec((None, c_chunk, S), lambda b, k: (b, k, 0)),
                    pl.BlockSpec((None, c_chunk, S), lambda b, k: (b, k, 0))]
        out_specs = pl.BlockSpec((None, N_DISP, S), lambda b, k: (b, 0, 0))
        dims = ("parallel", "arbitrary")
    else:
        grid = (B,)
        in_specs = [pl.BlockSpec((None, c_chunk, S), lambda b: (b, 0, 0)),
                    pl.BlockSpec((None, c_chunk, S), lambda b: (b, 0, 0))]
        out_specs = pl.BlockSpec((None, N_DISP, S), lambda b: (b, 0, 0))
        dims = ("parallel",)

    out = pl.pallas_call(
        kernel,
        out_shape=jax.ShapeDtypeStruct((B, N_DISP, S), dtype),
        grid_spec=pltpu.PrefetchScalarGridSpec(
            num_scalar_prefetch=0,
            grid=grid,
            in_specs=in_specs,
            out_specs=out_specs,
            scratch_shapes=scratch_shapes),
        compiler_params=pltpu.CompilerParams(
            dimension_semantics=dims,
            vmem_limit_bytes=vmem_limit),
    )(f2, s2)

    return out.reshape(B, N_DISP, H, W)


def _correlation_reference(first, second):
    """Pure-JAX reference (computed in float32) for verification."""
    f = first.astype(jnp.float32)
    s = second.astype(jnp.float32)
    B, C, H, W = f.shape
    sp = jnp.pad(s, ((0, 0), (0, 0), (MAX_DISP, MAX_DISP), (MAX_DISP, MAX_DISP)))
    outs = []
    for tc in range(N_DISP):
        dy = tc // NEIGH
        dx = tc % NEIGH
        win = sp[:, :, dy:dy + H, dx:dx + W]
        outs.append((f * win).sum(axis=1) / C)
    return jnp.stack(outs, axis=1)


if __name__ == "__main__":
    key = jax.random.PRNGKey(0)

    def run_case(seed_key, B, C, H, W, dtype, atol, rtol, **kwargs):
        k1, k2 = jax.random.split(seed_key)
        a = jax.random.normal(k1, (B, C, H, W), dtype=jnp.float32).astype(dtype)
        b = jax.random.normal(k2, (B, C, H, W), dtype=jnp.float32).astype(dtype)
        out = jax.block_until_ready(module_correlation(a, b, **kwargs))
        ref = _correlation_reference(a, b)
        assert out.shape == (B, N_DISP, H, W)
        assert jnp.allclose(out.astype(jnp.float32), ref, atol=atol, rtol=rtol), (
            f"mismatch vs reference for shape {(B, C, H, W)} dtype {dtype}")

    keys = jax.random.split(key, 4)
    # primary small test (f32, single channel chunk, direct-store path)
    run_case(keys[0], 2, 4, 16, 16, jnp.float32, 1e-5, 1e-5)
    # chunked channel reduction + channel padding (f32 accumulates in the output block)
    run_case(keys[1], 1, 40, 16, 16, jnp.float32, 1e-5, 1e-5, c_chunk_target=16)
    # bf16, single chunk: MXU ones-row reduce + f32 scratch accumulator
    run_case(keys[2], 1, 32, 16, 16, jnp.bfloat16, 5e-2, 5e-2)
    # bf16, chunked channel reduction
    run_case(keys[3], 1, 32, 8, 16, jnp.bfloat16, 5e-2, 5e-2, c_chunk_target=16)

    print("KERNEL_OK")
</pallas_src>

<mosaic_0001>
module attributes {stable_mosaic.version = 11 : i64} {
  func.func @_correlation_kernel(%arg0: i32, %arg1: memref<1x4x256xf32, #tpu.memory_space<vmem>>, %arg2: memref<1x4x256xf32, #tpu.memory_space<vmem>>, %arg3: memref<1x81x256xf32, #tpu.memory_space<vmem>>, %arg4: memref<9x4x256xf32, #tpu.memory_space<vmem>>) attributes {dimension_semantics = [#tpu.dimension_semantics<parallel>], iteration_bounds = array<i64: 2>, scalar_prefetch = 0 : i64, scratch_operands = 1 : i64, tpu.core_type = #tpu.core_type<tc>, window_params = [{transform_indices = @transform_0, window_bounds = array<i64: 1, 4, 256>}, {transform_indices = @transform_1, window_bounds = array<i64: 1, 4, 256>}, {transform_indices = @transform_2, window_bounds = array<i64: 1, 81, 256>}]} {
    %c0 = arith.constant 0 : index
    %c0_0 = arith.constant 0 : index
    %c0_1 = arith.constant 0 : index
    %0 = vector.load %arg1[%c0, %c0_0, %c0_1] : memref<1x4x256xf32, #tpu.memory_space<vmem>>, vector<1x4x256xf32>
    %1 = vector.shape_cast %0 : vector<1x4x256xf32> to vector<4x256xf32>
    %c0_2 = arith.constant 0 : index
    %c0_3 = arith.constant 0 : index
    %c0_4 = arith.constant 0 : index
    %2 = vector.load %arg2[%c0_2, %c0_3, %c0_4] : memref<1x4x256xf32, #tpu.memory_space<vmem>>, vector<1x4x256xf32>
    %3 = vector.shape_cast %2 : vector<1x4x256xf32> to vector<4x256xf32>
    %4 = tpu.iota {dimensions = array<i32: 1>} : vector<1x256xi32>
    %c16_i32 = arith.constant 16 : i32
    %c0_i32 = arith.constant 0 : i32
    %5 = arith.cmpi eq, %c16_i32, %c0_i32 : i32
    %c1_i32 = arith.constant 1 : i32
    %6 = arith.select %5, %c1_i32, %c16_i32 : i32
    %7 = vector.broadcast %6 : i32 to vector<1x256xi32>
    %8 = arith.remsi %4, %7 : vector<1x256xi32>
    %c0_i32_5 = arith.constant 0 : i32
    %9 = vector.broadcast %c0_i32_5 : i32 to vector<1x256xi32>
    %10 = arith.cmpi ne, %8, %9 : vector<1x256xi32>
    %c0_i32_6 = arith.constant 0 : i32
    %11 = vector.broadcast %c0_i32_6 : i32 to vector<1x256xi32>
    %12 = arith.cmpi slt, %8, %11 : vector<1x256xi32>
    %c0_i32_7 = arith.constant 0 : i32
    %13 = arith.cmpi slt, %6, %c0_i32_7 : i32
    %14 = vector.broadcast %13 : i1 to vector<1x256xi1>
    %15 = vector.broadcast %14 : vector<1x256xi1> to vector<1x256xi1>
    %16 = arith.xori %12, %15 : vector<1x256xi1>
    %17 = arith.andi %16, %10 : vector<1x256xi1>
    %18 = vector.broadcast %6 : i32 to vector<1x256xi32>
    %19 = arith.addi %8, %18 : vector<1x256xi32>
    %20 = arith.select %17, %19, %8 : vector<1x256xi1>, vector<1x256xi32>
    %c252_i32 = arith.constant 252 : i32
    %21 = tpu.dynamic_rotate %1 by %c252_i32 dim 1 : vector<4x256xf32>, i32 -> vector<4x256xf32>
    %c0_8 = arith.constant 0 : index
    %c0_9 = arith.constant 0 : index
    %c0_10 = arith.constant 0 : index
    %22 = vector.load %arg4[%c0_8, %c0_9, %c0_10] : memref<9x4x256xf32, #tpu.memory_space<vmem>>, vector<1x4x256xf32>
    %23 = vector.shape_cast %22 : vector<1x4x256xf32> to vector<4x256xf32>
    %24 = vector.shape_cast %21 : vector<4x256xf32> to vector<1x4x256xf32>
    tpu.vector_store %arg4[%c0_8, %c0_9, %c0_10], %24 {strides = array<i32>} : memref<9x4x256xf32, #tpu.memory_space<vmem>>, vector<1x4x256xf32>,
    %c253_i32 = arith.constant 253 : i32
    %25 = tpu.dynamic_rotate %1 by %c253_i32 dim 1 : vector<4x256xf32>, i32 -> vector<4x256xf32>
    %c1 = arith.constant 1 : index
    %c0_11 = arith.constant 0 : index
    %c0_12 = arith.constant 0 : index
    %26 = vector.load %arg4[%c1, %c0_11, %c0_12] : memref<9x4x256xf32, #tpu.memory_space<vmem>>, vector<1x4x256xf32>
    %27 = vector.shape_cast %26 : vector<1x4x256xf32> to vector<4x256xf32>
    %28 = vector.shape_cast %25 : vector<4x256xf32> to vector<1x4x256xf32>
    tpu.vector_store %arg4[%c1, %c0_11, %c0_12], %28 {strides = array<i32>} : memref<9x4x256xf32, #tpu.memory_space<vmem>>, vector<1x4x256xf32>,
    %c254_i32 = arith.constant 254 : i32
    %29 = tpu.dynamic_rotate %1 by %c254_i32 dim 1 : vector<4x256xf32>, i32 -> vector<4x256xf32>
    %c2 = arith.constant 2 : index
    %c0_13 = arith.constant 0 : index
    %c0_14 = arith.constant 0 : index
    %30 = vector.load %arg4[%c2, %c0_13, %c0_14] : memref<9x4x256xf32, #tpu.memory_space<vmem>>, vector<1x4x256xf32>
    %31 = vector.shape_cast %30 : vector<1x4x256xf32> to vector<4x256xf32>
    %32 = vector.shape_cast %29 : vector<4x256xf32> to vector<1x4x256xf32>
    tpu.vector_store %arg4[%c2, %c0_13, %c0_14], %32 {strides = array<i32>} : memref<9x4x256xf32, #tpu.memory_space<vmem>>, vector<1x4x256xf32>,
    %c255_i32 = arith.constant 255 : i32
    %33 = tpu.dynamic_rotate %1 by %c255_i32 dim 1 : vector<4x256xf32>, i32 -> vector<4x256xf32>
    %c3 = arith.constant 3 : index
    %c0_15 = arith.constant 0 : index
    %c0_16 = arith.constant 0 : index
    %34 = vector.load %arg4[%c3, %c0_15, %c0_16] : memref<9x4x256xf32, #tpu.memory_space<vmem>>, vector<1x4x256xf32>
    %35 = vector.shape_cast %34 : vector<1x4x256xf32> to vector<4x256xf32>
    %36 = vector.shape_cast %33 : vector<4x256xf32> to vector<1x4x256xf32>
    tpu.vector_store %arg4[%c3, %c0_15, %c0_16], %36 {strides = array<i32>} : memref<9x4x256xf32, #tpu.memory_space<vmem>>, vector<1x4x256xf32>,
    %c4 = arith.constant 4 : index
    %c0_17 = arith.constant 0 : index
    %c0_18 = arith.constant 0 : index
    %37 = vector.load %arg4[%c4, %c0_17, %c0_18] : memref<9x4x256xf32, #tpu.memory_space<vmem>>, vector<1x4x256xf32>
    %38 = vector.shape_cast %37 : vector<1x4x256xf32> to vector<4x256xf32>
    %39 = vector.shape_cast %1 : vector<4x256xf32> to vector<1x4x256xf32>
    tpu.vector_store %arg4[%c4, %c0_17, %c0_18], %39 {strides = array<i32>} : memref<9x4x256xf32, #tpu.memory_space<vmem>>, vector<1x4x256xf32>,
    %c1_i32_19 = arith.constant 1 : i32
    %40 = tpu.dynamic_rotate %1 by %c1_i32_19 dim 1 : vector<4x256xf32>, i32 -> vector<4x256xf32>
    %c5 = arith.constant 5 : index
    %c0_20 = arith.constant 0 : index
    %c0_21 = arith.constant 0 : index
    %41 = vector.load %arg4[%c5, %c0_20, %c0_21] : memref<9x4x256xf32, #tpu.memory_space<vmem>>, vector<1x4x256xf32>
    %42 = vector.shape_cast %41 : vector<1x4x256xf32> to vector<4x256xf32>
    %43 = vector.shape_cast %40 : vector<4x256xf32> to vector<1x4x256xf32>
    tpu.vector_store %arg4[%c5, %c0_20, %c0_21], %43 {strides = array<i32>} : memref<9x4x256xf32, #tpu.memory_space<vmem>>, vector<1x4x256xf32>,
    %c2_i32 = arith.constant 2 : i32
    %44 = tpu.dynamic_rotate %1 by %c2_i32 dim 1 : vector<4x256xf32>, i32 -> vector<4x256xf32>
    %c6 = arith.constant 6 : index
    %c0_22 = arith.constant 0 : index
    %c0_23 = arith.constant 0 : index
    %45 = vector.load %arg4[%c6, %c0_22, %c0_23] : memref<9x4x256xf32, #tpu.memory_space<vmem>>, vector<1x4x256xf32>
    %46 = vector.shape_cast %45 : vector<1x4x256xf32> to vector<4x256xf32>
    %47 = vector.shape_cast %44 : vector<4x256xf32> to vector<1x4x256xf32>
    tpu.vector_store %arg4[%c6, %c0_22, %c0_23], %47 {strides = array<i32>} : memref<9x4x256xf32, #tpu.memory_space<vmem>>, vector<1x4x256xf32>,
    %c3_i32 = arith.constant 3 : i32
    %48 = tpu.dynamic_rotate %1 by %c3_i32 dim 1 : vector<4x256xf32>, i32 -> vector<4x256xf32>
    %c7 = arith.constant 7 : index
    %c0_24 = arith.constant 0 : index
    %c0_25 = arith.constant 0 : index
    %49 = vector.load %arg4[%c7, %c0_24, %c0_25] : memref<9x4x256xf32, #tpu.memory_space<vmem>>, vector<1x4x256xf32>
    %50 = vector.shape_cast %49 : vector<1x4x256xf32> to vector<4x256xf32>
    %51 = vector.shape_cast %48 : vector<4x256xf32> to vector<1x4x256xf32>
    tpu.vector_store %arg4[%c7, %c0_24, %c0_25], %51 {strides = array<i32>} : memref<9x4x256xf32, #tpu.memory_space<vmem>>, vector<1x4x256xf32>,
    %c4_i32 = arith.constant 4 : i32
    %52 = tpu.dynamic_rotate %1 by %c4_i32 dim 1 : vector<4x256xf32>, i32 -> vector<4x256xf32>
    %c8 = arith.constant 8 : index
    %c0_26 = arith.constant 0 : index
    %c0_27 = arith.constant 0 : index
    %53 = vector.load %arg4[%c8, %c0_26, %c0_27] : memref<9x4x256xf32, #tpu.memory_space<vmem>>, vector<1x4x256xf32>
    %54 = vector.shape_cast %53 : vector<1x4x256xf32> to vector<4x256xf32>
    %55 = vector.shape_cast %52 : vector<4x256xf32> to vector<1x4x256xf32>
    tpu.vector_store %arg4[%c8, %c0_26, %c0_27], %55 {strides = array<i32>} : memref<9x4x256xf32, #tpu.memory_space<vmem>>, vector<1x4x256xf32>,
    %c64_i32 = arith.constant 64 : i32
    %56 = tpu.dynamic_rotate %3 by %c64_i32 dim 1 : vector<4x256xf32>, i32 -> vector<4x256xf32>
    %c64_i32_28 = arith.constant 64 : i32
    %57 = vector.broadcast %c64_i32_28 : i32 to vector<1x256xi32>
    %58 = arith.cmpi sge, %4, %57 : vector<1x256xi32>
    %c320_i32 = arith.constant 320 : i32
    %59 = vector.broadcast %c320_i32 : i32 to vector<1x256xi32>
    %60 = arith.cmpi slt, %4, %59 : vector<1x256xi32>
    %61 = arith.andi %58, %60 : vector<1x256xi1>
    %c0_29 = arith.constant 0 : index
    %c0_30 = arith.constant 0 : index
    %c0_31 = arith.constant 0 : index
    %62 = vector.load %arg4[%c0_29, %c0_30, %c0_31] : memref<9x4x256xf32, #tpu.memory_space<vmem>>, vector<1x4x256xf32>
    %63 = vector.shape_cast %62 : vector<1x4x256xf32> to vector<4x256xf32>
    %64 = arith.mulf %63, %56 : vector<4x256xf32>
    %cst = arith.constant dense<0.000000e+00> : vector<256xf32>
    %65 = vector.multi_reduction <add>, %64, %cst [0] : vector<4x256xf32> to vector<256xf32>
    %66 = vector.shape_cast %65 : vector<256xf32> to vector<1x256xf32>
    %c4_i32_32 = arith.constant 4 : i32
    %67 = tpu.dynamic_rotate %66 by %c4_i32_32 dim 1 : vector<1x256xf32>, i32 -> vector<1x256xf32>
    %c4_i32_33 = arith.constant 4 : i32
    %68 = vector.broadcast %c4_i32_33 : i32 to vector<1x256xi32>
    %69 = arith.cmpi sge, %20, %68 : vector<1x256xi32>
    %c20_i32 = arith.constant 20 : i32
    %70 = vector.broadcast %c20_i32 : i32 to vector<1x256xi32>
    %71 = arith.cmpi slt, %20, %70 : vector<1x256xi32>
    %72 = arith.andi %69, %71 : vector<1x256xi1>
    %73 = arith.andi %61, %72 : vector<1x256xi1>
    %cst_34 = arith.constant 0.000000e+00 : f32
    %74 = vector.broadcast %cst_34 : f32 to vector<1x256xf32>
    %75 = arith.select %73, %67, %74 : vector<1x256xi1>, vector<1x256xf32>
    %cst_35 = arith.constant 2.500000e-01 : f32
    %76 = vector.broadcast %cst_35 : f32 to vector<1x256xf32>
    %77 = arith.mulf %75, %76 : vector<1x256xf32>
    %c0_36 = arith.constant 0 : index
    %c0_37 = arith.constant 0 : index
    %c0_38 = arith.constant 0 : index
    %78 = vector.load %arg3[%c0_36, %c0_37, %c0_38] : memref<1x81x256xf32, #tpu.memory_space<vmem>>, vector<1x1x256xf32>
    %79 = vector.shape_cast %78 : vector<1x1x256xf32> to vector<1x256xf32>
    %80 = vector.shape_cast %77 : vector<1x256xf32> to vector<1x1x256xf32>
    tpu.vector_store %arg3[%c0_36, %c0_37, %c0_38], %80 {strides = array<i32>} : memref<1x81x256xf32, #tpu.memory_space<vmem>>, vector<1x1x256xf32>,
    %c1_39 = arith.constant 1 : index
    %c0_40 = arith.constant 0 : index
    %c0_41 = arith.constant 0 : index
    %81 = vector.load %arg4[%c1_39, %c0_40, %c0_41] : memref<9x4x256xf32, #tpu.memory_space<vmem>>, vector<1x4x256xf32>
    %82 = vector.shape_cast %81 : vector<1x4x256xf32> to vector<4x256xf32>
    %83 = arith.mulf %82, %56 : vector<4x256xf32>
    %cst_42 = arith.constant dense<0.000000e+00> : vector<256xf32>
    %84 = vector.multi_reduction <add>, %83, %cst_42 [0] : vector<4x256xf32> to vector<256xf32>
    %85 = vector.shape_cast %84 : vector<256xf32> to vector<1x256xf32>
    %c3_i32_43 = arith.constant 3 : i32
    %86 = tpu.dynamic_rotate %85 by %c3_i32_43 dim 1 : vector<1x256xf32>, i32 -> vector<1x256xf32>
    %c3_i32_44 = arith.constant 3 : i32
    %87 = vector.broadcast %c3_i32_44 : i32 to vector<1x256xi32>
    %88 = arith.cmpi sge, %20, %87 : vector<1x256xi32>
    %c19_i32 = arith.constant 19 : i32
    %89 = vector.broadcast %c19_i32 : i32 to vector<1x256xi32>
    %90 = arith.cmpi slt, %20, %89 : vector<1x256xi32>
    %91 = arith.andi %88, %90 : vector<1x256xi1>
    %92 = arith.andi %61, %91 : vector<1x256xi1>
    %cst_45 = arith.constant 0.000000e+00 : f32
    %93 = vector.broadcast %cst_45 : f32 to vector<1x256xf32>
    %94 = arith.select %92, %86, %93 : vector<1x256xi1>, vector<1x256xf32>
    %cst_46 = arith.constant 2.500000e-01 : f32
    %95 = vector.broadcast %cst_46 : f32 to vector<1x256xf32>
    %96 = arith.mulf %94, %95 : vector<1x256xf32>
    %c0_47 = arith.constant 0 : index
    %c1_48 = arith.constant 1 : index
    %c0_49 = arith.constant 0 : index
    %97 = vector.load %arg3[%c0_47, %c1_48, %c0_49] : memref<1x81x256xf32, #tpu.memory_space<vmem>>, vector<1x1x256xf32>
    %98 = vector.shape_cast %97 : vector<1x1x256xf32> to vector<1x256xf32>
    %99 = vector.shape_cast %96 : vector<1x256xf32> to vector<1x1x256xf32>
    tpu.vector_store %arg3[%c0_47, %c1_48, %c0_49], %99 {strides = array<i32>} : memref<1x81x256xf32, #tpu.memory_space<vmem>>, vector<1x1x256xf32>,
    %c2_50 = arith.constant 2 : index
    %c0_51 = arith.constant 0 : index
    %c0_52 = arith.constant 0 : index
    %100 = vector.load %arg4[%c2_50, %c0_51, %c0_52] : memref<9x4x256xf32, #tpu.memory_space<vmem>>, vector<1x4x256xf32>
    %101 = vector.shape_cast %100 : vector<1x4x256xf32> to vector<4x256xf32>
    %102 = arith.mulf %101, %56 : vector<4x256xf32>
    %cst_53 = arith.constant dense<0.000000e+00> : vector<256xf32>
    %103 = vector.multi_reduction <add>, %102, %cst_53 [0] : vector<4x256xf32> to vector<256xf32>
    %104 = vector.shape_cast %103 : vector<256xf32> to vector<1x256xf32>
    %c2_i32_54 = arith.constant 2 : i32
    %105 = tpu.dynamic_rotate %104 by %c2_i32_54 dim 1 : vector<1x256xf32>, i32 -> vector<1x256xf32>
    %c2_i32_55 = arith.constant 2 : i32
    %106 = vector.broadcast %c2_i32_55 : i32 to vector<1x256xi32>
    %107 = arith.cmpi sge, %20, %106 : vector<1x256xi32>
    %c18_i32 = arith.constant 18 : i32
    %108 = vector.broadcast %c18_i32 : i32 to vector<1x256xi32>
    %109 = arith.cmpi slt, %20, %108 : vector<1x256xi32>
    %110 = arith.andi %107, %109 : vector<1x256xi1>
    %111 = arith.andi %61, %110 : vector<1x256xi1>
    %cst_56 = arith.constant 0.000000e+00 : f32
    %112 = vector.broadcast %cst_56 : f32 to vector<1x256xf32>
    %113 = arith.select %111, %105, %112 : vector<1x256xi1>, vector<1x256xf32>
    %cst_57 = arith.constant 2.500000e-01 : f32
    %114 = vector.broadcast %cst_57 : f32 to vector<1x256xf32>
    %115 = arith.mulf %113, %114 : vector<1x256xf32>
    %c0_58 = arith.constant 0 : index
    %c2_59 = arith.constant 2 : index
    %c0_60 = arith.constant 0 : index
    %116 = vector.load %arg3[%c0_58, %c2_59, %c0_60] : memref<1x81x256xf32, #tpu.memory_space<vmem>>, vector<1x1x256xf32>
    %117 = vector.shape_cast %116 : vector<1x1x256xf32> to vector<1x256xf32>
    %118 = vector.shape_cast %115 : vector<1x256xf32> to vector<1x1x256xf32>
    tpu.vector_store %arg3[%c0_58, %c2_59, %c0_60], %118 {strides = array<i32>} : memref<1x81x256xf32, #tpu.memory_space<vmem>>, vector<1x1x256xf32>,
    %c3_61 = arith.constant 3 : index
    %c0_62 = arith.constant 0 : index
    %c0_63 = arith.constant 0 : index
    %119 = vector.load %arg4[%c3_61, %c0_62, %c0_63] : memref<9x4x256xf32, #tpu.memory_space<vmem>>, vector<1x4x256xf32>
    %120 = vector.shape_cast %119 : vector<1x4x256xf32> to vector<4x256xf32>
    %121 = arith.mulf %120, %56 : vector<4x256xf32>
    %cst_64 = arith.constant dense<0.000000e+00> : vector<256xf32>
    %122 = vector.multi_reduction <add>, %121, %cst_64 [0] : vector<4x256xf32> to vector<256xf32>
    %123 = vector.shape_cast %122 : vector<256xf32> to vector<1x256xf32>
    %c1_i32_65 = arith.constant 1 : i32
    %124 = tpu.dynamic_rotate %123 by %c1_i32_65 dim 1 : vector<1x256xf32>, i32 -> vector<1x256xf32>
    %c1_i32_66 = arith.constant 1 : i32
    %125 = vector.broadcast %c1_i32_66 : i32 to vector<1x256xi32>
    %126 = arith.cmpi sge, %20, %125 : vector<1x256xi32>
    %c17_i32 = arith.constant 17 : i32
    %127 = vector.broadcast %c17_i32 : i32 to vector<1x256xi32>
    %128 = arith.cmpi slt, %20, %127 : vector<1x256xi32>
    %129 = arith.andi %126, %128 : vector<1x256xi1>
    %130 = arith.andi %61, %129 : vector<1x256xi1>
    %cst_67 = arith.constant 0.000000e+00 : f32
    %131 = vector.broadcast %cst_67 : f32 to vector<1x256xf32>
    %132 = arith.select %130, %124, %131 : vector<1x256xi1>, vector<1x256xf32>
    %cst_68 = arith.constant 2.500000e-01 : f32
    %133 = vector.broadcast %cst_68 : f32 to vector<1x256xf32>
    %134 = arith.mulf %132, %133 : vector<1x256xf32>
    %c0_69 = arith.constant 0 : index
    %c3_70 = arith.constant 3 : index
    %c0_71 = arith.constant 0 : index
    %135 = vector.load %arg3[%c0_69, %c3_70, %c0_71] : memref<1x81x256xf32, #tpu.memory_space<vmem>>, vector<1x1x256xf32>
    %136 = vector.shape_cast %135 : vector<1x1x256xf32> to vector<1x256xf32>
    %137 = vector.shape_cast %134 : vector<1x256xf32> to vector<1x1x256xf32>
    tpu.vector_store %arg3[%c0_69, %c3_70, %c0_71], %137 {strides = array<i32>} : memref<1x81x256xf32, #tpu.memory_space<vmem>>, vector<1x1x256xf32>,
    %c4_72 = arith.constant 4 : index
    %c0_73 = arith.constant 0 : index
    %c0_74 = arith.constant 0 : index
    %138 = vector.load %arg4[%c4_72, %c0_73, %c0_74] : memref<9x4x256xf32, #tpu.memory_space<vmem>>, vector<1x4x256xf32>
    %139 = vector.shape_cast %138 : vector<1x4x256xf32> to vector<4x256xf32>
    %140 = arith.mulf %139, %56 : vector<4x256xf32>
    %cst_75 = arith.constant dense<0.000000e+00> : vector<256xf32>
    %141 = vector.multi_reduction <add>, %140, %cst_75 [0] : vector<4x256xf32> to vector<256xf32>
    %142 = vector.shape_cast %141 : vector<256xf32> to vector<1x256xf32>
    %cst_76 = arith.constant 0.000000e+00 : f32
    %143 = vector.broadcast %cst_76 : f32 to vector<1x256xf32>
    %144 = arith.select %61, %142, %143 : vector<1x256xi1>, vector<1x256xf32>
    %cst_77 = arith.constant 2.500000e-01 : f32
    %145 = vector.broadcast %cst_77 : f32 to vector<1x256xf32>
    %146 = arith.mulf %144, %145 : vector<1x256xf32>
    %c0_78 = arith.constant 0 : index
    %c4_79 = arith.constant 4 : index
    %c0_80 = arith.constant 0 : index
    %147 = vector.load %arg3[%c0_78, %c4_79, %c0_80] : memref<1x81x256xf32, #tpu.memory_space<vmem>>, vector<1x1x256xf32>
    %148 = vector.shape_cast %147 : vector<1x1x256xf32> to vector<1x256xf32>
    %149 = vector.shape_cast %146 : vector<1x256xf32> to vector<1x1x256xf32>
    tpu.vector_store %arg3[%c0_78, %c4_79, %c0_80], %149 {strides = array<i32>} : memref<1x81x256xf32, #tpu.memory_space<vmem>>, vector<1x1x256xf32>,
    %c5_81 = arith.constant 5 : index
    %c0_82 = arith.constant 0 : index
    %c0_83 = arith.constant 0 : index
    %150 = vector.load %arg4[%c5_81, %c0_82, %c0_83] : memref<9x4x256xf32, #tpu.memory_space<vmem>>, vector<1x4x256xf32>
    %151 = vector.shape_cast %150 : vector<1x4x256xf32> to vector<4x256xf32>
    %152 = arith.mulf %151, %56 : vector<4x256xf32>
    %cst_84 = arith.constant dense<0.000000e+00> : vector<256xf32>
    %153 = vector.multi_reduction <add>, %152, %cst_84 [0] : vector<4x256xf32> to vector<256xf32>
    %154 = vector.shape_cast %153 : vector<256xf32> to vector<1x256xf32>
    %c255_i32_85 = arith.constant 255 : i32
    %155 = tpu.dynamic_rotate %154 by %c255_i32_85 dim 1 : vector<1x256xf32>, i32 -> vector<1x256xf32>
    %c-1_i32 = arith.constant -1 : i32
    %156 = vector.broadcast %c-1_i32 : i32 to vector<1x256xi32>
    %157 = arith.cmpi sge, %20, %156 : vector<1x256xi32>
    %c15_i32 = arith.constant 15 : i32
    %158 = vector.broadcast %c15_i32 : i32 to vector<1x256xi32>
    %159 = arith.cmpi slt, %20, %158 : vector<1x256xi32>
    %160 = arith.andi %157, %159 : vector<1x256xi1>
    %161 = arith.andi %61, %160 : vector<1x256xi1>
    %cst_86 = arith.constant 0.000000e+00 : f32
    %162 = vector.broadcast %cst_86 : f32 to vector<1x256xf32>
    %163 = arith.select %161, %155, %162 : vector<1x256xi1>, vector<1x256xf32>
    %cst_87 = arith.constant 2.500000e-01 : f32
    %164 = vector.broadcast %cst_87 : f32 to vector<1x256xf32>
    %165 = arith.mulf %163, %164 : vector<1x256xf32>
    %c0_88 = arith.constant 0 : index
    %c5_89 = arith.constant 5 : index
    %c0_90 = arith.constant 0 : index
    %166 = vector.load %arg3[%c0_88, %c5_89, %c0_90] : memref<1x81x256xf32, #tpu.memory_space<vmem>>, vector<1x1x256xf32>
    %167 = vector.shape_cast %166 : vector<1x1x256xf32> to vector<1x256xf32>
    %168 = vector.shape_cast %165 : vector<1x256xf32> to vector<1x1x256xf32>
    tpu.vector_store %arg3[%c0_88, %c5_89, %c0_90], %168 {strides = array<i32>} : memref<1x81x256xf32, #tpu.memory_space<vmem>>, vector<1x1x256xf32>,
    %c6_91 = arith.constant 6 : index
    %c0_92 = arith.constant 0 : index
    %c0_93 = arith.constant 0 : index
    %169 = vector.load %arg4[%c6_91, %c0_92, %c0_93] : memref<9x4x256xf32, #tpu.memory_space<vmem>>, vector<1x4x256xf32>
    %170 = vector.shape_cast %169 : vector<1x4x256xf32> to vector<4x256xf32>
    %171 = arith.mulf %170, %56 : vector<4x256xf32>
    %cst_94 = arith.constant dense<0.000000e+00> : vector<256xf32>
    %172 = vector.multi_reduction <add>, %171, %cst_94 [0] : vector<4x256xf32> to vector<256xf32>
    %173 = vector.shape_cast %172 : vector<256xf32> to vector<1x256xf32>
    %c254_i32_95 = arith.constant 254 : i32
    %174 = tpu.dynamic_rotate %173 by %c254_i32_95 dim 1 : vector<1x256xf32>, i32 -> vector<1x256xf32>
    %c-2_i32 = arith.constant -2 : i32
    %175 = vector.broadcast %c-2_i32 : i32 to vector<1x256xi32>
    %176 = arith.cmpi sge, %20, %175 : vector<1x256xi32>
    %c14_i32 = arith.constant 14 : i32
    %177 = vector.broadcast %c14_i32 : i32 to vector<1x256xi32>
    %178 = arith.cmpi slt, %20, %177 : vector<1x256xi32>
    %179 = arith.andi %176, %178 : vector<1x256xi1>
    %180 = arith.andi %61, %179 : vector<1x256xi1>
    %cst_96 = arith.constant 0.000000e+00 : f32
    %181 = vector.broadcast %cst_96 : f32 to vector<1x256xf32>
    %182 = arith.select %180, %174, %181 : vector<1x256xi1>, vector<1x256xf32>
    %cst_97 = arith.constant 2.500000e-01 : f32
    %183 = vector.broadcast %cst_97 : f32 to vector<1x256xf32>
    %184 = arith.mulf %182, %183 : vector<1x256xf32>
    %c0_98 = arith.constant 0 : index
    %c6_99 = arith.constant 6 : index
    %c0_100 = arith.constant 0 : index
    %185 = vector.load %arg3[%c0_98, %c6_99, %c0_100] : memref<1x81x256xf32, #tpu.memory_space<vmem>>, vector<1x1x256xf32>
    %186 = vector.shape_cast %185 : vector<1x1x256xf32> to vector<1x256xf32>
    %187 = vector.shape_cast %184 : vector<1x256xf32> to vector<1x1x256xf32>
    tpu.vector_store %arg3[%c0_98, %c6_99, %c0_100], %187 {strides = array<i32>} : memref<1x81x256xf32, #tpu.memory_space<vmem>>, vector<1x1x256xf32>,
    %c7_101 = arith.constant 7 : index
    %c0_102 = arith.constant 0 : index
    %c0_103 = arith.constant 0 : index
    %188 = vector.load %arg4[%c7_101, %c0_102, %c0_103] : memref<9x4x256xf32, #tpu.memory_space<vmem>>, vector<1x4x256xf32>
    %189 = vector.shape_cast %188 : vector<1x4x256xf32> to vector<4x256xf32>
    %190 = arith.mulf %189, %56 : vector<4x256xf32>
    %cst_104 = arith.constant dense<0.000000e+00> : vector<256xf32>
    %191 = vector.multi_reduction <add>, %190, %cst_104 [0] : vector<4x256xf32> to vector<256xf32>
    %192 = vector.shape_cast %191 : vector<256xf32> to vector<1x256xf32>
    %c253_i32_105 = arith.constant 253 : i32
    %193 = tpu.dynamic_rotate %192 by %c253_i32_105 dim 1 : vector<1x256xf32>, i32 -> vector<1x256xf32>
    %c-3_i32 = arith.constant -3 : i32
    %194 = vector.broadcast %c-3_i32 : i32 to vector<1x256xi32>
    %195 = arith.cmpi sge, %20, %194 : vector<1x256xi32>
    %c13_i32 = arith.constant 13 : i32
    %196 = vector.broadcast %c13_i32 : i32 to vector<1x256xi32>
    %197 = arith.cmpi slt, %20, %196 : vector<1x256xi32>
    %198 = arith.andi %195, %197 : vector<1x256xi1>
    %199 = arith.andi %61, %198 : vector<1x256xi1>
    %cst_106 = arith.constant 0.000000e+00 : f32
    %200 = vector.broadcast %cst_106 : f32 to vector<1x256xf32>
    %201 = arith.select %199, %193, %200 : vector<1x256xi1>, vector<1x256xf32>
    %cst_107 = arith.constant 2.500000e-01 : f32
    %202 = vector.broadcast %cst_107 : f32 to vector<1x256xf32>
    %203 = arith.mulf %201, %202 : vector<1x256xf32>
    %c0_108 = arith.constant 0 : index
    %c7_109 = arith.constant 7 : index
    %c0_110 = arith.constant 0 : index
    %204 = vector.load %arg3[%c0_108, %c7_109, %c0_110] : memref<1x81x256xf32, #tpu.memory_space<vmem>>, vector<1x1x256xf32>
    %205 = vector.shape_cast %204 : vector<1x1x256xf32> to vector<1x256xf32>
    %206 = vector.shape_cast %203 : vector<1x256xf32> to vector<1x1x256xf32>
    tpu.vector_store %arg3[%c0_108, %c7_109, %c0_110], %206 {strides = array<i32>} : memref<1x81x256xf32, #tpu.memory_space<vmem>>, vector<1x1x256xf32>,
    %c8_111 = arith.constant 8 : index
    %c0_112 = arith.constant 0 : index
    %c0_113 = arith.constant 0 : index
    %207 = vector.load %arg4[%c8_111, %c0_112, %c0_113] : memref<9x4x256xf32, #tpu.memory_space<vmem>>, vector<1x4x256xf32>
    %208 = vector.shape_cast %207 : vector<1x4x256xf32> to vector<4x256xf32>
    %209 = arith.mulf %208, %56 : vector<4x256xf32>
    %cst_114 = arith.constant dense<0.000000e+00> : vector<256xf32>
    %210 = vector.multi_reduction <add>, %209, %cst_114 [0] : vector<4x256xf32> to vector<256xf32>
    %211 = vector.shape_cast %210 : vector<256xf32> to vector<1x256xf32>
    %c252_i32_115 = arith.constant 252 : i32
    %212 = tpu.dynamic_rotate %211 by %c252_i32_115 dim 1 : vector<1x256xf32>, i32 -> vector<1x256xf32>
    %c-4_i32 = arith.constant -4 : i32
    %213 = vector.broadcast %c-4_i32 : i32 to vector<1x256xi32>
    %214 = arith.cmpi sge, %20, %213 : vector<1x256xi32>
    %c12_i32 = arith.constant 12 : i32
    %215 = vector.broadcast %c12_i32 : i32 to vector<1x256xi32>
    %216 = arith.cmpi slt, %20, %215 : vector<1x256xi32>
    %217 = arith.andi %214, %216 : vector<1x256xi1>
    %218 = arith.andi %61, %217 : vector<1x256xi1>
    %cst_116 = arith.constant 0.000000e+00 : f32
    %219 = vector.broadcast %cst_116 : f32 to vector<1x256xf32>
    %220 = arith.select %218, %212, %219 : vector<1x256xi1>, vector<1x256xf32>
    %cst_117 = arith.constant 2.500000e-01 : f32
    %221 = vector.broadcast %cst_117 : f32 to vector<1x256xf32>
    %222 = arith.mulf %220, %221 : vector<1x256xf32>
    %c0_118 = arith.constant 0 : index
    %c8_119 = arith.constant 8 : index
    %c0_120 = arith.constant 0 : index
    %223 = vector.load %arg3[%c0_118, %c8_119, %c0_120] : memref<1x81x256xf32, #tpu.memory_space<vmem>>, vector<1x1x256xf32>
    %224 = vector.shape_cast %223 : vector<1x1x256xf32> to vector<1x256xf32>
    %225 = vector.shape_cast %222 : vector<1x256xf32> to vector<1x1x256xf32>
    tpu.vector_store %arg3[%c0_118, %c8_119, %c0_120], %225 {strides = array<i32>} : memref<1x81x256xf32, #tpu.memory_space<vmem>>, vector<1x1x256xf32>,
    %c48_i32 = arith.constant 48 : i32
    %226 = tpu.dynamic_rotate %3 by %c48_i32 dim 1 : vector<4x256xf32>, i32 -> vector<4x256xf32>
    %c48_i32_121 = arith.constant 48 : i32
    %227 = vector.broadcast %c48_i32_121 : i32 to vector<1x256xi32>
    %228 = arith.cmpi sge, %4, %227 : vector<1x256xi32>
    %c304_i32 = arith.constant 304 : i32
    %229 = vector.broadcast %c304_i32 : i32 to vector<1x256xi32>
    %230 = arith.cmpi slt, %4, %229 : vector<1x256xi32>
    %231 = arith.andi %228, %230 : vector<1x256xi1>
    %c0_122 = arith.constant 0 : index
    %c0_123 = arith.constant 0 : index
    %c0_124 = arith.constant 0 : index
    %232 = vector.load %arg4[%c0_122, %c0_123, %c0_124] : memref<9x4x256xf32, #tpu.memory_space<vmem>>, vector<1x4x256xf32>
    %233 = vector.shape_cast %232 : vector<1x4x256xf32> to vector<4x256xf32>
    %234 = arith.mulf %233, %226 : vector<4x256xf32>
    %cst_125 = arith.constant dense<0.000000e+00> : vector<256xf32>
    %235 = vector.multi_reduction <add>, %234, %cst_125 [0] : vector<4x256xf32> to vector<256xf32>
    %236 = vector.shape_cast %235 : vector<256xf32> to vector<1x256xf32>
    %c4_i32_126 = arith.constant 4 : i32
    %237 = tpu.dynamic_rotate %236 by %c4_i32_126 dim 1 : vector<1x256xf32>, i32 -> vector<1x256xf32>
    %c4_i32_127 = arith.constant 4 : i32
    %238 = vector.broadcast %c4_i32_127 : i32 to vector<1x256xi32>
    %239 = arith.cmpi sge, %20, %238 : vector<1x256xi32>
    %c20_i32_128 = arith.constant 20 : i32
    %240 = vector.broadcast %c20_i32_128 : i32 to vector<1x256xi32>
    %241 = arith.cmpi slt, %20, %240 : vector<1x256xi32>
    %242 = arith.andi %239, %241 : vector<1x256xi1>
    %243 = arith.andi %231, %242 : vector<1x256xi1>
    %cst_129 = arith.constant 0.000000e+00 : f32
    %244 = vector.broadcast %cst_129 : f32 to vector<1x256xf32>
    %245 = arith.select %243, %237, %244 : vector<1x256xi1>, vector<1x256xf32>
    %cst_130 = arith.constant 2.500000e-01 : f32
    %246 = vector.broadcast %cst_130 : f32 to vector<1x256xf32>
    %247 = arith.mulf %245, %246 : vector<1x256xf32>
    %c0_131 = arith.constant 0 : index
    %c9 = arith.constant 9 : index
    %c0_132 = arith.constant 0 : index
    %248 = vector.load %arg3[%c0_131, %c9, %c0_132] : memref<1x81x256xf32, #tpu.memory_space<vmem>>, vector<1x1x256xf32>
    %249 = vector.shape_cast %248 : vector<1x1x256xf32> to vector<1x256xf32>
    %250 = vector.shape_cast %247 : vector<1x256xf32> to vector<1x1x256xf32>
    tpu.vector_store %arg3[%c0_131, %c9, %c0_132], %250 {strides = array<i32>} : memref<1x81x256xf32, #tpu.memory_space<vmem>>, vector<1x1x256xf32>,
    %c1_133 = arith.constant 1 : index
    %c0_134 = arith.constant 0 : index
    %c0_135 = arith.constant 0 : index
    %251 = vector.load %arg4[%c1_133, %c0_134, %c0_135] : memref<9x4x256xf32, #tpu.memory_space<vmem>>, vector<1x4x256xf32>
    %252 = vector.shape_cast %251 : vector<1x4x256xf32> to vector<4x256xf32>
    %253 = arith.mulf %252, %226 : vector<4x256xf32>
    %cst_136 = arith.constant dense<0.000000e+00> : vector<256xf32>
    %254 = vector.multi_reduction <add>, %253, %cst_136 [0] : vector<4x256xf32> to vector<256xf32>
    %255 = vector.shape_cast %254 : vector<256xf32> to vector<1x256xf32>
    %c3_i32_137 = arith.constant 3 : i32
    %256 = tpu.dynamic_rotate %255 by %c3_i32_137 dim 1 : vector<1x256xf32>, i32 -> vector<1x256xf32>
    %c3_i32_138 = arith.constant 3 : i32
    %257 = vector.broadcast %c3_i32_138 : i32 to vector<1x256xi32>
    %258 = arith.cmpi sge, %20, %257 : vector<1x256xi32>
    %c19_i32_139 = arith.constant 19 : i32
    %259 = vector.broadcast %c19_i32_139 : i32 to vector<1x256xi32>
    %260 = arith.cmpi slt, %20, %259 : vector<1x256xi32>
    %261 = arith.andi %258, %260 : vector<1x256xi1>
    %262 = arith.andi %231, %261 : vector<1x256xi1>
    %cst_140 = arith.constant 0.000000e+00 : f32
    %263 = vector.broadcast %cst_140 : f32 to vector<1x256xf32>
    %264 = arith.select %262, %256, %263 : vector<1x256xi1>, vector<1x256xf32>
    %cst_141 = arith.constant 2.500000e-01 : f32
    %265 = vector.broadcast %cst_141 : f32 to vector<1x256xf32>
    %266 = arith.mulf %264, %265 : vector<1x256xf32>
    %c0_142 = arith.constant 0 : index
    %c10 = arith.constant 10 : index
    %c0_143 = arith.constant 0 : index
    %267 = vector.load %arg3[%c0_142, %c10, %c0_143] : memref<1x81x256xf32, #tpu.memory_space<vmem>>, vector<1x1x256xf32>
    %268 = vector.shape_cast %267 : vector<1x1x256xf32> to vector<1x256xf32>
    %269 = vector.shape_cast %266 : vector<1x256xf32> to vector<1x1x256xf32>
    tpu.vector_store %arg3[%c0_142, %c10, %c0_143], %269 {strides = array<i32>} : memref<1x81x256xf32, #tpu.memory_space<vmem>>, vector<1x1x256xf32>,
    %c2_144 = arith.constant 2 : index
    %c0_145 = arith.constant 0 : index
    %c0_146 = arith.constant 0 : index
    %270 = vector.load %arg4[%c2_144, %c0_145, %c0_146] : memref<9x4x256xf32, #tpu.memory_space<vmem>>, vector<1x4x256xf32>
    %271 = vector.shape_cast %270 : vector<1x4x256xf32> to vector<4x256xf32>
    %272 = arith.mulf %271, %226 : vector<4x256xf32>
    %cst_147 = arith.constant dense<0.000000e+00> : vector<256xf32>
    %273 = vector.multi_reduction <add>, %272, %cst_147 [0] : vector<4x256xf32> to vector<256xf32>
    %274 = vector.shape_cast %273 : vector<256xf32> to vector<1x256xf32>
    %c2_i32_148 = arith.constant 2 : i32
    %275 = tpu.dynamic_rotate %274 by %c2_i32_148 dim 1 : vector<1x256xf32>, i32 -> vector<1x256xf32>
    %c2_i32_149 = arith.constant 2 : i32
    %276 = vector.broadcast %c2_i32_149 : i32 to vector<1x256xi32>
    %277 = arith.cmpi sge, %20, %276 : vector<1x256xi32>
    %c18_i32_150 = arith.constant 18 : i32
    %278 = vector.broadcast %c18_i32_150 : i32 to vector<1x256xi32>
    %279 = arith.cmpi slt, %20, %278 : vector<1x256xi32>
    %280 = arith.andi %277, %279 : vector<1x256xi1>
    %281 = arith.andi %231, %280 : vector<1x256xi1>
    %cst_151 = arith.constant 0.000000e+00 : f32
    %282 = vector.broadcast %cst_151 : f32 to vector<1x256xf32>
    %283 = arith.select %281, %275, %282 : vector<1x256xi1>, vector<1x256xf32>
    %cst_152 = arith.constant 2.500000e-01 : f32
    %284 = vector.broadcast %cst_152 : f32 to vector<1x256xf32>
    %285 = arith.mulf %283, %284 : vector<1x256xf32>
    %c0_153 = arith.constant 0 : index
    %c11 = arith.constant 11 : index
    %c0_154 = arith.constant 0 : index
    %286 = vector.load %arg3[%c0_153, %c11, %c0_154] : memref<1x81x256xf32, #tpu.memory_space<vmem>>, vector<1x1x256xf32>
    %287 = vector.shape_cast %286 : vector<1x1x256xf32> to vector<1x256xf32>
    %288 = vector.shape_cast %285 : vector<1x256xf32> to vector<1x1x256xf32>
    tpu.vector_store %arg3[%c0_153, %c11, %c0_154], %288 {strides = array<i32>} : memref<1x81x256xf32, #tpu.memory_space<vmem>>, vector<1x1x256xf32>,
    %c3_155 = arith.constant 3 : index
    %c0_156 = arith.constant 0 : index
    %c0_157 = arith.constant 0 : index
    %289 = vector.load %arg4[%c3_155, %c0_156, %c0_157] : memref<9x4x256xf32, #tpu.memory_space<vmem>>, vector<1x4x256xf32>
    %290 = vector.shape_cast %289 : vector<1x4x256xf32> to vector<4x256xf32>
    %291 = arith.mulf %290, %226 : vector<4x256xf32>
    %cst_158 = arith.constant dense<0.000000e+00> : vector<256xf32>
    %292 = vector.multi_reduction <add>, %291, %cst_158 [0] : vector<4x256xf32> to vector<256xf32>
    %293 = vector.shape_cast %292 : vector<256xf32> to vector<1x256xf32>
    %c1_i32_159 = arith.constant 1 : i32
    %294 = tpu.dynamic_rotate %293 by %c1_i32_159 dim 1 : vector<1x256xf32>, i32 -> vector<1x256xf32>
    %c1_i32_160 = arith.constant 1 : i32
    %295 = vector.broadcast %c1_i32_160 : i32 to vector<1x256xi32>
    %296 = arith.cmpi sge, %20, %295 : vector<1x256xi32>
    %c17_i32_161 = arith.constant 17 : i32
    %297 = vector.broadcast %c17_i32_161 : i32 to vector<1x256xi32>
    %298 = arith.cmpi slt, %20, %297 : vector<1x256xi32>
    %299 = arith.andi %296, %298 : vector<1x256xi1>
    %300 = arith.andi %231, %299 : vector<1x256xi1>
    %cst_162 = arith.constant 0.000000e+00 : f32
    %301 = vector.broadcast %cst_162 : f32 to vector<1x256xf32>
    %302 = arith.select %300, %294, %301 : vector<1x256xi1>, vector<1x256xf32>
    %cst_163 = arith.constant 2.500000e-01 : f32
    %303 = vector.broadcast %cst_163 : f32 to vector<1x256xf32>
    %304 = arith.mulf %302, %303 : vector<1x256xf32>
    %c0_164 = arith.constant 0 : index
    %c12 = arith.constant 12 : index
    %c0_165 = arith.constant 0 : index
    %305 = vector.load %arg3[%c0_164, %c12, %c0_165] : memref<1x81x256xf32, #tpu.memory_space<vmem>>, vector<1x1x256xf32>
    %306 = vector.shape_cast %305 : vector<1x1x256xf32> to vector<1x256xf32>
    %307 = vector.shape_cast %304 : vector<1x256xf32> to vector<1x1x256xf32>
    tpu.vector_store %arg3[%c0_164, %c12, %c0_165], %307 {strides = array<i32>} : memref<1x81x256xf32, #tpu.memory_space<vmem>>, vector<1x1x256xf32>,
    %c4_166 = arith.constant 4 : index
    %c0_167 = arith.constant 0 : index
    %c0_168 = arith.constant 0 : index
    %308 = vector.load %arg4[%c4_166, %c0_167, %c0_168] : memref<9x4x256xf32, #tpu.memory_space<vmem>>, vector<1x4x256xf32>
    %309 = vector.shape_cast %308 : vector<1x4x256xf32> to vector<4x256xf32>
    %310 = arith.mulf %309, %226 : vector<4x256xf32>
    %cst_169 = arith.constant dense<0.000000e+00> : vector<256xf32>
    %311 = vector.multi_reduction <add>, %310, %cst_169 [0] : vector<4x256xf32> to vector<256xf32>
    %312 = vector.shape_cast %311 : vector<256xf32> to vector<1x256xf32>
    %cst_170 = arith.constant 0.000000e+00 : f32
    %313 = vector.broadcast %cst_170 : f32 to vector<1x256xf32>
    %314 = arith.select %231, %312, %313 : vector<1x256xi1>, vector<1x256xf32>
    %cst_171 = arith.constant 2.500000e-01 : f32
    %315 = vector.broadcast %cst_171 : f32 to vector<1x256xf32>
    %316 = arith.mulf %314, %315 : vector<1x256xf32>
    %c0_172 = arith.constant 0 : index
    %c13 = arith.constant 13 : index
    %c0_173 = arith.constant 0 : index
    %317 = vector.load %arg3[%c0_172, %c13, %c0_173] : memref<1x81x256xf32, #tpu.memory_space<vmem>>, vector<1x1x256xf32>
    %318 = vector.shape_cast %317 : vector<1x1x256xf32> to vector<1x256xf32>
    %319 = vector.shape_cast %316 : vector<1x256xf32> to vector<1x1x256xf32>
    tpu.vector_store %arg3[%c0_172, %c13, %c0_173], %319 {strides = array<i32>} : memref<1x81x256xf32, #tpu.memory_space<vmem>>, vector<1x1x256xf32>,
    %c5_174 = arith.constant 5 : index
    %c0_175 = arith.constant 0 : index
    %c0_176 = arith.constant 0 : index
    %320 = vector.load %arg4[%c5_174, %c0_175, %c0_176] : memref<9x4x256xf32, #tpu.memory_space<vmem>>, vector<1x4x256xf32>
    %321 = vector.shape_cast %320 : vector<1x4x256xf32> to vector<4x256xf32>
    %322 = arith.mulf %321, %226 : vector<4x256xf32>
    %cst_177 = arith.constant dense<0.000000e+00> : vector<256xf32>
    %323 = vector.multi_reduction <add>, %322, %cst_177 [0] : vector<4x256xf32> to vector<256xf32>
    %324 = vector.shape_cast %323 : vector<256xf32> to vector<1x256xf32>
    %c255_i32_178 = arith.constant 255 : i32
    %325 = tpu.dynamic_rotate %324 by %c255_i32_178 dim 1 : vector<1x256xf32>, i32 -> vector<1x256xf32>
    %c-1_i32_179 = arith.constant -1 : i32
    %326 = vector.broadcast %c-1_i32_179 : i32 to vector<1x256xi32>
    %327 = arith.cmpi sge, %20, %326 : vector<1x256xi32>
    %c15_i32_180 = arith.constant 15 : i32
    %328 = vector.broadcast %c15_i32_180 : i32 to vector<1x256xi32>
    %329 = arith.cmpi slt, %20, %328 : vector<1x256xi32>
    %330 = arith.andi %327, %329 : vector<1x256xi1>
    %331 = arith.andi %231, %330 : vector<1x256xi1>
    %cst_181 = arith.constant 0.000000e+00 : f32
    %332 = vector.broadcast %cst_181 : f32 to vector<1x256xf32>
    %333 = arith.select %331, %325, %332 : vector<1x256xi1>, vector<1x256xf32>
    %cst_182 = arith.constant 2.500000e-01 : f32
    %334 = vector.broadcast %cst_182 : f32 to vector<1x256xf32>
    %335 = arith.mulf %333, %334 : vector<1x256xf32>
    %c0_183 = arith.constant 0 : index
    %c14 = arith.constant 14 : index
    %c0_184 = arith.constant 0 : index
    %336 = vector.load %arg3[%c0_183, %c14, %c0_184] : memref<1x81x256xf32, #tpu.memory_space<vmem>>, vector<1x1x256xf32>
    %337 = vector.shape_cast %336 : vector<1x1x256xf32> to vector<1x256xf32>
    %338 = vector.shape_cast %335 : vector<1x256xf32> to vector<1x1x256xf32>
    tpu.vector_store %arg3[%c0_183, %c14, %c0_184], %338 {strides = array<i32>} : memref<1x81x256xf32, #tpu.memory_space<vmem>>, vector<1x1x256xf32>,
    %c6_185 = arith.constant 6 : index
    %c0_186 = arith.constant 0 : index
    %c0_187 = arith.constant 0 : index
    %339 = vector.load %arg4[%c6_185, %c0_186, %c0_187] : memref<9x4x256xf32, #tpu.memory_space<vmem>>, vector<1x4x256xf32>
    %340 = vector.shape_cast %339 : vector<1x4x256xf32> to vector<4x256xf32>
    %341 = arith.mulf %340, %226 : vector<4x256xf32>
    %cst_188 = arith.constant dense<0.000000e+00> : vector<256xf32>
    %342 = vector.multi_reduction <add>, %341, %cst_188 [0] : vector<4x256xf32> to vector<256xf32>
    %343 = vector.shape_cast %342 : vector<256xf32> to vector<1x256xf32>
    %c254_i32_189 = arith.constant 254 : i32
    %344 = tpu.dynamic_rotate %343 by %c254_i32_189 dim 1 : vector<1x256xf32>, i32 -> vector<1x256xf32>
    %c-2_i32_190 = arith.constant -2 : i32
    %345 = vector.broadcast %c-2_i32_190 : i32 to vector<1x256xi32>
    %346 = arith.cmpi sge, %20, %345 : vector<1x256xi32>
    %c14_i32_191 = arith.constant 14 : i32
    %347 = vector.broadcast %c14_i32_191 : i32 to vector<1x256xi32>
    %348 = arith.cmpi slt, %20, %347 : vector<1x256xi32>
    %349 = arith.andi %346, %348 : vector<1x256xi1>
    %350 = arith.andi %231, %349 : vector<1x256xi1>
    %cst_192 = arith.constant 0.000000e+00 : f32
    %351 = vector.broadcast %cst_192 : f32 to vector<1x256xf32>
    %352 = arith.select %350, %344, %351 : vector<1x256xi1>, vector<1x256xf32>
    %cst_193 = arith.constant 2.500000e-01 : f32
    %353 = vector.broadcast %cst_193 : f32 to vector<1x256xf32>
    %354 = arith.mulf %352, %353 : vector<1x256xf32>
    %c0_194 = arith.constant 0 : index
    %c15 = arith.constant 15 : index
    %c0_195 = arith.constant 0 : index
    %355 = vector.load %arg3[%c0_194, %c15, %c0_195] : memref<1x81x256xf32, #tpu.memory_space<vmem>>, vector<1x1x256xf32>
    %356 = vector.shape_cast %355 : vector<1x1x256xf32> to vector<1x256xf32>
    %357 = vector.shape_cast %354 : vector<1x256xf32> to vector<1x1x256xf32>
    tpu.vector_store %arg3[%c0_194, %c15, %c0_195], %357 {strides = array<i32>} : memref<1x81x256xf32, #tpu.memory_space<vmem>>, vector<1x1x256xf32>,
    %c7_196 = arith.constant 7 : index
    %c0_197 = arith.constant 0 : index
    %c0_198 = arith.constant 0 : index
    %358 = vector.load %arg4[%c7_196, %c0_197, %c0_198] : memref<9x4x256xf32, #tpu.memory_space<vmem>>, vector<1x4x256xf32>
    %359 = vector.shape_cast %358 : vector<1x4x256xf32> to vector<4x256xf32>
    %360 = arith.mulf %359, %226 : vector<4x256xf32>
    %cst_199 = arith.constant dense<0.000000e+00> : vector<256xf32>
    %361 = vector.multi_reduction <add>, %360, %cst_199 [0] : vector<4x256xf32> to vector<256xf32>
    %362 = vector.shape_cast %361 : vector<256xf32> to vector<1x256xf32>
    %c253_i32_200 = arith.constant 253 : i32
    %363 = tpu.dynamic_rotate %362 by %c253_i32_200 dim 1 : vector<1x256xf32>, i32 -> vector<1x256xf32>
    %c-3_i32_201 = arith.constant -3 : i32
    %364 = vector.broadcast %c-3_i32_201 : i32 to vector<1x256xi32>
    %365 = arith.cmpi sge, %20, %364 : vector<1x256xi32>
    %c13_i32_202 = arith.constant 13 : i32
    %366 = vector.broadcast %c13_i32_202 : i32 to vector<1x256xi32>
    %367 = arith.cmpi slt, %20, %366 : vector<1x256xi32>
    %368 = arith.andi %365, %367 : vector<1x256xi1>
    %369 = arith.andi %231, %368 : vector<1x256xi1>
    %cst_203 = arith.constant 0.000000e+00 : f32
    %370 = vector.broadcast %cst_203 : f32 to vector<1x256xf32>
    %371 = arith.select %369, %363, %370 : vector<1x256xi1>, vector<1x256xf32>
    %cst_204 = arith.constant 2.500000e-01 : f32
    %372 = vector.broadcast %cst_204 : f32 to vector<1x256xf32>
    %373 = arith.mulf %371, %372 : vector<1x256xf32>
    %c0_205 = arith.constant 0 : index
    %c16 = arith.constant 16 : index
    %c0_206 = arith.constant 0 : index
    %374 = vector.load %arg3[%c0_205, %c16, %c0_206] : memref<1x81x256xf32, #tpu.memory_space<vmem>>, vector<1x1x256xf32>
    %375 = vector.shape_cast %374 : vector<1x1x256xf32> to vector<1x256xf32>
    %376 = vector.shape_cast %373 : vector<1x256xf32> to vector<1x1x256xf32>
    tpu.vector_store %arg3[%c0_205, %c16, %c0_206], %376 {strides = array<i32>} : memref<1x81x256xf32, #tpu.memory_space<vmem>>, vector<1x1x256xf32>,
    %c8_207 = arith.constant 8 : index
    %c0_208 = arith.constant 0 : index
    %c0_209 = arith.constant 0 : index
    %377 = vector.load %arg4[%c8_207, %c0_208, %c0_209] : memref<9x4x256xf32, #tpu.memory_space<vmem>>, vector<1x4x256xf32>
    %378 = vector.shape_cast %377 : vector<1x4x256xf32> to vector<4x256xf32>
    %379 = arith.mulf %378, %226 : vector<4x256xf32>
    %cst_210 = arith.constant dense<0.000000e+00> : vector<256xf32>
    %380 = vector.multi_reduction <add>, %379, %cst_210 [0] : vector<4x256xf32> to vector<256xf32>
    %381 = vector.shape_cast %380 : vector<256xf32> to vector<1x256xf32>
    %c252_i32_211 = arith.constant 252 : i32
    %382 = tpu.dynamic_rotate %381 by %c252_i32_211 dim 1 : vector<1x256xf32>, i32 -> vector<1x256xf32>
    %c-4_i32_212 = arith.constant -4 : i32
    %383 = vector.broadcast %c-4_i32_212 : i32 to vector<1x256xi32>
    %384 = arith.cmpi sge, %20, %383 : vector<1x256xi32>
    %c12_i32_213 = arith.constant 12 : i32
    %385 = vector.broadcast %c12_i32_213 : i32 to vector<1x256xi32>
    %386 = arith.cmpi slt, %20, %385 : vector<1x256xi32>
    %387 = arith.andi %384, %386 : vector<1x256xi1>
    %388 = arith.andi %231, %387 : vector<1x256xi1>
    %cst_214 = arith.constant 0.000000e+00 : f32
    %389 = vector.broadcast %cst_214 : f32 to vector<1x256xf32>
    %390 = arith.select %388, %382, %389 : vector<1x256xi1>, vector<1x256xf32>
    %cst_215 = arith.constant 2.500000e-01 : f32
    %391 = vector.broadcast %cst_215 : f32 to vector<1x256xf32>
    %392 = arith.mulf %390, %391 : vector<1x256xf32>
    %c0_216 = arith.constant 0 : index
    %c17 = arith.constant 17 : index
    %c0_217 = arith.constant 0 : index
    %393 = vector.load %arg3[%c0_216, %c17, %c0_217] : memref<1x81x256xf32, #tpu.memory_space<vmem>>, vector<1x1x256xf32>
    %394 = vector.shape_cast %393 : vector<1x1x256xf32> to vector<1x256xf32>
    %395 = vector.shape_cast %392 : vector<1x256xf32> to vector<1x1x256xf32>
    tpu.vector_store %arg3[%c0_216, %c17, %c0_217], %395 {strides = array<i32>} : memref<1x81x256xf32, #tpu.memory_space<vmem>>, vector<1x1x256xf32>,
    %c32_i32 = arith.constant 32 : i32
    %396 = tpu.dynamic_rotate %3 by %c32_i32 dim 1 : vector<4x256xf32>, i32 -> vector<4x256xf32>
    %c32_i32_218 = arith.constant 32 : i32
    %397 = vector.broadcast %c32_i32_218 : i32 to vector<1x256xi32>
    %398 = arith.cmpi sge, %4, %397 : vector<1x256xi32>
    %c288_i32 = arith.constant 288 : i32
    %399 = vector.broadcast %c288_i32 : i32 to vector<1x256xi32>
    %400 = arith.cmpi slt, %4, %399 : vector<1x256xi32>
    %401 = arith.andi %398, %400 : vector<1x256xi1>
    %c0_219 = arith.constant 0 : index
    %c0_220 = arith.constant 0 : index
    %c0_221 = arith.constant 0 : index
    %402 = vector.load %arg4[%c0_219, %c0_220, %c0_221] : memref<9x4x256xf32, #tpu.memory_space<vmem>>, vector<1x4x256xf32>
    %403 = vector.shape_cast %402 : vector<1x4x256xf32> to vector<4x256xf32>
    %404 = arith.mulf %403, %396 : vector<4x256xf32>
    %cst_222 = arith.constant dense<0.000000e+00> : vector<256xf32>
    %405 = vector.multi_reduction <add>, %404, %cst_222 [0] : vector<4x256xf32> to vector<256xf32>
    %406 = vector.shape_cast %405 : vector<256xf32> to vector<1x256xf32>
    %c4_i32_223 = arith.constant 4 : i32
    %407 = tpu.dynamic_rotate %406 by %c4_i32_223 dim 1 : vector<1x256xf32>, i32 -> vector<1x256xf32>
    %c4_i32_224 = arith.constant 4 : i32
    %408 = vector.broadcast %c4_i32_224 : i32 to vector<1x256xi32>
    %409 = arith.cmpi sge, %20, %408 : vector<1x256xi32>
    %c20_i32_225 = arith.constant 20 : i32
    %410 = vector.broadcast %c20_i32_225 : i32 to vector<1x256xi32>
    %411 = arith.cmpi slt, %20, %410 : vector<1x256xi32>
    %412 = arith.andi %409, %411 : vector<1x256xi1>
    %413 = arith.andi %401, %412 : vector<1x256xi1>
    %cst_226 = arith.constant 0.000000e+00 : f32
    %414 = vector.broadcast %cst_226 : f32 to vector<1x256xf32>
    %415 = arith.select %413, %407, %414 : vector<1x256xi1>, vector<1x256xf32>
    %cst_227 = arith.constant 2.500000e-01 : f32
    %416 = vector.broadcast %cst_227 : f32 to vector<1x256xf32>
    %417 = arith.mulf %415, %416 : vector<1x256xf32>
    %c0_228 = arith.constant 0 : index
    %c18 = arith.constant 18 : index
    %c0_229 = arith.constant 0 : index
    %418 = vector.load %arg3[%c0_228, %c18, %c0_229] : memref<1x81x256xf32, #tpu.memory_space<vmem>>, vector<1x1x256xf32>
    %419 = vector.shape_cast %418 : vector<1x1x256xf32> to vector<1x256xf32>
    %420 = vector.shape_cast %417 : vector<1x256xf32> to vector<1x1x256xf32>
    tpu.vector_store %arg3[%c0_228, %c18, %c0_229], %420 {strides = array<i32>} : memref<1x81x256xf32, #tpu.memory_space<vmem>>, vector<1x1x256xf32>,
    %c1_230 = arith.constant 1 : index
    %c0_231 = arith.constant 0 : index
    %c0_232 = arith.constant 0 : index
    %421 = vector.load %arg4[%c1_230, %c0_231, %c0_232] : memref<9x4x256xf32, #tpu.memory_space<vmem>>, vector<1x4x256xf32>
    %422 = vector.shape_cast %421 : vector<1x4x256xf32> to vector<4x256xf32>
    %423 = arith.mulf %422, %396 : vector<4x256xf32>
    %cst_233 = arith.constant dense<0.000000e+00> : vector<256xf32>
    %424 = vector.multi_reduction <add>, %423, %cst_233 [0] : vector<4x256xf32> to vector<256xf32>
    %425 = vector.shape_cast %424 : vector<256xf32> to vector<1x256xf32>
    %c3_i32_234 = arith.constant 3 : i32
    %426 = tpu.dynamic_rotate %425 by %c3_i32_234 dim 1 : vector<1x256xf32>, i32 -> vector<1x256xf32>
    %c3_i32_235 = arith.constant 3 : i32
    %427 = vector.broadcast %c3_i32_235 : i32 to vector<1x256xi32>
    %428 = arith.cmpi sge, %20, %427 : vector<1x256xi32>
    %c19_i32_236 = arith.constant 19 : i32
    %429 = vector.broadcast %c19_i32_236 : i32 to vector<1x256xi32>
    %430 = arith.cmpi slt, %20, %429 : vector<1x256xi32>
    %431 = arith.andi %428, %430 : vector<1x256xi1>
    %432 = arith.andi %401, %431 : vector<1x256xi1>
    %cst_237 = arith.constant 0.000000e+00 : f32
    %433 = vector.broadcast %cst_237 : f32 to vector<1x256xf32>
    %434 = arith.select %432, %426, %433 : vector<1x256xi1>, vector<1x256xf32>
    %cst_238 = arith.constant 2.500000e-01 : f32
    %435 = vector.broadcast %cst_238 : f32 to vector<1x256xf32>
    %436 = arith.mulf %434, %435 : vector<1x256xf32>
    %c0_239 = arith.constant 0 : index
    %c19 = arith.constant 19 : index
    %c0_240 = arith.constant 0 : index
    %437 = vector.load %arg3[%c0_239, %c19, %c0_240] : memref<1x81x256xf32, #tpu.memory_space<vmem>>, vector<1x1x256xf32>
    %438 = vector.shape_cast %437 : vector<1x1x256xf32> to vector<1x256xf32>
    %439 = vector.shape_cast %436 : vector<1x256xf32> to vector<1x1x256xf32>
    tpu.vector_store %arg3[%c0_239, %c19, %c0_240], %439 {strides = array<i32>} : memref<1x81x256xf32, #tpu.memory_space<vmem>>, vector<1x1x256xf32>,
    %c2_241 = arith.constant 2 : index
    %c0_242 = arith.constant 0 : index
    %c0_243 = arith.constant 0 : index
    %440 = vector.load %arg4[%c2_241, %c0_242, %c0_243] : memref<9x4x256xf32, #tpu.memory_space<vmem>>, vector<1x4x256xf32>
    %441 = vector.shape_cast %440 : vector<1x4x256xf32> to vector<4x256xf32>
    %442 = arith.mulf %441, %396 : vector<4x256xf32>
    %cst_244 = arith.constant dense<0.000000e+00> : vector<256xf32>
    %443 = vector.multi_reduction <add>, %442, %cst_244 [0] : vector<4x256xf32> to vector<256xf32>
    %444 = vector.shape_cast %443 : vector<256xf32> to vector<1x256xf32>
    %c2_i32_245 = arith.constant 2 : i32
    %445 = tpu.dynamic_rotate %444 by %c2_i32_245 dim 1 : vector<1x256xf32>, i32 -> vector<1x256xf32>
    %c2_i32_246 = arith.constant 2 : i32
    %446 = vector.broadcast %c2_i32_246 : i32 to vector<1x256xi32>
    %447 = arith.cmpi sge, %20, %446 : vector<1x256xi32>
    %c18_i32_247 = arith.constant 18 : i32
    %448 = vector.broadcast %c18_i32_247 : i32 to vector<1x256xi32>
    %449 = arith.cmpi slt, %20, %448 : vector<1x256xi32>
    %450 = arith.andi %447, %449 : vector<1x256xi1>
    %451 = arith.andi %401, %450 : vector<1x256xi1>
    %cst_248 = arith.constant 0.000000e+00 : f32
    %452 = vector.broadcast %cst_248 : f32 to vector<1x256xf32>
    %453 = arith.select %451, %445, %452 : vector<1x256xi1>, vector<1x256xf32>
    %cst_249 = arith.constant 2.500000e-01 : f32
    %454 = vector.broadcast %cst_249 : f32 to vector<1x256xf32>
    %455 = arith.mulf %453, %454 : vector<1x256xf32>
    %c0_250 = arith.constant 0 : index
    %c20 = arith.constant 20 : index
    %c0_251 = arith.constant 0 : index
    %456 = vector.load %arg3[%c0_250, %c20, %c0_251] : memref<1x81x256xf32, #tpu.memory_space<vmem>>, vector<1x1x256xf32>
    %457 = vector.shape_cast %456 : vector<1x1x256xf32> to vector<1x256xf32>
    %458 = vector.shape_cast %455 : vector<1x256xf32> to vector<1x1x256xf32>
    tpu.vector_store %arg3[%c0_250, %c20, %c0_251], %458 {strides = array<i32>} : memref<1x81x256xf32, #tpu.memory_space<vmem>>, vector<1x1x256xf32>,
    %c3_252 = arith.constant 3 : index
    %c0_253 = arith.constant 0 : index
    %c0_254 = arith.constant 0 : index
    %459 = vector.load %arg4[%c3_252, %c0_253, %c0_254] : memref<9x4x256xf32, #tpu.memory_space<vmem>>, vector<1x4x256xf32>
    %460 = vector.shape_cast %459 : vector<1x4x256xf32> to vector<4x256xf32>
    %461 = arith.mulf %460, %396 : vector<4x256xf32>
    %cst_255 = arith.constant dense<0.000000e+00> : vector<256xf32>
    %462 = vector.multi_reduction <add>, %461, %cst_255 [0] : vector<4x256xf32> to vector<256xf32>
    %463 = vector.shape_cast %462 : vector<256xf32> to vector<1x256xf32>
    %c1_i32_256 = arith.constant 1 : i32
    %464 = tpu.dynamic_rotate %463 by %c1_i32_256 dim 1 : vector<1x256xf32>, i32 -> vector<1x256xf32>
    %c1_i32_257 = arith.constant 1 : i32
    %465 = vector.broadcast %c1_i32_257 : i32 to vector<1x256xi32>
    %466 = arith.cmpi sge, %20, %465 : vector<1x256xi32>
    %c17_i32_258 = arith.constant 17 : i32
    %467 = vector.broadcast %c17_i32_258 : i32 to vector<1x256xi32>
    %468 = arith.cmpi slt, %20, %467 : vector<1x256xi32>
    %469 = arith.andi %466, %468 : vector<1x256xi1>
    %470 = arith.andi %401, %469 : vector<1x256xi1>
    %cst_259 = arith.constant 0.000000e+00 : f32
    %471 = vector.broadcast %cst_259 : f32 to vector<1x256xf32>
    %472 = arith.select %470, %464, %471 : vector<1x256xi1>, vector<1x256xf32>
    %cst_260 = arith.constant 2.500000e-01 : f32
    %473 = vector.broadcast %cst_260 : f32 to vector<1x256xf32>
    %474 = arith.mulf %472, %473 : vector<1x256xf32>
    %c0_261 = arith.constant 0 : index
    %c21 = arith.constant 21 : index
    %c0_262 = arith.constant 0 : index
    %475 = vector.load %arg3[%c0_261, %c21, %c0_262] : memref<1x81x256xf32, #tpu.memory_space<vmem>>, vector<1x1x256xf32>
    %476 = vector.shape_cast %475 : vector<1x1x256xf32> to vector<1x256xf32>
    %477 = vector.shape_cast %474 : vector<1x256xf32> to vector<1x1x256xf32>
    tpu.vector_store %arg3[%c0_261, %c21, %c0_262], %477 {strides = array<i32>} : memref<1x81x256xf32, #tpu.memory_space<vmem>>, vector<1x1x256xf32>,
    %c4_263 = arith.constant 4 : index
    %c0_264 = arith.constant 0 : index
    %c0_265 = arith.constant 0 : index
    %478 = vector.load %arg4[%c4_263, %c0_264, %c0_265] : memref<9x4x256xf32, #tpu.memory_space<vmem>>, vector<1x4x256xf32>
    %479 = vector.shape_cast %478 : vector<1x4x256xf32> to vector<4x256xf32>
    %480 = arith.mulf %479, %396 : vector<4x256xf32>
    %cst_266 = arith.constant dense<0.000000e+00> : vector<256xf32>
    %481 = vector.multi_reduction <add>, %480, %cst_266 [0] : vector<4x256xf32> to vector<256xf32>
    %482 = vector.shape_cast %481 : vector<256xf32> to vector<1x256xf32>
    %cst_267 = arith.constant 0.000000e+00 : f32
    %483 = vector.broadcast %cst_267 : f32 to vector<1x256xf32>
    %484 = arith.select %401, %482, %483 : vector<1x256xi1>, vector<1x256xf32>
    %cst_268 = arith.constant 2.500000e-01 : f32
    %485 = vector.broadcast %cst_268 : f32 to vector<1x256xf32>
    %486 = arith.mulf %484, %485 : vector<1x256xf32>
    %c0_269 = arith.constant 0 : index
    %c22 = arith.constant 22 : index
    %c0_270 = arith.constant 0 : index
    %487 = vector.load %arg3[%c0_269, %c22, %c0_270] : memref<1x81x256xf32, #tpu.memory_space<vmem>>, vector<1x1x256xf32>
    %488 = vector.shape_cast %487 : vector<1x1x256xf32> to vector<1x256xf32>
    %489 = vector.shape_cast %486 : vector<1x256xf32> to vector<1x1x256xf32>
    tpu.vector_store %arg3[%c0_269, %c22, %c0_270], %489 {strides = array<i32>} : memref<1x81x256xf32, #tpu.memory_space<vmem>>, vector<1x1x256xf32>,
    %c5_271 = arith.constant 5 : index
    %c0_272 = arith.constant 0 : index
    %c0_273 = arith.constant 0 : index
    %490 = vector.load %arg4[%c5_271, %c0_272, %c0_273] : memref<9x4x256xf32, #tpu.memory_space<vmem>>, vector<1x4x256xf32>
    %491 = vector.shape_cast %490 : vector<1x4x256xf32> to vector<4x256xf32>
    %492 = arith.mulf %491, %396 : vector<4x256xf32>
    %cst_274 = arith.constant dense<0.000000e+00> : vector<256xf32>
    %493 = vector.multi_reduction <add>, %492, %cst_274 [0] : vector<4x256xf32> to vector<256xf32>
    %494 = vector.shape_cast %493 : vector<256xf32> to vector<1x256xf32>
    %c255_i32_275 = arith.constant 255 : i32
    %495 = tpu.dynamic_rotate %494 by %c255_i32_275 dim 1 : vector<1x256xf32>, i32 -> vector<1x256xf32>
    %c-1_i32_276 = arith.constant -1 : i32
    %496 = vector.broadcast %c-1_i32_276 : i32 to vector<1x256xi32>
    %497 = arith.cmpi sge, %20, %496 : vector<1x256xi32>
    %c15_i32_277 = arith.constant 15 : i32
    %498 = vector.broadcast %c15_i32_277 : i32 to vector<1x256xi32>
    %499 = arith.cmpi slt, %20, %498 : vector<1x256xi32>
    %500 = arith.andi %497, %499 : vector<1x256xi1>
    %501 = arith.andi %401, %500 : vector<1x256xi1>
    %cst_278 = arith.constant 0.000000e+00 : f32
    %502 = vector.broadcast %cst_278 : f32 to vector<1x256xf32>
    %503 = arith.select %501, %495, %502 : vector<1x256xi1>, vector<1x256xf32>
    %cst_279 = arith.constant 2.500000e-01 : f32
    %504 = vector.broadcast %cst_279 : f32 to vector<1x256xf32>
    %505 = arith.mulf %503, %504 : vector<1x256xf32>
    %c0_280 = arith.constant 0 : index
    %c23 = arith.constant 23 : index
    %c0_281 = arith.constant 0 : index
    %506 = vector.load %arg3[%c0_280, %c23, %c0_281] : memref<1x81x256xf32, #tpu.memory_space<vmem>>, vector<1x1x256xf32>
    %507 = vector.shape_cast %506 : vector<1x1x256xf32> to vector<1x256xf32>
    %508 = vector.shape_cast %505 : vector<1x256xf32> to vector<1x1x256xf32>
    tpu.vector_store %arg3[%c0_280, %c23, %c0_281], %508 {strides = array<i32>} : memref<1x81x256xf32, #tpu.memory_space<vmem>>, vector<1x1x256xf32>,
    %c6_282 = arith.constant 6 : index
    %c0_283 = arith.constant 0 : index
    %c0_284 = arith.constant 0 : index
    %509 = vector.load %arg4[%c6_282, %c0_283, %c0_284] : memref<9x4x256xf32, #tpu.memory_space<vmem>>, vector<1x4x256xf32>
    %510 = vector.shape_cast %509 : vector<1x4x256xf32> to vector<4x256xf32>
    %511 = arith.mulf %510, %396 : vector<4x256xf32>
    %cst_285 = arith.constant dense<0.000000e+00> : vector<256xf32>
    %512 = vector.multi_reduction <add>, %511, %cst_285 [0] : vector<4x256xf32> to vector<256xf32>
    %513 = vector.shape_cast %512 : vector<256xf32> to vector<1x256xf32>
    %c254_i32_286 = arith.constant 254 : i32
    %514 = tpu.dynamic_rotate %513 by %c254_i32_286 dim 1 : vector<1x256xf32>, i32 -> vector<1x256xf32>
    %c-2_i32_287 = arith.constant -2 : i32
    %515 = vector.broadcast %c-2_i32_287 : i32 to vector<1x256xi32>
    %516 = arith.cmpi sge, %20, %515 : vector<1x256xi32>
    %c14_i32_288 = arith.constant 14 : i32
    %517 = vector.broadcast %c14_i32_288 : i32 to vector<1x256xi32>
    %518 = arith.cmpi slt, %20, %517 : vector<1x256xi32>
    %519 = arith.andi %516, %518 : vector<1x256xi1>
    %520 = arith.andi %401, %519 : vector<1x256xi1>
    %cst_289 = arith.constant 0.000000e+00 : f32
    %521 = vector.broadcast %cst_289 : f32 to vector<1x256xf32>
    %522 = arith.select %520, %514, %521 : vector<1x256xi1>, vector<1x256xf32>
    %cst_290 = arith.constant 2.500000e-01 : f32
    %523 = vector.broadcast %cst_290 : f32 to vector<1x256xf32>
    %524 = arith.mulf %522, %523 : vector<1x256xf32>
    %c0_291 = arith.constant 0 : index
    %c24 = arith.constant 24 : index
    %c0_292 = arith.constant 0 : index
    %525 = vector.load %arg3[%c0_291, %c24, %c0_292] : memref<1x81x256xf32, #tpu.memory_space<vmem>>, vector<1x1x256xf32>
    %526 = vector.shape_cast %525 : vector<1x1x256xf32> to vector<1x256xf32>
    %527 = vector.shape_cast %524 : vector<1x256xf32> to vector<1x1x256xf32>
    tpu.vector_store %arg3[%c0_291, %c24, %c0_292], %527 {strides = array<i32>} : memref<1x81x256xf32, #tpu.memory_space<vmem>>, vector<1x1x256xf32>,
    %c7_293 = arith.constant 7 : index
    %c0_294 = arith.constant 0 : index
    %c0_295 = arith.constant 0 : index
    %528 = vector.load %arg4[%c7_293, %c0_294, %c0_295] : memref<9x4x256xf32, #tpu.memory_space<vmem>>, vector<1x4x256xf32>
    %529 = vector.shape_cast %528 : vector<1x4x256xf32> to vector<4x256xf32>
    %530 = arith.mulf %529, %396 : vector<4x256xf32>
    %cst_296 = arith.constant dense<0.000000e+00> : vector<256xf32>
    %531 = vector.multi_reduction <add>, %530, %cst_296 [0] : vector<4x256xf32> to vector<256xf32>
    %532 = vector.shape_cast %531 : vector<256xf32> to vector<1x256xf32>
    %c253_i32_297 = arith.constant 253 : i32
    %533 = tpu.dynamic_rotate %532 by %c253_i32_297 dim 1 : vector<1x256xf32>, i32 -> vector<1x256xf32>
    %c-3_i32_298 = arith.constant -3 : i32
    %534 = vector.broadcast %c-3_i32_298 : i32 to vector<1x256xi32>
    %535 = arith.cmpi sge, %20, %534 : vector<1x256xi32>
    %c13_i32_299 = arith.constant 13 : i32
    %536 = vector.broadcast %c13_i32_299 : i32 to vector<1x256xi32>
    %537 = arith.cmpi slt, %20, %536 : vector<1x256xi32>
    %538 = arith.andi %535, %537 : vector<1x256xi1>
    %539 = arith.andi %401, %538 : vector<1x256xi1>
    %cst_300 = arith.constant 0.000000e+00 : f32
    %540 = vector.broadcast %cst_300 : f32 to vector<1x256xf32>
    %541 = arith.select %539, %533, %540 : vector<1x256xi1>, vector<1x256xf32>
    %cst_301 = arith.constant 2.500000e-01 : f32
    %542 = vector.broadcast %cst_301 : f32 to vector<1x256xf32>
    %543 = arith.mulf %541, %542 : vector<1x256xf32>
    %c0_302 = arith.constant 0 : index
    %c25 = arith.constant 25 : index
    %c0_303 = arith.constant 0 : index
    %544 = vector.load %arg3[%c0_302, %c25, %c0_303] : memref<1x81x256xf32, #tpu.memory_space<vmem>>, vector<1x1x256xf32>
    %545 = vector.shape_cast %544 : vector<1x1x256xf32> to vector<1x256xf32>
    %546 = vector.shape_cast %543 : vector<1x256xf32> to vector<1x1x256xf32>
    tpu.vector_store %arg3[%c0_302, %c25, %c0_303], %546 {strides = array<i32>} : memref<1x81x256xf32, #tpu.memory_space<vmem>>, vector<1x1x256xf32>,
    %c8_304 = arith.constant 8 : index
    %c0_305 = arith.constant 0 : index
    %c0_306 = arith.constant 0 : index
    %547 = vector.load %arg4[%c8_304, %c0_305, %c0_306] : memref<9x4x256xf32, #tpu.memory_space<vmem>>, vector<1x4x256xf32>
    %548 = vector.shape_cast %547 : vector<1x4x256xf32> to vector<4x256xf32>
    %549 = arith.mulf %548, %396 : vector<4x256xf32>
    %cst_307 = arith.constant dense<0.000000e+00> : vector<256xf32>
    %550 = vector.multi_reduction <add>, %549, %cst_307 [0] : vector<4x256xf32> to vector<256xf32>
    %551 = vector.shape_cast %550 : vector<256xf32> to vector<1x256xf32>
    %c252_i32_308 = arith.constant 252 : i32
    %552 = tpu.dynamic_rotate %551 by %c252_i32_308 dim 1 : vector<1x256xf32>, i32 -> vector<1x256xf32>
    %c-4_i32_309 = arith.constant -4 : i32
    %553 = vector.broadcast %c-4_i32_309 : i32 to vector<1x256xi32>
    %554 = arith.cmpi sge, %20, %553 : vector<1x256xi32>
    %c12_i32_310 = arith.constant 12 : i32
    %555 = vector.broadcast %c12_i32_310 : i32 to vector<1x256xi32>
    %556 = arith.cmpi slt, %20, %555 : vector<1x256xi32>
    %557 = arith.andi %554, %556 : vector<1x256xi1>
    %558 = arith.andi %401, %557 : vector<1x256xi1>
    %cst_311 = arith.constant 0.000000e+00 : f32
    %559 = vector.broadcast %cst_311 : f32 to vector<1x256xf32>
    %560 = arith.select %558, %552, %559 : vector<1x256xi1>, vector<1x256xf32>
    %cst_312 = arith.constant 2.500000e-01 : f32
    %561 = vector.broadcast %cst_312 : f32 to vector<1x256xf32>
    %562 = arith.mulf %560, %561 : vector<1x256xf32>
    %c0_313 = arith.constant 0 : index
    %c26 = arith.constant 26 : index
    %c0_314 = arith.constant 0 : index
    %563 = vector.load %arg3[%c0_313, %c26, %c0_314] : memref<1x81x256xf32, #tpu.memory_space<vmem>>, vector<1x1x256xf32>
    %564 = vector.shape_cast %563 : vector<1x1x256xf32> to vector<1x256xf32>
    %565 = vector.shape_cast %562 : vector<1x256xf32> to vector<1x1x256xf32>
    tpu.vector_store %arg3[%c0_313, %c26, %c0_314], %565 {strides = array<i32>} : memref<1x81x256xf32, #tpu.memory_space<vmem>>, vector<1x1x256xf32>,
    %c16_i32_315 = arith.constant 16 : i32
    %566 = tpu.dynamic_rotate %3 by %c16_i32_315 dim 1 : vector<4x256xf32>, i32 -> vector<4x256xf32>
    %c16_i32_316 = arith.constant 16 : i32
    %567 = vector.broadcast %c16_i32_316 : i32 to vector<1x256xi32>
    %568 = arith.cmpi sge, %4, %567 : vector<1x256xi32>
    %c272_i32 = arith.constant 272 : i32
    %569 = vector.broadcast %c272_i32 : i32 to vector<1x256xi32>
    %570 = arith.cmpi slt, %4, %569 : vector<1x256xi32>
    %571 = arith.andi %568, %570 : vector<1x256xi1>
    %c0_317 = arith.constant 0 : index
    %c0_318 = arith.constant 0 : index
    %c0_319 = arith.constant 0 : index
    %572 = vector.load %arg4[%c0_317, %c0_318, %c0_319] : memref<9x4x256xf32, #tpu.memory_space<vmem>>, vector<1x4x256xf32>
    %573 = vector.shape_cast %572 : vector<1x4x256xf32> to vector<4x256xf32>
    %574 = arith.mulf %573, %566 : vector<4x256xf32>
    %cst_320 = arith.constant dense<0.000000e+00> : vector<256xf32>
    %575 = vector.multi_reduction <add>, %574, %cst_320 [0] : vector<4x256xf32> to vector<256xf32>
    %576 = vector.shape_cast %575 : vector<256xf32> to vector<1x256xf32>
    %c4_i32_321 = arith.constant 4 : i32
    %577 = tpu.dynamic_rotate %576 by %c4_i32_321 dim 1 : vector<1x256xf32>, i32 -> vector<1x256xf32>
    %c4_i32_322 = arith.constant 4 : i32
    %578 = vector.broadcast %c4_i32_322 : i32 to vector<1x256xi32>
    %579 = arith.cmpi sge, %20, %578 : vector<1x256xi32>
    %c20_i32_323 = arith.constant 20 : i32
    %580 = vector.broadcast %c20_i32_323 : i32 to vector<1x256xi32>
    %581 = arith.cmpi slt, %20, %580 : vector<1x256xi32>
    %582 = arith.andi %579, %581 : vector<1x256xi1>
    %583 = arith.andi %571, %582 : vector<1x256xi1>
    %cst_324 = arith.constant 0.000000e+00 : f32
    %584 = vector.broadcast %cst_324 : f32 to vector<1x256xf32>
    %585 = arith.select %583, %577, %584 : vector<1x256xi1>, vector<1x256xf32>
    %cst_325 = arith.constant 2.500000e-01 : f32
    %586 = vector.broadcast %cst_325 : f32 to vector<1x256xf32>
    %587 = arith.mulf %585, %586 : vector<1x256xf32>
    %c0_326 = arith.constant 0 : index
    %c27 = arith.constant 27 : index
    %c0_327 = arith.constant 0 : index
    %588 = vector.load %arg3[%c0_326, %c27, %c0_327] : memref<1x81x256xf32, #tpu.memory_space<vmem>>, vector<1x1x256xf32>
    %589 = vector.shape_cast %588 : vector<1x1x256xf32> to vector<1x256xf32>
    %590 = vector.shape_cast %587 : vector<1x256xf32> to vector<1x1x256xf32>
    tpu.vector_store %arg3[%c0_326, %c27, %c0_327], %590 {strides = array<i32>} : memref<1x81x256xf32, #tpu.memory_space<vmem>>, vector<1x1x256xf32>,
    %c1_328 = arith.constant 1 : index
    %c0_329 = arith.constant 0 : index
    %c0_330 = arith.constant 0 : index
    %591 = vector.load %arg4[%c1_328, %c0_329, %c0_330] : memref<9x4x256xf32, #tpu.memory_space<vmem>>, vector<1x4x256xf32>
    %592 = vector.shape_cast %591 : vector<1x4x256xf32> to vector<4x256xf32>
    %593 = arith.mulf %592, %566 : vector<4x256xf32>
    %cst_331 = arith.constant dense<0.000000e+00> : vector<256xf32>
    %594 = vector.multi_reduction <add>, %593, %cst_331 [0] : vector<4x256xf32> to vector<256xf32>
    %595 = vector.shape_cast %594 : vector<256xf32> to vector<1x256xf32>
    %c3_i32_332 = arith.constant 3 : i32
    %596 = tpu.dynamic_rotate %595 by %c3_i32_332 dim 1 : vector<1x256xf32>, i32 -> vector<1x256xf32>
    %c3_i32_333 = arith.constant 3 : i32
    %597 = vector.broadcast %c3_i32_333 : i32 to vector<1x256xi32>
    %598 = arith.cmpi sge, %20, %597 : vector<1x256xi32>
    %c19_i32_334 = arith.constant 19 : i32
    %599 = vector.broadcast %c19_i32_334 : i32 to vector<1x256xi32>
    %600 = arith.cmpi slt, %20, %599 : vector<1x256xi32>
    %601 = arith.andi %598, %600 : vector<1x256xi1>
    %602 = arith.andi %571, %601 : vector<1x256xi1>
    %cst_335 = arith.constant 0.000000e+00 : f32
    %603 = vector.broadcast %cst_335 : f32 to vector<1x256xf32>
    %604 = arith.select %602, %596, %603 : vector<1x256xi1>, vector<1x256xf32>
    %cst_336 = arith.constant 2.500000e-01 : f32
    %605 = vector.broadcast %cst_336 : f32 to vector<1x256xf32>
    %606 = arith.mulf %604, %605 : vector<1x256xf32>
    %c0_337 = arith.constant 0 : index
    %c28 = arith.constant 28 : index
    %c0_338 = arith.constant 0 : index
    %607 = vector.load %arg3[%c0_337, %c28, %c0_338] : memref<1x81x256xf32, #tpu.memory_space<vmem>>, vector<1x1x256xf32>
    %608 = vector.shape_cast %607 : vector<1x1x256xf32> to vector<1x256xf32>
    %609 = vector.shape_cast %606 : vector<1x256xf32> to vector<1x1x256xf32>
    tpu.vector_store %arg3[%c0_337, %c28, %c0_338], %609 {strides = array<i32>} : memref<1x81x256xf32, #tpu.memory_space<vmem>>, vector<1x1x256xf32>,
    %c2_339 = arith.constant 2 : index
    %c0_340 = arith.constant 0 : index
    %c0_341 = arith.constant 0 : index
    %610 = vector.load %arg4[%c2_339, %c0_340, %c0_341] : memref<9x4x256xf32, #tpu.memory_space<vmem>>, vector<1x4x256xf32>
    %611 = vector.shape_cast %610 : vector<1x4x256xf32> to vector<4x256xf32>
    %612 = arith.mulf %611, %566 : vector<4x256xf32>
    %cst_342 = arith.constant dense<0.000000e+00> : vector<256xf32>
    %613 = vector.multi_reduction <add>, %612, %cst_342 [0] : vector<4x256xf32> to vector<256xf32>
    %614 = vector.shape_cast %613 : vector<256xf32> to vector<1x256xf32>
    %c2_i32_343 = arith.constant 2 : i32
    %615 = tpu.dynamic_rotate %614 by %c2_i32_343 dim 1 : vector<1x256xf32>, i32 -> vector<1x256xf32>
    %c2_i32_344 = arith.constant 2 : i32
    %616 = vector.broadcast %c2_i32_344 : i32 to vector<1x256xi32>
    %617 = arith.cmpi sge, %20, %616 : vector<1x256xi32>
    %c18_i32_345 = arith.constant 18 : i32
    %618 = vector.broadcast %c18_i32_345 : i32 to vector<1x256xi32>
    %619 = arith.cmpi slt, %20, %618 : vector<1x256xi32>
    %620 = arith.andi %617, %619 : vector<1x256xi1>
    %621 = arith.andi %571, %620 : vector<1x256xi1>
    %cst_346 = arith.constant 0.000000e+00 : f32
    %622 = vector.broadcast %cst_346 : f32 to vector<1x256xf32>
    %623 = arith.select %621, %615, %622 : vector<1x256xi1>, vector<1x256xf32>
    %cst_347 = arith.constant 2.500000e-01 : f32
    %624 = vector.broadcast %cst_347 : f32 to vector<1x256xf32>
    %625 = arith.mulf %623, %624 : vector<1x256xf32>
    %c0_348 = arith.constant 0 : index
    %c29 = arith.constant 29 : index
    %c0_349 = arith.constant 0 : index
    %626 = vector.load %arg3[%c0_348, %c29, %c0_349] : memref<1x81x256xf32, #tpu.memory_space<vmem>>, vector<1x1x256xf32>
    %627 = vector.shape_cast %626 : vector<1x1x256xf32> to vector<1x256xf32>
    %628 = vector.shape_cast %625 : vector<1x256xf32> to vector<1x1x256xf32>
    tpu.vector_store %arg3[%c0_348, %c29, %c0_349], %628 {strides = array<i32>} : memref<1x81x256xf32, #tpu.memory_space<vmem>>, vector<1x1x256xf32>,
    %c3_350 = arith.constant 3 : index
    %c0_351 = arith.constant 0 : index
    %c0_352 = arith.constant 0 : index
    %629 = vector.load %arg4[%c3_350, %c0_351, %c0_352] : memref<9x4x256xf32, #tpu.memory_space<vmem>>, vector<1x4x256xf32>
    %630 = vector.shape_cast %629 : vector<1x4x256xf32> to vector<4x256xf32>
    %631 = arith.mulf %630, %566 : vector<4x256xf32>
    %cst_353 = arith.constant dense<0.000000e+00> : vector<256xf32>
    %632 = vector.multi_reduction <add>, %631, %cst_353 [0] : vector<4x256xf32> to vector<256xf32>
    %633 = vector.shape_cast %632 : vector<256xf32> to vector<1x256xf32>
    %c1_i32_354 = arith.constant 1 : i32
    %634 = tpu.dynamic_rotate %633 by %c1_i32_354 dim 1 : vector<1x256xf32>, i32 -> vector<1x256xf32>
    %c1_i32_355 = arith.constant 1 : i32
    %635 = vector.broadcast %c1_i32_355 : i32 to vector<1x256xi32>
    %636 = arith.cmpi sge, %20, %635 : vector<1x256xi32>
    %c17_i32_356 = arith.constant 17 : i32
    %637 = vector.broadcast %c17_i32_356 : i32 to vector<1x256xi32>
    %638 = arith.cmpi slt, %20, %637 : vector<1x256xi32>
    %639 = arith.andi %636, %638 : vector<1x256xi1>
    %640 = arith.andi %571, %639 : vector<1x256xi1>
    %cst_357 = arith.constant 0.000000e+00 : f32
    %641 = vector.broadcast %cst_357 : f32 to vector<1x256xf32>
    %642 = arith.select %640, %634, %641 : vector<1x256xi1>, vector<1x256xf32>
    %cst_358 = arith.constant 2.500000e-01 : f32
    %643 = vector.broadcast %cst_358 : f32 to vector<1x256xf32>
    %644 = arith.mulf %642, %643 : vector<1x256xf32>
    %c0_359 = arith.constant 0 : index
    %c30 = arith.constant 30 : index
    %c0_360 = arith.constant 0 : index
    %645 = vector.load %arg3[%c0_359, %c30, %c0_360] : memref<1x81x256xf32, #tpu.memory_space<vmem>>, vector<1x1x256xf32>
    %646 = vector.shape_cast %645 : vector<1x1x256xf32> to vector<1x256xf32>
    %647 = vector.shape_cast %644 : vector<1x256xf32> to vector<1x1x256xf32>
    tpu.vector_store %arg3[%c0_359, %c30, %c0_360], %647 {strides = array<i32>} : memref<1x81x256xf32, #tpu.memory_space<vmem>>, vector<1x1x256xf32>,
    %c4_361 = arith.constant 4 : index
    %c0_362 = arith.constant 0 : index
    %c0_363 = arith.constant 0 : index
    %648 = vector.load %arg4[%c4_361, %c0_362, %c0_363] : memref<9x4x256xf32, #tpu.memory_space<vmem>>, vector<1x4x256xf32>
    %649 = vector.shape_cast %648 : vector<1x4x256xf32> to vector<4x256xf32>
    %650 = arith.mulf %649, %566 : vector<4x256xf32>
    %cst_364 = arith.constant dense<0.000000e+00> : vector<256xf32>
    %651 = vector.multi_reduction <add>, %650, %cst_364 [0] : vector<4x256xf32> to vector<256xf32>
    %652 = vector.shape_cast %651 : vector<256xf32> to vector<1x256xf32>
    %cst_365 = arith.constant 0.000000e+00 : f32
    %653 = vector.broadcast %cst_365 : f32 to vector<1x256xf32>
    %654 = arith.select %571, %652, %653 : vector<1x256xi1>, vector<1x256xf32>
    %cst_366 = arith.constant 2.500000e-01 : f32
    %655 = vector.broadcast %cst_366 : f32 to vector<1x256xf32>
    %656 = arith.mulf %654, %655 : vector<1x256xf32>
    %c0_367 = arith.constant 0 : index
    %c31 = arith.constant 31 : index
    %c0_368 = arith.constant 0 : index
    %657 = vector.load %arg3[%c0_367, %c31, %c0_368] : memref<1x81x256xf32, #tpu.memory_space<vmem>>, vector<1x1x256xf32>
    %658 = vector.shape_cast %657 : vector<1x1x256xf32> to vector<1x256xf32>
    %659 = vector.shape_cast %656 : vector<1x256xf32> to vector<1x1x256xf32>
    tpu.vector_store %arg3[%c0_367, %c31, %c0_368], %659 {strides = array<i32>} : memref<1x81x256xf32, #tpu.memory_space<vmem>>, vector<1x1x256xf32>,
    %c5_369 = arith.constant 5 : index
    %c0_370 = arith.constant 0 : index
    %c0_371 = arith.constant 0 : index
    %660 = vector.load %arg4[%c5_369, %c0_370, %c0_371] : memref<9x4x256xf32, #tpu.memory_space<vmem>>, vector<1x4x256xf32>
    %661 = vector.shape_cast %660 : vector<1x4x256xf32> to vector<4x256xf32>
    %662 = arith.mulf %661, %566 : vector<4x256xf32>
    %cst_372 = arith.constant dense<0.000000e+00> : vector<256xf32>
    %663 = vector.multi_reduction <add>, %662, %cst_372 [0] : vector<4x256xf32> to vector<256xf32>
    %664 = vector.shape_cast %663 : vector<256xf32> to vector<1x256xf32>
    %c255_i32_373 = arith.constant 255 : i32
    %665 = tpu.dynamic_rotate %664 by %c255_i32_373 dim 1 : vector<1x256xf32>, i32 -> vector<1x256xf32>
    %c-1_i32_374 = arith.constant -1 : i32
    %666 = vector.broadcast %c-1_i32_374 : i32 to vector<1x256xi32>
    %667 = arith.cmpi sge, %20, %666 : vector<1x256xi32>
    %c15_i32_375 = arith.constant 15 : i32
    %668 = vector.broadcast %c15_i32_375 : i32 to vector<1x256xi32>
    %669 = arith.cmpi slt, %20, %668 : vector<1x256xi32>
    %670 = arith.andi %667, %669 : vector<1x256xi1>
    %671 = arith.andi %571, %670 : vector<1x256xi1>
    %cst_376 = arith.constant 0.000000e+00 : f32
    %672 = vector.broadcast %cst_376 : f32 to vector<1x256xf32>
    %673 = arith.select %671, %665, %672 : vector<1x256xi1>, vector<1x256xf32>
    %cst_377 = arith.constant 2.500000e-01 : f32
    %674 = vector.broadcast %cst_377 : f32 to vector<1x256xf32>
    %675 = arith.mulf %673, %674 : vector<1x256xf32>
    %c0_378 = arith.constant 0 : index
    %c32 = arith.constant 32 : index
    %c0_379 = arith.constant 0 : index
    %676 = vector.load %arg3[%c0_378, %c32, %c0_379] : memref<1x81x256xf32, #tpu.memory_space<vmem>>, vector<1x1x256xf32>
    %677 = vector.shape_cast %676 : vector<1x1x256xf32> to vector<1x256xf32>
    %678 = vector.shape_cast %675 : vector<1x256xf32> to vector<1x1x256xf32>
    tpu.vector_store %arg3[%c0_378, %c32, %c0_379], %678 {strides = array<i32>} : memref<1x81x256xf32, #tpu.memory_space<vmem>>, vector<1x1x256xf32>,
    %c6_380 = arith.constant 6 : index
    %c0_381 = arith.constant 0 : index
    %c0_382 = arith.constant 0 : index
    %679 = vector.load %arg4[%c6_380, %c0_381, %c0_382] : memref<9x4x256xf32, #tpu.memory_space<vmem>>, vector<1x4x256xf32>
    %680 = vector.shape_cast %679 : vector<1x4x256xf32> to vector<4x256xf32>
    %681 = arith.mulf %680, %566 : vector<4x256xf32>
    %cst_383 = arith.constant dense<0.000000e+00> : vector<256xf32>
    %682 = vector.multi_reduction <add>, %681, %cst_383 [0] : vector<4x256xf32> to vector<256xf32>
    %683 = vector.shape_cast %682 : vector<256xf32> to vector<1x256xf32>
    %c254_i32_384 = arith.constant 254 : i32
    %684 = tpu.dynamic_rotate %683 by %c254_i32_384 dim 1 : vector<1x256xf32>, i32 -> vector<1x256xf32>
    %c-2_i32_385 = arith.constant -2 : i32
    %685 = vector.broadcast %c-2_i32_385 : i32 to vector<1x256xi32>
    %686 = arith.cmpi sge, %20, %685 : vector<1x256xi32>
    %c14_i32_386 = arith.constant 14 : i32
    %687 = vector.broadcast %c14_i32_386 : i32 to vector<1x256xi32>
    %688 = arith.cmpi slt, %20, %687 : vector<1x256xi32>
    %689 = arith.andi %686, %688 : vector<1x256xi1>
    %690 = arith.andi %571, %689 : vector<1x256xi1>
    %cst_387 = arith.constant 0.000000e+00 : f32
    %691 = vector.broadcast %cst_387 : f32 to vector<1x256xf32>
    %692 = arith.select %690, %684, %691 : vector<1x256xi1>, vector<1x256xf32>
    %cst_388 = arith.constant 2.500000e-01 : f32
    %693 = vector.broadcast %cst_388 : f32 to vector<1x256xf32>
    %694 = arith.mulf %692, %693 : vector<1x256xf32>
    %c0_389 = arith.constant 0 : index
    %c33 = arith.constant 33 : index
    %c0_390 = arith.constant 0 : index
    %695 = vector.load %arg3[%c0_389, %c33, %c0_390] : memref<1x81x256xf32, #tpu.memory_space<vmem>>, vector<1x1x256xf32>
    %696 = vector.shape_cast %695 : vector<1x1x256xf32> to vector<1x256xf32>
    %697 = vector.shape_cast %694 : vector<1x256xf32> to vector<1x1x256xf32>
    tpu.vector_store %arg3[%c0_389, %c33, %c0_390], %697 {strides = array<i32>} : memref<1x81x256xf32, #tpu.memory_space<vmem>>, vector<1x1x256xf32>,
    %c7_391 = arith.constant 7 : index
    %c0_392 = arith.constant 0 : index
    %c0_393 = arith.constant 0 : index
    %698 = vector.load %arg4[%c7_391, %c0_392, %c0_393] : memref<9x4x256xf32, #tpu.memory_space<vmem>>, vector<1x4x256xf32>
    %699 = vector.shape_cast %698 : vector<1x4x256xf32> to vector<4x256xf32>
    %700 = arith.mulf %699, %566 : vector<4x256xf32>
    %cst_394 = arith.constant dense<0.000000e+00> : vector<256xf32>
    %701 = vector.multi_reduction <add>, %700, %cst_394 [0] : vector<4x256xf32> to vector<256xf32>
    %702 = vector.shape_cast %701 : vector<256xf32> to vector<1x256xf32>
    %c253_i32_395 = arith.constant 253 : i32
    %703 = tpu.dynamic_rotate %702 by %c253_i32_395 dim 1 : vector<1x256xf32>, i32 -> vector<1x256xf32>
    %c-3_i32_396 = arith.constant -3 : i32
    %704 = vector.broadcast %c-3_i32_396 : i32 to vector<1x256xi32>
    %705 = arith.cmpi sge, %20, %704 : vector<1x256xi32>
    %c13_i32_397 = arith.constant 13 : i32
    %706 = vector.broadcast %c13_i32_397 : i32 to vector<1x256xi32>
    %707 = arith.cmpi slt, %20, %706 : vector<1x256xi32>
    %708 = arith.andi %705, %707 : vector<1x256xi1>
    %709 = arith.andi %571, %708 : vector<1x256xi1>
    %cst_398 = arith.constant 0.000000e+00 : f32
    %710 = vector.broadcast %cst_398 : f32 to vector<1x256xf32>
    %711 = arith.select %709, %703, %710 : vector<1x256xi1>, vector<1x256xf32>
    %cst_399 = arith.constant 2.500000e-01 : f32
    %712 = vector.broadcast %cst_399 : f32 to vector<1x256xf32>
    %713 = arith.mulf %711, %712 : vector<1x256xf32>
    %c0_400 = arith.constant 0 : index
    %c34 = arith.constant 34 : index
    %c0_401 = arith.constant 0 : index
    %714 = vector.load %arg3[%c0_400, %c34, %c0_401] : memref<1x81x256xf32, #tpu.memory_space<vmem>>, vector<1x1x256xf32>
    %715 = vector.shape_cast %714 : vector<1x1x256xf32> to vector<1x256xf32>
    %716 = vector.shape_cast %713 : vector<1x256xf32> to vector<1x1x256xf32>
    tpu.vector_store %arg3[%c0_400, %c34, %c0_401], %716 {strides = array<i32>} : memref<1x81x256xf32, #tpu.memory_space<vmem>>, vector<1x1x256xf32>,
    %c8_402 = arith.constant 8 : index
    %c0_403 = arith.constant 0 : index
    %c0_404 = arith.constant 0 : index
    %717 = vector.load %arg4[%c8_402, %c0_403, %c0_404] : memref<9x4x256xf32, #tpu.memory_space<vmem>>, vector<1x4x256xf32>
    %718 = vector.shape_cast %717 : vector<1x4x256xf32> to vector<4x256xf32>
    %719 = arith.mulf %718, %566 : vector<4x256xf32>
    %cst_405 = arith.constant dense<0.000000e+00> : vector<256xf32>
    %720 = vector.multi_reduction <add>, %719, %cst_405 [0] : vector<4x256xf32> to vector<256xf32>
    %721 = vector.shape_cast %720 : vector<256xf32> to vector<1x256xf32>
    %c252_i32_406 = arith.constant 252 : i32
    %722 = tpu.dynamic_rotate %721 by %c252_i32_406 dim 1 : vector<1x256xf32>, i32 -> vector<1x256xf32>
    %c-4_i32_407 = arith.constant -4 : i32
    %723 = vector.broadcast %c-4_i32_407 : i32 to vector<1x256xi32>
    %724 = arith.cmpi sge, %20, %723 : vector<1x256xi32>
    %c12_i32_408 = arith.constant 12 : i32
    %725 = vector.broadcast %c12_i32_408 : i32 to vector<1x256xi32>
    %726 = arith.cmpi slt, %20, %725 : vector<1x256xi32>
    %727 = arith.andi %724, %726 : vector<1x256xi1>
    %728 = arith.andi %571, %727 : vector<1x256xi1>
    %cst_409 = arith.constant 0.000000e+00 : f32
    %729 = vector.broadcast %cst_409 : f32 to vector<1x256xf32>
    %730 = arith.select %728, %722, %729 : vector<1x256xi1>, vector<1x256xf32>
    %cst_410 = arith.constant 2.500000e-01 : f32
    %731 = vector.broadcast %cst_410 : f32 to vector<1x256xf32>
    %732 = arith.mulf %730, %731 : vector<1x256xf32>
    %c0_411 = arith.constant 0 : index
    %c35 = arith.constant 35 : index
    %c0_412 = arith.constant 0 : index
    %733 = vector.load %arg3[%c0_411, %c35, %c0_412] : memref<1x81x256xf32, #tpu.memory_space<vmem>>, vector<1x1x256xf32>
    %734 = vector.shape_cast %733 : vector<1x1x256xf32> to vector<1x256xf32>
    %735 = vector.shape_cast %732 : vector<1x256xf32> to vector<1x1x256xf32>
    tpu.vector_store %arg3[%c0_411, %c35, %c0_412], %735 {strides = array<i32>} : memref<1x81x256xf32, #tpu.memory_space<vmem>>, vector<1x1x256xf32>,
    %c0_413 = arith.constant 0 : index
    %c0_414 = arith.constant 0 : index
    %c0_415 = arith.constant 0 : index
    %736 = vector.load %arg4[%c0_413, %c0_414, %c0_415] : memref<9x4x256xf32, #tpu.memory_space<vmem>>, vector<1x4x256xf32>
    %737 = vector.shape_cast %736 : vector<1x4x256xf32> to vector<4x256xf32>
    %738 = arith.mulf %737, %3 : vector<4x256xf32>
    %cst_416 = arith.constant dense<0.000000e+00> : vector<256xf32>
    %739 = vector.multi_reduction <add>, %738, %cst_416 [0] : vector<4x256xf32> to vector<256xf32>
    %740 = vector.shape_cast %739 : vector<256xf32> to vector<1x256xf32>
    %c4_i32_417 = arith.constant 4 : i32
    %741 = tpu.dynamic_rotate %740 by %c4_i32_417 dim 1 : vector<1x256xf32>, i32 -> vector<1x256xf32>
    %c4_i32_418 = arith.constant 4 : i32
    %742 = vector.broadcast %c4_i32_418 : i32 to vector<1x256xi32>
    %743 = arith.cmpi sge, %20, %742 : vector<1x256xi32>
    %c20_i32_419 = arith.constant 20 : i32
    %744 = vector.broadcast %c20_i32_419 : i32 to vector<1x256xi32>
    %745 = arith.cmpi slt, %20, %744 : vector<1x256xi32>
    %746 = arith.andi %743, %745 : vector<1x256xi1>
    %cst_420 = arith.constant 0.000000e+00 : f32
    %747 = vector.broadcast %cst_420 : f32 to vector<1x256xf32>
    %748 = arith.select %746, %741, %747 : vector<1x256xi1>, vector<1x256xf32>
    %cst_421 = arith.constant 2.500000e-01 : f32
    %749 = vector.broadcast %cst_421 : f32 to vector<1x256xf32>
    %750 = arith.mulf %748, %749 : vector<1x256xf32>
    %c0_422 = arith.constant 0 : index
    %c36 = arith.constant 36 : index
    %c0_423 = arith.constant 0 : index
    %751 = vector.load %arg3[%c0_422, %c36, %c0_423] : memref<1x81x256xf32, #tpu.memory_space<vmem>>, vector<1x1x256xf32>
    %752 = vector.shape_cast %751 : vector<1x1x256xf32> to vector<1x256xf32>
    %753 = vector.shape_cast %750 : vector<1x256xf32> to vector<1x1x256xf32>
    tpu.vector_store %arg3[%c0_422, %c36, %c0_423], %753 {strides = array<i32>} : memref<1x81x256xf32, #tpu.memory_space<vmem>>, vector<1x1x256xf32>,
    %c1_424 = arith.constant 1 : index
    %c0_425 = arith.constant 0 : index
    %c0_426 = arith.constant 0 : index
    %754 = vector.load %arg4[%c1_424, %c0_425, %c0_426] : memref<9x4x256xf32, #tpu.memory_space<vmem>>, vector<1x4x256xf32>
    %755 = vector.shape_cast %754 : vector<1x4x256xf32> to vector<4x256xf32>
    %756 = arith.mulf %755, %3 : vector<4x256xf32>
    %cst_427 = arith.constant dense<0.000000e+00> : vector<256xf32>
    %757 = vector.multi_reduction <add>, %756, %cst_427 [0] : vector<4x256xf32> to vector<256xf32>
    %758 = vector.shape_cast %757 : vector<256xf32> to vector<1x256xf32>
    %c3_i32_428 = arith.constant 3 : i32
    %759 = tpu.dynamic_rotate %758 by %c3_i32_428 dim 1 : vector<1x256xf32>, i32 -> vector<1x256xf32>
    %c3_i32_429 = arith.constant 3 : i32
    %760 = vector.broadcast %c3_i32_429 : i32 to vector<1x256xi32>
    %761 = arith.cmpi sge, %20, %760 : vector<1x256xi32>
    %c19_i32_430 = arith.constant 19 : i32
    %762 = vector.broadcast %c19_i32_430 : i32 to vector<1x256xi32>
    %763 = arith.cmpi slt, %20, %762 : vector<1x256xi32>
    %764 = arith.andi %761, %763 : vector<1x256xi1>
    %cst_431 = arith.constant 0.000000e+00 : f32
    %765 = vector.broadcast %cst_431 : f32 to vector<1x256xf32>
    %766 = arith.select %764, %759, %765 : vector<1x256xi1>, vector<1x256xf32>
    %cst_432 = arith.constant 2.500000e-01 : f32
    %767 = vector.broadcast %cst_432 : f32 to vector<1x256xf32>
    %768 = arith.mulf %766, %767 : vector<1x256xf32>
    %c0_433 = arith.constant 0 : index
    %c37 = arith.constant 37 : index
    %c0_434 = arith.constant 0 : index
    %769 = vector.load %arg3[%c0_433, %c37, %c0_434] : memref<1x81x256xf32, #tpu.memory_space<vmem>>, vector<1x1x256xf32>
    %770 = vector.shape_cast %769 : vector<1x1x256xf32> to vector<1x256xf32>
    %771 = vector.shape_cast %768 : vector<1x256xf32> to vector<1x1x256xf32>
    tpu.vector_store %arg3[%c0_433, %c37, %c0_434], %771 {strides = array<i32>} : memref<1x81x256xf32, #tpu.memory_space<vmem>>, vector<1x1x256xf32>,
    %c2_435 = arith.constant 2 : index
    %c0_436 = arith.constant 0 : index
    %c0_437 = arith.constant 0 : index
    %772 = vector.load %arg4[%c2_435, %c0_436, %c0_437] : memref<9x4x256xf32, #tpu.memory_space<vmem>>, vector<1x4x256xf32>
    %773 = vector.shape_cast %772 : vector<1x4x256xf32> to vector<4x256xf32>
    %774 = arith.mulf %773, %3 : vector<4x256xf32>
    %cst_438 = arith.constant dense<0.000000e+00> : vector<256xf32>
    %775 = vector.multi_reduction <add>, %774, %cst_438 [0] : vector<4x256xf32> to vector<256xf32>
    %776 = vector.shape_cast %775 : vector<256xf32> to vector<1x256xf32>
    %c2_i32_439 = arith.constant 2 : i32
    %777 = tpu.dynamic_rotate %776 by %c2_i32_439 dim 1 : vector<1x256xf32>, i32 -> vector<1x256xf32>
    %c2_i32_440 = arith.constant 2 : i32
    %778 = vector.broadcast %c2_i32_440 : i32 to vector<1x256xi32>
    %779 = arith.cmpi sge, %20, %778 : vector<1x256xi32>
    %c18_i32_441 = arith.constant 18 : i32
    %780 = vector.broadcast %c18_i32_441 : i32 to vector<1x256xi32>
    %781 = arith.cmpi slt, %20, %780 : vector<1x256xi32>
    %782 = arith.andi %779, %781 : vector<1x256xi1>
    %cst_442 = arith.constant 0.000000e+00 : f32
    %783 = vector.broadcast %cst_442 : f32 to vector<1x256xf32>
    %784 = arith.select %782, %777, %783 : vector<1x256xi1>, vector<1x256xf32>
    %cst_443 = arith.constant 2.500000e-01 : f32
    %785 = vector.broadcast %cst_443 : f32 to vector<1x256xf32>
    %786 = arith.mulf %784, %785 : vector<1x256xf32>
    %c0_444 = arith.constant 0 : index
    %c38 = arith.constant 38 : index
    %c0_445 = arith.constant 0 : index
    %787 = vector.load %arg3[%c0_444, %c38, %c0_445] : memref<1x81x256xf32, #tpu.memory_space<vmem>>, vector<1x1x256xf32>
    %788 = vector.shape_cast %787 : vector<1x1x256xf32> to vector<1x256xf32>
    %789 = vector.shape_cast %786 : vector<1x256xf32> to vector<1x1x256xf32>
    tpu.vector_store %arg3[%c0_444, %c38, %c0_445], %789 {strides = array<i32>} : memref<1x81x256xf32, #tpu.memory_space<vmem>>, vector<1x1x256xf32>,
    %c3_446 = arith.constant 3 : index
    %c0_447 = arith.constant 0 : index
    %c0_448 = arith.constant 0 : index
    %790 = vector.load %arg4[%c3_446, %c0_447, %c0_448] : memref<9x4x256xf32, #tpu.memory_space<vmem>>, vector<1x4x256xf32>
    %791 = vector.shape_cast %790 : vector<1x4x256xf32> to vector<4x256xf32>
    %792 = arith.mulf %791, %3 : vector<4x256xf32>
    %cst_449 = arith.constant dense<0.000000e+00> : vector<256xf32>
    %793 = vector.multi_reduction <add>, %792, %cst_449 [0] : vector<4x256xf32> to vector<256xf32>
    %794 = vector.shape_cast %793 : vector<256xf32> to vector<1x256xf32>
    %c1_i32_450 = arith.constant 1 : i32
    %795 = tpu.dynamic_rotate %794 by %c1_i32_450 dim 1 : vector<1x256xf32>, i32 -> vector<1x256xf32>
    %c1_i32_451 = arith.constant 1 : i32
    %796 = vector.broadcast %c1_i32_451 : i32 to vector<1x256xi32>
    %797 = arith.cmpi sge, %20, %796 : vector<1x256xi32>
    %c17_i32_452 = arith.constant 17 : i32
    %798 = vector.broadcast %c17_i32_452 : i32 to vector<1x256xi32>
    %799 = arith.cmpi slt, %20, %798 : vector<1x256xi32>
    %800 = arith.andi %797, %799 : vector<1x256xi1>
    %cst_453 = arith.constant 0.000000e+00 : f32
    %801 = vector.broadcast %cst_453 : f32 to vector<1x256xf32>
    %802 = arith.select %800, %795, %801 : vector<1x256xi1>, vector<1x256xf32>
    %cst_454 = arith.constant 2.500000e-01 : f32
    %803 = vector.broadcast %cst_454 : f32 to vector<1x256xf32>
    %804 = arith.mulf %802, %803 : vector<1x256xf32>
    %c0_455 = arith.constant 0 : index
    %c39 = arith.constant 39 : index
    %c0_456 = arith.constant 0 : index
    %805 = vector.load %arg3[%c0_455, %c39, %c0_456] : memref<1x81x256xf32, #tpu.memory_space<vmem>>, vector<1x1x256xf32>
    %806 = vector.shape_cast %805 : vector<1x1x256xf32> to vector<1x256xf32>
    %807 = vector.shape_cast %804 : vector<1x256xf32> to vector<1x1x256xf32>
    tpu.vector_store %arg3[%c0_455, %c39, %c0_456], %807 {strides = array<i32>} : memref<1x81x256xf32, #tpu.memory_space<vmem>>, vector<1x1x256xf32>,
    %c4_457 = arith.constant 4 : index
    %c0_458 = arith.constant 0 : index
    %c0_459 = arith.constant 0 : index
    %808 = vector.load %arg4[%c4_457, %c0_458, %c0_459] : memref<9x4x256xf32, #tpu.memory_space<vmem>>, vector<1x4x256xf32>
    %809 = vector.shape_cast %808 : vector<1x4x256xf32> to vector<4x256xf32>
    %810 = arith.mulf %809, %3 : vector<4x256xf32>
    %cst_460 = arith.constant dense<0.000000e+00> : vector<256xf32>
    %811 = vector.multi_reduction <add>, %810, %cst_460 [0] : vector<4x256xf32> to vector<256xf32>
    %812 = vector.shape_cast %811 : vector<256xf32> to vector<1x256xf32>
    %cst_461 = arith.constant 2.500000e-01 : f32
    %813 = vector.broadcast %cst_461 : f32 to vector<1x256xf32>
    %814 = arith.mulf %812, %813 : vector<1x256xf32>
    %c0_462 = arith.constant 0 : index
    %c40 = arith.constant 40 : index
    %c0_463 = arith.constant 0 : index
    %815 = vector.load %arg3[%c0_462, %c40, %c0_463] : memref<1x81x256xf32, #tpu.memory_space<vmem>>, vector<1x1x256xf32>
    %816 = vector.shape_cast %815 : vector<1x1x256xf32> to vector<1x256xf32>
    %817 = vector.shape_cast %814 : vector<1x256xf32> to vector<1x1x256xf32>
    tpu.vector_store %arg3[%c0_462, %c40, %c0_463], %817 {strides = array<i32>} : memref<1x81x256xf32, #tpu.memory_space<vmem>>, vector<1x1x256xf32>,
    %c5_464 = arith.constant 5 : index
    %c0_465 = arith.constant 0 : index
    %c0_466 = arith.constant 0 : index
    %818 = vector.load %arg4[%c5_464, %c0_465, %c0_466] : memref<9x4x256xf32, #tpu.memory_space<vmem>>, vector<1x4x256xf32>
    %819 = vector.shape_cast %818 : vector<1x4x256xf32> to vector<4x256xf32>
    %820 = arith.mulf %819, %3 : vector<4x256xf32>
    %cst_467 = arith.constant dense<0.000000e+00> : vector<256xf32>
    %821 = vector.multi_reduction <add>, %820, %cst_467 [0] : vector<4x256xf32> to vector<256xf32>
    %822 = vector.shape_cast %821 : vector<256xf32> to vector<1x256xf32>
    %c255_i32_468 = arith.constant 255 : i32
    %823 = tpu.dynamic_rotate %822 by %c255_i32_468 dim 1 : vector<1x256xf32>, i32 -> vector<1x256xf32>
    %c-1_i32_469 = arith.constant -1 : i32
    %824 = vector.broadcast %c-1_i32_469 : i32 to vector<1x256xi32>
    %825 = arith.cmpi sge, %20, %824 : vector<1x256xi32>
    %c15_i32_470 = arith.constant 15 : i32
    %826 = vector.broadcast %c15_i32_470 : i32 to vector<1x256xi32>
    %827 = arith.cmpi slt, %20, %826 : vector<1x256xi32>
    %828 = arith.andi %825, %827 : vector<1x256xi1>
    %cst_471 = arith.constant 0.000000e+00 : f32
    %829 = vector.broadcast %cst_471 : f32 to vector<1x256xf32>
    %830 = arith.select %828, %823, %829 : vector<1x256xi1>, vector<1x256xf32>
    %cst_472 = arith.constant 2.500000e-01 : f32
    %831 = vector.broadcast %cst_472 : f32 to vector<1x256xf32>
    %832 = arith.mulf %830, %831 : vector<1x256xf32>
    %c0_473 = arith.constant 0 : index
    %c41 = arith.constant 41 : index
    %c0_474 = arith.constant 0 : index
    %833 = vector.load %arg3[%c0_473, %c41, %c0_474] : memref<1x81x256xf32, #tpu.memory_space<vmem>>, vector<1x1x256xf32>
    %834 = vector.shape_cast %833 : vector<1x1x256xf32> to vector<1x256xf32>
    %835 = vector.shape_cast %832 : vector<1x256xf32> to vector<1x1x256xf32>
    tpu.vector_store %arg3[%c0_473, %c41, %c0_474], %835 {strides = array<i32>} : memref<1x81x256xf32, #tpu.memory_space<vmem>>, vector<1x1x256xf32>,
    %c6_475 = arith.constant 6 : index
    %c0_476 = arith.constant 0 : index
    %c0_477 = arith.constant 0 : index
    %836 = vector.load %arg4[%c6_475, %c0_476, %c0_477] : memref<9x4x256xf32, #tpu.memory_space<vmem>>, vector<1x4x256xf32>
    %837 = vector.shape_cast %836 : vector<1x4x256xf32> to vector<4x256xf32>
    %838 = arith.mulf %837, %3 : vector<4x256xf32>
    %cst_478 = arith.constant dense<0.000000e+00> : vector<256xf32>
    %839 = vector.multi_reduction <add>, %838, %cst_478 [0] : vector<4x256xf32> to vector<256xf32>
    %840 = vector.shape_cast %839 : vector<256xf32> to vector<1x256xf32>
    %c254_i32_479 = arith.constant 254 : i32
    %841 = tpu.dynamic_rotate %840 by %c254_i32_479 dim 1 : vector<1x256xf32>, i32 -> vector<1x256xf32>
    %c-2_i32_480 = arith.constant -2 : i32
    %842 = vector.broadcast %c-2_i32_480 : i32 to vector<1x256xi32>
    %843 = arith.cmpi sge, %20, %842 : vector<1x256xi32>
    %c14_i32_481 = arith.constant 14 : i32
    %844 = vector.broadcast %c14_i32_481 : i32 to vector<1x256xi32>
    %845 = arith.cmpi slt, %20, %844 : vector<1x256xi32>
    %846 = arith.andi %843, %845 : vector<1x256xi1>
    %cst_482 = arith.constant 0.000000e+00 : f32
    %847 = vector.broadcast %cst_482 : f32 to vector<1x256xf32>
    %848 = arith.select %846, %841, %847 : vector<1x256xi1>, vector<1x256xf32>
    %cst_483 = arith.constant 2.500000e-01 : f32
    %849 = vector.broadcast %cst_483 : f32 to vector<1x256xf32>
    %850 = arith.mulf %848, %849 : vector<1x256xf32>
    %c0_484 = arith.constant 0 : index
    %c42 = arith.constant 42 : index
    %c0_485 = arith.constant 0 : index
    %851 = vector.load %arg3[%c0_484, %c42, %c0_485] : memref<1x81x256xf32, #tpu.memory_space<vmem>>, vector<1x1x256xf32>
    %852 = vector.shape_cast %851 : vector<1x1x256xf32> to vector<1x256xf32>
    %853 = vector.shape_cast %850 : vector<1x256xf32> to vector<1x1x256xf32>
    tpu.vector_store %arg3[%c0_484, %c42, %c0_485], %853 {strides = array<i32>} : memref<1x81x256xf32, #tpu.memory_space<vmem>>, vector<1x1x256xf32>,
    %c7_486 = arith.constant 7 : index
    %c0_487 = arith.constant 0 : index
    %c0_488 = arith.constant 0 : index
    %854 = vector.load %arg4[%c7_486, %c0_487, %c0_488] : memref<9x4x256xf32, #tpu.memory_space<vmem>>, vector<1x4x256xf32>
    %855 = vector.shape_cast %854 : vector<1x4x256xf32> to vector<4x256xf32>
    %856 = arith.mulf %855, %3 : vector<4x256xf32>
    %cst_489 = arith.constant dense<0.000000e+00> : vector<256xf32>
    %857 = vector.multi_reduction <add>, %856, %cst_489 [0] : vector<4x256xf32> to vector<256xf32>
    %858 = vector.shape_cast %857 : vector<256xf32> to vector<1x256xf32>
    %c253_i32_490 = arith.constant 253 : i32
    %859 = tpu.dynamic_rotate %858 by %c253_i32_490 dim 1 : vector<1x256xf32>, i32 -> vector<1x256xf32>
    %c-3_i32_491 = arith.constant -3 : i32
    %860 = vector.broadcast %c-3_i32_491 : i32 to vector<1x256xi32>
    %861 = arith.cmpi sge, %20, %860 : vector<1x256xi32>
    %c13_i32_492 = arith.constant 13 : i32
    %862 = vector.broadcast %c13_i32_492 : i32 to vector<1x256xi32>
    %863 = arith.cmpi slt, %20, %862 : vector<1x256xi32>
    %864 = arith.andi %861, %863 : vector<1x256xi1>
    %cst_493 = arith.constant 0.000000e+00 : f32
    %865 = vector.broadcast %cst_493 : f32 to vector<1x256xf32>
    %866 = arith.select %864, %859, %865 : vector<1x256xi1>, vector<1x256xf32>
    %cst_494 = arith.constant 2.500000e-01 : f32
    %867 = vector.broadcast %cst_494 : f32 to vector<1x256xf32>
    %868 = arith.mulf %866, %867 : vector<1x256xf32>
    %c0_495 = arith.constant 0 : index
    %c43 = arith.constant 43 : index
    %c0_496 = arith.constant 0 : index
    %869 = vector.load %arg3[%c0_495, %c43, %c0_496] : memref<1x81x256xf32, #tpu.memory_space<vmem>>, vector<1x1x256xf32>
    %870 = vector.shape_cast %869 : vector<1x1x256xf32> to vector<1x256xf32>
    %871 = vector.shape_cast %868 : vector<1x256xf32> to vector<1x1x256xf32>
    tpu.vector_store %arg3[%c0_495, %c43, %c0_496], %871 {strides = array<i32>} : memref<1x81x256xf32, #tpu.memory_space<vmem>>, vector<1x1x256xf32>,
    %c8_497 = arith.constant 8 : index
    %c0_498 = arith.constant 0 : index
    %c0_499 = arith.constant 0 : index
    %872 = vector.load %arg4[%c8_497, %c0_498, %c0_499] : memref<9x4x256xf32, #tpu.memory_space<vmem>>, vector<1x4x256xf32>
    %873 = vector.shape_cast %872 : vector<1x4x256xf32> to vector<4x256xf32>
    %874 = arith.mulf %873, %3 : vector<4x256xf32>
    %cst_500 = arith.constant dense<0.000000e+00> : vector<256xf32>
    %875 = vector.multi_reduction <add>, %874, %cst_500 [0] : vector<4x256xf32> to vector<256xf32>
    %876 = vector.shape_cast %875 : vector<256xf32> to vector<1x256xf32>
    %c252_i32_501 = arith.constant 252 : i32
    %877 = tpu.dynamic_rotate %876 by %c252_i32_501 dim 1 : vector<1x256xf32>, i32 -> vector<1x256xf32>
    %c-4_i32_502 = arith.constant -4 : i32
    %878 = vector.broadcast %c-4_i32_502 : i32 to vector<1x256xi32>
    %879 = arith.cmpi sge, %20, %878 : vector<1x256xi32>
    %c12_i32_503 = arith.constant 12 : i32
    %880 = vector.broadcast %c12_i32_503 : i32 to vector<1x256xi32>
    %881 = arith.cmpi slt, %20, %880 : vector<1x256xi32>
    %882 = arith.andi %879, %881 : vector<1x256xi1>
    %cst_504 = arith.constant 0.000000e+00 : f32
    %883 = vector.broadcast %cst_504 : f32 to vector<1x256xf32>
    %884 = arith.select %882, %877, %883 : vector<1x256xi1>, vector<1x256xf32>
    %cst_505 = arith.constant 2.500000e-01 : f32
    %885 = vector.broadcast %cst_505 : f32 to vector<1x256xf32>
    %886 = arith.mulf %884, %885 : vector<1x256xf32>
    %c0_506 = arith.constant 0 : index
    %c44 = arith.constant 44 : index
    %c0_507 = arith.constant 0 : index
    %887 = vector.load %arg3[%c0_506, %c44, %c0_507] : memref<1x81x256xf32, #tpu.memory_space<vmem>>, vector<1x1x256xf32>
    %888 = vector.shape_cast %887 : vector<1x1x256xf32> to vector<1x256xf32>
    %889 = vector.shape_cast %886 : vector<1x256xf32> to vector<1x1x256xf32>
    tpu.vector_store %arg3[%c0_506, %c44, %c0_507], %889 {strides = array<i32>} : memref<1x81x256xf32, #tpu.memory_space<vmem>>, vector<1x1x256xf32>,
    %c240_i32 = arith.constant 240 : i32
    %890 = tpu.dynamic_rotate %3 by %c240_i32 dim 1 : vector<4x256xf32>, i32 -> vector<4x256xf32>
    %c-16_i32 = arith.constant -16 : i32
    %891 = vector.broadcast %c-16_i32 : i32 to vector<1x256xi32>
    %892 = arith.cmpi sge, %4, %891 : vector<1x256xi32>
    %c240_i32_508 = arith.constant 240 : i32
    %893 = vector.broadcast %c240_i32_508 : i32 to vector<1x256xi32>
    %894 = arith.cmpi slt, %4, %893 : vector<1x256xi32>
    %895 = arith.andi %892, %894 : vector<1x256xi1>
    %c0_509 = arith.constant 0 : index
    %c0_510 = arith.constant 0 : index
    %c0_511 = arith.constant 0 : index
    %896 = vector.load %arg4[%c0_509, %c0_510, %c0_511] : memref<9x4x256xf32, #tpu.memory_space<vmem>>, vector<1x4x256xf32>
    %897 = vector.shape_cast %896 : vector<1x4x256xf32> to vector<4x256xf32>
    %898 = arith.mulf %897, %890 : vector<4x256xf32>
    %cst_512 = arith.constant dense<0.000000e+00> : vector<256xf32>
    %899 = vector.multi_reduction <add>, %898, %cst_512 [0] : vector<4x256xf32> to vector<256xf32>
    %900 = vector.shape_cast %899 : vector<256xf32> to vector<1x256xf32>
    %c4_i32_513 = arith.constant 4 : i32
    %901 = tpu.dynamic_rotate %900 by %c4_i32_513 dim 1 : vector<1x256xf32>, i32 -> vector<1x256xf32>
    %c4_i32_514 = arith.constant 4 : i32
    %902 = vector.broadcast %c4_i32_514 : i32 to vector<1x256xi32>
    %903 = arith.cmpi sge, %20, %902 : vector<1x256xi32>
    %c20_i32_515 = arith.constant 20 : i32
    %904 = vector.broadcast %c20_i32_515 : i32 to vector<1x256xi32>
    %905 = arith.cmpi slt, %20, %904 : vector<1x256xi32>
    %906 = arith.andi %903, %905 : vector<1x256xi1>
    %907 = arith.andi %895, %906 : vector<1x256xi1>
    %cst_516 = arith.constant 0.000000e+00 : f32
    %908 = vector.broadcast %cst_516 : f32 to vector<1x256xf32>
    %909 = arith.select %907, %901, %908 : vector<1x256xi1>, vector<1x256xf32>
    %cst_517 = arith.constant 2.500000e-01 : f32
    %910 = vector.broadcast %cst_517 : f32 to vector<1x256xf32>
    %911 = arith.mulf %909, %910 : vector<1x256xf32>
    %c0_518 = arith.constant 0 : index
    %c45 = arith.constant 45 : index
    %c0_519 = arith.constant 0 : index
    %912 = vector.load %arg3[%c0_518, %c45, %c0_519] : memref<1x81x256xf32, #tpu.memory_space<vmem>>, vector<1x1x256xf32>
    %913 = vector.shape_cast %912 : vector<1x1x256xf32> to vector<1x256xf32>
    %914 = vector.shape_cast %911 : vector<1x256xf32> to vector<1x1x256xf32>
    tpu.vector_store %arg3[%c0_518, %c45, %c0_519], %914 {strides = array<i32>} : memref<1x81x256xf32, #tpu.memory_space<vmem>>, vector<1x1x256xf32>,
    %c1_520 = arith.constant 1 : index
    %c0_521 = arith.constant 0 : index
    %c0_522 = arith.constant 0 : index
    %915 = vector.load %arg4[%c1_520, %c0_521, %c0_522] : memref<9x4x256xf32, #tpu.memory_space<vmem>>, vector<1x4x256xf32>
    %916 = vector.shape_cast %915 : vector<1x4x256xf32> to vector<4x256xf32>
    %917 = arith.mulf %916, %890 : vector<4x256xf32>
    %cst_523 = arith.constant dense<0.000000e+00> : vector<256xf32>
    %918 = vector.multi_reduction <add>, %917, %cst_523 [0] : vector<4x256xf32> to vector<256xf32>
    %919 = vector.shape_cast %918 : vector<256xf32> to vector<1x256xf32>
    %c3_i32_524 = arith.constant 3 : i32
    %920 = tpu.dynamic_rotate %919 by %c3_i32_524 dim 1 : vector<1x256xf32>, i32 -> vector<1x256xf32>
    %c3_i32_525 = arith.constant 3 : i32
    %921 = vector.broadcast %c3_i32_525 : i32 to vector<1x256xi32>
    %922 = arith.cmpi sge, %20, %921 : vector<1x256xi32>
    %c19_i32_526 = arith.constant 19 : i32
    %923 = vector.broadcast %c19_i32_526 : i32 to vector<1x256xi32>
    %924 = arith.cmpi slt, %20, %923 : vector<1x256xi32>
    %925 = arith.andi %922, %924 : vector<1x256xi1>
    %926 = arith.andi %895, %925 : vector<1x256xi1>
    %cst_527 = arith.constant 0.000000e+00 : f32
    %927 = vector.broadcast %cst_527 : f32 to vector<1x256xf32>
    %928 = arith.select %926, %920, %927 : vector<1x256xi1>, vector<1x256xf32>
    %cst_528 = arith.constant 2.500000e-01 : f32
    %929 = vector.broadcast %cst_528 : f32 to vector<1x256xf32>
    %930 = arith.mulf %928, %929 : vector<1x256xf32>
    %c0_529 = arith.constant 0 : index
    %c46 = arith.constant 46 : index
    %c0_530 = arith.constant 0 : index
    %931 = vector.load %arg3[%c0_529, %c46, %c0_530] : memref<1x81x256xf32, #tpu.memory_space<vmem>>, vector<1x1x256xf32>
    %932 = vector.shape_cast %931 : vector<1x1x256xf32> to vector<1x256xf32>
    %933 = vector.shape_cast %930 : vector<1x256xf32> to vector<1x1x256xf32>
    tpu.vector_store %arg3[%c0_529, %c46, %c0_530], %933 {strides = array<i32>} : memref<1x81x256xf32, #tpu.memory_space<vmem>>, vector<1x1x256xf32>,
    %c2_531 = arith.constant 2 : index
    %c0_532 = arith.constant 0 : index
    %c0_533 = arith.constant 0 : index
    %934 = vector.load %arg4[%c2_531, %c0_532, %c0_533] : memref<9x4x256xf32, #tpu.memory_space<vmem>>, vector<1x4x256xf32>
    %935 = vector.shape_cast %934 : vector<1x4x256xf32> to vector<4x256xf32>
    %936 = arith.mulf %935, %890 : vector<4x256xf32>
    %cst_534 = arith.constant dense<0.000000e+00> : vector<256xf32>
    %937 = vector.multi_reduction <add>, %936, %cst_534 [0] : vector<4x256xf32> to vector<256xf32>
    %938 = vector.shape_cast %937 : vector<256xf32> to vector<1x256xf32>
    %c2_i32_535 = arith.constant 2 : i32
    %939 = tpu.dynamic_rotate %938 by %c2_i32_535 dim 1 : vector<1x256xf32>, i32 -> vector<1x256xf32>
    %c2_i32_536 = arith.constant 2 : i32
    %940 = vector.broadcast %c2_i32_536 : i32 to vector<1x256xi32>
    %941 = arith.cmpi sge, %20, %940 : vector<1x256xi32>
    %c18_i32_537 = arith.constant 18 : i32
    %942 = vector.broadcast %c18_i32_537 : i32 to vector<1x256xi32>
    %943 = arith.cmpi slt, %20, %942 : vector<1x256xi32>
    %944 = arith.andi %941, %943 : vector<1x256xi1>
    %945 = arith.andi %895, %944 : vector<1x256xi1>
    %cst_538 = arith.constant 0.000000e+00 : f32
    %946 = vector.broadcast %cst_538 : f32 to vector<1x256xf32>
    %947 = arith.select %945, %939, %946 : vector<1x256xi1>, vector<1x256xf32>
    %cst_539 = arith.constant 2.500000e-01 : f32
    %948 = vector.broadcast %cst_539 : f32 to vector<1x256xf32>
    %949 = arith.mulf %947, %948 : vector<1x256xf32>
    %c0_540 = arith.constant 0 : index
    %c47 = arith.constant 47 : index
    %c0_541 = arith.constant 0 : index
    %950 = vector.load %arg3[%c0_540, %c47, %c0_541] : memref<1x81x256xf32, #tpu.memory_space<vmem>>, vector<1x1x256xf32>
    %951 = vector.shape_cast %950 : vector<1x1x256xf32> to vector<1x256xf32>
    %952 = vector.shape_cast %949 : vector<1x256xf32> to vector<1x1x256xf32>
    tpu.vector_store %arg3[%c0_540, %c47, %c0_541], %952 {strides = array<i32>} : memref<1x81x256xf32, #tpu.memory_space<vmem>>, vector<1x1x256xf32>,
    %c3_542 = arith.constant 3 : index
    %c0_543 = arith.constant 0 : index
    %c0_544 = arith.constant 0 : index
    %953 = vector.load %arg4[%c3_542, %c0_543, %c0_544] : memref<9x4x256xf32, #tpu.memory_space<vmem>>, vector<1x4x256xf32>
    %954 = vector.shape_cast %953 : vector<1x4x256xf32> to vector<4x256xf32>
    %955 = arith.mulf %954, %890 : vector<4x256xf32>
    %cst_545 = arith.constant dense<0.000000e+00> : vector<256xf32>
    %956 = vector.multi_reduction <add>, %955, %cst_545 [0] : vector<4x256xf32> to vector<256xf32>
    %957 = vector.shape_cast %956 : vector<256xf32> to vector<1x256xf32>
    %c1_i32_546 = arith.constant 1 : i32
    %958 = tpu.dynamic_rotate %957 by %c1_i32_546 dim 1 : vector<1x256xf32>, i32 -> vector<1x256xf32>
    %c1_i32_547 = arith.constant 1 : i32
    %959 = vector.broadcast %c1_i32_547 : i32 to vector<1x256xi32>
    %960 = arith.cmpi sge, %20, %959 : vector<1x256xi32>
    %c17_i32_548 = arith.constant 17 : i32
    %961 = vector.broadcast %c17_i32_548 : i32 to vector<1x256xi32>
    %962 = arith.cmpi slt, %20, %961 : vector<1x256xi32>
    %963 = arith.andi %960, %962 : vector<1x256xi1>
    %964 = arith.andi %895, %963 : vector<1x256xi1>
    %cst_549 = arith.constant 0.000000e+00 : f32
    %965 = vector.broadcast %cst_549 : f32 to vector<1x256xf32>
    %966 = arith.select %964, %958, %965 : vector<1x256xi1>, vector<1x256xf32>
    %cst_550 = arith.constant 2.500000e-01 : f32
    %967 = vector.broadcast %cst_550 : f32 to vector<1x256xf32>
    %968 = arith.mulf %966, %967 : vector<1x256xf32>
    %c0_551 = arith.constant 0 : index
    %c48 = arith.constant 48 : index
    %c0_552 = arith.constant 0 : index
    %969 = vector.load %arg3[%c0_551, %c48, %c0_552] : memref<1x81x256xf32, #tpu.memory_space<vmem>>, vector<1x1x256xf32>
    %970 = vector.shape_cast %969 : vector<1x1x256xf32> to vector<1x256xf32>
    %971 = vector.shape_cast %968 : vector<1x256xf32> to vector<1x1x256xf32>
    tpu.vector_store %arg3[%c0_551, %c48, %c0_552], %971 {strides = array<i32>} : memref<1x81x256xf32, #tpu.memory_space<vmem>>, vector<1x1x256xf32>,
    %c4_553 = arith.constant 4 : index
    %c0_554 = arith.constant 0 : index
    %c0_555 = arith.constant 0 : index
    %972 = vector.load %arg4[%c4_553, %c0_554, %c0_555] : memref<9x4x256xf32, #tpu.memory_space<vmem>>, vector<1x4x256xf32>
    %973 = vector.shape_cast %972 : vector<1x4x256xf32> to vector<4x256xf32>
    %974 = arith.mulf %973, %890 : vector<4x256xf32>
    %cst_556 = arith.constant dense<0.000000e+00> : vector<256xf32>
    %975 = vector.multi_reduction <add>, %974, %cst_556 [0] : vector<4x256xf32> to vector<256xf32>
    %976 = vector.shape_cast %975 : vector<256xf32> to vector<1x256xf32>
    %cst_557 = arith.constant 0.000000e+00 : f32
    %977 = vector.broadcast %cst_557 : f32 to vector<1x256xf32>
    %978 = arith.select %895, %976, %977 : vector<1x256xi1>, vector<1x256xf32>
    %cst_558 = arith.constant 2.500000e-01 : f32
    %979 = vector.broadcast %cst_558 : f32 to vector<1x256xf32>
    %980 = arith.mulf %978, %979 : vector<1x256xf32>
    %c0_559 = arith.constant 0 : index
    %c49 = arith.constant 49 : index
    %c0_560 = arith.constant 0 : index
    %981 = vector.load %arg3[%c0_559, %c49, %c0_560] : memref<1x81x256xf32, #tpu.memory_space<vmem>>, vector<1x1x256xf32>
    %982 = vector.shape_cast %981 : vector<1x1x256xf32> to vector<1x256xf32>
    %983 = vector.shape_cast %980 : vector<1x256xf32> to vector<1x1x256xf32>
    tpu.vector_store %arg3[%c0_559, %c49, %c0_560], %983 {strides = array<i32>} : memref<1x81x256xf32, #tpu.memory_space<vmem>>, vector<1x1x256xf32>,
    %c5_561 = arith.constant 5 : index
    %c0_562 = arith.constant 0 : index
    %c0_563 = arith.constant 0 : index
    %984 = vector.load %arg4[%c5_561, %c0_562, %c0_563] : memref<9x4x256xf32, #tpu.memory_space<vmem>>, vector<1x4x256xf32>
    %985 = vector.shape_cast %984 : vector<1x4x256xf32> to vector<4x256xf32>
    %986 = arith.mulf %985, %890 : vector<4x256xf32>
    %cst_564 = arith.constant dense<0.000000e+00> : vector<256xf32>
    %987 = vector.multi_reduction <add>, %986, %cst_564 [0] : vector<4x256xf32> to vector<256xf32>
    %988 = vector.shape_cast %987 : vector<256xf32> to vector<1x256xf32>
    %c255_i32_565 = arith.constant 255 : i32
    %989 = tpu.dynamic_rotate %988 by %c255_i32_565 dim 1 : vector<1x256xf32>, i32 -> vector<1x256xf32>
    %c-1_i32_566 = arith.constant -1 : i32
    %990 = vector.broadcast %c-1_i32_566 : i32 to vector<1x256xi32>
    %991 = arith.cmpi sge, %20, %990 : vector<1x256xi32>
    %c15_i32_567 = arith.constant 15 : i32
    %992 = vector.broadcast %c15_i32_567 : i32 to vector<1x256xi32>
    %993 = arith.cmpi slt, %20, %992 : vector<1x256xi32>
    %994 = arith.andi %991, %993 : vector<1x256xi1>
    %995 = arith.andi %895, %994 : vector<1x256xi1>
    %cst_568 = arith.constant 0.000000e+00 : f32
    %996 = vector.broadcast %cst_568 : f32 to vector<1x256xf32>
    %997 = arith.select %995, %989, %996 : vector<1x256xi1>, vector<1x256xf32>
    %cst_569 = arith.constant 2.500000e-01 : f32
    %998 = vector.broadcast %cst_569 : f32 to vector<1x256xf32>
    %999 = arith.mulf %997, %998 : vector<1x256xf32>
    %c0_570 = arith.constant 0 : index
    %c50 = arith.constant 50 : index
    %c0_571 = arith.constant 0 : index
    %1000 = vector.load %arg3[%c0_570, %c50, %c0_571] : memref<1x81x256xf32, #tpu.memory_space<vmem>>, vector<1x1x256xf32>
    %1001 = vector.shape_cast %1000 : vector<1x1x256xf32> to vector<1x256xf32>
    %1002 = vector.shape_cast %999 : vector<1x256xf32> to vector<1x1x256xf32>
    tpu.vector_store %arg3[%c0_570, %c50, %c0_571], %1002 {strides = array<i32>} : memref<1x81x256xf32, #tpu.memory_space<vmem>>, vector<1x1x256xf32>,
    %c6_572 = arith.constant 6 : index
    %c0_573 = arith.constant 0 : index
    %c0_574 = arith.constant 0 : index
    %1003 = vector.load %arg4[%c6_572, %c0_573, %c0_574] : memref<9x4x256xf32, #tpu.memory_space<vmem>>, vector<1x4x256xf32>
    %1004 = vector.shape_cast %1003 : vector<1x4x256xf32> to vector<4x256xf32>
    %1005 = arith.mulf %1004, %890 : vector<4x256xf32>
    %cst_575 = arith.constant dense<0.000000e+00> : vector<256xf32>
    %1006 = vector.multi_reduction <add>, %1005, %cst_575 [0] : vector<4x256xf32> to vector<256xf32>
    %1007 = vector.shape_cast %1006 : vector<256xf32> to vector<1x256xf32>
    %c254_i32_576 = arith.constant 254 : i32
    %1008 = tpu.dynamic_rotate %1007 by %c254_i32_576 dim 1 : vector<1x256xf32>, i32 -> vector<1x256xf32>
    %c-2_i32_577 = arith.constant -2 : i32
    %1009 = vector.broadcast %c-2_i32_577 : i32 to vector<1x256xi32>
    %1010 = arith.cmpi sge, %20, %1009 : vector<1x256xi32>
    %c14_i32_578 = arith.constant 14 : i32
    %1011 = vector.broadcast %c14_i32_578 : i32 to vector<1x256xi32>
    %1012 = arith.cmpi slt, %20, %1011 : vector<1x256xi32>
    %1013 = arith.andi %1010, %1012 : vector<1x256xi1>
    %1014 = arith.andi %895, %1013 : vector<1x256xi1>
    %cst_579 = arith.constant 0.000000e+00 : f32
    %1015 = vector.broadcast %cst_579 : f32 to vector<1x256xf32>
    %1016 = arith.select %1014, %1008, %1015 : vector<1x256xi1>, vector<1x256xf32>
    %cst_580 = arith.constant 2.500000e-01 : f32
    %1017 = vector.broadcast %cst_580 : f32 to vector<1x256xf32>
    %1018 = arith.mulf %1016, %1017 : vector<1x256xf32>
    %c0_581 = arith.constant 0 : index
    %c51 = arith.constant 51 : index
    %c0_582 = arith.constant 0 : index
    %1019 = vector.load %arg3[%c0_581, %c51, %c0_582] : memref<1x81x256xf32, #tpu.memory_space<vmem>>, vector<1x1x256xf32>
    %1020 = vector.shape_cast %1019 : vector<1x1x256xf32> to vector<1x256xf32>
    %1021 = vector.shape_cast %1018 : vector<1x256xf32> to vector<1x1x256xf32>
    tpu.vector_store %arg3[%c0_581, %c51, %c0_582], %1021 {strides = array<i32>} : memref<1x81x256xf32, #tpu.memory_space<vmem>>, vector<1x1x256xf32>,
    %c7_583 = arith.constant 7 : index
    %c0_584 = arith.constant 0 : index
    %c0_585 = arith.constant 0 : index
    %1022 = vector.load %arg4[%c7_583, %c0_584, %c0_585] : memref<9x4x256xf32, #tpu.memory_space<vmem>>, vector<1x4x256xf32>
    %1023 = vector.shape_cast %1022 : vector<1x4x256xf32> to vector<4x256xf32>
    %1024 = arith.mulf %1023, %890 : vector<4x256xf32>
    %cst_586 = arith.constant dense<0.000000e+00> : vector<256xf32>
    %1025 = vector.multi_reduction <add>, %1024, %cst_586 [0] : vector<4x256xf32> to vector<256xf32>
    %1026 = vector.shape_cast %1025 : vector<256xf32> to vector<1x256xf32>
    %c253_i32_587 = arith.constant 253 : i32
    %1027 = tpu.dynamic_rotate %1026 by %c253_i32_587 dim 1 : vector<1x256xf32>, i32 -> vector<1x256xf32>
    %c-3_i32_588 = arith.constant -3 : i32
    %1028 = vector.broadcast %c-3_i32_588 : i32 to vector<1x256xi32>
    %1029 = arith.cmpi sge, %20, %1028 : vector<1x256xi32>
    %c13_i32_589 = arith.constant 13 : i32
    %1030 = vector.broadcast %c13_i32_589 : i32 to vector<1x256xi32>
    %1031 = arith.cmpi slt, %20, %1030 : vector<1x256xi32>
    %1032 = arith.andi %1029, %1031 : vector<1x256xi1>
    %1033 = arith.andi %895, %1032 : vector<1x256xi1>
    %cst_590 = arith.constant 0.000000e+00 : f32
    %1034 = vector.broadcast %cst_590 : f32 to vector<1x256xf32>
    %1035 = arith.select %1033, %1027, %1034 : vector<1x256xi1>, vector<1x256xf32>
    %cst_591 = arith.constant 2.500000e-01 : f32
    %1036 = vector.broadcast %cst_591 : f32 to vector<1x256xf32>
    %1037 = arith.mulf %1035, %1036 : vector<1x256xf32>
    %c0_592 = arith.constant 0 : index
    %c52 = arith.constant 52 : index
    %c0_593 = arith.constant 0 : index
    %1038 = vector.load %arg3[%c0_592, %c52, %c0_593] : memref<1x81x256xf32, #tpu.memory_space<vmem>>, vector<1x1x256xf32>
    %1039 = vector.shape_cast %1038 : vector<1x1x256xf32> to vector<1x256xf32>
    %1040 = vector.shape_cast %1037 : vector<1x256xf32> to vector<1x1x256xf32>
    tpu.vector_store %arg3[%c0_592, %c52, %c0_593], %1040 {strides = array<i32>} : memref<1x81x256xf32, #tpu.memory_space<vmem>>, vector<1x1x256xf32>,
    %c8_594 = arith.constant 8 : index
    %c0_595 = arith.constant 0 : index
    %c0_596 = arith.constant 0 : index
    %1041 = vector.load %arg4[%c8_594, %c0_595, %c0_596] : memref<9x4x256xf32, #tpu.memory_space<vmem>>, vector<1x4x256xf32>
    %1042 = vector.shape_cast %1041 : vector<1x4x256xf32> to vector<4x256xf32>
    %1043 = arith.mulf %1042, %890 : vector<4x256xf32>
    %cst_597 = arith.constant dense<0.000000e+00> : vector<256xf32>
    %1044 = vector.multi_reduction <add>, %1043, %cst_597 [0] : vector<4x256xf32> to vector<256xf32>
    %1045 = vector.shape_cast %1044 : vector<256xf32> to vector<1x256xf32>
    %c252_i32_598 = arith.constant 252 : i32
    %1046 = tpu.dynamic_rotate %1045 by %c252_i32_598 dim 1 : vector<1x256xf32>, i32 -> vector<1x256xf32>
    %c-4_i32_599 = arith.constant -4 : i32
    %1047 = vector.broadcast %c-4_i32_599 : i32 to vector<1x256xi32>
    %1048 = arith.cmpi sge, %20, %1047 : vector<1x256xi32>
    %c12_i32_600 = arith.constant 12 : i32
    %1049 = vector.broadcast %c12_i32_600 : i32 to vector<1x256xi32>
    %1050 = arith.cmpi slt, %20, %1049 : vector<1x256xi32>
    %1051 = arith.andi %1048, %1050 : vector<1x256xi1>
    %1052 = arith.andi %895, %1051 : vector<1x256xi1>
    %cst_601 = arith.constant 0.000000e+00 : f32
    %1053 = vector.broadcast %cst_601 : f32 to vector<1x256xf32>
    %1054 = arith.select %1052, %1046, %1053 : vector<1x256xi1>, vector<1x256xf32>
    %cst_602 = arith.constant 2.500000e-01 : f32
    %1055 = vector.broadcast %cst_602 : f32 to vector<1x256xf32>
    %1056 = arith.mulf %1054, %1055 : vector<1x256xf32>
    %c0_603 = arith.constant 0 : index
    %c53 = arith.constant 53 : index
    %c0_604 = arith.constant 0 : index
    %1057 = vector.load %arg3[%c0_603, %c53, %c0_604] : memref<1x81x256xf32, #tpu.memory_space<vmem>>, vector<1x1x256xf32>
    %1058 = vector.shape_cast %1057 : vector<1x1x256xf32> to vector<1x256xf32>
    %1059 = vector.shape_cast %1056 : vector<1x256xf32> to vector<1x1x256xf32>
    tpu.vector_store %arg3[%c0_603, %c53, %c0_604], %1059 {strides = array<i32>} : memref<1x81x256xf32, #tpu.memory_space<vmem>>, vector<1x1x256xf32>,
    %c224_i32 = arith.constant 224 : i32
    %1060 = tpu.dynamic_rotate %3 by %c224_i32 dim 1 : vector<4x256xf32>, i32 -> vector<4x256xf32>
    %c-32_i32 = arith.constant -32 : i32
    %1061 = vector.broadcast %c-32_i32 : i32 to vector<1x256xi32>
    %1062 = arith.cmpi sge, %4, %1061 : vector<1x256xi32>
    %c224_i32_605 = arith.constant 224 : i32
    %1063 = vector.broadcast %c224_i32_605 : i32 to vector<1x256xi32>
    %1064 = arith.cmpi slt, %4, %1063 : vector<1x256xi32>
    %1065 = arith.andi %1062, %1064 : vector<1x256xi1>
    %c0_606 = arith.constant 0 : index
    %c0_607 = arith.constant 0 : index
    %c0_608 = arith.constant 0 : index
    %1066 = vector.load %arg4[%c0_606, %c0_607, %c0_608] : memref<9x4x256xf32, #tpu.memory_space<vmem>>, vector<1x4x256xf32>
    %1067 = vector.shape_cast %1066 : vector<1x4x256xf32> to vector<4x256xf32>
    %1068 = arith.mulf %1067, %1060 : vector<4x256xf32>
    %cst_609 = arith.constant dense<0.000000e+00> : vector<256xf32>
    %1069 = vector.multi_reduction <add>, %1068, %cst_609 [0] : vector<4x256xf32> to vector<256xf32>
    %1070 = vector.shape_cast %1069 : vector<256xf32> to vector<1x256xf32>
    %c4_i32_610 = arith.constant 4 : i32
    %1071 = tpu.dynamic_rotate %1070 by %c4_i32_610 dim 1 : vector<1x256xf32>, i32 -> vector<1x256xf32>
    %c4_i32_611 = arith.constant 4 : i32
    %1072 = vector.broadcast %c4_i32_611 : i32 to vector<1x256xi32>
    %1073 = arith.cmpi sge, %20, %1072 : vector<1x256xi32>
    %c20_i32_612 = arith.constant 20 : i32
    %1074 = vector.broadcast %c20_i32_612 : i32 to vector<1x256xi32>
    %1075 = arith.cmpi slt, %20, %1074 : vector<1x256xi32>
    %1076 = arith.andi %1073, %1075 : vector<1x256xi1>
    %1077 = arith.andi %1065, %1076 : vector<1x256xi1>
    %cst_613 = arith.constant 0.000000e+00 : f32
    %1078 = vector.broadcast %cst_613 : f32 to vector<1x256xf32>
    %1079 = arith.select %1077, %1071, %1078 : vector<1x256xi1>, vector<1x256xf32>
    %cst_614 = arith.constant 2.500000e-01 : f32
    %1080 = vector.broadcast %cst_614 : f32 to vector<1x256xf32>
    %1081 = arith.mulf %1079, %1080 : vector<1x256xf32>
    %c0_615 = arith.constant 0 : index
    %c54 = arith.constant 54 : index
    %c0_616 = arith.constant 0 : index
    %1082 = vector.load %arg3[%c0_615, %c54, %c0_616] : memref<1x81x256xf32, #tpu.memory_space<vmem>>, vector<1x1x256xf32>
    %1083 = vector.shape_cast %1082 : vector<1x1x256xf32> to vector<1x256xf32>
    %1084 = vector.shape_cast %1081 : vector<1x256xf32> to vector<1x1x256xf32>
    tpu.vector_store %arg3[%c0_615, %c54, %c0_616], %1084 {strides = array<i32>} : memref<1x81x256xf32, #tpu.memory_space<vmem>>, vector<1x1x256xf32>,
    %c1_617 = arith.constant 1 : index
    %c0_618 = arith.constant 0 : index
    %c0_619 = arith.constant 0 : index
    %1085 = vector.load %arg4[%c1_617, %c0_618, %c0_619] : memref<9x4x256xf32, #tpu.memory_space<vmem>>, vector<1x4x256xf32>
    %1086 = vector.shape_cast %1085 : vector<1x4x256xf32> to vector<4x256xf32>
    %1087 = arith.mulf %1086, %1060 : vector<4x256xf32>
    %cst_620 = arith.constant dense<0.000000e+00> : vector<256xf32>
    %1088 = vector.multi_reduction <add>, %1087, %cst_620 [0] : vector<4x256xf32> to vector<256xf32>
    %1089 = vector.shape_cast %1088 : vector<256xf32> to vector<1x256xf32>
    %c3_i32_621 = arith.constant 3 : i32
    %1090 = tpu.dynamic_rotate %1089 by %c3_i32_621 dim 1 : vector<1x256xf32>, i32 -> vector<1x256xf32>
    %c3_i32_622 = arith.constant 3 : i32
    %1091 = vector.broadcast %c3_i32_622 : i32 to vector<1x256xi32>
    %1092 = arith.cmpi sge, %20, %1091 : vector<1x256xi32>
    %c19_i32_623 = arith.constant 19 : i32
    %1093 = vector.broadcast %c19_i32_623 : i32 to vector<1x256xi32>
    %1094 = arith.cmpi slt, %20, %1093 : vector<1x256xi32>
    %1095 = arith.andi %1092, %1094 : vector<1x256xi1>
    %1096 = arith.andi %1065, %1095 : vector<1x256xi1>
    %cst_624 = arith.constant 0.000000e+00 : f32
    %1097 = vector.broadcast %cst_624 : f32 to vector<1x256xf32>
    %1098 = arith.select %1096, %1090, %1097 : vector<1x256xi1>, vector<1x256xf32>
    %cst_625 = arith.constant 2.500000e-01 : f32
    %1099 = vector.broadcast %cst_625 : f32 to vector<1x256xf32>
    %1100 = arith.mulf %1098, %1099 : vector<1x256xf32>
    %c0_626 = arith.constant 0 : index
    %c55 = arith.constant 55 : index
    %c0_627 = arith.constant 0 : index
    %1101 = vector.load %arg3[%c0_626, %c55, %c0_627] : memref<1x81x256xf32, #tpu.memory_space<vmem>>, vector<1x1x256xf32>
    %1102 = vector.shape_cast %1101 : vector<1x1x256xf32> to vector<1x256xf32>
    %1103 = vector.shape_cast %1100 : vector<1x256xf32> to vector<1x1x256xf32>
    tpu.vector_store %arg3[%c0_626, %c55, %c0_627], %1103 {strides = array<i32>} : memref<1x81x256xf32, #tpu.memory_space<vmem>>, vector<1x1x256xf32>,
    %c2_628 = arith.constant 2 : index
    %c0_629 = arith.constant 0 : index
    %c0_630 = arith.constant 0 : index
    %1104 = vector.load %arg4[%c2_628, %c0_629, %c0_630] : memref<9x4x256xf32, #tpu.memory_space<vmem>>, vector<1x4x256xf32>
    %1105 = vector.shape_cast %1104 : vector<1x4x256xf32> to vector<4x256xf32>
    %1106 = arith.mulf %1105, %1060 : vector<4x256xf32>
    %cst_631 = arith.constant dense<0.000000e+00> : vector<256xf32>
    %1107 = vector.multi_reduction <add>, %1106, %cst_631 [0] : vector<4x256xf32> to vector<256xf32>
    %1108 = vector.shape_cast %1107 : vector<256xf32> to vector<1x256xf32>
    %c2_i32_632 = arith.constant 2 : i32
    %1109 = tpu.dynamic_rotate %1108 by %c2_i32_632 dim 1 : vector<1x256xf32>, i32 -> vector<1x256xf32>
    %c2_i32_633 = arith.constant 2 : i32
    %1110 = vector.broadcast %c2_i32_633 : i32 to vector<1x256xi32>
    %1111 = arith.cmpi sge, %20, %1110 : vector<1x256xi32>
    %c18_i32_634 = arith.constant 18 : i32
    %1112 = vector.broadcast %c18_i32_634 : i32 to vector<1x256xi32>
    %1113 = arith.cmpi slt, %20, %1112 : vector<1x256xi32>
    %1114 = arith.andi %1111, %1113 : vector<1x256xi1>
    %1115 = arith.andi %1065, %1114 : vector<1x256xi1>
    %cst_635 = arith.constant 0.000000e+00 : f32
    %1116 = vector.broadcast %cst_635 : f32 to vector<1x256xf32>
    %1117 = arith.select %1115, %1109, %1116 : vector<1x256xi1>, vector<1x256xf32>
    %cst_636 = arith.constant 2.500000e-01 : f32
    %1118 = vector.broadcast %cst_636 : f32 to vector<1x256xf32>
    %1119 = arith.mulf %1117, %1118 : vector<1x256xf32>
    %c0_637 = arith.constant 0 : index
    %c56 = arith.constant 56 : index
    %c0_638 = arith.constant 0 : index
    %1120 = vector.load %arg3[%c0_637, %c56, %c0_638] : memref<1x81x256xf32, #tpu.memory_space<vmem>>, vector<1x1x256xf32>
    %1121 = vector.shape_cast %1120 : vector<1x1x256xf32> to vector<1x256xf32>
    %1122 = vector.shape_cast %1119 : vector<1x256xf32> to vector<1x1x256xf32>
    tpu.vector_store %arg3[%c0_637, %c56, %c0_638], %1122 {strides = array<i32>} : memref<1x81x256xf32, #tpu.memory_space<vmem>>, vector<1x1x256xf32>,
    %c3_639 = arith.constant 3 : index
    %c0_640 = arith.constant 0 : index
    %c0_641 = arith.constant 0 : index
    %1123 = vector.load %arg4[%c3_639, %c0_640, %c0_641] : memref<9x4x256xf32, #tpu.memory_space<vmem>>, vector<1x4x256xf32>
    %1124 = vector.shape_cast %1123 : vector<1x4x256xf32> to vector<4x256xf32>
    %1125 = arith.mulf %1124, %1060 : vector<4x256xf32>
    %cst_642 = arith.constant dense<0.000000e+00> : vector<256xf32>
    %1126 = vector.multi_reduction <add>, %1125, %cst_642 [0] : vector<4x256xf32> to vector<256xf32>
    %1127 = vector.shape_cast %1126 : vector<256xf32> to vector<1x256xf32>
    %c1_i32_643 = arith.constant 1 : i32
    %1128 = tpu.dynamic_rotate %1127 by %c1_i32_643 dim 1 : vector<1x256xf32>, i32 -> vector<1x256xf32>
    %c1_i32_644 = arith.constant 1 : i32
    %1129 = vector.broadcast %c1_i32_644 : i32 to vector<1x256xi32>
    %1130 = arith.cmpi sge, %20, %1129 : vector<1x256xi32>
    %c17_i32_645 = arith.constant 17 : i32
    %1131 = vector.broadcast %c17_i32_645 : i32 to vector<1x256xi32>
    %1132 = arith.cmpi slt, %20, %1131 : vector<1x256xi32>
    %1133 = arith.andi %1130, %1132 : vector<1x256xi1>
    %1134 = arith.andi %1065, %1133 : vector<1x256xi1>
    %cst_646 = arith.constant 0.000000e+00 : f32
    %1135 = vector.broadcast %cst_646 : f32 to vector<1x256xf32>
    %1136 = arith.select %1134, %1128, %1135 : vector<1x256xi1>, vector<1x256xf32>
    %cst_647 = arith.constant 2.500000e-01 : f32
    %1137 = vector.broadcast %cst_647 : f32 to vector<1x256xf32>
    %1138 = arith.mulf %1136, %1137 : vector<1x256xf32>
    %c0_648 = arith.constant 0 : index
    %c57 = arith.constant 57 : index
    %c0_649 = arith.constant 0 : index
    %1139 = vector.load %arg3[%c0_648, %c57, %c0_649] : memref<1x81x256xf32, #tpu.memory_space<vmem>>, vector<1x1x256xf32>
    %1140 = vector.shape_cast %1139 : vector<1x1x256xf32> to vector<1x256xf32>
    %1141 = vector.shape_cast %1138 : vector<1x256xf32> to vector<1x1x256xf32>
    tpu.vector_store %arg3[%c0_648, %c57, %c0_649], %1141 {strides = array<i32>} : memref<1x81x256xf32, #tpu.memory_space<vmem>>, vector<1x1x256xf32>,
    %c4_650 = arith.constant 4 : index
    %c0_651 = arith.constant 0 : index
    %c0_652 = arith.constant 0 : index
    %1142 = vector.load %arg4[%c4_650, %c0_651, %c0_652] : memref<9x4x256xf32, #tpu.memory_space<vmem>>, vector<1x4x256xf32>
    %1143 = vector.shape_cast %1142 : vector<1x4x256xf32> to vector<4x256xf32>
    %1144 = arith.mulf %1143, %1060 : vector<4x256xf32>
    %cst_653 = arith.constant dense<0.000000e+00> : vector<256xf32>
    %1145 = vector.multi_reduction <add>, %1144, %cst_653 [0] : vector<4x256xf32> to vector<256xf32>
    %1146 = vector.shape_cast %1145 : vector<256xf32> to vector<1x256xf32>
    %cst_654 = arith.constant 0.000000e+00 : f32
    %1147 = vector.broadcast %cst_654 : f32 to vector<1x256xf32>
    %1148 = arith.select %1065, %1146, %1147 : vector<1x256xi1>, vector<1x256xf32>
    %cst_655 = arith.constant 2.500000e-01 : f32
    %1149 = vector.broadcast %cst_655 : f32 to vector<1x256xf32>
    %1150 = arith.mulf %1148, %1149 : vector<1x256xf32>
    %c0_656 = arith.constant 0 : index
    %c58 = arith.constant 58 : index
    %c0_657 = arith.constant 0 : index
    %1151 = vector.load %arg3[%c0_656, %c58, %c0_657] : memref<1x81x256xf32, #tpu.memory_space<vmem>>, vector<1x1x256xf32>
    %1152 = vector.shape_cast %1151 : vector<1x1x256xf32> to vector<1x256xf32>
    %1153 = vector.shape_cast %1150 : vector<1x256xf32> to vector<1x1x256xf32>
    tpu.vector_store %arg3[%c0_656, %c58, %c0_657], %1153 {strides = array<i32>} : memref<1x81x256xf32, #tpu.memory_space<vmem>>, vector<1x1x256xf32>,
    %c5_658 = arith.constant 5 : index
    %c0_659 = arith.constant 0 : index
    %c0_660 = arith.constant 0 : index
    %1154 = vector.load %arg4[%c5_658, %c0_659, %c0_660] : memref<9x4x256xf32, #tpu.memory_space<vmem>>, vector<1x4x256xf32>
    %1155 = vector.shape_cast %1154 : vector<1x4x256xf32> to vector<4x256xf32>
    %1156 = arith.mulf %1155, %1060 : vector<4x256xf32>
    %cst_661 = arith.constant dense<0.000000e+00> : vector<256xf32>
    %1157 = vector.multi_reduction <add>, %1156, %cst_661 [0] : vector<4x256xf32> to vector<256xf32>
    %1158 = vector.shape_cast %1157 : vector<256xf32> to vector<1x256xf32>
    %c255_i32_662 = arith.constant 255 : i32
    %1159 = tpu.dynamic_rotate %1158 by %c255_i32_662 dim 1 : vector<1x256xf32>, i32 -> vector<1x256xf32>
    %c-1_i32_663 = arith.constant -1 : i32
    %1160 = vector.broadcast %c-1_i32_663 : i32 to vector<1x256xi32>
    %1161 = arith.cmpi sge, %20, %1160 : vector<1x256xi32>
    %c15_i32_664 = arith.constant 15 : i32
    %1162 = vector.broadcast %c15_i32_664 : i32 to vector<1x256xi32>
    %1163 = arith.cmpi slt, %20, %1162 : vector<1x256xi32>
    %1164 = arith.andi %1161, %1163 : vector<1x256xi1>
    %1165 = arith.andi %1065, %1164 : vector<1x256xi1>
    %cst_665 = arith.constant 0.000000e+00 : f32
    %1166 = vector.broadcast %cst_665 : f32 to vector<1x256xf32>
    %1167 = arith.select %1165, %1159, %1166 : vector<1x256xi1>, vector<1x256xf32>
    %cst_666 = arith.constant 2.500000e-01 : f32
    %1168 = vector.broadcast %cst_666 : f32 to vector<1x256xf32>
    %1169 = arith.mulf %1167, %1168 : vector<1x256xf32>
    %c0_667 = arith.constant 0 : index
    %c59 = arith.constant 59 : index
    %c0_668 = arith.constant 0 : index
    %1170 = vector.load %arg3[%c0_667, %c59, %c0_668] : memref<1x81x256xf32, #tpu.memory_space<vmem>>, vector<1x1x256xf32>
    %1171 = vector.shape_cast %1170 : vector<1x1x256xf32> to vector<1x256xf32>
    %1172 = vector.shape_cast %1169 : vector<1x256xf32> to vector<1x1x256xf32>
    tpu.vector_store %arg3[%c0_667, %c59, %c0_668], %1172 {strides = array<i32>} : memref<1x81x256xf32, #tpu.memory_space<vmem>>, vector<1x1x256xf32>,
    %c6_669 = arith.constant 6 : index
    %c0_670 = arith.constant 0 : index
    %c0_671 = arith.constant 0 : index
    %1173 = vector.load %arg4[%c6_669, %c0_670, %c0_671] : memref<9x4x256xf32, #tpu.memory_space<vmem>>, vector<1x4x256xf32>
    %1174 = vector.shape_cast %1173 : vector<1x4x256xf32> to vector<4x256xf32>
    %1175 = arith.mulf %1174, %1060 : vector<4x256xf32>
    %cst_672 = arith.constant dense<0.000000e+00> : vector<256xf32>
    %1176 = vector.multi_reduction <add>, %1175, %cst_672 [0] : vector<4x256xf32> to vector<256xf32>
    %1177 = vector.shape_cast %1176 : vector<256xf32> to vector<1x256xf32>
    %c254_i32_673 = arith.constant 254 : i32
    %1178 = tpu.dynamic_rotate %1177 by %c254_i32_673 dim 1 : vector<1x256xf32>, i32 -> vector<1x256xf32>
    %c-2_i32_674 = arith.constant -2 : i32
    %1179 = vector.broadcast %c-2_i32_674 : i32 to vector<1x256xi32>
    %1180 = arith.cmpi sge, %20, %1179 : vector<1x256xi32>
    %c14_i32_675 = arith.constant 14 : i32
    %1181 = vector.broadcast %c14_i32_675 : i32 to vector<1x256xi32>
    %1182 = arith.cmpi slt, %20, %1181 : vector<1x256xi32>
    %1183 = arith.andi %1180, %1182 : vector<1x256xi1>
    %1184 = arith.andi %1065, %1183 : vector<1x256xi1>
    %cst_676 = arith.constant 0.000000e+00 : f32
    %1185 = vector.broadcast %cst_676 : f32 to vector<1x256xf32>
    %1186 = arith.select %1184, %1178, %1185 : vector<1x256xi1>, vector<1x256xf32>
    %cst_677 = arith.constant 2.500000e-01 : f32
    %1187 = vector.broadcast %cst_677 : f32 to vector<1x256xf32>
    %1188 = arith.mulf %1186, %1187 : vector<1x256xf32>
    %c0_678 = arith.constant 0 : index
    %c60 = arith.constant 60 : index
    %c0_679 = arith.constant 0 : index
    %1189 = vector.load %arg3[%c0_678, %c60, %c0_679] : memref<1x81x256xf32, #tpu.memory_space<vmem>>, vector<1x1x256xf32>
    %1190 = vector.shape_cast %1189 : vector<1x1x256xf32> to vector<1x256xf32>
    %1191 = vector.shape_cast %1188 : vector<1x256xf32> to vector<1x1x256xf32>
    tpu.vector_store %arg3[%c0_678, %c60, %c0_679], %1191 {strides = array<i32>} : memref<1x81x256xf32, #tpu.memory_space<vmem>>, vector<1x1x256xf32>,
    %c7_680 = arith.constant 7 : index
    %c0_681 = arith.constant 0 : index
    %c0_682 = arith.constant 0 : index
    %1192 = vector.load %arg4[%c7_680, %c0_681, %c0_682] : memref<9x4x256xf32, #tpu.memory_space<vmem>>, vector<1x4x256xf32>
    %1193 = vector.shape_cast %1192 : vector<1x4x256xf32> to vector<4x256xf32>
    %1194 = arith.mulf %1193, %1060 : vector<4x256xf32>
    %cst_683 = arith.constant dense<0.000000e+00> : vector<256xf32>
    %1195 = vector.multi_reduction <add>, %1194, %cst_683 [0] : vector<4x256xf32> to vector<256xf32>
    %1196 = vector.shape_cast %1195 : vector<256xf32> to vector<1x256xf32>
    %c253_i32_684 = arith.constant 253 : i32
    %1197 = tpu.dynamic_rotate %1196 by %c253_i32_684 dim 1 : vector<1x256xf32>, i32 -> vector<1x256xf32>
    %c-3_i32_685 = arith.constant -3 : i32
    %1198 = vector.broadcast %c-3_i32_685 : i32 to vector<1x256xi32>
    %1199 = arith.cmpi sge, %20, %1198 : vector<1x256xi32>
    %c13_i32_686 = arith.constant 13 : i32
    %1200 = vector.broadcast %c13_i32_686 : i32 to vector<1x256xi32>
    %1201 = arith.cmpi slt, %20, %1200 : vector<1x256xi32>
    %1202 = arith.andi %1199, %1201 : vector<1x256xi1>
    %1203 = arith.andi %1065, %1202 : vector<1x256xi1>
    %cst_687 = arith.constant 0.000000e+00 : f32
    %1204 = vector.broadcast %cst_687 : f32 to vector<1x256xf32>
    %1205 = arith.select %1203, %1197, %1204 : vector<1x256xi1>, vector<1x256xf32>
    %cst_688 = arith.constant 2.500000e-01 : f32
    %1206 = vector.broadcast %cst_688 : f32 to vector<1x256xf32>
    %1207 = arith.mulf %1205, %1206 : vector<1x256xf32>
    %c0_689 = arith.constant 0 : index
    %c61 = arith.constant 61 : index
    %c0_690 = arith.constant 0 : index
    %1208 = vector.load %arg3[%c0_689, %c61, %c0_690] : memref<1x81x256xf32, #tpu.memory_space<vmem>>, vector<1x1x256xf32>
    %1209 = vector.shape_cast %1208 : vector<1x1x256xf32> to vector<1x256xf32>
    %1210 = vector.shape_cast %1207 : vector<1x256xf32> to vector<1x1x256xf32>
    tpu.vector_store %arg3[%c0_689, %c61, %c0_690], %1210 {strides = array<i32>} : memref<1x81x256xf32, #tpu.memory_space<vmem>>, vector<1x1x256xf32>,
    %c8_691 = arith.constant 8 : index
    %c0_692 = arith.constant 0 : index
    %c0_693 = arith.constant 0 : index
    %1211 = vector.load %arg4[%c8_691, %c0_692, %c0_693] : memref<9x4x256xf32, #tpu.memory_space<vmem>>, vector<1x4x256xf32>
    %1212 = vector.shape_cast %1211 : vector<1x4x256xf32> to vector<4x256xf32>
    %1213 = arith.mulf %1212, %1060 : vector<4x256xf32>
    %cst_694 = arith.constant dense<0.000000e+00> : vector<256xf32>
    %1214 = vector.multi_reduction <add>, %1213, %cst_694 [0] : vector<4x256xf32> to vector<256xf32>
    %1215 = vector.shape_cast %1214 : vector<256xf32> to vector<1x256xf32>
    %c252_i32_695 = arith.constant 252 : i32
    %1216 = tpu.dynamic_rotate %1215 by %c252_i32_695 dim 1 : vector<1x256xf32>, i32 -> vector<1x256xf32>
    %c-4_i32_696 = arith.constant -4 : i32
    %1217 = vector.broadcast %c-4_i32_696 : i32 to vector<1x256xi32>
    %1218 = arith.cmpi sge, %20, %1217 : vector<1x256xi32>
    %c12_i32_697 = arith.constant 12 : i32
    %1219 = vector.broadcast %c12_i32_697 : i32 to vector<1x256xi32>
    %1220 = arith.cmpi slt, %20, %1219 : vector<1x256xi32>
    %1221 = arith.andi %1218, %1220 : vector<1x256xi1>
    %1222 = arith.andi %1065, %1221 : vector<1x256xi1>
    %cst_698 = arith.constant 0.000000e+00 : f32
    %1223 = vector.broadcast %cst_698 : f32 to vector<1x256xf32>
    %1224 = arith.select %1222, %1216, %1223 : vector<1x256xi1>, vector<1x256xf32>
    %cst_699 = arith.constant 2.500000e-01 : f32
    %1225 = vector.broadcast %cst_699 : f32 to vector<1x256xf32>
    %1226 = arith.mulf %1224, %1225 : vector<1x256xf32>
    %c0_700 = arith.constant 0 : index
    %c62 = arith.constant 62 : index
    %c0_701 = arith.constant 0 : index
    %1227 = vector.load %arg3[%c0_700, %c62, %c0_701] : memref<1x81x256xf32, #tpu.memory_space<vmem>>, vector<1x1x256xf32>
    %1228 = vector.shape_cast %1227 : vector<1x1x256xf32> to vector<1x256xf32>
    %1229 = vector.shape_cast %1226 : vector<1x256xf32> to vector<1x1x256xf32>
    tpu.vector_store %arg3[%c0_700, %c62, %c0_701], %1229 {strides = array<i32>} : memref<1x81x256xf32, #tpu.memory_space<vmem>>, vector<1x1x256xf32>,
    %c208_i32 = arith.constant 208 : i32
    %1230 = tpu.dynamic_rotate %3 by %c208_i32 dim 1 : vector<4x256xf32>, i32 -> vector<4x256xf32>
    %c-48_i32 = arith.constant -48 : i32
    %1231 = vector.broadcast %c-48_i32 : i32 to vector<1x256xi32>
    %1232 = arith.cmpi sge, %4, %1231 : vector<1x256xi32>
    %c208_i32_702 = arith.constant 208 : i32
    %1233 = vector.broadcast %c208_i32_702 : i32 to vector<1x256xi32>
    %1234 = arith.cmpi slt, %4, %1233 : vector<1x256xi32>
    %1235 = arith.andi %1232, %1234 : vector<1x256xi1>
    %c0_703 = arith.constant 0 : index
    %c0_704 = arith.constant 0 : index
    %c0_705 = arith.constant 0 : index
    %1236 = vector.load %arg4[%c0_703, %c0_704, %c0_705] : memref<9x4x256xf32, #tpu.memory_space<vmem>>, vector<1x4x256xf32>
    %1237 = vector.shape_cast %1236 : vector<1x4x256xf32> to vector<4x256xf32>
    %1238 = arith.mulf %1237, %1230 : vector<4x256xf32>
    %cst_706 = arith.constant dense<0.000000e+00> : vector<256xf32>
    %1239 = vector.multi_reduction <add>, %1238, %cst_706 [0] : vector<4x256xf32> to vector<256xf32>
    %1240 = vector.shape_cast %1239 : vector<256xf32> to vector<1x256xf32>
    %c4_i32_707 = arith.constant 4 : i32
    %1241 = tpu.dynamic_rotate %1240 by %c4_i32_707 dim 1 : vector<1x256xf32>, i32 -> vector<1x256xf32>
    %c4_i32_708 = arith.constant 4 : i32
    %1242 = vector.broadcast %c4_i32_708 : i32 to vector<1x256xi32>
    %1243 = arith.cmpi sge, %20, %1242 : vector<1x256xi32>
    %c20_i32_709 = arith.constant 20 : i32
    %1244 = vector.broadcast %c20_i32_709 : i32 to vector<1x256xi32>
    %1245 = arith.cmpi slt, %20, %1244 : vector<1x256xi32>
    %1246 = arith.andi %1243, %1245 : vector<1x256xi1>
    %1247 = arith.andi %1235, %1246 : vector<1x256xi1>
    %cst_710 = arith.constant 0.000000e+00 : f32
    %1248 = vector.broadcast %cst_710 : f32 to vector<1x256xf32>
    %1249 = arith.select %1247, %1241, %1248 : vector<1x256xi1>, vector<1x256xf32>
    %cst_711 = arith.constant 2.500000e-01 : f32
    %1250 = vector.broadcast %cst_711 : f32 to vector<1x256xf32>
    %1251 = arith.mulf %1249, %1250 : vector<1x256xf32>
    %c0_712 = arith.constant 0 : index
    %c63 = arith.constant 63 : index
    %c0_713 = arith.constant 0 : index
    %1252 = vector.load %arg3[%c0_712, %c63, %c0_713] : memref<1x81x256xf32, #tpu.memory_space<vmem>>, vector<1x1x256xf32>
    %1253 = vector.shape_cast %1252 : vector<1x1x256xf32> to vector<1x256xf32>
    %1254 = vector.shape_cast %1251 : vector<1x256xf32> to vector<1x1x256xf32>
    tpu.vector_store %arg3[%c0_712, %c63, %c0_713], %1254 {strides = array<i32>} : memref<1x81x256xf32, #tpu.memory_space<vmem>>, vector<1x1x256xf32>,
    %c1_714 = arith.constant 1 : index
    %c0_715 = arith.constant 0 : index
    %c0_716 = arith.constant 0 : index
    %1255 = vector.load %arg4[%c1_714, %c0_715, %c0_716] : memref<9x4x256xf32, #tpu.memory_space<vmem>>, vector<1x4x256xf32>
    %1256 = vector.shape_cast %1255 : vector<1x4x256xf32> to vector<4x256xf32>
    %1257 = arith.mulf %1256, %1230 : vector<4x256xf32>
    %cst_717 = arith.constant dense<0.000000e+00> : vector<256xf32>
    %1258 = vector.multi_reduction <add>, %1257, %cst_717 [0] : vector<4x256xf32> to vector<256xf32>
    %1259 = vector.shape_cast %1258 : vector<256xf32> to vector<1x256xf32>
    %c3_i32_718 = arith.constant 3 : i32
    %1260 = tpu.dynamic_rotate %1259 by %c3_i32_718 dim 1 : vector<1x256xf32>, i32 -> vector<1x256xf32>
    %c3_i32_719 = arith.constant 3 : i32
    %1261 = vector.broadcast %c3_i32_719 : i32 to vector<1x256xi32>
    %1262 = arith.cmpi sge, %20, %1261 : vector<1x256xi32>
    %c19_i32_720 = arith.constant 19 : i32
    %1263 = vector.broadcast %c19_i32_720 : i32 to vector<1x256xi32>
    %1264 = arith.cmpi slt, %20, %1263 : vector<1x256xi32>
    %1265 = arith.andi %1262, %1264 : vector<1x256xi1>
    %1266 = arith.andi %1235, %1265 : vector<1x256xi1>
    %cst_721 = arith.constant 0.000000e+00 : f32
    %1267 = vector.broadcast %cst_721 : f32 to vector<1x256xf32>
    %1268 = arith.select %1266, %1260, %1267 : vector<1x256xi1>, vector<1x256xf32>
    %cst_722 = arith.constant 2.500000e-01 : f32
    %1269 = vector.broadcast %cst_722 : f32 to vector<1x256xf32>
    %1270 = arith.mulf %1268, %1269 : vector<1x256xf32>
    %c0_723 = arith.constant 0 : index
    %c64 = arith.constant 64 : index
    %c0_724 = arith.constant 0 : index
    %1271 = vector.load %arg3[%c0_723, %c64, %c0_724] : memref<1x81x256xf32, #tpu.memory_space<vmem>>, vector<1x1x256xf32>
    %1272 = vector.shape_cast %1271 : vector<1x1x256xf32> to vector<1x256xf32>
    %1273 = vector.shape_cast %1270 : vector<1x256xf32> to vector<1x1x256xf32>
    tpu.vector_store %arg3[%c0_723, %c64, %c0_724], %1273 {strides = array<i32>} : memref<1x81x256xf32, #tpu.memory_space<vmem>>, vector<1x1x256xf32>,
    %c2_725 = arith.constant 2 : index
    %c0_726 = arith.constant 0 : index
    %c0_727 = arith.constant 0 : index
    %1274 = vector.load %arg4[%c2_725, %c0_726, %c0_727] : memref<9x4x256xf32, #tpu.memory_space<vmem>>, vector<1x4x256xf32>
    %1275 = vector.shape_cast %1274 : vector<1x4x256xf32> to vector<4x256xf32>
    %1276 = arith.mulf %1275, %1230 : vector<4x256xf32>
    %cst_728 = arith.constant dense<0.000000e+00> : vector<256xf32>
    %1277 = vector.multi_reduction <add>, %1276, %cst_728 [0] : vector<4x256xf32> to vector<256xf32>
    %1278 = vector.shape_cast %1277 : vector<256xf32> to vector<1x256xf32>
    %c2_i32_729 = arith.constant 2 : i32
    %1279 = tpu.dynamic_rotate %1278 by %c2_i32_729 dim 1 : vector<1x256xf32>, i32 -> vector<1x256xf32>
    %c2_i32_730 = arith.constant 2 : i32
    %1280 = vector.broadcast %c2_i32_730 : i32 to vector<1x256xi32>
    %1281 = arith.cmpi sge, %20, %1280 : vector<1x256xi32>
    %c18_i32_731 = arith.constant 18 : i32
    %1282 = vector.broadcast %c18_i32_731 : i32 to vector<1x256xi32>
    %1283 = arith.cmpi slt, %20, %1282 : vector<1x256xi32>
    %1284 = arith.andi %1281, %1283 : vector<1x256xi1>
    %1285 = arith.andi %1235, %1284 : vector<1x256xi1>
    %cst_732 = arith.constant 0.000000e+00 : f32
    %1286 = vector.broadcast %cst_732 : f32 to vector<1x256xf32>
    %1287 = arith.select %1285, %1279, %1286 : vector<1x256xi1>, vector<1x256xf32>
    %cst_733 = arith.constant 2.500000e-01 : f32
    %1288 = vector.broadcast %cst_733 : f32 to vector<1x256xf32>
    %1289 = arith.mulf %1287, %1288 : vector<1x256xf32>
    %c0_734 = arith.constant 0 : index
    %c65 = arith.constant 65 : index
    %c0_735 = arith.constant 0 : index
    %1290 = vector.load %arg3[%c0_734, %c65, %c0_735] : memref<1x81x256xf32, #tpu.memory_space<vmem>>, vector<1x1x256xf32>
    %1291 = vector.shape_cast %1290 : vector<1x1x256xf32> to vector<1x256xf32>
    %1292 = vector.shape_cast %1289 : vector<1x256xf32> to vector<1x1x256xf32>
    tpu.vector_store %arg3[%c0_734, %c65, %c0_735], %1292 {strides = array<i32>} : memref<1x81x256xf32, #tpu.memory_space<vmem>>, vector<1x1x256xf32>,
    %c3_736 = arith.constant 3 : index
    %c0_737 = arith.constant 0 : index
    %c0_738 = arith.constant 0 : index
    %1293 = vector.load %arg4[%c3_736, %c0_737, %c0_738] : memref<9x4x256xf32, #tpu.memory_space<vmem>>, vector<1x4x256xf32>
    %1294 = vector.shape_cast %1293 : vector<1x4x256xf32> to vector<4x256xf32>
    %1295 = arith.mulf %1294, %1230 : vector<4x256xf32>
    %cst_739 = arith.constant dense<0.000000e+00> : vector<256xf32>
    %1296 = vector.multi_reduction <add>, %1295, %cst_739 [0] : vector<4x256xf32> to vector<256xf32>
    %1297 = vector.shape_cast %1296 : vector<256xf32> to vector<1x256xf32>
    %c1_i32_740 = arith.constant 1 : i32
    %1298 = tpu.dynamic_rotate %1297 by %c1_i32_740 dim 1 : vector<1x256xf32>, i32 -> vector<1x256xf32>
    %c1_i32_741 = arith.constant 1 : i32
    %1299 = vector.broadcast %c1_i32_741 : i32 to vector<1x256xi32>
    %1300 = arith.cmpi sge, %20, %1299 : vector<1x256xi32>
    %c17_i32_742 = arith.constant 17 : i32
    %1301 = vector.broadcast %c17_i32_742 : i32 to vector<1x256xi32>
    %1302 = arith.cmpi slt, %20, %1301 : vector<1x256xi32>
    %1303 = arith.andi %1300, %1302 : vector<1x256xi1>
    %1304 = arith.andi %1235, %1303 : vector<1x256xi1>
    %cst_743 = arith.constant 0.000000e+00 : f32
    %1305 = vector.broadcast %cst_743 : f32 to vector<1x256xf32>
    %1306 = arith.select %1304, %1298, %1305 : vector<1x256xi1>, vector<1x256xf32>
    %cst_744 = arith.constant 2.500000e-01 : f32
    %1307 = vector.broadcast %cst_744 : f32 to vector<1x256xf32>
    %1308 = arith.mulf %1306, %1307 : vector<1x256xf32>
    %c0_745 = arith.constant 0 : index
    %c66 = arith.constant 66 : index
    %c0_746 = arith.constant 0 : index
    %1309 = vector.load %arg3[%c0_745, %c66, %c0_746] : memref<1x81x256xf32, #tpu.memory_space<vmem>>, vector<1x1x256xf32>
    %1310 = vector.shape_cast %1309 : vector<1x1x256xf32> to vector<1x256xf32>
    %1311 = vector.shape_cast %1308 : vector<1x256xf32> to vector<1x1x256xf32>
    tpu.vector_store %arg3[%c0_745, %c66, %c0_746], %1311 {strides = array<i32>} : memref<1x81x256xf32, #tpu.memory_space<vmem>>, vector<1x1x256xf32>,
    %c4_747 = arith.constant 4 : index
    %c0_748 = arith.constant 0 : index
    %c0_749 = arith.constant 0 : index
    %1312 = vector.load %arg4[%c4_747, %c0_748, %c0_749] : memref<9x4x256xf32, #tpu.memory_space<vmem>>, vector<1x4x256xf32>
    %1313 = vector.shape_cast %1312 : vector<1x4x256xf32> to vector<4x256xf32>
    %1314 = arith.mulf %1313, %1230 : vector<4x256xf32>
    %cst_750 = arith.constant dense<0.000000e+00> : vector<256xf32>
    %1315 = vector.multi_reduction <add>, %1314, %cst_750 [0] : vector<4x256xf32> to vector<256xf32>
    %1316 = vector.shape_cast %1315 : vector<256xf32> to vector<1x256xf32>
    %cst_751 = arith.constant 0.000000e+00 : f32
    %1317 = vector.broadcast %cst_751 : f32 to vector<1x256xf32>
    %1318 = arith.select %1235, %1316, %1317 : vector<1x256xi1>, vector<1x256xf32>
    %cst_752 = arith.constant 2.500000e-01 : f32
    %1319 = vector.broadcast %cst_752 : f32 to vector<1x256xf32>
    %1320 = arith.mulf %1318, %1319 : vector<1x256xf32>
    %c0_753 = arith.constant 0 : index
    %c67 = arith.constant 67 : index
    %c0_754 = arith.constant 0 : index
    %1321 = vector.load %arg3[%c0_753, %c67, %c0_754] : memref<1x81x256xf32, #tpu.memory_space<vmem>>, vector<1x1x256xf32>
    %1322 = vector.shape_cast %1321 : vector<1x1x256xf32> to vector<1x256xf32>
    %1323 = vector.shape_cast %1320 : vector<1x256xf32> to vector<1x1x256xf32>
    tpu.vector_store %arg3[%c0_753, %c67, %c0_754], %1323 {strides = array<i32>} : memref<1x81x256xf32, #tpu.memory_space<vmem>>, vector<1x1x256xf32>,
    %c5_755 = arith.constant 5 : index
    %c0_756 = arith.constant 0 : index
    %c0_757 = arith.constant 0 : index
    %1324 = vector.load %arg4[%c5_755, %c0_756, %c0_757] : memref<9x4x256xf32, #tpu.memory_space<vmem>>, vector<1x4x256xf32>
    %1325 = vector.shape_cast %1324 : vector<1x4x256xf32> to vector<4x256xf32>
    %1326 = arith.mulf %1325, %1230 : vector<4x256xf32>
    %cst_758 = arith.constant dense<0.000000e+00> : vector<256xf32>
    %1327 = vector.multi_reduction <add>, %1326, %cst_758 [0] : vector<4x256xf32> to vector<256xf32>
    %1328 = vector.shape_cast %1327 : vector<256xf32> to vector<1x256xf32>
    %c255_i32_759 = arith.constant 255 : i32
    %1329 = tpu.dynamic_rotate %1328 by %c255_i32_759 dim 1 : vector<1x256xf32>, i32 -> vector<1x256xf32>
    %c-1_i32_760 = arith.constant -1 : i32
    %1330 = vector.broadcast %c-1_i32_760 : i32 to vector<1x256xi32>
    %1331 = arith.cmpi sge, %20, %1330 : vector<1x256xi32>
    %c15_i32_761 = arith.constant 15 : i32
    %1332 = vector.broadcast %c15_i32_761 : i32 to vector<1x256xi32>
    %1333 = arith.cmpi slt, %20, %1332 : vector<1x256xi32>
    %1334 = arith.andi %1331, %1333 : vector<1x256xi1>
    %1335 = arith.andi %1235, %1334 : vector<1x256xi1>
    %cst_762 = arith.constant 0.000000e+00 : f32
    %1336 = vector.broadcast %cst_762 : f32 to vector<1x256xf32>
    %1337 = arith.select %1335, %1329, %1336 : vector<1x256xi1>, vector<1x256xf32>
    %cst_763 = arith.constant 2.500000e-01 : f32
    %1338 = vector.broadcast %cst_763 : f32 to vector<1x256xf32>
    %1339 = arith.mulf %1337, %1338 : vector<1x256xf32>
    %c0_764 = arith.constant 0 : index
    %c68 = arith.constant 68 : index
    %c0_765 = arith.constant 0 : index
    %1340 = vector.load %arg3[%c0_764, %c68, %c0_765] : memref<1x81x256xf32, #tpu.memory_space<vmem>>, vector<1x1x256xf32>
    %1341 = vector.shape_cast %1340 : vector<1x1x256xf32> to vector<1x256xf32>
    %1342 = vector.shape_cast %1339 : vector<1x256xf32> to vector<1x1x256xf32>
    tpu.vector_store %arg3[%c0_764, %c68, %c0_765], %1342 {strides = array<i32>} : memref<1x81x256xf32, #tpu.memory_space<vmem>>, vector<1x1x256xf32>,
    %c6_766 = arith.constant 6 : index
    %c0_767 = arith.constant 0 : index
    %c0_768 = arith.constant 0 : index
    %1343 = vector.load %arg4[%c6_766, %c0_767, %c0_768] : memref<9x4x256xf32, #tpu.memory_space<vmem>>, vector<1x4x256xf32>
    %1344 = vector.shape_cast %1343 : vector<1x4x256xf32> to vector<4x256xf32>
    %1345 = arith.mulf %1344, %1230 : vector<4x256xf32>
    %cst_769 = arith.constant dense<0.000000e+00> : vector<256xf32>
    %1346 = vector.multi_reduction <add>, %1345, %cst_769 [0] : vector<4x256xf32> to vector<256xf32>
    %1347 = vector.shape_cast %1346 : vector<256xf32> to vector<1x256xf32>
    %c254_i32_770 = arith.constant 254 : i32
    %1348 = tpu.dynamic_rotate %1347 by %c254_i32_770 dim 1 : vector<1x256xf32>, i32 -> vector<1x256xf32>
    %c-2_i32_771 = arith.constant -2 : i32
    %1349 = vector.broadcast %c-2_i32_771 : i32 to vector<1x256xi32>
    %1350 = arith.cmpi sge, %20, %1349 : vector<1x256xi32>
    %c14_i32_772 = arith.constant 14 : i32
    %1351 = vector.broadcast %c14_i32_772 : i32 to vector<1x256xi32>
    %1352 = arith.cmpi slt, %20, %1351 : vector<1x256xi32>
    %1353 = arith.andi %1350, %1352 : vector<1x256xi1>
    %1354 = arith.andi %1235, %1353 : vector<1x256xi1>
    %cst_773 = arith.constant 0.000000e+00 : f32
    %1355 = vector.broadcast %cst_773 : f32 to vector<1x256xf32>
    %1356 = arith.select %1354, %1348, %1355 : vector<1x256xi1>, vector<1x256xf32>
    %cst_774 = arith.constant 2.500000e-01 : f32
    %1357 = vector.broadcast %cst_774 : f32 to vector<1x256xf32>
    %1358 = arith.mulf %1356, %1357 : vector<1x256xf32>
    %c0_775 = arith.constant 0 : index
    %c69 = arith.constant 69 : index
    %c0_776 = arith.constant 0 : index
    %1359 = vector.load %arg3[%c0_775, %c69, %c0_776] : memref<1x81x256xf32, #tpu.memory_space<vmem>>, vector<1x1x256xf32>
    %1360 = vector.shape_cast %1359 : vector<1x1x256xf32> to vector<1x256xf32>
    %1361 = vector.shape_cast %1358 : vector<1x256xf32> to vector<1x1x256xf32>
    tpu.vector_store %arg3[%c0_775, %c69, %c0_776], %1361 {strides = array<i32>} : memref<1x81x256xf32, #tpu.memory_space<vmem>>, vector<1x1x256xf32>,
    %c7_777 = arith.constant 7 : index
    %c0_778 = arith.constant 0 : index
    %c0_779 = arith.constant 0 : index
    %1362 = vector.load %arg4[%c7_777, %c0_778, %c0_779] : memref<9x4x256xf32, #tpu.memory_space<vmem>>, vector<1x4x256xf32>
    %1363 = vector.shape_cast %1362 : vector<1x4x256xf32> to vector<4x256xf32>
    %1364 = arith.mulf %1363, %1230 : vector<4x256xf32>
    %cst_780 = arith.constant dense<0.000000e+00> : vector<256xf32>
    %1365 = vector.multi_reduction <add>, %1364, %cst_780 [0] : vector<4x256xf32> to vector<256xf32>
    %1366 = vector.shape_cast %1365 : vector<256xf32> to vector<1x256xf32>
    %c253_i32_781 = arith.constant 253 : i32
    %1367 = tpu.dynamic_rotate %1366 by %c253_i32_781 dim 1 : vector<1x256xf32>, i32 -> vector<1x256xf32>
    %c-3_i32_782 = arith.constant -3 : i32
    %1368 = vector.broadcast %c-3_i32_782 : i32 to vector<1x256xi32>
    %1369 = arith.cmpi sge, %20, %1368 : vector<1x256xi32>
    %c13_i32_783 = arith.constant 13 : i32
    %1370 = vector.broadcast %c13_i32_783 : i32 to vector<1x256xi32>
    %1371 = arith.cmpi slt, %20, %1370 : vector<1x256xi32>
    %1372 = arith.andi %1369, %1371 : vector<1x256xi1>
    %1373 = arith.andi %1235, %1372 : vector<1x256xi1>
    %cst_784 = arith.constant 0.000000e+00 : f32
    %1374 = vector.broadcast %cst_784 : f32 to vector<1x256xf32>
    %1375 = arith.select %1373, %1367, %1374 : vector<1x256xi1>, vector<1x256xf32>
    %cst_785 = arith.constant 2.500000e-01 : f32
    %1376 = vector.broadcast %cst_785 : f32 to vector<1x256xf32>
    %1377 = arith.mulf %1375, %1376 : vector<1x256xf32>
    %c0_786 = arith.constant 0 : index
    %c70 = arith.constant 70 : index
    %c0_787 = arith.constant 0 : index
    %1378 = vector.load %arg3[%c0_786, %c70, %c0_787] : memref<1x81x256xf32, #tpu.memory_space<vmem>>, vector<1x1x256xf32>
    %1379 = vector.shape_cast %1378 : vector<1x1x256xf32> to vector<1x256xf32>
    %1380 = vector.shape_cast %1377 : vector<1x256xf32> to vector<1x1x256xf32>
    tpu.vector_store %arg3[%c0_786, %c70, %c0_787], %1380 {strides = array<i32>} : memref<1x81x256xf32, #tpu.memory_space<vmem>>, vector<1x1x256xf32>,
    %c8_788 = arith.constant 8 : index
    %c0_789 = arith.constant 0 : index
    %c0_790 = arith.constant 0 : index
    %1381 = vector.load %arg4[%c8_788, %c0_789, %c0_790] : memref<9x4x256xf32, #tpu.memory_space<vmem>>, vector<1x4x256xf32>
    %1382 = vector.shape_cast %1381 : vector<1x4x256xf32> to vector<4x256xf32>
    %1383 = arith.mulf %1382, %1230 : vector<4x256xf32>
    %cst_791 = arith.constant dense<0.000000e+00> : vector<256xf32>
    %1384 = vector.multi_reduction <add>, %1383, %cst_791 [0] : vector<4x256xf32> to vector<256xf32>
    %1385 = vector.shape_cast %1384 : vector<256xf32> to vector<1x256xf32>
    %c252_i32_792 = arith.constant 252 : i32
    %1386 = tpu.dynamic_rotate %1385 by %c252_i32_792 dim 1 : vector<1x256xf32>, i32 -> vector<1x256xf32>
    %c-4_i32_793 = arith.constant -4 : i32
    %1387 = vector.broadcast %c-4_i32_793 : i32 to vector<1x256xi32>
    %1388 = arith.cmpi sge, %20, %1387 : vector<1x256xi32>
    %c12_i32_794 = arith.constant 12 : i32
    %1389 = vector.broadcast %c12_i32_794 : i32 to vector<1x256xi32>
    %1390 = arith.cmpi slt, %20, %1389 : vector<1x256xi32>
    %1391 = arith.andi %1388, %1390 : vector<1x256xi1>
    %1392 = arith.andi %1235, %1391 : vector<1x256xi1>
    %cst_795 = arith.constant 0.000000e+00 : f32
    %1393 = vector.broadcast %cst_795 : f32 to vector<1x256xf32>
    %1394 = arith.select %1392, %1386, %1393 : vector<1x256xi1>, vector<1x256xf32>
    %cst_796 = arith.constant 2.500000e-01 : f32
    %1395 = vector.broadcast %cst_796 : f32 to vector<1x256xf32>
    %1396 = arith.mulf %1394, %1395 : vector<1x256xf32>
    %c0_797 = arith.constant 0 : index
    %c71 = arith.constant 71 : index
    %c0_798 = arith.constant 0 : index
    %1397 = vector.load %arg3[%c0_797, %c71, %c0_798] : memref<1x81x256xf32, #tpu.memory_space<vmem>>, vector<1x1x256xf32>
    %1398 = vector.shape_cast %1397 : vector<1x1x256xf32> to vector<1x256xf32>
    %1399 = vector.shape_cast %1396 : vector<1x256xf32> to vector<1x1x256xf32>
    tpu.vector_store %arg3[%c0_797, %c71, %c0_798], %1399 {strides = array<i32>} : memref<1x81x256xf32, #tpu.memory_space<vmem>>, vector<1x1x256xf32>,
    %c192_i32 = arith.constant 192 : i32
    %1400 = tpu.dynamic_rotate %3 by %c192_i32 dim 1 : vector<4x256xf32>, i32 -> vector<4x256xf32>
    %c-64_i32 = arith.constant -64 : i32
    %1401 = vector.broadcast %c-64_i32 : i32 to vector<1x256xi32>
    %1402 = arith.cmpi sge, %4, %1401 : vector<1x256xi32>
    %c192_i32_799 = arith.constant 192 : i32
    %1403 = vector.broadcast %c192_i32_799 : i32 to vector<1x256xi32>
    %1404 = arith.cmpi slt, %4, %1403 : vector<1x256xi32>
    %1405 = arith.andi %1402, %1404 : vector<1x256xi1>
    %c0_800 = arith.constant 0 : index
    %c0_801 = arith.constant 0 : index
    %c0_802 = arith.constant 0 : index
    %1406 = vector.load %arg4[%c0_800, %c0_801, %c0_802] : memref<9x4x256xf32, #tpu.memory_space<vmem>>, vector<1x4x256xf32>
    %1407 = vector.shape_cast %1406 : vector<1x4x256xf32> to vector<4x256xf32>
    %1408 = arith.mulf %1407, %1400 : vector<4x256xf32>
    %cst_803 = arith.constant dense<0.000000e+00> : vector<256xf32>
    %1409 = vector.multi_reduction <add>, %1408, %cst_803 [0] : vector<4x256xf32> to vector<256xf32>
    %1410 = vector.shape_cast %1409 : vector<256xf32> to vector<1x256xf32>
    %c4_i32_804 = arith.constant 4 : i32
    %1411 = tpu.dynamic_rotate %1410 by %c4_i32_804 dim 1 : vector<1x256xf32>, i32 -> vector<1x256xf32>
    %c4_i32_805 = arith.constant 4 : i32
    %1412 = vector.broadcast %c4_i32_805 : i32 to vector<1x256xi32>
    %1413 = arith.cmpi sge, %20, %1412 : vector<1x256xi32>
    %c20_i32_806 = arith.constant 20 : i32
    %1414 = vector.broadcast %c20_i32_806 : i32 to vector<1x256xi32>
    %1415 = arith.cmpi slt, %20, %1414 : vector<1x256xi32>
    %1416 = arith.andi %1413, %1415 : vector<1x256xi1>
    %1417 = arith.andi %1405, %1416 : vector<1x256xi1>
    %cst_807 = arith.constant 0.000000e+00 : f32
    %1418 = vector.broadcast %cst_807 : f32 to vector<1x256xf32>
    %1419 = arith.select %1417, %1411, %1418 : vector<1x256xi1>, vector<1x256xf32>
    %cst_808 = arith.constant 2.500000e-01 : f32
    %1420 = vector.broadcast %cst_808 : f32 to vector<1x256xf32>
    %1421 = arith.mulf %1419, %1420 : vector<1x256xf32>
    %c0_809 = arith.constant 0 : index
    %c72 = arith.constant 72 : index
    %c0_810 = arith.constant 0 : index
    %1422 = vector.load %arg3[%c0_809, %c72, %c0_810] : memref<1x81x256xf32, #tpu.memory_space<vmem>>, vector<1x1x256xf32>
    %1423 = vector.shape_cast %1422 : vector<1x1x256xf32> to vector<1x256xf32>
    %1424 = vector.shape_cast %1421 : vector<1x256xf32> to vector<1x1x256xf32>
    tpu.vector_store %arg3[%c0_809, %c72, %c0_810], %1424 {strides = array<i32>} : memref<1x81x256xf32, #tpu.memory_space<vmem>>, vector<1x1x256xf32>,
    %c1_811 = arith.constant 1 : index
    %c0_812 = arith.constant 0 : index
    %c0_813 = arith.constant 0 : index
    %1425 = vector.load %arg4[%c1_811, %c0_812, %c0_813] : memref<9x4x256xf32, #tpu.memory_space<vmem>>, vector<1x4x256xf32>
    %1426 = vector.shape_cast %1425 : vector<1x4x256xf32> to vector<4x256xf32>
    %1427 = arith.mulf %1426, %1400 : vector<4x256xf32>
    %cst_814 = arith.constant dense<0.000000e+00> : vector<256xf32>
    %1428 = vector.multi_reduction <add>, %1427, %cst_814 [0] : vector<4x256xf32> to vector<256xf32>
    %1429 = vector.shape_cast %1428 : vector<256xf32> to vector<1x256xf32>
    %c3_i32_815 = arith.constant 3 : i32
    %1430 = tpu.dynamic_rotate %1429 by %c3_i32_815 dim 1 : vector<1x256xf32>, i32 -> vector<1x256xf32>
    %c3_i32_816 = arith.constant 3 : i32
    %1431 = vector.broadcast %c3_i32_816 : i32 to vector<1x256xi32>
    %1432 = arith.cmpi sge, %20, %1431 : vector<1x256xi32>
    %c19_i32_817 = arith.constant 19 : i32
    %1433 = vector.broadcast %c19_i32_817 : i32 to vector<1x256xi32>
    %1434 = arith.cmpi slt, %20, %1433 : vector<1x256xi32>
    %1435 = arith.andi %1432, %1434 : vector<1x256xi1>
    %1436 = arith.andi %1405, %1435 : vector<1x256xi1>
    %cst_818 = arith.constant 0.000000e+00 : f32
    %1437 = vector.broadcast %cst_818 : f32 to vector<1x256xf32>
    %1438 = arith.select %1436, %1430, %1437 : vector<1x256xi1>, vector<1x256xf32>
    %cst_819 = arith.constant 2.500000e-01 : f32
    %1439 = vector.broadcast %cst_819 : f32 to vector<1x256xf32>
    %1440 = arith.mulf %1438, %1439 : vector<1x256xf32>
    %c0_820 = arith.constant 0 : index
    %c73 = arith.constant 73 : index
    %c0_821 = arith.constant 0 : index
    %1441 = vector.load %arg3[%c0_820, %c73, %c0_821] : memref<1x81x256xf32, #tpu.memory_space<vmem>>, vector<1x1x256xf32>
    %1442 = vector.shape_cast %1441 : vector<1x1x256xf32> to vector<1x256xf32>
    %1443 = vector.shape_cast %1440 : vector<1x256xf32> to vector<1x1x256xf32>
    tpu.vector_store %arg3[%c0_820, %c73, %c0_821], %1443 {strides = array<i32>} : memref<1x81x256xf32, #tpu.memory_space<vmem>>, vector<1x1x256xf32>,
    %c2_822 = arith.constant 2 : index
    %c0_823 = arith.constant 0 : index
    %c0_824 = arith.constant 0 : index
    %1444 = vector.load %arg4[%c2_822, %c0_823, %c0_824] : memref<9x4x256xf32, #tpu.memory_space<vmem>>, vector<1x4x256xf32>
    %1445 = vector.shape_cast %1444 : vector<1x4x256xf32> to vector<4x256xf32>
    %1446 = arith.mulf %1445, %1400 : vector<4x256xf32>
    %cst_825 = arith.constant dense<0.000000e+00> : vector<256xf32>
    %1447 = vector.multi_reduction <add>, %1446, %cst_825 [0] : vector<4x256xf32> to vector<256xf32>
    %1448 = vector.shape_cast %1447 : vector<256xf32> to vector<1x256xf32>
    %c2_i32_826 = arith.constant 2 : i32
    %1449 = tpu.dynamic_rotate %1448 by %c2_i32_826 dim 1 : vector<1x256xf32>, i32 -> vector<1x256xf32>
    %c2_i32_827 = arith.constant 2 : i32
    %1450 = vector.broadcast %c2_i32_827 : i32 to vector<1x256xi32>
    %1451 = arith.cmpi sge, %20, %1450 : vector<1x256xi32>
    %c18_i32_828 = arith.constant 18 : i32
    %1452 = vector.broadcast %c18_i32_828 : i32 to vector<1x256xi32>
    %1453 = arith.cmpi slt, %20, %1452 : vector<1x256xi32>
    %1454 = arith.andi %1451, %1453 : vector<1x256xi1>
    %1455 = arith.andi %1405, %1454 : vector<1x256xi1>
    %cst_829 = arith.constant 0.000000e+00 : f32
    %1456 = vector.broadcast %cst_829 : f32 to vector<1x256xf32>
    %1457 = arith.select %1455, %1449, %1456 : vector<1x256xi1>, vector<1x256xf32>
    %cst_830 = arith.constant 2.500000e-01 : f32
    %1458 = vector.broadcast %cst_830 : f32 to vector<1x256xf32>
    %1459 = arith.mulf %1457, %1458 : vector<1x256xf32>
    %c0_831 = arith.constant 0 : index
    %c74 = arith.constant 74 : index
    %c0_832 = arith.constant 0 : index
    %1460 = vector.load %arg3[%c0_831, %c74, %c0_832] : memref<1x81x256xf32, #tpu.memory_space<vmem>>, vector<1x1x256xf32>
    %1461 = vector.shape_cast %1460 : vector<1x1x256xf32> to vector<1x256xf32>
    %1462 = vector.shape_cast %1459 : vector<1x256xf32> to vector<1x1x256xf32>
    tpu.vector_store %arg3[%c0_831, %c74, %c0_832], %1462 {strides = array<i32>} : memref<1x81x256xf32, #tpu.memory_space<vmem>>, vector<1x1x256xf32>,
    %c3_833 = arith.constant 3 : index
    %c0_834 = arith.constant 0 : index
    %c0_835 = arith.constant 0 : index
    %1463 = vector.load %arg4[%c3_833, %c0_834, %c0_835] : memref<9x4x256xf32, #tpu.memory_space<vmem>>, vector<1x4x256xf32>
    %1464 = vector.shape_cast %1463 : vector<1x4x256xf32> to vector<4x256xf32>
    %1465 = arith.mulf %1464, %1400 : vector<4x256xf32>
    %cst_836 = arith.constant dense<0.000000e+00> : vector<256xf32>
    %1466 = vector.multi_reduction <add>, %1465, %cst_836 [0] : vector<4x256xf32> to vector<256xf32>
    %1467 = vector.shape_cast %1466 : vector<256xf32> to vector<1x256xf32>
    %c1_i32_837 = arith.constant 1 : i32
    %1468 = tpu.dynamic_rotate %1467 by %c1_i32_837 dim 1 : vector<1x256xf32>, i32 -> vector<1x256xf32>
    %c1_i32_838 = arith.constant 1 : i32
    %1469 = vector.broadcast %c1_i32_838 : i32 to vector<1x256xi32>
    %1470 = arith.cmpi sge, %20, %1469 : vector<1x256xi32>
    %c17_i32_839 = arith.constant 17 : i32
    %1471 = vector.broadcast %c17_i32_839 : i32 to vector<1x256xi32>
    %1472 = arith.cmpi slt, %20, %1471 : vector<1x256xi32>
    %1473 = arith.andi %1470, %1472 : vector<1x256xi1>
    %1474 = arith.andi %1405, %1473 : vector<1x256xi1>
    %cst_840 = arith.constant 0.000000e+00 : f32
    %1475 = vector.broadcast %cst_840 : f32 to vector<1x256xf32>
    %1476 = arith.select %1474, %1468, %1475 : vector<1x256xi1>, vector<1x256xf32>
    %cst_841 = arith.constant 2.500000e-01 : f32
    %1477 = vector.broadcast %cst_841 : f32 to vector<1x256xf32>
    %1478 = arith.mulf %1476, %1477 : vector<1x256xf32>
    %c0_842 = arith.constant 0 : index
    %c75 = arith.constant 75 : index
    %c0_843 = arith.constant 0 : index
    %1479 = vector.load %arg3[%c0_842, %c75, %c0_843] : memref<1x81x256xf32, #tpu.memory_space<vmem>>, vector<1x1x256xf32>
    %1480 = vector.shape_cast %1479 : vector<1x1x256xf32> to vector<1x256xf32>
    %1481 = vector.shape_cast %1478 : vector<1x256xf32> to vector<1x1x256xf32>
    tpu.vector_store %arg3[%c0_842, %c75, %c0_843], %1481 {strides = array<i32>} : memref<1x81x256xf32, #tpu.memory_space<vmem>>, vector<1x1x256xf32>,
    %c4_844 = arith.constant 4 : index
    %c0_845 = arith.constant 0 : index
    %c0_846 = arith.constant 0 : index
    %1482 = vector.load %arg4[%c4_844, %c0_845, %c0_846] : memref<9x4x256xf32, #tpu.memory_space<vmem>>, vector<1x4x256xf32>
    %1483 = vector.shape_cast %1482 : vector<1x4x256xf32> to vector<4x256xf32>
    %1484 = arith.mulf %1483, %1400 : vector<4x256xf32>
    %cst_847 = arith.constant dense<0.000000e+00> : vector<256xf32>
    %1485 = vector.multi_reduction <add>, %1484, %cst_847 [0] : vector<4x256xf32> to vector<256xf32>
    %1486 = vector.shape_cast %1485 : vector<256xf32> to vector<1x256xf32>
    %cst_848 = arith.constant 0.000000e+00 : f32
    %1487 = vector.broadcast %cst_848 : f32 to vector<1x256xf32>
    %1488 = arith.select %1405, %1486, %1487 : vector<1x256xi1>, vector<1x256xf32>
    %cst_849 = arith.constant 2.500000e-01 : f32
    %1489 = vector.broadcast %cst_849 : f32 to vector<1x256xf32>
    %1490 = arith.mulf %1488, %1489 : vector<1x256xf32>
    %c0_850 = arith.constant 0 : index
    %c76 = arith.constant 76 : index
    %c0_851 = arith.constant 0 : index
    %1491 = vector.load %arg3[%c0_850, %c76, %c0_851] : memref<1x81x256xf32, #tpu.memory_space<vmem>>, vector<1x1x256xf32>
    %1492 = vector.shape_cast %1491 : vector<1x1x256xf32> to vector<1x256xf32>
    %1493 = vector.shape_cast %1490 : vector<1x256xf32> to vector<1x1x256xf32>
    tpu.vector_store %arg3[%c0_850, %c76, %c0_851], %1493 {strides = array<i32>} : memref<1x81x256xf32, #tpu.memory_space<vmem>>, vector<1x1x256xf32>,
    %c5_852 = arith.constant 5 : index
    %c0_853 = arith.constant 0 : index
    %c0_854 = arith.constant 0 : index
    %1494 = vector.load %arg4[%c5_852, %c0_853, %c0_854] : memref<9x4x256xf32, #tpu.memory_space<vmem>>, vector<1x4x256xf32>
    %1495 = vector.shape_cast %1494 : vector<1x4x256xf32> to vector<4x256xf32>
    %1496 = arith.mulf %1495, %1400 : vector<4x256xf32>
    %cst_855 = arith.constant dense<0.000000e+00> : vector<256xf32>
    %1497 = vector.multi_reduction <add>, %1496, %cst_855 [0] : vector<4x256xf32> to vector<256xf32>
    %1498 = vector.shape_cast %1497 : vector<256xf32> to vector<1x256xf32>
    %c255_i32_856 = arith.constant 255 : i32
    %1499 = tpu.dynamic_rotate %1498 by %c255_i32_856 dim 1 : vector<1x256xf32>, i32 -> vector<1x256xf32>
    %c-1_i32_857 = arith.constant -1 : i32
    %1500 = vector.broadcast %c-1_i32_857 : i32 to vector<1x256xi32>
    %1501 = arith.cmpi sge, %20, %1500 : vector<1x256xi32>
    %c15_i32_858 = arith.constant 15 : i32
    %1502 = vector.broadcast %c15_i32_858 : i32 to vector<1x256xi32>
    %1503 = arith.cmpi slt, %20, %1502 : vector<1x256xi32>
    %1504 = arith.andi %1501, %1503 : vector<1x256xi1>
    %1505 = arith.andi %1405, %1504 : vector<1x256xi1>
    %cst_859 = arith.constant 0.000000e+00 : f32
    %1506 = vector.broadcast %cst_859 : f32 to vector<1x256xf32>
    %1507 = arith.select %1505, %1499, %1506 : vector<1x256xi1>, vector<1x256xf32>
    %cst_860 = arith.constant 2.500000e-01 : f32
    %1508 = vector.broadcast %cst_860 : f32 to vector<1x256xf32>
    %1509 = arith.mulf %1507, %1508 : vector<1x256xf32>
    %c0_861 = arith.constant 0 : index
    %c77 = arith.constant 77 : index
    %c0_862 = arith.constant 0 : index
    %1510 = vector.load %arg3[%c0_861, %c77, %c0_862] : memref<1x81x256xf32, #tpu.memory_space<vmem>>, vector<1x1x256xf32>
    %1511 = vector.shape_cast %1510 : vector<1x1x256xf32> to vector<1x256xf32>
    %1512 = vector.shape_cast %1509 : vector<1x256xf32> to vector<1x1x256xf32>
    tpu.vector_store %arg3[%c0_861, %c77, %c0_862], %1512 {strides = array<i32>} : memref<1x81x256xf32, #tpu.memory_space<vmem>>, vector<1x1x256xf32>,
    %c6_863 = arith.constant 6 : index
    %c0_864 = arith.constant 0 : index
    %c0_865 = arith.constant 0 : index
    %1513 = vector.load %arg4[%c6_863, %c0_864, %c0_865] : memref<9x4x256xf32, #tpu.memory_space<vmem>>, vector<1x4x256xf32>
    %1514 = vector.shape_cast %1513 : vector<1x4x256xf32> to vector<4x256xf32>
    %1515 = arith.mulf %1514, %1400 : vector<4x256xf32>
    %cst_866 = arith.constant dense<0.000000e+00> : vector<256xf32>
    %1516 = vector.multi_reduction <add>, %1515, %cst_866 [0] : vector<4x256xf32> to vector<256xf32>
    %1517 = vector.shape_cast %1516 : vector<256xf32> to vector<1x256xf32>
    %c254_i32_867 = arith.constant 254 : i32
    %1518 = tpu.dynamic_rotate %1517 by %c254_i32_867 dim 1 : vector<1x256xf32>, i32 -> vector<1x256xf32>
    %c-2_i32_868 = arith.constant -2 : i32
    %1519 = vector.broadcast %c-2_i32_868 : i32 to vector<1x256xi32>
    %1520 = arith.cmpi sge, %20, %1519 : vector<1x256xi32>
    %c14_i32_869 = arith.constant 14 : i32
    %1521 = vector.broadcast %c14_i32_869 : i32 to vector<1x256xi32>
    %1522 = arith.cmpi slt, %20, %1521 : vector<1x256xi32>
    %1523 = arith.andi %1520, %1522 : vector<1x256xi1>
    %1524 = arith.andi %1405, %1523 : vector<1x256xi1>
    %cst_870 = arith.constant 0.000000e+00 : f32
    %1525 = vector.broadcast %cst_870 : f32 to vector<1x256xf32>
    %1526 = arith.select %1524, %1518, %1525 : vector<1x256xi1>, vector<1x256xf32>
    %cst_871 = arith.constant 2.500000e-01 : f32
    %1527 = vector.broadcast %cst_871 : f32 to vector<1x256xf32>
    %1528 = arith.mulf %1526, %1527 : vector<1x256xf32>
    %c0_872 = arith.constant 0 : index
    %c78 = arith.constant 78 : index
    %c0_873 = arith.constant 0 : index
    %1529 = vector.load %arg3[%c0_872, %c78, %c0_873] : memref<1x81x256xf32, #tpu.memory_space<vmem>>, vector<1x1x256xf32>
    %1530 = vector.shape_cast %1529 : vector<1x1x256xf32> to vector<1x256xf32>
    %1531 = vector.shape_cast %1528 : vector<1x256xf32> to vector<1x1x256xf32>
    tpu.vector_store %arg3[%c0_872, %c78, %c0_873], %1531 {strides = array<i32>} : memref<1x81x256xf32, #tpu.memory_space<vmem>>, vector<1x1x256xf32>,
    %c7_874 = arith.constant 7 : index
    %c0_875 = arith.constant 0 : index
    %c0_876 = arith.constant 0 : index
    %1532 = vector.load %arg4[%c7_874, %c0_875, %c0_876] : memref<9x4x256xf32, #tpu.memory_space<vmem>>, vector<1x4x256xf32>
    %1533 = vector.shape_cast %1532 : vector<1x4x256xf32> to vector<4x256xf32>
    %1534 = arith.mulf %1533, %1400 : vector<4x256xf32>
    %cst_877 = arith.constant dense<0.000000e+00> : vector<256xf32>
    %1535 = vector.multi_reduction <add>, %1534, %cst_877 [0] : vector<4x256xf32> to vector<256xf32>
    %1536 = vector.shape_cast %1535 : vector<256xf32> to vector<1x256xf32>
    %c253_i32_878 = arith.constant 253 : i32
    %1537 = tpu.dynamic_rotate %1536 by %c253_i32_878 dim 1 : vector<1x256xf32>, i32 -> vector<1x256xf32>
    %c-3_i32_879 = arith.constant -3 : i32
    %1538 = vector.broadcast %c-3_i32_879 : i32 to vector<1x256xi32>
    %1539 = arith.cmpi sge, %20, %1538 : vector<1x256xi32>
    %c13_i32_880 = arith.constant 13 : i32
    %1540 = vector.broadcast %c13_i32_880 : i32 to vector<1x256xi32>
    %1541 = arith.cmpi slt, %20, %1540 : vector<1x256xi32>
    %1542 = arith.andi %1539, %1541 : vector<1x256xi1>
    %1543 = arith.andi %1405, %1542 : vector<1x256xi1>
    %cst_881 = arith.constant 0.000000e+00 : f32
    %1544 = vector.broadcast %cst_881 : f32 to vector<1x256xf32>
    %1545 = arith.select %1543, %1537, %1544 : vector<1x256xi1>, vector<1x256xf32>
    %cst_882 = arith.constant 2.500000e-01 : f32
    %1546 = vector.broadcast %cst_882 : f32 to vector<1x256xf32>
    %1547 = arith.mulf %1545, %1546 : vector<1x256xf32>
    %c0_883 = arith.constant 0 : index
    %c79 = arith.constant 79 : index
    %c0_884 = arith.constant 0 : index
    %1548 = vector.load %arg3[%c0_883, %c79, %c0_884] : memref<1x81x256xf32, #tpu.memory_space<vmem>>, vector<1x1x256xf32>
    %1549 = vector.shape_cast %1548 : vector<1x1x256xf32> to vector<1x256xf32>
    %1550 = vector.shape_cast %1547 : vector<1x256xf32> to vector<1x1x256xf32>
    tpu.vector_store %arg3[%c0_883, %c79, %c0_884], %1550 {strides = array<i32>} : memref<1x81x256xf32, #tpu.memory_space<vmem>>, vector<1x1x256xf32>,
    %c8_885 = arith.constant 8 : index
    %c0_886 = arith.constant 0 : index
    %c0_887 = arith.constant 0 : index
    %1551 = vector.load %arg4[%c8_885, %c0_886, %c0_887] : memref<9x4x256xf32, #tpu.memory_space<vmem>>, vector<1x4x256xf32>
    %1552 = vector.shape_cast %1551 : vector<1x4x256xf32> to vector<4x256xf32>
    %1553 = arith.mulf %1552, %1400 : vector<4x256xf32>
    %cst_888 = arith.constant dense<0.000000e+00> : vector<256xf32>
    %1554 = vector.multi_reduction <add>, %1553, %cst_888 [0] : vector<4x256xf32> to vector<256xf32>
    %1555 = vector.shape_cast %1554 : vector<256xf32> to vector<1x256xf32>
    %c252_i32_889 = arith.constant 252 : i32
    %1556 = tpu.dynamic_rotate %1555 by %c252_i32_889 dim 1 : vector<1x256xf32>, i32 -> vector<1x256xf32>
    %c-4_i32_890 = arith.constant -4 : i32
    %1557 = vector.broadcast %c-4_i32_890 : i32 to vector<1x256xi32>
    %1558 = arith.cmpi sge, %20, %1557 : vector<1x256xi32>
    %c12_i32_891 = arith.constant 12 : i32
    %1559 = vector.broadcast %c12_i32_891 : i32 to vector<1x256xi32>
    %1560 = arith.cmpi slt, %20, %1559 : vector<1x256xi32>
    %1561 = arith.andi %1558, %1560 : vector<1x256xi1>
    %1562 = arith.andi %1405, %1561 : vector<1x256xi1>
    %cst_892 = arith.constant 0.000000e+00 : f32
    %1563 = vector.broadcast %cst_892 : f32 to vector<1x256xf32>
    %1564 = arith.select %1562, %1556, %1563 : vector<1x256xi1>, vector<1x256xf32>
    %cst_893 = arith.constant 2.500000e-01 : f32
    %1565 = vector.broadcast %cst_893 : f32 to vector<1x256xf32>
    %1566 = arith.mulf %1564, %1565 : vector<1x256xf32>
    %c0_894 = arith.constant 0 : index
    %c80 = arith.constant 80 : index
    %c0_895 = arith.constant 0 : index
    %1567 = vector.load %arg3[%c0_894, %c80, %c0_895] : memref<1x81x256xf32, #tpu.memory_space<vmem>>, vector<1x1x256xf32>
    %1568 = vector.shape_cast %1567 : vector<1x1x256xf32> to vector<1x256xf32>
    %1569 = vector.shape_cast %1566 : vector<1x256xf32> to vector<1x1x256xf32>
    tpu.vector_store %arg3[%c0_894, %c80, %c0_895], %1569 {strides = array<i32>} : memref<1x81x256xf32, #tpu.memory_space<vmem>>, vector<1x1x256xf32>,
    return
  }
  func.func @transform_0(%arg0: i32) -> (i32, i32, i32) {
    %c0_i32 = arith.constant 0 : i32
    %c0_i32_0 = arith.constant 0 : i32
    %c0_i32_1 = arith.constant 0 : i32
    return %arg0, %c0_i32, %c0_i32_0 : i32, i32, i32
  }
  func.func @transform_1(%arg0: i32) -> (i32, i32, i32) {
    %c0_i32 = arith.constant 0 : i32
    %c0_i32_0 = arith.constant 0 : i32
    %c0_i32_1 = arith.constant 0 : i32
    return %arg0, %c0_i32, %c0_i32_0 : i32, i32, i32
  }
  func.func @transform_2(%arg0: i32) -> (i32, i32, i32) {
    %c0_i32 = arith.constant 0 : i32
    %c0_i32_0 = arith.constant 0 : i32
    %c0_i32_1 = arith.constant 0 : i32
    return %arg0, %c0_i32, %c0_i32_0 : i32, i32, i32
  }
}

</mosaic_0001>

<bundles_post_ra>
// kernel: tpu_custom_call.1
= control target key start
LH: loop header
LB: loop body
LE: loop exit
PB: predicated region body
PF: predicated region fallthrough
CT: control target
= control target key end

     0   :  { %7 = vsyncpa [#allocation4], 0  ;;  %s6886_s0 = inlined_call_operand.hbm [shape: f32[2,4,256], index: 0, kind: input, shape index: {}]   ;;  %s6887_s1 = inlined_call_operand.hbm [shape: f32[2,4,256], index: 1, kind: input, shape index: {}]   ;;  %s6888_s2 = inlined_call_operand.vmem [shape: f32[2,81,256], index: 2, kind: output, shape index: {}]  }
   0x1   :  { %9 = vsyncpa [#allocation4 + $0x1], 0 }
   0x2   :  { %10 = vsyncpa [#allocation6], 0 }
   0x3   :  { %12 = vsyncpa [#allocation6 + $0x1], 0  ;;  %s4313_s9 = smov 0   ;;  %s4315_s10 = smov 0  }
   0x4   :  { %s4317_s11 = smov 0   ;;  %s4319_s12 = smov 0  }
   0x5 LB: > { %s4332_s13 = sadd.s32 4294967295, %s4281_s12   ;;  %s4335_s14 = sadd.s32 1, %s4281_s12   ;;  %s4281_s12 = sphi %s4319_s12, %s7353_s12   ;;  %s4277_s11 = sphi %s4317_s11, %s7352_s11   ;;  %s4273_s10 = sphi %s4315_s10, %s7351_s10   ;;  %s4269_s9 = sphi %s4313_s9, %s7350_s9  }
   0x6   : > { %s22_s15 = ssub.s32 %s4281_s12, %s4335_s14  ;;  %s25_s16 = sadd.s32 1, %s4277_s11 }
   0x7   : > { %p23_p0 = scmp.eq.s32.totalorder %s22_s15, 0  ;;  %p32_p1 = scmp.ne.s32.totalorder %s4277_s11, %s4273_s10 }
   0x8   : > { %p33_p2 = scmp.eq.s32.totalorder %s4281_s12, 0  ;;  %p38_p3 = scmp.ne.s32.totalorder %s4273_s10, %s4269_s9 }
   0x9   : > { %s4345_s17 = scalar_select %p23_p0, %s4277_s11, %s25_s16  }
   0xa   : > { %p4347_p4 = por %p33_p2, %p32_p1  ;;  %p39_p5 = scmp.eq.s32.totalorder %s4332_s13, 0 }
   0xb   : > { %p4135_p6 = scmp.lt.s32.totalorder %s4281_s12, 2  ;;  %s4358_s20 = sand.u32 1, %s4277_s11  }
   0xc   : > { %p4353_p7 = por %p39_p5, %p38_p3  ;;  %s4029_s21 = sshll.u32 %s4358_s20, 3 }
   0xd   : > { %s4121_s22 = sshll.u32 %s4281_s12, 3  ;;  %s118_s26 = scalar_lea.vmem [#allocation3], %s4029_s21 }
   0xe   : > { %s123_s25 = scalar_lea.hbm %s6886_s0, %s4121_s22  ;;  %s127_s27 = sshll.u32 %s118_s26, 4  ;;  %s128_s27 = int_to_ptr.vmem [resolvable:$true] %s127_s27 }
   0xf   : > { %s125_s28 = sshll.u32 %s123_s25, 4  ;;  %p4367_p8 = pnand %p4135_p6, %p4347_p4  ;;  %s126_s28 = int_to_ptr.hbm [resolvable:$true] %s125_s28 }
  0x10   : > { %p4035_p9 = scmp.ge.s32.totalorder %s4281_s12, 1  ;;  %p152_p10 = scmp.lt.s32.totalorder %s4281_s12, 3 }
  0x11   : > { %s115_s30 = scalar_lea.sflag [#allocation4], %s4358_s20  ;;  %s4183_s3 = sshra.s32 %s126_s28, 4  ;;  %s4184_s3 = int_to_ptr.hbm [resolvable:$true] %s4183_s3 }
  0x12   : > { %s4185_s4 = scalar_lea.hbm %s4184_s3, 8  ;;  %p4187_p12 = pneg %p4367_p8 }
  0x13   : > { %p4186_p11 = scmp.ne.s32.totalorder %s4184_s3, %s4185_s4  ;;  %s4190_s7 = scalar_lea.hbm %s6886_s0, 16 }
  0x14   : > { %p4191_p1 = scmp.lt.s32.totalorder %s4184_s3, %s6886_s0  ;;  %p4192_p2 = scmp.lt.s32.totalorder %s4190_s7, %s4185_s4 }
  0x15   : > { %p4188_p13 = pnand %p4187_p12, %p4186_p11 }
  0x16   : > { %p4193_p3 = por %p4192_p2, %p4191_p1 }
  0x17   : > { %p4189_p0 = pneg %p4188_p13 }
  0x19   : > { %p4194_p4 = pnand %p4193_p3, %p4189_p0 }
  0x1b   : > { %4197 = shalt.err (!%p4194_p4)
}
  0x1c   : > { %4131 = dma.hbm_to_vmem [thread:$0]  (!%p4367_p8), %s126_s28, 128, %s128_s27, %s115_s30  }
  0x1d   : > { %p4391_p5 = pnand %p4035_p9, %p152_p10  ;;  %s143_s23 = scalar_lea.hbm %s6887_s1, %s4121_s22 }
  0x1e   : > { %s138_s24 = scalar_lea.vmem [#allocation5], %s4029_s21  ;;  %s145_s26 = sshll.u32 %s143_s23, 4  ;;  %s146_s26 = int_to_ptr.hbm [resolvable:$true] %s145_s26 }
  0x1f   : > { %s147_s25 = sshll.u32 %s138_s24, 4  ;;  %s135_s3 = scalar_lea.sflag [#allocation6], %s4358_s20  ;;  %s148_s25 = int_to_ptr.vmem [resolvable:$true] %s147_s25 }
  0x20   : > { %s4213_s4 = sshra.s32 %s146_s26, 4  ;;  %s4220_s28 = scalar_lea.hbm %s6887_s1, 16  ;;  %s4214_s4 = int_to_ptr.hbm [resolvable:$true] %s4213_s4 }
  0x21   : > { %s4215_s5 = scalar_lea.hbm %s4214_s4, 8  ;;  %p4221_p11 = scmp.lt.s32.totalorder %s4214_s4, %s6887_s1 }
  0x22   : > { %p4216_p6 = scmp.ne.s32.totalorder %s4214_s4, %s4215_s5  ;;  %p4222_p13 = scmp.lt.s32.totalorder %s4220_s28, %s4215_s5 }
  0x24   : > { %p4218_p9 = pnand %p4216_p6, %p4187_p12  ;;  %p4223_p0 = por %p4222_p13, %p4221_p11 }
  0x26   : > { %p4219_p10 = pneg %p4218_p9 }
  0x28   : > { %p4224_p1 = pnand %p4223_p0, %p4219_p10 }
  0x2a   : > { %4227 = shalt.err (!%p4224_p1)
}
  0x2b   : > { %4134 = dma.hbm_to_vmem [thread:$0]  (!%p4367_p8), %s146_s26, 128, %s148_s25, %s135_s3  }
  0x2c   : > { %156 = sbr.rel (%p4391_p5) target bundleno = 2017 (0x7e1), region = 28 }
  0x31   : > { %s158_s20 = sand.u32 1, %s4273_s10  }
  0x32   : > { %s4036_s21 = sshll.u32 %s158_s20, 3  ;;  %s159_s6 = scalar_lea.sflag [#allocation4], %s158_s20 }
  0x33   : > { %s162_s7 = scalar_lea.vmem [#allocation3], %s4036_s21 }
  0x34   : > { %4260 = dma.done.wait (%p4353_p7), %s159_s6, 128  }
  0x35   : > { %4262 = vsyncadd (%p4353_p7), %s159_s6, 4294967168  ;;  %s169_s8 = scalar_lea.sflag [#allocation6], %s158_s20  ;;  %s4417_s9 = scalar_lea.vmem [#allocation5], %s4036_s21 }
  0x36   : > { %4264 = dma.done.wait (%p4353_p7), %s169_s8, 128  }
  0x37   : > { %4266 = vsyncadd (%p4353_p7), %s169_s8, 4294967168  ;;  %v4423_v0 = vld [vmem:[%s162_s7] sm:$0xff]  ;;  %s4283_s29 = smov 124   ;;  %s4284_s15 = smov 125   ;;  %v4445_v15 = vld [vmem:[%s4417_s9] sm:$0xff]  ;;  %v206_v21 = vlaneseq  ;;  %vm249_vm2 = vcmask 1043456  }
  0x38   : > { %234 = vst [vmem:[#allocation1] ss:$2 sm:$0xff] %v4423_v0  ;;  %s4285_s19 = smov 126   ;;  %s4286_s16 = smov 127   ;;  %vm455_vm11 = vcmask 1040384  }
  0x39   : > { %s4287_s18 = smov 1   ;;  %s4288_s23 = smov 2   ;;  %6920 = vst [vmem:[#allocation9_spill] sm:$0xff] %v4445_v15  ;;  %v4456_v22 = vand.u32 127, %v206_v21  ;;  %vm4582_vm12 = vcmp.lt.s32.totalorder %v206_v21, 256 }
  0x3a   : > { %s4289_s24 = smov 3   ;;  %s4290_s25 = smov 4  }
  0x3b   : > { %s4291_s26 = smov 64   ;;  %vm6894_vm0 = vcmp.lt.s32.totalorder %v4456_v22, 124  ;;  %vm6891_vm1 = vcmp.lt.s32.totalorder %v4456_v22, 64  ;;  %vm6895_vm3 = vcmp.lt.s32.totalorder %v4456_v22, 125  ;;  %vm6904_vm4 = vcmp.lt.s32.totalorder %v4456_v22, 126  ;;  %p199_p7 = scmp.lt.s32.totalorder %s4332_s13, 1 }
  0x3c   : > { %vm6896_vm5 = vcmp.lt.s32.totalorder %v4456_v22, 127  ;;  %vm6912_vm6 = vcmp.lt.s32.totalorder %v4456_v22, 1  ;;  %vm6901_vm7 = vcmp.lt.s32.totalorder %v4456_v22, 2  ;;  %vm6897_vm8 = vcmp.lt.s32.totalorder %v4456_v22, 3  ;;  %s4292_s12 = smov 48   ;;  %s4293_s27 = smov 32  }
  0x3d   : > { %vm6905_vm9 = vcmp.lt.s32.totalorder %v4456_v22, 4  ;;  %s7355_s13 = smov (!%p199_p7, %s4332_s13), 1  ;;  %vm401_vm10 = vcmp.ge.s32.totalorder %v4456_v22, 64  ;;  %vm843_vm13 = vcmp.lt.s32.totalorder %v4456_v22, 48  ;;  %vm846_vm14 = vcmp.ge.s32.totalorder %v4456_v22, 48  ;;  %s4294_s28 = smov 16  }
  0x3e   : > { %s4123_s3 = smul.u32 176, %s7355_s13  ;;  %vm1236_vm15 = vcmp.lt.s32.totalorder %v4456_v22, 32  ;;  %s4295_s30 = smov 112  }
  0x3f   : > { %v235_v1 = vld.sshfl [vmem:[#allocation1] sm:$0xff pattern:$0x75316420]  ;;  %v236_v2 = vld.sshfl [vmem:[#allocation1 + $0x8] sm:$0xff pattern:$0x75316420] }
  0x40   : > { %239 = vrot.lane.b32.xlu0 %v235_v1, %s4283_s29  ;;  %253 = vst [vmem:[#allocation1] ss:$2 sm:$0xff] %v4423_v0  ;;  %s4579_s5 = scalar_lea.vmem %s6888_s2, %s4123_s3  ;;  %s4296_s22 = smov 96  }
  0x41   : > { %s4297_s20 = smov 80  }
  0x47   : > { %v254_v3 = vld.sshfl [vmem:[#allocation1] sm:$0xff pattern:$0x75316420]  ;;  %v255_v4 = vld.sshfl [vmem:[#allocation1 + $0x8] sm:$0xff pattern:$0x75316420] }
  0x48   : > { %241 = vrot.lane.b32.xlu0 %v236_v2, %s4283_s29  ;;  %272 = vst [vmem:[#allocation1] ss:$2 sm:$0xff] %v4423_v0  ;;  %258 = vrot.lane.b32.xlu2 %v254_v3, %s4284_s15 }
  0x4f   : > { %v273_v5 = vld.sshfl [vmem:[#allocation1] sm:$0xff pattern:$0x75316420]  ;;  %v274_v6 = vld.sshfl [vmem:[#allocation1 + $0x8] sm:$0xff pattern:$0x75316420] }
  0x50   : > { %277 = vrot.lane.b32.xlu0 %v273_v5, %s4285_s19  ;;  %291 = vst [vmem:[#allocation1] ss:$2 sm:$0xff] %v4423_v0  ;;  %260 = vrot.lane.b32.xlu2 %v255_v4, %s4284_s15 }
  0x57   : > { %v293_v7 = vld.sshfl [vmem:[#allocation1 + $0x8] sm:$0xff pattern:$0x75316420]  ;;  %v292_v8 = vld.sshfl [vmem:[#allocation1] sm:$0xff pattern:$0x75316420] }
  0x58   : > { %298 = vrot.lane.b32.xlu0 %v293_v7, %s4286_s16  ;;  %312 = vst [vmem:[#allocation1] ss:$2 sm:$0xff] %v4423_v0  ;;  %296 = vrot.lane.b32.xlu2 %v292_v8, %s4286_s16 }
  0x5f   : > { %v313_v9 = vld.sshfl [vmem:[#allocation1] sm:$0xff pattern:$0x75316420]  ;;  %v314_v10 = vld.sshfl [vmem:[#allocation1 + $0x8] sm:$0xff pattern:$0x75316420] }
  0x60   : > { %331 = vst [vmem:[#allocation1] ss:$2 sm:$0xff] %v4423_v0  ;;  %319 = vrot.lane.b32.xlu2 %v314_v10, %s4287_s18 }
  0x67   : > { %v332_v11 = vld.sshfl [vmem:[#allocation1] sm:$0xff pattern:$0x75316420]  ;;  %v333_v12 = vld.sshfl [vmem:[#allocation1 + $0x8] sm:$0xff pattern:$0x75316420] }
  0x68   : > { %336 = vrot.lane.b32.xlu0 %v332_v11, %s4288_s23  ;;  %350 = vst [vmem:[#allocation1] ss:$2 sm:$0xff] %v4423_v0 }
  0x6f   : > { %v351_v13 = vld.sshfl [vmem:[#allocation1] sm:$0xff pattern:$0x75316420]  ;;  %v352_v14 = vld.sshfl [vmem:[#allocation1 + $0x8] sm:$0xff pattern:$0x75316420] }
  0x70   : > { %369 = vst [vmem:[#allocation1] ss:$2 sm:$0xff] %v4423_v0  ;;  %357 = vrot.lane.b32.xlu0 %v352_v14, %s4289_s24  ;;  %355 = vrot.lane.b32.xlu2 %v351_v13, %s4289_s24 }
  0x77   : > { %v370_v16 = vld.sshfl [vmem:[#allocation1] sm:$0xff pattern:$0x75316420]  ;;  %v371_v17 = vld.sshfl [vmem:[#allocation1 + $0x8] sm:$0xff pattern:$0x75316420] }
  0x78   : > { %389 = vst [vmem:[#allocation1] ss:$2 sm:$0xff] %v4445_v15  ;;  %376 = vrot.lane.b32.xlu2 %v371_v17, %s4290_s25 }
  0x7f   : > { %v390_v18 = vld.sshfl [vmem:[#allocation1] sm:$0xff pattern:$0x75316420]  ;;  %v391_v19 = vld.sshfl [vmem:[#allocation1 + $0x8] sm:$0xff pattern:$0x75316420] }
  0x80   : > { %394 = vrot.lane.b32.xlu1 %v390_v18, %s4291_s26 }
  0x88   : > { %396 = vrot.lane.b32.xlu1 %v391_v19, %s4291_s26 }
  0x90   : > { %279 = vrot.lane.b32.xlu1 %v274_v6, %s4285_s19 }
  0x98   : > { %317 = vrot.lane.b32.xlu1 %v313_v9, %s4287_s18 }
  0xa0   : > { %338 = vrot.lane.b32.xlu1 %v333_v12, %s4288_s23 }
  0xa2   : > { %v259_v24 = vpop.permute.xlu2 %258 }
  0xa8   : > { %374 = vrot.lane.b32.xlu1 %v370_v16, %s4290_s25 }
  0xaa   : > { %v261_v34 = vpop.permute.xlu2 %260 }
  0xab   : > { %v264_v36 = vsel %vm6895_vm3, %v261_v34, %v259_v24  ;;  %v263_v41 = vsel %vm6895_vm3, %v259_v24, %v261_v34 }
  0xac   : > { %v267_v39 = vrot.slane %v264_v36, 4 }
  0xae   : > { %v4485_v43 = vsel %vm249_vm2, %v263_v41, %v267_v39 }
  0xb2   : > { %v240_v20 = vpop.permute.xlu0 %239  ;;  %v297_v50 = vpop.permute.xlu2 %296 }
  0xba   : > { %v242_v25 = vpop.permute.xlu0 %241  ;;  %v320_v63 = vpop.permute.xlu2 %319 }
  0xbb   : > { %v245_v26 = vsel %vm6894_vm0, %v242_v25, %v240_v20  ;;  %v244_v29 = vsel %vm6894_vm0, %v240_v20, %v242_v25 }
  0xbc   : > { %v248_v27 = vrot.slane %v245_v26, 4 }
  0xbe   : > { %v4470_v33 = vsel %vm249_vm2, %v244_v29, %v248_v27 }
  0xc2   : > { %v278_v38 = vpop.permute.xlu0 %277 }
  0xca   : > { %v299_v49 = vpop.permute.xlu0 %298  ;;  %v356_v17 = vpop.permute.xlu2 %355 }
  0xcb   : > { %v302_v51 = vsel %vm6896_vm5, %v299_v49, %v297_v50  ;;  %v301_v57 = vsel %vm6896_vm5, %v297_v50, %v299_v49 }
  0xcc   : > { %v305_v53 = vrot.slane %v302_v51, 4 }
  0xce   : > { %v4510_v58 = vsel %vm249_vm2, %v301_v57, %v305_v53 }
  0xda   : > { %v337_v2 = vpop.permute.xlu0 %336 }
  0xe2   : > { %v358_v16 = vpop.permute.xlu0 %357 }
  0xe3   : > { %v360_v25 = vsel %vm6897_vm8, %v356_v17, %v358_v16  ;;  %v361_v39 = vsel %vm6897_vm8, %v358_v16, %v356_v17 }
  0xf2   : > { %v395_v23 = vpop.permute.xlu1 %394 }
  0xfa   : > { %v397_v28 = vpop.permute.xlu1 %396 }
  0xfb   : > { %v399_v30 = vsel %vm6891_vm1, %v395_v23, %v397_v28  ;;  %v400_v32 = vsel %vm6891_vm1, %v397_v28, %v395_v23  ;;  %vm2374_vm1 = vcmp.lt.s32.totalorder %v4456_v22, 112 }
  0xfc   : > { %v410_v31 = vrot.slane %v399_v30, 4 }
  0xfe   : > { %v4473_v35 = vsel %vm249_vm2, %v400_v32, %v410_v31  ;;  %v364_v31 = vrot.slane %v360_v25, 4 }
  0xff   : > { %v413_v37 = vmul.f32 %v4473_v35, %v4470_v33  ;;  %v465_v44 = vmul.f32 %v4473_v35, %v4485_v43  ;;  %v561_v59 = vmul.f32 %v4473_v35, %v4510_v58  ;;  %v609_v3 = vmul.f32 %v4473_v35, %v4423_v0 }
 0x101   : > { %415 = vst [vmem:[#allocation1] ss:$2 sm:$0xff] %v413_v37 }
 0x102   : > { %v280_v40 = vpop.permute.xlu1 %279 }
 0x103   : > { %v283_v42 = vsel %vm6904_vm4, %v280_v40, %v278_v38  ;;  %v282_v48 = vsel %vm6904_vm4, %v278_v38, %v280_v40  ;;  %v377_v40 = vpop.permute.xlu2 %376 }
 0x104   : > { %v286_v45 = vrot.slane %v283_v42, 4 }
 0x106   : > { %v4499_v52 = vsel %vm249_vm2, %v282_v48, %v286_v45  ;;  %v4562_v45 = vsel %vm249_vm2, %v361_v39, %v364_v31 }
 0x107   : > { %v513_v54 = vmul.f32 %v4473_v35, %v4499_v52 }
 0x108   : > { %v4489_v46 = vld.sshfl [vmem:[#allocation1] sm:$0xff pattern:$0x75316420]  ;;  %v4491_v47 = vld.sshfl [vmem:[#allocation1 + $0x8] sm:$0xff pattern:$0x75316420] }
 0x109   : > { %467 = vst [vmem:[#allocation1] ss:$2 sm:$0xff] %v465_v44 }
 0x10a   : > { %v318_v60 = vpop.permute.xlu1 %317 }
 0x10b   : > { %v322_v1 = vsel %vm6912_vm6, %v318_v60, %v320_v63  ;;  %v323_v7 = vsel %vm6912_vm6, %v320_v63, %v318_v60 }
 0x10c   : > { %v326_v4 = vrot.slane %v322_v1, 4 }
 0x10e   : > { %v4531_v9 = vsel %vm249_vm2, %v323_v7, %v326_v4 }
 0x10f   : > { %v643_v11 = vmul.f32 %v4473_v35, %v4531_v9 }
 0x110   : > { %v4503_v55 = vld.sshfl [vmem:[#allocation1] sm:$0xff pattern:$0x75316420]  ;;  %v4505_v56 = vld.sshfl [vmem:[#allocation1 + $0x8] sm:$0xff pattern:$0x75316420] }
 0x111   : > { %515 = vst [vmem:[#allocation1] ss:$2 sm:$0xff] %v513_v54  ;;  %v739_v54 = vmul.f32 %v4473_v35, %v4562_v45 }
 0x112   : > { %v339_v8 = vpop.permute.xlu1 %338 }
 0x113   : > { %v341_v10 = vsel %vm6901_vm7, %v337_v2, %v339_v8  ;;  %v342_v18 = vsel %vm6901_vm7, %v339_v8, %v337_v2 }
 0x114   : > { %v345_v12 = vrot.slane %v341_v10, 4 }
 0x116   : > { %v4545_v26 = vsel %vm249_vm2, %v342_v18, %v345_v12 }
 0x117   : > { %v691_v32 = vmul.f32 %v4473_v35, %v4545_v26 }
 0x118   : > { %v4514_v61 = vld.sshfl [vmem:[#allocation1] sm:$0xff pattern:$0x75316420]  ;;  %v4516_v62 = vld.sshfl [vmem:[#allocation1 + $0x8] sm:$0xff pattern:$0x75316420] }
 0x119   : > { %563 = vst [vmem:[#allocation1] ss:$2 sm:$0xff] %v561_v59 }
 0x11a   : > { %v375_v41 = vpop.permute.xlu1 %374 }
 0x11b   : > { %v379_v48 = vsel %vm6905_vm9, %v375_v41, %v377_v40  ;;  %v380_v1 = vsel %vm6905_vm9, %v377_v40, %v375_v41 }
 0x11c   : > { %v383_v57 = vrot.slane %v379_v48, 4 }
 0x11e   : > { %v4588_v7 = vsel %vm249_vm2, %v380_v1, %v383_v57 }
 0x11f   : > { %v787_v8 = vmul.f32 %v4473_v35, %v4588_v7 }
 0x120   : > { %v4523_v5 = vld.sshfl [vmem:[#allocation1] sm:$0xff pattern:$0x75316420]  ;;  %v4525_v6 = vld.sshfl [vmem:[#allocation1 + $0x8] sm:$0xff pattern:$0x75316420] }
 0x121   : > { %611 = vst [vmem:[#allocation1] ss:$2 sm:$0xff] %v609_v3 }
 0x128   : > { %v612_v13 = vld.sshfl [vmem:[#allocation1] sm:$0xff pattern:$0x75316420]  ;;  %v613_v14 = vld.sshfl [vmem:[#allocation1 + $0x8] sm:$0xff pattern:$0x75316420] }
 0x129   : > { %645 = vst [vmem:[#allocation1] ss:$2 sm:$0xff] %v643_v11  ;;  %v616_v19 = vsel %vm249_vm2, %v612_v13, 0.0  ;;  %v623_v20 = vsel %vm249_vm2, %v613_v14, 0.0 }
 0x12a   : > { %v617_v23 = vrot.slane %v616_v19, 4  ;;  %v624_v24 = vrot.slane %v623_v20, 4 }
 0x12c   : > { %v618_v27 = vadd.f32 %v617_v23, %v616_v19  ;;  %v625_v28 = vadd.f32 %v624_v24, %v623_v20 }
 0x12e   : > { %v619_v29 = vrot.slane %v618_v27, 2  ;;  %v626_v30 = vrot.slane %v625_v28, 2 }
 0x130   : > { %v4550_v34 = vld.sshfl [vmem:[#allocation1] sm:$0xff pattern:$0x75316420]  ;;  %v4552_v36 = vld.sshfl [vmem:[#allocation1 + $0x8] sm:$0xff pattern:$0x75316420]  ;;  %v620_v37 = vadd.f32 %v619_v29, %v618_v27  ;;  %v627_v38 = vadd.f32 %v626_v30, %v625_v28 }
 0x131   : > { %693 = vst [vmem:[#allocation1] ss:$2 sm:$0xff] %v691_v32 }
 0x132   : > { %v621_v42 = vrot.slane %v620_v37, 1  ;;  %v628_v44 = vrot.slane %v627_v38, 1 }
 0x134   : > { %v622_v49 = vadd.f32 %v621_v42, %v620_v37  ;;  %v629_v50 = vadd.f32 %v628_v44, %v627_v38 }
 0x136   : > { %v630_v51 = vsel %vm401_vm10, %v622_v49, 0.0  ;;  %v633_v53 = vmul.f32 0.25, %v629_v50 }
 0x137   : > { %v632_v59 = vmul.f32 0.25, %v630_v51 }
 0x138   : > { %v4570_v60 = vld.sshfl [vmem:[#allocation1] sm:$0xff pattern:$0x75316420]  ;;  %v4572_v63 = vld.sshfl [vmem:[#allocation1 + $0x8] sm:$0xff pattern:$0x75316420] }
 0x139   : > { %741 = vst [vmem:[#allocation1] ss:$2 sm:$0xff] %v739_v54  ;;  %v636_v3 = vrot.slane %v633_v53, 7 }
 0x13b   : > { %v637_v4 = vsel %vm455_vm11, %v632_v59, %v636_v3 }
 0x13c   : > { %4042 = vst.msk [vmem:[%s4579_s5 + $0x4] ss:$8 sm:$0x3] %vm4582_vm12, %v637_v4 }
 0x140   : > { %v4595_v10 = vld.sshfl [vmem:[#allocation1] sm:$0xff pattern:$0x75316420]  ;;  %v4597_v11 = vld.sshfl [vmem:[#allocation1 + $0x8] sm:$0xff pattern:$0x75316420] }
 0x141   : > { %6923 = vst [vmem:[#allocation10_spill] sm:$0xff] %v4595_v10 }
 0x142   : > { %789 = vst [vmem:[#allocation1] ss:$2 sm:$0xff] %v787_v8 }
 0x149   : > { %v4599_v21 = vld.sshfl [vmem:[#allocation1] sm:$0xff pattern:$0x75316420]  ;;  %v4601_v12 = vld.sshfl [vmem:[#allocation1 + $0x8] sm:$0xff pattern:$0x75316420] }
 0x14a   : > { %6924 = vst [vmem:[#allocation11_spill] sm:$0xff] %v4601_v12 }
 0x14b   : > { %834 = vst [vmem:[#allocation1] ss:$2 sm:$0xff] %v4445_v15 }
 0x152   : > { %v835_v13 = vld.sshfl [vmem:[#allocation1] sm:$0xff pattern:$0x75316420]  ;;  %v836_v14 = vld.sshfl [vmem:[#allocation1 + $0x8] sm:$0xff pattern:$0x75316420] }
 0x153   : > { %841 = vrot.lane.b32.xlu1 %v836_v14, %s4292_s12  ;;  %839 = vrot.lane.b32.xlu0 %v835_v13, %s4292_s12 }
 0x1c5   : > { %v842_v16 = vpop.permute.xlu1 %841  ;;  %v840_v35 = vpop.permute.xlu0 %839 }
 0x1c6   : > { %v844_v17 = vsel %vm843_vm13, %v840_v35, %v842_v16  ;;  %v845_v19 = vsel %vm843_vm13, %v842_v16, %v840_v35  ;;  %vm6893_vm13 = vcmp.ge.s32.totalorder %v4456_v22, 32 }
 0x1c7   : > { %v855_v18 = vrot.slane %v844_v17, 4 }
 0x1c9   : > { %v856_v20 = vsel %vm249_vm2, %v845_v19, %v855_v18 }
 0x1ca   : > { %v858_v23 = vmul.f32 %v856_v20, %v4470_v33  ;;  %v900_v24 = vmul.f32 %v856_v20, %v4485_v43  ;;  %v942_v28 = vmul.f32 %v856_v20, %v4499_v52  ;;  %v984_v31 = vmul.f32 %v856_v20, %v4510_v58 }
 0x1cb   : > { %v1026_v38 = vmul.f32 %v856_v20, %v4423_v0  ;;  %v1060_v41 = vmul.f32 %v856_v20, %v4531_v9  ;;  %v1102_v1 = vmul.f32 %v856_v20, %v4545_v26 }
 0x1cc   : > { %860 = vst [vmem:[#allocation1] ss:$2 sm:$0xff] %v858_v23  ;;  %v1144_v23 = vmul.f32 %v856_v20, %v4562_v45 }
 0x1d3   : > { %v4608_v25 = vld.sshfl [vmem:[#allocation1] sm:$0xff pattern:$0x75316420]  ;;  %v4610_v27 = vld.sshfl [vmem:[#allocation1 + $0x8] sm:$0xff pattern:$0x75316420] }
 0x1d4   : > { %6925 = vst [vmem:[#allocation12_spill] sm:$0xff] %v4608_v25 }
 0x1d5   : > { %902 = vst [vmem:[#allocation1] ss:$2 sm:$0xff] %v900_v24 }
 0x1dc   : > { %v4613_v29 = vld.sshfl [vmem:[#allocation1] sm:$0xff pattern:$0x75316420]  ;;  %v4615_v30 = vld.sshfl [vmem:[#allocation1 + $0x8] sm:$0xff pattern:$0x75316420] }
 0x1dd   : > { %6926 = vst [vmem:[#allocation13_spill] sm:$0xff] %v4613_v29 }
 0x1de   : > { %6927 = vst [vmem:[#allocation14_spill] sm:$0xff] %v4615_v30 }
 0x1df   : > { %944 = vst [vmem:[#allocation1] ss:$2 sm:$0xff] %v942_v28 }
 0x1e6   : > { %v4618_v32 = vld.sshfl [vmem:[#allocation1] sm:$0xff pattern:$0x75316420]  ;;  %v4620_v37 = vld.sshfl [vmem:[#allocation1 + $0x8] sm:$0xff pattern:$0x75316420] }
 0x1e7   : > { %6928 = vst [vmem:[#allocation15_spill] sm:$0xff] %v4620_v37 }
 0x1e8   : > { %986 = vst [vmem:[#allocation1] ss:$2 sm:$0xff] %v984_v31 }
 0x1ef   : > { %v4623_v39 = vld.sshfl [vmem:[#allocation1] sm:$0xff pattern:$0x75316420]  ;;  %v4625_v40 = vld.sshfl [vmem:[#allocation1 + $0x8] sm:$0xff pattern:$0x75316420] }
 0x1f0   : > { %6929 = vst [vmem:[#allocation16_spill] sm:$0xff] %v4623_v39 }
 0x1f1   : > { %1028 = vst [vmem:[#allocation1] ss:$2 sm:$0xff] %v1026_v38 }
 0x1f8   : > { %v1029_v42 = vld.sshfl [vmem:[#allocation1] sm:$0xff pattern:$0x75316420]  ;;  %v1030_v44 = vld.sshfl [vmem:[#allocation1 + $0x8] sm:$0xff pattern:$0x75316420] }
 0x1f9   : > { %1062 = vst [vmem:[#allocation1] ss:$2 sm:$0xff] %v1060_v41  ;;  %v1033_v48 = vsel %vm249_vm2, %v1029_v42, 0.0  ;;  %v1040_v49 = vsel %vm249_vm2, %v1030_v44, 0.0  ;;  %v1186_v42 = vmul.f32 %v856_v20, %v4588_v7 }
 0x1fa   : > { %v1034_v50 = vrot.slane %v1033_v48, 4  ;;  %v1041_v51 = vrot.slane %v1040_v49, 4 }
 0x1fc   : > { %v1035_v53 = vadd.f32 %v1034_v50, %v1033_v48  ;;  %v1042_v54 = vadd.f32 %v1041_v51, %v1040_v49 }
 0x1fe   : > { %v1036_v57 = vrot.slane %v1035_v53, 2  ;;  %v1043_v59 = vrot.slane %v1042_v54, 2 }
 0x200   : > { %v4631_v3 = vld.sshfl [vmem:[#allocation1] sm:$0xff pattern:$0x75316420]  ;;  %v4633_v4 = vld.sshfl [vmem:[#allocation1 + $0x8] sm:$0xff pattern:$0x75316420]  ;;  %v1037_v8 = vadd.f32 %v1036_v57, %v1035_v53  ;;  %v1044_v13 = vadd.f32 %v1043_v59, %v1042_v54 }
 0x201   : > { %6930 = vst [vmem:[#allocation17_spill] sm:$0xff] %v4631_v3  ;;  %v520_v3 = vsel %vm249_vm2, %v4514_v61, 0.0 }
 0x202   : > { %6931 = vst [vmem:[#allocation18_spill] sm:$0xff] %v4633_v4  ;;  %v1038_v14 = vrot.slane %v1037_v8, 1  ;;  %v1045_v16 = vrot.slane %v1044_v13, 1 }
 0x203   : > { %1104 = vst [vmem:[#allocation1] ss:$2 sm:$0xff] %v1102_v1 }
 0x204   : > { %v1039_v35 = vadd.f32 %v1038_v14, %v1037_v8  ;;  %v1046_v17 = vadd.f32 %v1045_v16, %v1044_v13 }
 0x206   : > { %v1047_v18 = vsel %vm846_vm14, %v1039_v35, 0.0  ;;  %v1050_v19 = vmul.f32 0.25, %v1046_v17 }
 0x207   : > { %v1049_v24 = vmul.f32 0.25, %v1047_v18 }
 0x208   : > { %v1053_v38 = vrot.slane %v1050_v19, 7 }
 0x20a   : > { %v4639_v28 = vld.sshfl [vmem:[#allocation1] sm:$0xff pattern:$0x75316420]  ;;  %v4641_v31 = vld.sshfl [vmem:[#allocation1 + $0x8] sm:$0xff pattern:$0x75316420]  ;;  %v1054_v41 = vsel %vm455_vm11, %v1049_v24, %v1053_v38 }
 0x20b   : > { %6932 = vst [vmem:[#allocation19_spill] sm:$0xff] %v4641_v31 }
 0x20c   : > { %1146 = vst [vmem:[#allocation1] ss:$2 sm:$0xff] %v1144_v23 }
 0x20d   : > { %4051 = vst.msk [vmem:[%s4579_s5 + $0x15] ss:$8 sm:$0x3] %vm4582_vm12, %v1054_v41 }
 0x213   : > { %v4648_v44 = vld.sshfl [vmem:[#allocation1] sm:$0xff pattern:$0x75316420]  ;;  %v4650_v48 = vld.sshfl [vmem:[#allocation1 + $0x8] sm:$0xff pattern:$0x75316420] }
 0x214   : > { %6933 = vst [vmem:[#allocation20_spill] sm:$0xff] %v4648_v44 }
 0x215   : > { %1188 = vst [vmem:[#allocation1] ss:$2 sm:$0xff] %v1186_v42 }
 0x21c   : > { %v4652_v49 = vld.sshfl [vmem:[#allocation1] sm:$0xff pattern:$0x75316420]  ;;  %v4654_v50 = vld.sshfl [vmem:[#allocation1 + $0x8] sm:$0xff pattern:$0x75316420] }
 0x21d   : > { %6934 = vst [vmem:[#allocation21_spill] sm:$0xff] %v4652_v49 }
 0x21e   : > { %6935 = vst [vmem:[#allocation22_spill] sm:$0xff] %v4654_v50 }
 0x21f   : > { %1227 = vst [vmem:[#allocation1] ss:$2 sm:$0xff] %v4445_v15 }
 0x226   : > { %v1229_v51 = vld.sshfl [vmem:[#allocation1 + $0x8] sm:$0xff pattern:$0x75316420]  ;;  %v1228_v53 = vld.sshfl [vmem:[#allocation1] sm:$0xff pattern:$0x75316420] }
 0x227   : > { %1234 = vrot.lane.b32.xlu0 %v1229_v51, %s4293_s27  ;;  %1232 = vrot.lane.b32.xlu2 %v1228_v53, %s4293_s27 }
 0x281   : > { %v1233_v54 = vpop.permute.xlu2 %1232 }
 0x299   : > { %v1235_v20 = vpop.permute.xlu0 %1234 }
 0x29a   : > { %v1237_v57 = vsel %vm1236_vm15, %v1233_v54, %v1235_v20  ;;  %v1238_v1 = vsel %vm1236_vm15, %v1235_v20, %v1233_v54  ;;  %vm1629_vm15 = vcmp.lt.s32.totalorder %v4456_v22, 16 }
 0x29b   : > { %v1248_v59 = vrot.slane %v1237_v57, 4 }
 0x29d   : > { %v1249_v8 = vsel %vm249_vm2, %v1238_v1, %v1248_v59 }
 0x29e   : > { %v1251_v13 = vmul.f32 %v1249_v8, %v4470_v33  ;;  %v1293_v14 = vmul.f32 %v1249_v8, %v4485_v43  ;;  %v1335_v17 = vmul.f32 %v1249_v8, %v4499_v52  ;;  %v1377_v23 = vmul.f32 %v1249_v8, %v4510_v58 }
 0x29f   : > { %v1419_v41 = vmul.f32 %v1249_v8, %v4423_v0  ;;  %v1453_v53 = vmul.f32 %v1249_v8, %v4531_v9 }
 0x2a0   : > { %1253 = vst [vmem:[#allocation1] ss:$2 sm:$0xff] %v1251_v13 }
 0x2a7   : > { %v4661_v16 = vld.sshfl [vmem:[#allocation1] sm:$0xff pattern:$0x75316420]  ;;  %v4663_v35 = vld.sshfl [vmem:[#allocation1 + $0x8] sm:$0xff pattern:$0x75316420] }
 0x2a8   : > { %6936 = vst [vmem:[#allocation23_spill] sm:$0xff] %v4663_v35 }
 0x2a9   : > { %1295 = vst [vmem:[#allocation1] ss:$2 sm:$0xff] %v1293_v14 }
 0x2b0   : > { %v4666_v18 = vld.sshfl [vmem:[#allocation1] sm:$0xff pattern:$0x75316420]  ;;  %v4668_v19 = vld.sshfl [vmem:[#allocation1 + $0x8] sm:$0xff pattern:$0x75316420] }
 0x2b1   : > { %6937 = vst [vmem:[#allocation24_spill] sm:$0xff] %v4666_v18 }
 0x2b2   : > { %1337 = vst [vmem:[#allocation1] ss:$2 sm:$0xff] %v1335_v17 }
 0x2b9   : > { %v4671_v24 = vld.sshfl [vmem:[#allocation1] sm:$0xff pattern:$0x75316420]  ;;  %v4673_v38 = vld.sshfl [vmem:[#allocation1 + $0x8] sm:$0xff pattern:$0x75316420] }
 0x2ba   : > { %6938 = vst [vmem:[#allocation25_spill] sm:$0xff] %v4671_v24  ;;  %v1495_v24 = vmul.f32 %v1249_v8, %v4545_v26 }
 0x2bb   : > { %6939 = vst [vmem:[#allocation26_spill] sm:$0xff] %v4673_v38 }
 0x2bc   : > { %1379 = vst [vmem:[#allocation1] ss:$2 sm:$0xff] %v1377_v23 }
 0x2c3   : > { %v4676_v42 = vld.sshfl [vmem:[#allocation1] sm:$0xff pattern:$0x75316420]  ;;  %v4678_v51 = vld.sshfl [vmem:[#allocation1 + $0x8] sm:$0xff pattern:$0x75316420] }
 0x2c4   : > { %6940 = vst [vmem:[#allocation27_spill] sm:$0xff] %v4678_v51 }
 0x2c5   : > { %1421 = vst [vmem:[#allocation1] ss:$2 sm:$0xff] %v1419_v41 }
 0x2cc   : > { %v1422_v54 = vld.sshfl [vmem:[#allocation1] sm:$0xff pattern:$0x75316420]  ;;  %v1423_v20 = vld.sshfl [vmem:[#allocation1 + $0x8] sm:$0xff pattern:$0x75316420] }
 0x2cd   : > { %1455 = vst [vmem:[#allocation1] ss:$2 sm:$0xff] %v1453_v53  ;;  %v1426_v57 = vsel %vm249_vm2, %v1422_v54, 0.0  ;;  %v1433_v59 = vsel %vm249_vm2, %v1423_v20, 0.0 }
 0x2ce   : > { %v1427_v1 = vrot.slane %v1426_v57, 4  ;;  %v1434_v13 = vrot.slane %v1433_v59, 4 }
 0x2d0   : > { %v1428_v14 = vadd.f32 %v1427_v1, %v1426_v57  ;;  %v1435_v17 = vadd.f32 %v1434_v13, %v1433_v59  ;;  %v1537_v1 = vmul.f32 %v1249_v8, %v4562_v45 }
 0x2d2   : > { %v1429_v23 = vrot.slane %v1428_v14, 2  ;;  %v1436_v38 = vrot.slane %v1435_v17, 2 }
 0x2d4   : > { %v4684_v18 = vld.sshfl [vmem:[#allocation1] sm:$0xff pattern:$0x75316420]  ;;  %v4686_v41 = vld.sshfl [vmem:[#allocation1 + $0x8] sm:$0xff pattern:$0x75316420]  ;;  %v1430_v51 = vadd.f32 %v1429_v23, %v1428_v14  ;;  %v1437_v35 = vadd.f32 %v1436_v38, %v1435_v17 }
 0x2d5   : > { %6941 = vst [vmem:[#allocation28_spill] sm:$0xff] %v4684_v18 }
 0x2d6   : > { %1497 = vst [vmem:[#allocation1] ss:$2 sm:$0xff] %v1495_v24  ;;  %v1431_v53 = vrot.slane %v1430_v51, 1  ;;  %v1438_v54 = vrot.slane %v1437_v35, 1 }
 0x2d8   : > { %v1432_v20 = vadd.f32 %v1431_v53, %v1430_v51  ;;  %v1439_v50 = vadd.f32 %v1438_v54, %v1437_v35  ;;  %v1579_v35 = vmul.f32 %v1249_v8, %v4588_v7  ;;  %v420_v51 = vsel %vm249_vm2, %v4489_v46, 0.0 }
 0x2d9   : > { %v421_v17 = vrot.slane %v420_v51, 4  ;;  %v479_v53 = vsel %vm249_vm2, %v4505_v56, 0.0 }
 0x2da   : > { %v1440_v57 = vsel %vm6893_vm13, %v1432_v20, 0.0  ;;  %v1443_v59 = vmul.f32 0.25, %v1439_v50 }
 0x2db   : > { %v1442_v13 = vmul.f32 0.25, %v1440_v57  ;;  %v422_v23 = vadd.f32 %v421_v17, %v420_v51  ;;  %v480_v57 = vrot.slane %v479_v53, 4 }
 0x2dc   : > { %v1446_v38 = vrot.slane %v1443_v59, 7 }
 0x2dd   : > { %v4692_v18 = vld.sshfl [vmem:[#allocation1] sm:$0xff pattern:$0x75316420]  ;;  %v4694_v49 = vld.sshfl [vmem:[#allocation1 + $0x8] sm:$0xff pattern:$0x75316420]  ;;  %v481_v46 = vadd.f32 %v480_v57, %v479_v53 }
 0x2de   : > { %6942 = vst [vmem:[#allocation29_spill] sm:$0xff] %v4692_v18  ;;  %v1447_v24 = vsel %vm455_vm11, %v1442_v13, %v1446_v38  ;;  %v423_v8 = vrot.slane %v422_v23, 2 }
 0x2df   : > { %6943 = vst [vmem:[#allocation30_spill] sm:$0xff] %v4694_v49  ;;  %v482_v56 = vrot.slane %v481_v46, 2 }
 0x2e0   : > { %1539 = vst [vmem:[#allocation1] ss:$2 sm:$0xff] %v1537_v1  ;;  %v424_v59 = vadd.f32 %v423_v8, %v422_v23  ;;  %v568_v1 = vsel %vm249_vm2, %v4523_v5, 0.0 }
 0x2e1   : > { %4060 = vst.msk [vmem:[%s4579_s5 + $0x26] ss:$8 sm:$0x3] %vm4582_vm12, %v1447_v24  ;;  %v483_v17 = vadd.f32 %v482_v56, %v481_v46 }
 0x2e2   : > { %v425_v24 = vrot.slane %v424_v59, 1 }
 0x2e4   : > { %v426_v51 = vadd.f32 %v425_v24, %v424_v59 }
 0x2e7   : > { %v4703_v50 = vld.sshfl [vmem:[#allocation1] sm:$0xff pattern:$0x75316420]  ;;  %v4705_v14 = vld.sshfl [vmem:[#allocation1 + $0x8] sm:$0xff pattern:$0x75316420] }
 0x2e8   : > { %6944 = vst [vmem:[#allocation31_spill] sm:$0xff] %v4705_v14  ;;  %v484_v14 = vrot.slane %v483_v17, 1 }
 0x2e9   : > { %1581 = vst [vmem:[#allocation1] ss:$2 sm:$0xff] %v1579_v35  ;;  %v569_v35 = vrot.slane %v568_v1, 4 }
 0x2ea   : > { %v485_v23 = vadd.f32 %v484_v14, %v483_v17 }
 0x2f0   : > { %v4709_v54 = vld.sshfl [vmem:[#allocation1] sm:$0xff pattern:$0x75316420]  ;;  %v4711_v20 = vld.sshfl [vmem:[#allocation1 + $0x8] sm:$0xff pattern:$0x75316420] }
 0x2f1   : > { %6945 = vst [vmem:[#allocation32_spill] sm:$0xff] %v4709_v54  ;;  %v570_v54 = vadd.f32 %v569_v35, %v568_v1 }
 0x2f2   : > { %1620 = vst [vmem:[#allocation1] ss:$2 sm:$0xff] %v4445_v15 }
 0x2f3   : > { %v571_v49 = vrot.slane %v570_v54, 2 }
 0x2f5   : > { %v572_v53 = vadd.f32 %v571_v49, %v570_v54 }
 0x2f7   : > { %v573_v5 = vrot.slane %v572_v53, 1 }
 0x2f9   : > { %v1622_v13 = vld.sshfl [vmem:[#allocation1 + $0x8] sm:$0xff pattern:$0x75316420]  ;;  %v1621_v38 = vld.sshfl [vmem:[#allocation1] sm:$0xff pattern:$0x75316420]  ;;  %v574_v8 = vadd.f32 %v573_v5, %v572_v53 }
 0x2fa   : > { %1627 = vrot.lane.b32.xlu2 %v1622_v13, %s4294_s28  ;;  %1625 = vrot.lane.b32.xlu1 %v1621_v38, %s4294_s28 }
 0x302   : > { %434 = vrot.lane.b32.xlu2 %v426_v51, %s4290_s25 }
 0x30a   : > { %488 = vrot.lane.b32.xlu2 %v485_v23, %s4289_s24 }
 0x312   : > { %582 = vrot.lane.b32.xlu2 %v574_v8, %s4287_s18 }
 0x354   : > { %v1628_v57 = vpop.permute.xlu2 %1627 }
 0x36c   : > { %v1626_v13 = vpop.permute.xlu1 %1625 }
 0x36d   : > { %v1630_v38 = vsel %vm1629_vm15, %v1626_v13, %v1628_v57  ;;  %v1631_v46 = vsel %vm1629_vm15, %v1628_v57, %v1626_v13  ;;  %vm6892_vm15 = vcmp.ge.s32.totalorder %v4456_v22, 16 }
 0x36e   : > { %v1641_v59 = vrot.slane %v1630_v38, 4 }
 0x370   : > { %v1642_v1 = vsel %vm249_vm2, %v1631_v46, %v1641_v59 }
 0x371   : > { %v1644_v24 = vmul.f32 %v1642_v1, %v4470_v33  ;;  %v1686_v49 = vmul.f32 %v1642_v1, %v4485_v43  ;;  %v1728_v56 = vmul.f32 %v1642_v1, %v4499_v52  ;;  %v1770_v17 = vmul.f32 %v1642_v1, %v4510_v58 }
 0x372   : > { %v1812_v5 = vmul.f32 %v1642_v1, %v4423_v0  ;;  %v1846_v13 = vmul.f32 %v1642_v1, %v4531_v9 }
 0x373   : > { %1646 = vst [vmem:[#allocation1] ss:$2 sm:$0xff] %v1644_v24 }
 0x37a   : > { %v4723_v14 = vld.sshfl [vmem:[#allocation1] sm:$0xff pattern:$0x75316420]  ;;  %v4725_v54 = vld.sshfl [vmem:[#allocation1 + $0x8] sm:$0xff pattern:$0x75316420] }
 0x37b   : > { %6946 = vst [vmem:[#allocation33_spill] sm:$0xff] %v4725_v54  ;;  %v1888_v54 = vmul.f32 %v1642_v1, %v4545_v26 }
 0x37c   : > { %1688 = vst [vmem:[#allocation1] ss:$2 sm:$0xff] %v1686_v49 }
 0x383   : > { %v4728_v35 = vld.sshfl [vmem:[#allocation1] sm:$0xff pattern:$0x75316420]  ;;  %v4730_v51 = vld.sshfl [vmem:[#allocation1 + $0x8] sm:$0xff pattern:$0x75316420] }
 0x384   : > { %6947 = vst [vmem:[#allocation34_spill] sm:$0xff] %v4728_v35 }
 0x385   : > { %1730 = vst [vmem:[#allocation1] ss:$2 sm:$0xff] %v1728_v56 }
 0x38c   : > { %v4733_v23 = vld.sshfl [vmem:[#allocation1] sm:$0xff pattern:$0x75316420]  ;;  %v4735_v53 = vld.sshfl [vmem:[#allocation1 + $0x8] sm:$0xff pattern:$0x75316420] }
 0x38d   : > { %6948 = vst [vmem:[#allocation35_spill] sm:$0xff] %v4733_v23 }
 0x38e   : > { %6949 = vst [vmem:[#allocation36_spill] sm:$0xff] %v4735_v53 }
 0x38f   : > { %1772 = vst [vmem:[#allocation1] ss:$2 sm:$0xff] %v1770_v17 }
 0x396   : > { %v4738_v8 = vld.sshfl [vmem:[#allocation1] sm:$0xff pattern:$0x75316420]  ;;  %v4740_v57 = vld.sshfl [vmem:[#allocation1 + $0x8] sm:$0xff pattern:$0x75316420] }
 0x397   : > { %6950 = vst [vmem:[#allocation37_spill] sm:$0xff] %v4740_v57 }
 0x398   : > { %1814 = vst [vmem:[#allocation1] ss:$2 sm:$0xff] %v1812_v5 }
 0x39f   : > { %v1815_v38 = vld.sshfl [vmem:[#allocation1] sm:$0xff pattern:$0x75316420]  ;;  %v1816_v59 = vld.sshfl [vmem:[#allocation1 + $0x8] sm:$0xff pattern:$0x75316420] }
 0x3a0   : > { %1848 = vst [vmem:[#allocation1] ss:$2 sm:$0xff] %v1846_v13  ;;  %v1819_v46 = vsel %vm249_vm2, %v1815_v38, 0.0  ;;  %v1826_v24 = vsel %vm249_vm2, %v1816_v59, 0.0 }
 0x3a1   : > { %v1820_v49 = vrot.slane %v1819_v46, 4  ;;  %v1827_v56 = vrot.slane %v1826_v24, 4 }
 0x3a3   : > { %v1821_v53 = vadd.f32 %v1820_v49, %v1819_v46  ;;  %v1828_v17 = vadd.f32 %v1827_v56, %v1826_v24  ;;  %v1930_v49 = vmul.f32 %v1642_v1, %v4562_v45 }
 0x3a5   : > { %v1822_v23 = vrot.slane %v1821_v53, 2  ;;  %v1829_v35 = vrot.slane %v1828_v17, 2 }
 0x3a7   : > { %v4746_v18 = vld.sshfl [vmem:[#allocation1] sm:$0xff pattern:$0x75316420]  ;;  %v4748_v5 = vld.sshfl [vmem:[#allocation1 + $0x8] sm:$0xff pattern:$0x75316420]  ;;  %v1823_v57 = vadd.f32 %v1822_v23, %v1821_v53  ;;  %v1830_v44 = vadd.f32 %v1829_v35, %v1828_v17 }
 0x3a8   : > { %6951 = vst [vmem:[#allocation38_spill] sm:$0xff] %v4746_v18 }
 0x3a9   : > { %1890 = vst [vmem:[#allocation1] ss:$2 sm:$0xff] %v1888_v54  ;;  %v1824_v13 = vrot.slane %v1823_v57, 1  ;;  %v1831_v38 = vrot.slane %v1830_v44, 1 }
 0x3ab   : > { %v1825_v59 = vadd.f32 %v1824_v13, %v1823_v57  ;;  %v1832_v31 = vadd.f32 %v1831_v38, %v1830_v44  ;;  %v1972_v44 = vmul.f32 %v1642_v1, %v4588_v7  ;;  %v2054_v13 = vmul.f32 %v4485_v43, %v4445_v15 }
 0x3ac   : > { %v2094_v1 = vmul.f32 %v4499_v52, %v4445_v15 }
 0x3ad   : > { %v1833_v46 = vsel %vm6892_vm15, %v1825_v59, 0.0  ;;  %v1836_v24 = vmul.f32 0.25, %v1832_v31  ;;  %v2014_v31 = vmul.f32 %v4470_v33, %v4445_v15 }
 0x3ae   : > { %v1835_v56 = vmul.f32 0.25, %v1833_v46 }
 0x3af   : > { %v1839_v35 = vrot.slane %v1836_v24, 7 }
 0x3b0   : > { %v4754_v18 = vld.sshfl [vmem:[#allocation1] sm:$0xff pattern:$0x75316420]  ;;  %v4756_v4 = vld.sshfl [vmem:[#allocation1 + $0x8] sm:$0xff pattern:$0x75316420] }
 0x3b1   : > { %6952 = vst [vmem:[#allocation39_spill] sm:$0xff] %v4754_v18  ;;  %v1840_v54 = vsel %vm455_vm11, %v1835_v56, %v1839_v35 }
 0x3b2   : > { %6953 = vst [vmem:[#allocation40_spill] sm:$0xff] %v4756_v4 }
 0x3b3   : > { %1932 = vst [vmem:[#allocation1] ss:$2 sm:$0xff] %v1930_v49  ;;  %v2134_v49 = vmul.f32 %v4510_v58, %v4445_v15 }
 0x3b4   : > { %4069 = vst.msk [vmem:[%s4579_s5 + $0x37] ss:$8 sm:$0x3] %vm4582_vm12, %v1840_v54  ;;  %v2174_v54 = vmul.f32 %v4445_v15, %v4423_v0 }
 0x3ba   : > { %v4763_v23 = vld.sshfl [vmem:[#allocation1] sm:$0xff pattern:$0x75316420]  ;;  %v4765_v53 = vld.sshfl [vmem:[#allocation1 + $0x8] sm:$0xff pattern:$0x75316420] }
 0x3bb   : > { %6954 = vst [vmem:[#allocation41_spill] sm:$0xff] %v4765_v53 }
 0x3bc   : > { %1974 = vst [vmem:[#allocation1] ss:$2 sm:$0xff] %v1972_v44 }
 0x3c3   : > { %v4769_v57 = vld.sshfl [vmem:[#allocation1] sm:$0xff pattern:$0x75316420]  ;;  %v4771_v17 = vld.sshfl [vmem:[#allocation1 + $0x8] sm:$0xff pattern:$0x75316420] }
 0x3c4   : > { %6955 = vst [vmem:[#allocation42_spill] sm:$0xff] %v4769_v57  ;;  %v2326_v57 = vmul.f32 %v4588_v7, %v4445_v15 }
 0x3c5   : > { %2016 = vst [vmem:[#allocation1] ss:$2 sm:$0xff] %v2014_v31 }
 0x3cc   : > { %v4775_v38 = vld.sshfl [vmem:[#allocation1] sm:$0xff pattern:$0x75316420]  ;;  %v4777_v59 = vld.sshfl [vmem:[#allocation1 + $0x8] sm:$0xff pattern:$0x75316420] }
 0x3cd   : > { %6956 = vst [vmem:[#allocation43_spill] sm:$0xff] %v4775_v38  ;;  %v427_v38 = vsel %vm249_vm2, %v4491_v47, 0.0 }
 0x3ce   : > { %6957 = vst [vmem:[#allocation44_spill] sm:$0xff] %v4777_v59 }
 0x3cf   : > { %2056 = vst [vmem:[#allocation1] ss:$2 sm:$0xff] %v2054_v13  ;;  %v2206_v13 = vmul.f32 %v4531_v9, %v4445_v15 }
 0x3d6   : > { %v4781_v46 = vld.sshfl [vmem:[#allocation1] sm:$0xff pattern:$0x75316420]  ;;  %v4783_v24 = vld.sshfl [vmem:[#allocation1 + $0x8] sm:$0xff pattern:$0x75316420] }
 0x3d7   : > { %6958 = vst [vmem:[#allocation45_spill] sm:$0xff] %v4783_v24 }
 0x3d8   : > { %2096 = vst [vmem:[#allocation1] ss:$2 sm:$0xff] %v2094_v1 }
 0x3df   : > { %v4787_v56 = vld.sshfl [vmem:[#allocation1] sm:$0xff pattern:$0x75316420]  ;;  %v4789_v35 = vld.sshfl [vmem:[#allocation1 + $0x8] sm:$0xff pattern:$0x75316420] }
 0x3e0   : > { %6959 = vst [vmem:[#allocation46_spill] sm:$0xff] %v4787_v56  ;;  %v2246_v56 = vmul.f32 %v4545_v26, %v4445_v15 }
 0x3e1   : > { %2136 = vst [vmem:[#allocation1] ss:$2 sm:$0xff] %v2134_v49 }
 0x3e8   : > { %v4793_v44 = vld.sshfl [vmem:[#allocation1] sm:$0xff pattern:$0x75316420]  ;;  %v4795_v31 = vld.sshfl [vmem:[#allocation1 + $0x8] sm:$0xff pattern:$0x75316420] }
 0x3e9   : > { %6960 = vst [vmem:[#allocation47_spill] sm:$0xff] %v4793_v44 }
 0x3ea   : > { %6961 = vst [vmem:[#allocation48_spill] sm:$0xff] %v4795_v31  ;;  %v2286_v31 = vmul.f32 %v4562_v45, %v4445_v15 }
 0x3eb   : > { %2176 = vst [vmem:[#allocation1] ss:$2 sm:$0xff] %v2174_v54 }
 0x3f2   : > { %v4799_v1 = vld.sshfl [vmem:[#allocation1] sm:$0xff pattern:$0x75316420]  ;;  %v4801_v59 = vld.sshfl [vmem:[#allocation1 + $0x8] sm:$0xff pattern:$0x75316420] }
 0x3f3   : > { %2208 = vst [vmem:[#allocation1] ss:$2 sm:$0xff] %v2206_v13  ;;  %v472_v13 = vsel %vm249_vm2, %v4503_v55, 0.0 }
 0x3f4   : > { %v473_v53 = vrot.slane %v472_v13, 4 }
 0x3f6   : > { %v474_v18 = vadd.f32 %v473_v53, %v472_v13 }
 0x3fa   : > { %v4805_v49 = vld.sshfl [vmem:[#allocation1] sm:$0xff pattern:$0x75316420]  ;;  %v4807_v24 = vld.sshfl [vmem:[#allocation1 + $0x8] sm:$0xff pattern:$0x75316420] }
 0x3fb   : > { %6962 = vst [vmem:[#allocation49_spill] sm:$0xff] %v4807_v24  ;;  %v428_v24 = vrot.slane %v427_v38, 4 }
 0x3fc   : > { %2248 = vst [vmem:[#allocation1] ss:$2 sm:$0xff] %v2246_v56 }
 0x403   : > { %v4811_v54 = vld.sshfl [vmem:[#allocation1] sm:$0xff pattern:$0x75316420]  ;;  %v4813_v44 = vld.sshfl [vmem:[#allocation1 + $0x8] sm:$0xff pattern:$0x75316420] }
 0x404   : > { %6963 = vst [vmem:[#allocation50_spill] sm:$0xff] %v4811_v54  ;;  %v429_v54 = vadd.f32 %v428_v24, %v427_v38 }
 0x405   : > { %2288 = vst [vmem:[#allocation1] ss:$2 sm:$0xff] %v2286_v31  ;;  %v527_v31 = vsel %vm249_vm2, %v4516_v62, 0.0  ;;  %v575_v62 = vsel %vm249_vm2, %v4525_v6, 0.0 }
 0x406   : > { %v430_v47 = vrot.slane %v429_v54, 2 }
 0x408   : > { %v431_v37 = vadd.f32 %v430_v47, %v429_v54 }
 0x40a   : > { %v432_v61 = vrot.slane %v431_v37, 1 }
 0x40c   : > { %v4821_v4 = vld.sshfl [vmem:[#allocation1] sm:$0xff pattern:$0x75316420]  ;;  %v4823_v56 = vld.sshfl [vmem:[#allocation1 + $0x8] sm:$0xff pattern:$0x75316420]  ;;  %v433_v12 = vadd.f32 %v432_v61, %v431_v37 }
 0x40d   : > { %6964 = vst [vmem:[#allocation51_spill] sm:$0xff] %v4821_v4  ;;  %v475_v4 = vrot.slane %v474_v18, 2  ;;  %v872_v61 = vsel %vm249_vm2, %v4610_v27, 0.0  ;;  %v998_v27 = vsel %vm249_vm2, %v4625_v40, 0.0  ;;  %v2188_v40 = vsel %vm249_vm2, %v4801_v59, 0.0 }
 0x40e   : > { %6965 = vst [vmem:[#allocation52_spill] sm:$0xff] %v4823_v56  ;;  %v528_v56 = vrot.slane %v527_v31, 4  ;;  %v1258_v59 = vsel %vm249_vm2, %v4661_v16, 0.0 }
 0x40f   : > { %2328 = vst [vmem:[#allocation1] ss:$2 sm:$0xff] %v2326_v57  ;;  %v521_v57 = vrot.slane %v520_v3, 4  ;;  %v476_v30 = vadd.f32 %v475_v4, %v474_v18 }
 0x410   : > { %v529_v38 = vadd.f32 %v528_v56, %v527_v31 }
 0x411   : > { %v522_v53 = vadd.f32 %v521_v57, %v520_v3  ;;  %v650_v3 = vsel %vm249_vm2, %v4550_v34, 0.0 }
 0x412   : > { %v530_v29 = vrot.slane %v529_v38, 2  ;;  %v651_v31 = vrot.slane %v650_v3, 4 }
 0x413   : > { %v523_v25 = vrot.slane %v522_v53, 2 }
 0x414   : > { %v531_v10 = vadd.f32 %v530_v29, %v529_v38  ;;  %v705_v29 = vsel %vm249_vm2, %v4572_v63, 0.0 }
 0x415   : > { %v524_v54 = vadd.f32 %v523_v25, %v522_v53 }
 0x416   : > { %v4829_v39 = vld.sshfl [vmem:[#allocation1] sm:$0xff pattern:$0x75316420]  ;;  %v4831_v55 = vld.sshfl [vmem:[#allocation1 + $0x8] sm:$0xff pattern:$0x75316420] }
 0x417   : > { %6966 = vst [vmem:[#allocation53_spill] sm:$0xff] %v4829_v39  ;;  %v576_v39 = vrot.slane %v575_v62, 4  ;;  %v532_v6 = vrot.slane %v531_v10, 1  ;;  %v525_v18 = vrot.slane %v524_v54, 1 }
 0x418   : > { %6967 = vst [vmem:[#allocation54_spill] sm:$0xff] %v4831_v55  ;;  %v477_v55 = vrot.slane %v476_v30, 1 }
 0x419   : > { %2365 = vst [vmem:[#allocation1] ss:$2 sm:$0xff] %v4445_v15  ;;  %v577_v4 = vadd.f32 %v576_v39, %v575_v62  ;;  %v533_v47 = vadd.f32 %v532_v6, %v531_v10  ;;  %v526_v57 = vadd.f32 %v525_v18, %v524_v54  ;;  %v794_v39 = vsel %vm249_vm2, %v4599_v21, 0.0 }
 0x41a   : > { %v478_v15 = vadd.f32 %v477_v55, %v476_v30  ;;  %v795_v38 = vrot.slane %v794_v39, 4  ;;  %v949_v21 = vsel %vm249_vm2, %v4618_v32, 0.0  ;;  %v1109_v32 = vsel %vm249_vm2, %v4639_v28, 0.0 }
 0x41b   : > { %v578_v56 = vrot.slane %v577_v4, 2 }
 0x41c   : > { %v796_v62 = vadd.f32 %v795_v38, %v794_v39 }
 0x420   : > { %v2367_v24 = vld.sshfl [vmem:[#allocation1 + $0x8] sm:$0xff pattern:$0x75316420]  ;;  %v2366_v13 = vld.sshfl [vmem:[#allocation1] sm:$0xff pattern:$0x75316420] }
 0x421   : > { %2372 = vrot.lane.b32.xlu1 %v2367_v24, %s4295_s30  ;;  %2370 = vrot.lane.b32.xlu0 %v2366_v13, %s4295_s30  ;;  %v579_v24 = vadd.f32 %v578_v56, %v577_v4  ;;  %v652_v13 = vadd.f32 %v651_v31, %v650_v3  ;;  %v797_v4 = vrot.slane %v796_v62, 2  ;;  %v873_v3 = vrot.slane %v872_v61, 4 }
 0x423   : > { %v580_v34 = vrot.slane %v579_v24, 1  ;;  %v653_v25 = vrot.slane %v652_v13, 2  ;;  %v798_v18 = vadd.f32 %v797_v4, %v796_v62  ;;  %v874_v56 = vadd.f32 %v873_v3, %v872_v61 }
 0x424   : > { %v1158_v62 = vsel %vm249_vm2, %v4650_v48, 0.0  ;;  %v2189_v4 = vrot.slane %v2188_v40, 4  ;;  %v2181_v3 = vsel %vm249_vm2, %v4799_v1, 0.0  ;;  %v1259_v48 = vrot.slane %v1258_v59, 4 }
 0x425   : > { %v581_v30 = vadd.f32 %v580_v34, %v579_v24  ;;  %v799_v31 = vrot.slane %v798_v18, 1  ;;  %v999_v34 = vrot.slane %v998_v27, 4  ;;  %v1159_v28 = vrot.slane %v1158_v62, 4 }
 0x427   : > { %v800_v24 = vadd.f32 %v799_v31, %v798_v18  ;;  %v1160_v31 = vadd.f32 %v1159_v28, %v1158_v62 }
 0x429   : > { %486 = vrot.lane.b32.xlu1 %v478_v15, %s4289_s24  ;;  %436 = vrot.lane.b32.xlu0 %v433_v12, %s4290_s25  ;;  %v706_v15 = vrot.slane %v705_v29, 4  ;;  %v654_v12 = vadd.f32 %v653_v25, %v652_v13 }
 0x42b   : > { %v707_v37 = vadd.f32 %v706_v15, %v705_v29  ;;  %v655_v10 = vrot.slane %v654_v12, 1 }
 0x42d   : > { %v708_v55 = vrot.slane %v707_v37, 2  ;;  %v656_v53 = vadd.f32 %v655_v10, %v654_v12  ;;  %v1110_v10 = vrot.slane %v1109_v32, 4 }
 0x42f   : > { %v709_v63 = vadd.f32 %v708_v55, %v707_v37 }
 0x431   : > { %536 = vrot.lane.b32.xlu1 %v533_v47, %s4288_s23  ;;  %534 = vrot.lane.b32.xlu0 %v526_v57, %s4288_s23  ;;  %v710_v54 = vrot.slane %v709_v63, 1  ;;  %v875_v47 = vrot.slane %v874_v56, 2  ;;  %v950_v57 = vrot.slane %v949_v21, 4 }
 0x433   : > { %v711_v6 = vadd.f32 %v710_v54, %v709_v63  ;;  %v876_v13 = vadd.f32 %v875_v47, %v874_v56  ;;  %v951_v29 = vadd.f32 %v950_v57, %v949_v21  ;;  %v2182_v56 = vrot.slane %v2181_v3, 4 }
 0x434   : > { %v2190_v21 = vadd.f32 %v2189_v4, %v2188_v40 }
 0x435   : > { %v877_v25 = vrot.slane %v876_v13, 1  ;;  %v952_v15 = vrot.slane %v951_v29, 2  ;;  %v2183_v47 = vadd.f32 %v2182_v56, %v2181_v3  ;;  %v1467_v56 = vsel %vm249_vm2, %v4686_v41, 0.0 }
 0x436   : > { %v2191_v57 = vrot.slane %v2190_v21, 2 }
 0x437   : > { %v878_v12 = vadd.f32 %v877_v25, %v876_v13  ;;  %v953_v37 = vadd.f32 %v952_v15, %v951_v29  ;;  %v1161_v13 = vrot.slane %v1160_v31, 2  ;;  %v1260_v29 = vadd.f32 %v1259_v48, %v1258_v59 }
 0x438   : > { %v1307_v15 = vsel %vm249_vm2, %v4668_v19, 0.0  ;;  %v1544_v48 = vsel %vm249_vm2, %v4703_v50, 0.0 }
 0x439   : > { %584 = vrot.lane.b32.xlu0 %v581_v30, %s4287_s18  ;;  %v1000_v30 = vadd.f32 %v999_v34, %v998_v27  ;;  %v954_v55 = vrot.slane %v953_v37, 1  ;;  %v2184_v27 = vrot.slane %v2183_v47, 2  ;;  %v2192_v34 = vadd.f32 %v2191_v57, %v2190_v21 }
 0x43a   : > { %v1162_v1 = vadd.f32 %v1161_v13, %v1160_v31  ;;  %v1468_v31 = vrot.slane %v1467_v56, 4  ;;  %v1545_v13 = vrot.slane %v1544_v48, 4 }
 0x43b   : > { %v1001_v39 = vrot.slane %v1000_v30, 2  ;;  %v955_v63 = vadd.f32 %v954_v55, %v953_v37  ;;  %v2193_v16 = vrot.slane %v2192_v34, 1 }
 0x43c   : > { %v1163_v37 = vrot.slane %v1162_v1, 1 }
 0x43d   : > { %v1002_v38 = vadd.f32 %v1001_v39, %v1000_v30  ;;  %v1261_v30 = vrot.slane %v1260_v29, 2  ;;  %v2194_v55 = vadd.f32 %v2193_v16, %v2192_v34 }
 0x43f   : > { %v1003_v61 = vrot.slane %v1002_v38, 1  ;;  %v1262_v39 = vadd.f32 %v1261_v30, %v1260_v29  ;;  %v2196_v62 = vmul.f32 0.25, %v2194_v55  ;;  %v4890_v30 = vadd.s32 128, %v4456_v22 }
 0x441   : > { %664 = vrot.lane.b32.xlu0 %v656_v53, %s4286_s16  ;;  %v1111_v53 = vadd.f32 %v1110_v10, %v1109_v32  ;;  %v1308_v32 = vrot.slane %v1307_v15, 4  ;;  %v1263_v40 = vrot.slane %v1262_v39, 1  ;;  %v2199_v3 = vrot.slane %v2196_v62, 7 }
 0x443   : > { %v1112_v54 = vrot.slane %v1111_v53, 2  ;;  %v1264_v4 = vadd.f32 %v1263_v40, %v1262_v39 }
 0x445   : > { %v1113_v18 = vadd.f32 %v1112_v54, %v1111_v53  ;;  %v1309_v53 = vadd.f32 %v1308_v32, %v1307_v15  ;;  %v435_v15 = vpop.permute.xlu2 %434 }
 0x449   : > { %714 = vrot.lane.b32.xlu0 %v711_v6, %s4285_s19  ;;  %v1004_v6 = vadd.f32 %v1003_v61, %v1002_v38  ;;  %v1164_v38 = vadd.f32 %v1163_v37, %v1162_v1  ;;  %v1310_v61 = vrot.slane %v1309_v53, 2  ;;  %v1593_v1 = vsel %vm249_vm2, %v4711_v20, 0.0 }
 0x44a   : > { %v1594_v16 = vrot.slane %v1593_v1, 4 }
 0x451   : > { %808 = vrot.lane.b32.xlu0 %v800_v24, %s4283_s29  ;;  %v1114_v24 = vrot.slane %v1113_v18, 1 }
 0x453   : > { %v1115_v25 = vadd.f32 %v1114_v24, %v1113_v18  ;;  %v1469_v24 = vadd.f32 %v1468_v31, %v1467_v56 }
 0x455   : > { %v1470_v29 = vrot.slane %v1469_v24, 2 }
 0x459   : > { %881 = vrot.lane.b32.xlu0 %v878_v12, %s4290_s25  ;;  %v2185_v12 = vadd.f32 %v2184_v27, %v2183_v47  ;;  %v1546_v27 = vadd.f32 %v1545_v13, %v1544_v48 }
 0x45b   : > { %v2186_v10 = vrot.slane %v2185_v12, 1  ;;  %v1547_v50 = vrot.slane %v1546_v27, 2 }
 0x45d   : > { %v2187_v19 = vadd.f32 %v2186_v10, %v2185_v12  ;;  %v4893_v12 = vand.u32 15, %v4456_v22 }
 0x45f   : > { %v2195_v28 = vmul.f32 0.25, %v2187_v19  ;;  %vm492_vm15 = vcmp.ge.s32.totalorder %v4893_v12, 3  ;;  %vm6907_vm13 = vcmp.ge.s32.totalorder %v4893_v12, 4 }
 0x460   : > { %vm4922_vm5 = vmand %vm401_vm10, %vm6907_vm13 }
 0x461   : > { %963 = vrot.lane.b32.xlu0 %v955_v63, %s4288_s23  ;;  %v1384_v63 = vsel %vm249_vm2, %v4676_v42, 0.0  ;;  %v2200_v59 = vsel %vm455_vm11, %v2195_v28, %v2199_v3 }
 0x462   : > { %v1385_v54 = vrot.slane %v1384_v63, 4  ;;  %4078 = vst.msk [vmem:[%s4579_s5 + $0x50] ss:$8 sm:$0x3] %vm4582_vm12, %v2200_v59 }
 0x464   : > { %v1386_v18 = vadd.f32 %v1385_v54, %v1384_v63  ;;  %v1595_v63 = vadd.f32 %v1594_v16, %v1593_v1  ;;  %v1700_v1 = vsel %vm249_vm2, %v4730_v51, 0.0 }
 0x466   : > { %v1387_v42 = vrot.slane %v1386_v18, 2  ;;  %v1596_v3 = vrot.slane %v1595_v63, 2 }
 0x468   : > { %v1388_v57 = vadd.f32 %v1387_v42, %v1386_v18 }
 0x469   : > { %1007 = vrot.lane.b32.xlu0 %v1004_v6, %s4287_s18  ;;  %v1311_v6 = vadd.f32 %v1310_v61, %v1309_v53  ;;  %v4896_v53 = vand.u32 15, %v4890_v30  ;;  %v1651_v61 = vsel %vm249_vm2, %v4723_v14, 0.0 }
 0x46a   : > { %v1389_v41 = vrot.slane %v1388_v57, 1  ;;  %v1652_v56 = vrot.slane %v1651_v61, 4 }
 0x46b   : > { %v1312_v21 = vrot.slane %v1311_v6, 1  ;;  %vm6902_vm0 = vcmp.ge.s32.totalorder %v4896_v53, 3  ;;  %vm6906_vm3 = vcmp.ge.s32.totalorder %v4896_v53, 4 }
 0x46c   : > { %v1390_v34 = vadd.f32 %v1389_v41, %v1388_v57 }
 0x46d   : > { %v1313_v47 = vadd.f32 %v1312_v21, %v1311_v6 }
 0x471   : > { %1123 = vrot.lane.b32.xlu0 %v1115_v25, %s4285_s19  ;;  %v1471_v25 = vadd.f32 %v1470_v29, %v1469_v24 }
 0x473   : > { %v1472_v39 = vrot.slane %v1471_v25, 1 }
 0x475   : > { %v1473_v19 = vadd.f32 %v1472_v39, %v1471_v25  ;;  %v1653_v25 = vadd.f32 %v1652_v56, %v1651_v61 }
 0x479   : > { %1167 = vrot.lane.b32.xlu0 %v1164_v38, %s4284_s15  ;;  %v1548_v38 = vadd.f32 %v1547_v50, %v1546_v27  ;;  %v1597_v27 = vadd.f32 %v1596_v3, %v1595_v63 }
 0x47b   : > { %v1549_v28 = vrot.slane %v1548_v38, 1  ;;  %v1598_v63 = vrot.slane %v1597_v27, 1 }
 0x47d   : > { %v1550_v29 = vadd.f32 %v1549_v28, %v1548_v38  ;;  %v1599_v3 = vadd.f32 %v1598_v63, %v1597_v27 }
 0x481   : > { %1272 = vrot.lane.b32.xlu0 %v1264_v4, %s4290_s25  ;;  %v489_v4 = vpop.permute.xlu2 %488 }
 0x489   : > { %1316 = vrot.lane.b32.xlu0 %v1313_v47, %s4289_s24 }
 0x491   : > { %1398 = vrot.lane.b32.xlu0 %v1390_v34, %s4287_s18 }
 0x493   : > { %v2373_v37 = vpop.permute.xlu1 %2372  ;;  %v2371_v32 = vpop.permute.xlu0 %2370 }
 0x494   : > { %v2376_v10 = vsel %vm2374_vm1, %v2373_v37, %v2371_v32  ;;  %v2375_v20 = vsel %vm2374_vm1, %v2371_v32, %v2373_v37  ;;  %vm4912_vm1 = vmand %vm401_vm10, %vm492_vm15 }
 0x495   : > { %v2386_v55 = vrot.slane %v2376_v10, 4 }
 0x497   : > { %v4900_v40 = vsel %vm249_vm2, %v2375_v20, %v2386_v55 }
 0x498   : > { %v2389_v62 = vmul.f32 %v4900_v40, %v4470_v33  ;;  %v2431_v34 = vmul.f32 %v4900_v40, %v4485_v43  ;;  %v2473_v56 = vmul.f32 %v4900_v40, %v4499_v52 }
 0x499   : > { %1476 = vrot.lane.b32.xlu0 %v1473_v19, %s4286_s16  ;;  %v1654_v19 = vrot.slane %v1653_v25, 2 }
 0x49a   : > { %2391 = vst [vmem:[#allocation1] ss:$2 sm:$0xff] %v2389_v62  ;;  %v1701_v62 = vrot.slane %v1700_v1, 4 }
 0x49b   : > { %v487_v6 = vpop.permute.xlu1 %486  ;;  %v437_v18 = vpop.permute.xlu0 %436 }
 0x49c   : > { %v490_v21 = vsel %vm6897_vm8, %v487_v6, %v489_v4  ;;  %v491_v42 = vsel %vm6897_vm8, %v489_v4, %v487_v6  ;;  %v438_v31 = vsel %vm6905_vm9, %v435_v15, %v437_v18  ;;  %v439_v59 = vsel %vm6905_vm9, %v437_v18, %v435_v15 }
 0x49d   : > { %v500_v48 = vsel %vm4912_vm1, %v491_v42, 0.0  ;;  %v501_v47 = vsel %vm6902_vm0, %v490_v21, 0.0  ;;  %v448_v57 = vsel %vm4922_vm5, %v439_v59, 0.0  ;;  %v449_v24 = vsel %vm6906_vm3, %v438_v31, 0.0 }
 0x49e   : > { %v503_v13 = vmul.f32 0.25, %v501_v47  ;;  %v451_v41 = vmul.f32 0.25, %v449_v24  ;;  %vm6898_vm8 = vcmp.ge.s32.totalorder %v4893_v12, 2  ;;  %v502_v15 = vmul.f32 0.25, %v500_v48 }
 0x49f   : > { %v450_v16 = vmul.f32 0.25, %v448_v57  ;;  %vm6899_vm5 = vcmp.ge.s32.totalorder %v4896_v53, 2  ;;  %vm4959_vm1 = vmand %vm401_vm10, %vm6898_vm8  ;;  %vm6913_vm8 = vcmp.ge.s32.totalorder %v4893_v12, 1  ;;  %v1655_v6 = vadd.f32 %v1654_v19, %v1653_v25 }
 0x4a0   : > { %v506_v50 = vrot.slane %v503_v13, 7  ;;  %v454_v37 = vrot.slane %v451_v41, 7  ;;  %v1702_v18 = vadd.f32 %v1701_v62, %v1700_v1  ;;  %v1777_v31 = vsel %vm249_vm2, %v4738_v8, 0.0  ;;  %v583_v8 = vpop.permute.xlu2 %582 }
 0x4a1   : > { %1558 = vrot.lane.b32.xlu0 %v1550_v29, %s4284_s15  ;;  %v4948_v32 = vld.sshfl [vmem:[#allocation1] sm:$0xff pattern:$0x75316420]  ;;  %v4950_v39 = vld.sshfl [vmem:[#allocation1 + $0x8] sm:$0xff pattern:$0x75316420] }
 0x4a2   : > { %v507_v10 = vsel %vm455_vm11, %v502_v15, %v506_v50  ;;  %v456_v55 = vsel %vm455_vm11, %v450_v16, %v454_v37  ;;  %2433 = vst [vmem:[#allocation1] ss:$2 sm:$0xff] %v2431_v34  ;;  %v1656_v13 = vrot.slane %v1655_v6, 1  ;;  %v1703_v41 = vrot.slane %v1702_v18, 2 }
 0x4a3   : > { %4039 = vst.msk [vmem:[%s4579_s5 + $0x1] ss:$8 sm:$0x3] %vm4582_vm12, %v507_v10  ;;  %v537_v38 = vpop.permute.xlu1 %536  ;;  %v535_v20 = vpop.permute.xlu0 %534  ;;  %v1778_v29 = vrot.slane %v1777_v31, 4  ;;  %v2515_v10 = vmul.f32 %v4900_v40, %v4510_v58 }
 0x4a4   : > { %462 = vst.msk [vmem:[%s4579_s5] ss:$8 sm:$0x3] %vm4582_vm12, %v456_v55  ;;  %v538_v61 = vsel %vm6901_vm7, %v535_v20, %v537_v38  ;;  %v539_v54 = vsel %vm6901_vm7, %v537_v38, %v535_v20  ;;  %v1657_v50 = vadd.f32 %v1656_v13, %v1655_v6  ;;  %v1704_v16 = vadd.f32 %v1703_v41, %v1702_v18 }
 0x4a5   : > { %v548_v4 = vsel %vm4959_vm1, %v539_v54, 0.0  ;;  %v549_v14 = vsel %vm6899_vm5, %v538_v61, 0.0  ;;  %vm6910_vm1 = vcmp.ge.s32.totalorder %v4896_v53, 1  ;;  %vm4993_vm5 = vmand %vm401_vm10, %vm6913_vm8  ;;  %v1779_v37 = vadd.f32 %v1778_v29, %v1777_v31 }
 0x4a6   : > { %v551_v28 = vmul.f32 0.25, %v549_v14  ;;  %v550_v21 = vmul.f32 0.25, %v548_v4  ;;  %v1860_v38 = vsel %vm249_vm2, %v4748_v5, 0.0  ;;  %v1705_v62 = vrot.slane %v1704_v16, 1 }
 0x4a7   : > { %v1780_v61 = vrot.slane %v1779_v37, 2  ;;  %v1861_v54 = vrot.slane %v1860_v38, 4  ;;  %v1937_v5 = vsel %vm249_vm2, %v4763_v23, 0.0  ;;  %v1986_v23 = vsel %vm249_vm2, %v4771_v17, 0.0 }
 0x4a8   : > { %v554_v42 = vrot.slane %v551_v28, 7  ;;  %v1706_v4 = vadd.f32 %v1705_v62, %v1704_v16  ;;  %vm6903_vm7 = vcmp.lt.s32.totalorder %v4896_v53, 14 }
 0x4a9   : > { %1602 = vrot.lane.b32.xlu0 %v1599_v3, %s4283_s29  ;;  %v4983_v59 = vld.sshfl [vmem:[#allocation1] sm:$0xff pattern:$0x75316420]  ;;  %v4985_v48 = vld.sshfl [vmem:[#allocation1 + $0x8] sm:$0xff pattern:$0x75316420]  ;;  %v1781_v14 = vadd.f32 %v1780_v61, %v1779_v37  ;;  %v1862_v28 = vadd.f32 %v1861_v54, %v1860_v38  ;;  %v2557_v3 = vmul.f32 %v4900_v40, %v4423_v0  ;;  %v2633_v38 = vmul.f32 %v4900_v40, %v4545_v26 }
 0x4aa   : > { %v555_v47 = vsel %vm455_vm11, %v550_v21, %v554_v42  ;;  %2475 = vst [vmem:[#allocation1] ss:$2 sm:$0xff] %v2473_v56  ;;  %v1938_v56 = vrot.slane %v1937_v5, 4 }
 0x4ab   : > { %4040 = vst.msk [vmem:[%s4579_s5 + $0x2] ss:$8 sm:$0x3] %vm4582_vm12, %v555_v47  ;;  %v585_v24 = vpop.permute.xlu0 %584  ;;  %v1782_v21 = vrot.slane %v1781_v14, 1  ;;  %v1863_v42 = vrot.slane %v1862_v28, 2 }
 0x4ac   : > { %v586_v27 = vsel %vm6912_vm6, %v583_v8, %v585_v24  ;;  %v587_v34 = vsel %vm6912_vm6, %v585_v24, %v583_v8  ;;  %v1939_v31 = vadd.f32 %v1938_v56, %v1937_v5  ;;  %v2591_v8 = vmul.f32 %v4900_v40, %v4531_v9 }
 0x4ad   : > { %v596_v25 = vsel %vm4993_vm5, %v587_v34, 0.0  ;;  %v597_v1 = vsel %vm6910_vm1, %v586_v27, 0.0  ;;  %v1783_v47 = vadd.f32 %v1782_v21, %v1781_v14  ;;  %v1864_v57 = vadd.f32 %v1863_v42, %v1862_v28 }
 0x4ae   : > { %v599_v15 = vmul.f32 0.25, %v597_v1  ;;  %v598_v55 = vmul.f32 0.25, %v596_v25  ;;  %v1940_v41 = vrot.slane %v1939_v31, 2  ;;  %v1987_v25 = vrot.slane %v1986_v23, 4 }
 0x4af   : > { %v1865_v34 = vrot.slane %v1864_v57, 1  ;;  %vm6900_vm5 = vcmp.lt.s32.totalorder %v4890_v30, 240 }
 0x4b0   : > { %v602_v51 = vrot.slane %v599_v15, 7  ;;  %v1941_v37 = vadd.f32 %v1940_v41, %v1939_v31 }
 0x4b1   : > { %1665 = vrot.lane.b32.xlu0 %v1657_v50, %s4290_s25  ;;  %v5013_v20 = vld.sshfl [vmem:[#allocation1] sm:$0xff pattern:$0x75316420]  ;;  %v5015_v63 = vld.sshfl [vmem:[#allocation1 + $0x8] sm:$0xff pattern:$0x75316420] }
 0x4b2   : > { %v603_v19 = vsel %vm455_vm11, %v598_v55, %v602_v51  ;;  %2517 = vst [vmem:[#allocation1] ss:$2 sm:$0xff] %v2515_v10  ;;  %v1866_v10 = vadd.f32 %v1865_v34, %v1864_v57  ;;  %v1988_v55 = vadd.f32 %v1987_v25, %v1986_v23  ;;  %v1942_v14 = vrot.slane %v1941_v37, 1 }
 0x4b3   : > { %4041 = vst.msk [vmem:[%s4579_s5 + $0x3] ss:$8 sm:$0x3] %vm4582_vm12, %v603_v19  ;;  %v2061_v19 = vsel %vm249_vm2, %v4781_v46, 0.0  ;;  %v2108_v23 = vsel %vm249_vm2, %v4789_v35, 0.0  ;;  %v657_v35 = vsel %vm249_vm2, %v4552_v36, 0.0 }
 0x4b4   : > { %v1989_v28 = vrot.slane %v1988_v55, 2  ;;  %v2062_v5 = vrot.slane %v2061_v19, 4  ;;  %v1943_v31 = vadd.f32 %v1942_v14, %v1941_v37 }
 0x4b6   : > { %v1990_v46 = vadd.f32 %v1989_v28, %v1988_v55  ;;  %v2717_v55 = vmul.f32 %v4900_v40, %v4588_v7 }
 0x4b8   : > { %v1991_v34 = vrot.slane %v1990_v46, 1 }
 0x4b9   : > { %1709 = vrot.lane.b32.xlu0 %v1706_v4, %s4289_s24  ;;  %v5026_v6 = vld.sshfl [vmem:[#allocation1] sm:$0xff pattern:$0x75316420]  ;;  %v5028_v18 = vld.sshfl [vmem:[#allocation1 + $0x8] sm:$0xff pattern:$0x75316420] }
 0x4ba   : > { %2559 = vst [vmem:[#allocation1] ss:$2 sm:$0xff] %v2557_v3 }
 0x4c1   : > { %1791 = vrot.lane.b32.xlu0 %v1783_v47, %s4287_s18  ;;  %v2560_v24 = vld.sshfl [vmem:[#allocation1] sm:$0xff pattern:$0x75316420]  ;;  %v2561_v13 = vld.sshfl [vmem:[#allocation1 + $0x8] sm:$0xff pattern:$0x75316420]  ;;  %v2063_v47 = vadd.f32 %v2062_v5, %v2061_v19 }
 0x4c2   : > { %2593 = vst [vmem:[#allocation1] ss:$2 sm:$0xff] %v2591_v8  ;;  %v2564_v29 = vsel %vm249_vm2, %v2560_v24, 0.0  ;;  %v2571_v27 = vsel %vm249_vm2, %v2561_v13, 0.0  ;;  %v2675_v8 = vmul.f32 %v4900_v40, %v4562_v45  ;;  %v658_v19 = vrot.slane %v657_v35, 4 }
 0x4c3   : > { %v2565_v1 = vrot.slane %v2564_v29, 4  ;;  %v2572_v15 = vrot.slane %v2571_v27, 4  ;;  %v2064_v25 = vrot.slane %v2063_v47, 2 }
 0x4c5   : > { %v2566_v50 = vadd.f32 %v2565_v1, %v2564_v29  ;;  %v2573_v16 = vadd.f32 %v2572_v15, %v2571_v27  ;;  %v2109_v1 = vrot.slane %v2108_v23, 4 }
 0x4c7   : > { %v2567_v17 = vrot.slane %v2566_v50, 2  ;;  %v2574_v51 = vrot.slane %v2573_v16, 2  ;;  %v2110_v37 = vadd.f32 %v2109_v1, %v2108_v23 }
 0x4c9   : > { %1869 = vrot.lane.b32.xlu0 %v1866_v10, %s4286_s16  ;;  %v5042_v62 = vld.sshfl [vmem:[#allocation1] sm:$0xff pattern:$0x75316420]  ;;  %v5044_v61 = vld.sshfl [vmem:[#allocation1 + $0x8] sm:$0xff pattern:$0x75316420]  ;;  %v2568_v54 = vadd.f32 %v2567_v17, %v2566_v50  ;;  %v2575_v4 = vadd.f32 %v2574_v51, %v2573_v16  ;;  %v1992_v50 = vadd.f32 %v1991_v34, %v1990_v46  ;;  %v2065_v16 = vadd.f32 %v2064_v25, %v2063_v47 }
 0x4ca   : > { %2635 = vst [vmem:[#allocation1] ss:$2 sm:$0xff] %v2633_v38  ;;  %v698_v10 = vsel %vm249_vm2, %v4570_v60, 0.0  ;;  %v2213_v17 = vsel %vm249_vm2, %v4805_v49, 0.0  ;;  %v659_v60 = vadd.f32 %v658_v19, %v657_v35  ;;  %v2260_v49 = vsel %vm249_vm2, %v4813_v44, 0.0  ;;  %v6977_v47 = vld [vmem:[#allocation9_spill] sm:$0xff] }
 0x4cb   : > { %v2569_v3 = vrot.slane %v2568_v54, 1  ;;  %v2576_v56 = vrot.slane %v2575_v4, 1  ;;  %v699_v36 = vrot.slane %v698_v10, 4  ;;  %v2214_v14 = vrot.slane %v2213_v17, 4  ;;  %v6978_v35 = vld [vmem:[#allocation11_spill] sm:$0xff] }
 0x4cd   : > { %v2577_v21 = vadd.f32 %v2576_v56, %v2575_v4  ;;  %v2570_v42 = vadd.f32 %v2569_v3, %v2568_v54  ;;  %v2066_v54 = vrot.slane %v2065_v16, 1  ;;  %v2111_v4 = vrot.slane %v2110_v37, 2 }
 0x4ce   : > { %v700_v28 = vadd.f32 %v699_v36, %v698_v10  ;;  %v2215_v40 = vadd.f32 %v2214_v14, %v2213_v17  ;;  %v753_v56 = vsel %vm249_vm2, %v4597_v11, 0.0  ;;  %v6979_v10 = vld [vmem:[#allocation53_spill] sm:$0xff]  ;;  %v6980_v17 = vld [vmem:[#allocation12_spill] sm:$0xff] }
 0x4cf   : > { %v2579_v57 = vsel %vm6900_vm5, %v2577_v21, 0.0  ;;  %v2580_v29 = vmul.f32 0.25, %v2570_v42  ;;  %v2067_v5 = vadd.f32 %v2066_v54, %v2065_v16  ;;  %v2112_v3 = vadd.f32 %v2111_v4, %v2110_v37  ;;  %v6976_v21 = vld [vmem:[#allocation10_spill] sm:$0xff] }
 0x4d0   : > { %v2581_v24 = vmul.f32 0.25, %v2579_v57  ;;  %v746_v42 = vsel %vm249_vm2, %v6976_v21, 0.0  ;;  %v701_v57 = vrot.slane %v700_v28, 2  ;;  %v754_v44 = vrot.slane %v753_v56, 4 }
 0x4d1   : > { %1951 = vrot.lane.b32.xlu0 %v1943_v31, %s4284_s15  ;;  %v5054_v13 = vld.sshfl [vmem:[#allocation1] sm:$0xff pattern:$0x75316420]  ;;  %v5056_v41 = vld.sshfl [vmem:[#allocation1 + $0x8] sm:$0xff pattern:$0x75316420] }
 0x4d2   : > { %2677 = vst [vmem:[#allocation1] ss:$2 sm:$0xff] %v2675_v8  ;;  %v2584_v27 = vrot.slane %v2581_v24, 7  ;;  %v660_v8 = vrot.slane %v659_v60, 2  ;;  %v2113_v23 = vrot.slane %v2112_v3, 1  ;;  %v2216_v24 = vrot.slane %v2215_v40, 2 }
 0x4d3   : > { %v702_v34 = vadd.f32 %v701_v57, %v700_v28  ;;  %v755_v16 = vadd.f32 %v754_v44, %v753_v56  ;;  %v865_v36 = vsel %vm249_vm2, %v6980_v17, 0.0  ;;  %vm6908_vm5 = vcmp.lt.s32.totalorder %v4893_v12, 14 }
 0x4d4   : > { %v2585_v15 = vsel %vm455_vm11, %v2580_v29, %v2584_v27  ;;  %v2261_v29 = vrot.slane %v2260_v49, 4  ;;  %v747_v27 = vrot.slane %v746_v42, 4  ;;  %v661_v11 = vadd.f32 %v660_v8, %v659_v60  ;;  %v6981_v8 = vld [vmem:[#allocation13_spill] sm:$0xff]  ;;  %vm724_vm0 = vmand %vm401_vm10, %vm6908_vm5 }
 0x4d5   : > { %4087 = vst.msk [vmem:[%s4579_s5 + $0x61] ss:$8 sm:$0x3] %vm4582_vm12, %v2585_v15  ;;  %v2114_v25 = vadd.f32 %v2113_v23, %v2112_v3  ;;  %v2217_v1 = vadd.f32 %v2216_v24, %v2215_v40  ;;  %v703_v4 = vrot.slane %v702_v34, 1  ;;  %v756_v40 = vrot.slane %v755_v16, 2 }
 0x4d6   : > { %v2262_v15 = vadd.f32 %v2261_v29, %v2260_v49  ;;  %v748_v37 = vadd.f32 %v747_v27, %v746_v42  ;;  %v662_v14 = vrot.slane %v661_v11, 1  ;;  %v866_v56 = vrot.slane %v865_v36, 4  ;;  %v6982_v27 = vld [vmem:[#allocation14_spill] sm:$0xff] }
 0x4d7   : > { %v2218_v60 = vrot.slane %v2217_v1, 1  ;;  %v704_v21 = vadd.f32 %v703_v4, %v702_v34  ;;  %v907_v23 = vsel %vm249_vm2, %v6981_v8, 0.0  ;;  %vm7008_vm5 = vcmp.lt.s32.totalorder %v4456_v22, 125 }
 0x4d8   : > { %v749_v49 = vrot.slane %v748_v37, 2  ;;  %v663_v42 = vadd.f32 %v662_v14, %v661_v11  ;;  %v867_v17 = vadd.f32 %v866_v56, %v865_v36  ;;  %v908_v11 = vrot.slane %v907_v23, 4  ;;  %v6983_v56 = vld [vmem:[#allocation15_spill] sm:$0xff] }
 0x4d9   : > { %1995 = vrot.lane.b32.xlu0 %v1992_v50, %s4283_s29  ;;  %v5071_v51 = vld.sshfl [vmem:[#allocation1] sm:$0xff pattern:$0x75316420]  ;;  %v5073_v38 = vld.sshfl [vmem:[#allocation1 + $0x8] sm:$0xff pattern:$0x75316420]  ;;  %v2219_v24 = vadd.f32 %v2218_v60, %v2217_v1 }
 0x4da   : > { %2719 = vst [vmem:[#allocation1] ss:$2 sm:$0xff] %v2717_v55  ;;  %v801_v50 = vsel %vm249_vm2, %v6978_v35, 0.0  ;;  %v2333_v55 = vsel %vm249_vm2, %v6979_v10, 0.0  ;;  %v757_v35 = vadd.f32 %v756_v40, %v755_v16  ;;  %v750_v10 = vadd.f32 %v749_v49, %v748_v37 }
 0x4db   : > { %v802_v28 = vrot.slane %v801_v50, 4  ;;  %v2334_v3 = vrot.slane %v2333_v55, 4  ;;  %v868_v16 = vrot.slane %v867_v17, 2  ;;  %v909_v36 = vadd.f32 %v908_v11, %v907_v23 }
 0x4dc   : > { %v751_v4 = vrot.slane %v750_v10, 1  ;;  %v2480_v49 = vsel %vm249_vm2, %v5013_v20, 0.0 }
 0x4dd   : > { %v803_v57 = vadd.f32 %v802_v28, %v801_v50  ;;  %v2335_v44 = vadd.f32 %v2334_v3, %v2333_v55  ;;  %v869_v40 = vadd.f32 %v868_v16, %v867_v17  ;;  %v910_v23 = vrot.slane %v909_v36, 2 }
 0x4de   : > { %v752_v3 = vadd.f32 %v751_v4, %v750_v10  ;;  %v2529_v16 = vsel %vm249_vm2, %v5028_v18, 0.0 }
 0x4df   : > { %v804_v34 = vrot.slane %v803_v57, 2  ;;  %v2336_v50 = vrot.slane %v2335_v44, 2  ;;  %v911_v17 = vadd.f32 %v910_v23, %v909_v36 }
 0x4e1   : > { %2075 = vrot.lane.b32.xlu0 %v2067_v5, %s4289_s24  ;;  %v5082_v31 = vld.sshfl [vmem:[#allocation1] sm:$0xff pattern:$0x75316420]  ;;  %v5084_v46 = vld.sshfl [vmem:[#allocation1 + $0x8] sm:$0xff pattern:$0x75316420]  ;;  %v805_v37 = vadd.f32 %v804_v34, %v803_v57 }
 0x4e2   : > { %2758 = vst [vmem:[#allocation1] ss:$2 sm:$0xff] %v6977_v47  ;;  %v2263_v5 = vrot.slane %v2262_v15, 2 }
 0x4e3   : > { %v806_v57 = vrot.slane %v805_v37, 1 }
 0x4e4   : > { %v2264_v29 = vadd.f32 %v2263_v5, %v2262_v15 }
 0x4e5   : > { %v807_v10 = vadd.f32 %v806_v57, %v805_v37  ;;  %v912_v37 = vrot.slane %v911_v17, 1 }
 0x4e6   : > { %v2265_v15 = vrot.slane %v2264_v29, 1 }
 0x4e8   : > { %v2266_v28 = vadd.f32 %v2265_v15, %v2264_v29  ;;  %v6985_v15 = vld [vmem:[#allocation17_spill] sm:$0xff] }
 0x4e9   : > { %2117 = vrot.lane.b32.xlu0 %v2114_v25, %s4288_s23  ;;  %v2760_v19 = vld.sshfl [vmem:[#allocation1 + $0x8] sm:$0xff pattern:$0x75316420]  ;;  %v2759_v54 = vld.sshfl [vmem:[#allocation1] sm:$0xff pattern:$0x75316420] }
 0x4ea   : > { %2765 = vrot.lane.b32.xlu2 %v2760_v19, %s4296_s22  ;;  %2763 = vrot.lane.b32.xlu1 %v2759_v54, %s4296_s22  ;;  %v914_v25 = vsel %vm249_vm2, %v6982_v27, 0.0  ;;  %v2403_v19 = vsel %vm249_vm2, %v4950_v39, 0.0  ;;  %v758_v54 = vrot.slane %v757_v35, 1  ;;  %v2337_v39 = vadd.f32 %v2336_v50, %v2335_v44 }
 0x4eb   : > { %v915_v1 = vrot.slane %v914_v25, 4  ;;  %v2404_v55 = vrot.slane %v2403_v19, 4  ;;  %v2481_v27 = vrot.slane %v2480_v49, 4  ;;  %v1067_v50 = vsel %vm249_vm2, %v6985_v15, 0.0 }
 0x4ec   : > { %v759_v5 = vadd.f32 %v758_v54, %v757_v35  ;;  %v2338_v29 = vrot.slane %v2337_v39, 1 }
 0x4ed   : > { %v916_v14 = vadd.f32 %v915_v1, %v914_v25  ;;  %v2405_v60 = vadd.f32 %v2404_v55, %v2403_v19  ;;  %v870_v25 = vrot.slane %v869_v40, 1  ;;  %v2482_v1 = vadd.f32 %v2481_v27, %v2480_v49 }
 0x4ee   : > { %v2339_v34 = vadd.f32 %v2338_v29, %v2337_v39 }
 0x4ef   : > { %v2406_v44 = vrot.slane %v2405_v60, 2  ;;  %v871_v55 = vadd.f32 %v870_v25, %v869_v40 }
 0x4f1   : > { %2227 = vrot.lane.b32.xlu0 %v2219_v24, %s4286_s16  ;;  %v917_v24 = vrot.slane %v916_v14, 2  ;;  %v2407_v11 = vadd.f32 %v2406_v44, %v2405_v60  ;;  %v2483_v60 = vrot.slane %v2482_v1, 2  ;;  %v6988_v44 = vld [vmem:[#allocation20_spill] sm:$0xff] }
 0x4f2   : > { %712 = vrot.lane.b32.xlu2 %v704_v21, %s4285_s19  ;;  %666 = vrot.lane.b32.xlu1 %v663_v42, %s4286_s16  ;;  %v956_v21 = vsel %vm249_vm2, %v6983_v56, 0.0  ;;  %v6984_v42 = vld [vmem:[#allocation16_spill] sm:$0xff]  ;;  %v1151_v27 = vsel %vm249_vm2, %v6988_v44, 0.0 }
 0x4f3   : > { %v991_v8 = vsel %vm249_vm2, %v6984_v42, 0.0  ;;  %v957_v20 = vrot.slane %v956_v21, 4  ;;  %v918_v19 = vadd.f32 %v917_v24, %v916_v14  ;;  %v1068_v14 = vrot.slane %v1067_v50, 4 }
 0x4f4   : > { %v992_v35 = vrot.slane %v991_v8, 4  ;;  %v2408_v39 = vrot.slane %v2407_v11, 1  ;;  %v2484_v24 = vadd.f32 %v2483_v60, %v2482_v1  ;;  %v2647_v60 = vsel %vm249_vm2, %v5056_v41, 0.0 }
 0x4f5   : > { %v958_v54 = vadd.f32 %v957_v20, %v956_v21  ;;  %v919_v36 = vrot.slane %v918_v19, 1  ;;  %v913_v21 = vadd.f32 %v912_v37, %v911_v17  ;;  %v1069_v42 = vadd.f32 %v1068_v14, %v1067_v50 }
 0x4f6   : > { %v993_v4 = vadd.f32 %v992_v35, %v991_v8  ;;  %v6987_v8 = vld [vmem:[#allocation19_spill] sm:$0xff]  ;;  %v2409_v23 = vadd.f32 %v2408_v39, %v2407_v11  ;;  %v2485_v11 = vrot.slane %v2484_v24, 1 }
 0x4f7   : > { %v959_v40 = vrot.slane %v958_v54, 2  ;;  %v920_v18 = vadd.f32 %v919_v36, %v918_v19  ;;  %v1116_v57 = vsel %vm249_vm2, %v6987_v8, 0.0  ;;  %v1070_v17 = vrot.slane %v1069_v42, 2 }
 0x4f8   : > { %v994_v49 = vrot.slane %v993_v4, 2  ;;  %v1117_v19 = vrot.slane %v1116_v57, 4 }
 0x4f9   : > { %2269 = vrot.lane.b32.xlu0 %v2266_v28, %s4285_s19  ;;  %v6986_v28 = vld [vmem:[#allocation18_spill] sm:$0xff]  ;;  %v960_v25 = vadd.f32 %v959_v40, %v958_v54 }
 0x4fa   : > { %762 = vrot.lane.b32.xlu2 %v759_v5, %s4284_s15  ;;  %760 = vrot.lane.b32.xlu1 %v752_v3, %s4284_s15  ;;  %v1074_v5 = vsel %vm249_vm2, %v6986_v28, 0.0  ;;  %v2530_v3 = vrot.slane %v2529_v16, 4  ;;  %v995_v20 = vadd.f32 %v994_v49, %v993_v4  ;;  %v1071_v4 = vadd.f32 %v1070_v17, %v1069_v42  ;;  %v6990_v49 = vld [vmem:[#allocation22_spill] sm:$0xff] }
 0x4fb   : > { %v1075_v56 = vrot.slane %v1074_v5, 4  ;;  %v961_v50 = vrot.slane %v960_v25, 1 }
 0x4fc   : > { %v2531_v29 = vadd.f32 %v2530_v3, %v2529_v16  ;;  %v1118_v16 = vadd.f32 %v1117_v19, %v1116_v57  ;;  %v6989_v3 = vld [vmem:[#allocation21_spill] sm:$0xff] }
 0x4fd   : > { %v1076_v35 = vadd.f32 %v1075_v56, %v1074_v5  ;;  %v2486_v5 = vadd.f32 %v2485_v11, %v2484_v24  ;;  %v962_v36 = vadd.f32 %v961_v50, %v960_v25  ;;  %v1193_v40 = vsel %vm249_vm2, %v6989_v3, 0.0 }
 0x4fe   : > { %v2532_v1 = vrot.slane %v2531_v29, 2  ;;  %v1200_v56 = vsel %vm249_vm2, %v6990_v49, 0.0  ;;  %v1194_v41 = vrot.slane %v1193_v40, 4 }
 0x4ff   : > { %v1077_v54 = vrot.slane %v1076_v35, 2 }
 0x501   : > { %2347 = vrot.lane.b32.xlu0 %v2339_v34, %s4283_s29  ;;  %v1152_v34 = vrot.slane %v1151_v27, 4  ;;  %v1078_v39 = vadd.f32 %v1077_v54, %v1076_v35 }
 0x502   : > { %810 = vrot.lane.b32.xlu1 %v807_v10, %s4283_s29  ;;  %879 = vrot.lane.b32.xlu2 %v871_v55, %s4290_s25  ;;  %v2598_v10 = vsel %vm249_vm2, %v5042_v62, 0.0  ;;  %v996_v55 = vrot.slane %v995_v20, 1  ;;  %v2533_v62 = vadd.f32 %v2532_v1, %v2531_v29  ;;  %v1201_v29 = vrot.slane %v1200_v56, 4 }
 0x503   : > { %v2599_v15 = vrot.slane %v2598_v10, 4  ;;  %v1153_v28 = vadd.f32 %v1152_v34, %v1151_v27  ;;  %v1079_v24 = vrot.slane %v1078_v39, 1  ;;  %v6992_v34 = vld [vmem:[#allocation24_spill] sm:$0xff] }
 0x504   : > { %v997_v14 = vadd.f32 %v996_v55, %v995_v20  ;;  %v2534_v8 = vrot.slane %v2533_v62, 1  ;;  %v6991_v20 = vld [vmem:[#allocation23_spill] sm:$0xff]  ;;  %v1300_v11 = vsel %vm249_vm2, %v6992_v34, 0.0  ;;  %v1202_v50 = vadd.f32 %v1201_v29, %v1200_v56 }
 0x505   : > { %v2600_v37 = vadd.f32 %v2599_v15, %v2598_v10  ;;  %v1154_v42 = vrot.slane %v1153_v28, 2  ;;  %v1265_v35 = vsel %vm249_vm2, %v6991_v20, 0.0  ;;  %v1080_v1 = vadd.f32 %v1079_v24, %v1078_v39 }
 0x506   : > { %v2535_v10 = vadd.f32 %v2534_v8, %v2533_v62  ;;  %v1195_v15 = vadd.f32 %v1194_v41, %v1193_v40  ;;  %v2724_v55 = vsel %vm249_vm2, %v5082_v31, 0.0 }
 0x507   : > { %v2601_v57 = vrot.slane %v2600_v37, 2  ;;  %v1155_v25 = vadd.f32 %v1154_v42, %v1153_v28  ;;  %v6993_v42 = vld [vmem:[#allocation25_spill] sm:$0xff] }
 0x508   : > { %v1342_v8 = vsel %vm249_vm2, %v6993_v42, 0.0  ;;  %v6997_v42 = vld [vmem:[#allocation29_spill] sm:$0xff] }
 0x509   : > { %2412 = vrot.lane.b32.xlu0 %v2409_v23, %s4290_s25  ;;  %v2648_v23 = vrot.slane %v2647_v60, 4  ;;  %v2602_v17 = vadd.f32 %v2601_v57, %v2600_v37  ;;  %v2725_v37 = vrot.slane %v2724_v55, 4  ;;  %v6994_v57 = vld [vmem:[#allocation26_spill] sm:$0xff] }
 0x50a   : > { %921 = vrot.lane.b32.xlu1 %v913_v21, %s4289_s24  ;;  %923 = vrot.lane.b32.xlu2 %v920_v18, %s4289_s24  ;;  %v1072_v21 = vrot.slane %v1071_v4, 1  ;;  %v1119_v18 = vrot.slane %v1118_v16, 2 }
 0x50b   : > { %v2649_v19 = vadd.f32 %v2648_v23, %v2647_v60  ;;  %v2603_v28 = vrot.slane %v2602_v17, 1  ;;  %v2726_v56 = vadd.f32 %v2725_v37, %v2724_v55  ;;  %v1349_v23 = vsel %vm249_vm2, %v6994_v57, 0.0  ;;  %v5155_v55 = vpop.permute.xlu0 %664  ;;  %v6998_v57 = vld [vmem:[#allocation30_spill] sm:$0xff] }
 0x50c   : > { %v1073_v44 = vadd.f32 %v1072_v21, %v1071_v4  ;;  %v1120_v27 = vadd.f32 %v1119_v18, %v1118_v16  ;;  %v1266_v4 = vrot.slane %v1265_v35, 4  ;;  %v1301_v16 = vrot.slane %v1300_v11, 4 }
 0x50d   : > { %v2650_v62 = vrot.slane %v2649_v19, 2  ;;  %v2604_v40 = vadd.f32 %v2603_v28, %v2602_v17 }
 0x50e   : > { %v1121_v54 = vrot.slane %v1120_v27, 1  ;;  %v1267_v60 = vadd.f32 %v1266_v4, %v1265_v35  ;;  %v1302_v3 = vadd.f32 %v1301_v16, %v1300_v11  ;;  %v6996_v16 = vld [vmem:[#allocation28_spill] sm:$0xff] }
 0x50f   : > { %v2651_v49 = vadd.f32 %v2650_v62, %v2649_v19  ;;  %v1460_v28 = vsel %vm249_vm2, %v6996_v16, 0.0 }
 0x510   : > { %v1122_v39 = vadd.f32 %v1121_v54, %v1120_v27  ;;  %v1268_v24 = vrot.slane %v1267_v60, 2  ;;  %v1303_v41 = vrot.slane %v1302_v3, 2  ;;  %v1343_v27 = vrot.slane %v1342_v8, 4  ;;  %v6995_v54 = vld [vmem:[#allocation27_spill] sm:$0xff] }
 0x511   : > { %2494 = vrot.lane.b32.xlu0 %v2486_v5, %s4288_s23  ;;  %v1156_v5 = vrot.slane %v1155_v25, 1  ;;  %v2652_v29 = vrot.slane %v2651_v49, 1  ;;  %v1391_v4 = vsel %vm249_vm2, %v6995_v54, 0.0 }
 0x512   : > { %965 = vrot.lane.b32.xlu1 %v962_v36, %s4288_s23  ;;  %1005 = vrot.lane.b32.xlu2 %v997_v14, %s4287_s18  ;;  %v1196_v36 = vrot.slane %v1195_v15, 2  ;;  %v1203_v14 = vrot.slane %v1202_v50, 2  ;;  %v1304_v17 = vadd.f32 %v1303_v41, %v1302_v3  ;;  %v1344_v11 = vadd.f32 %v1343_v27, %v1342_v8 }
 0x513   : > { %v1157_v31 = vadd.f32 %v1156_v5, %v1155_v25  ;;  %v1350_v25 = vrot.slane %v1349_v23, 4  ;;  %v2653_v19 = vadd.f32 %v2652_v29, %v2651_v49  ;;  %v1502_v8 = vsel %vm249_vm2, %v6997_v42, 0.0 }
 0x514   : > { %v1197_v21 = vadd.f32 %v1196_v36, %v1195_v15  ;;  %v1204_v18 = vadd.f32 %v1203_v14, %v1202_v50  ;;  %v1305_v37 = vrot.slane %v1304_v17, 1  ;;  %v1345_v36 = vrot.slane %v1344_v11, 2 }
 0x515   : > { %v1503_v41 = vrot.slane %v1502_v8, 4 }
 0x516   : > { %v1198_v20 = vrot.slane %v1197_v21, 1  ;;  %v1205_v35 = vrot.slane %v1204_v18, 1  ;;  %v1346_v49 = vadd.f32 %v1345_v36, %v1344_v11 }
 0x518   : > { %v1199_v15 = vadd.f32 %v1198_v20, %v1197_v21  ;;  %v1206_v50 = vadd.f32 %v1205_v35, %v1204_v18  ;;  %v1504_v35 = vadd.f32 %v1503_v41, %v1502_v8 }
 0x519   : > { %2538 = vrot.lane.b32.xlu0 %v2535_v10, %s4287_s18  ;;  %v1269_v10 = vadd.f32 %v1268_v24, %v1267_v60  ;;  %v1461_v60 = vrot.slane %v1460_v28, 4  ;;  %v715_v24 = vpop.permute.xlu0 %714 }
 0x51a   : > { %1081 = vrot.lane.b32.xlu1 %v1073_v44, %s4286_s16  ;;  %1083 = vrot.lane.b32.xlu2 %v1080_v1, %s4286_s16  ;;  %v2727_v44 = vrot.slane %v2726_v56, 2  ;;  %v1351_v1 = vadd.f32 %v1350_v25, %v1349_v23  ;;  %v1509_v23 = vsel %vm249_vm2, %v6998_v57, 0.0 }
 0x51b   : > { %v1270_v5 = vrot.slane %v1269_v10, 1  ;;  %v1462_v18 = vadd.f32 %v1461_v60, %v1460_v28  ;;  %v1510_v29 = vrot.slane %v1509_v23, 4 }
 0x51c   : > { %v2728_v34 = vadd.f32 %v2727_v44, %v2726_v56  ;;  %v1352_v14 = vrot.slane %v1351_v1, 2  ;;  %v1347_v44 = vrot.slane %v1346_v49, 1 }
 0x51d   : > { %v1271_v3 = vadd.f32 %v1270_v5, %v1269_v10  ;;  %v1463_v20 = vrot.slane %v1462_v18, 2  ;;  %v1511_v10 = vadd.f32 %v1510_v29, %v1509_v23 }
 0x51e   : > { %v2729_v62 = vrot.slane %v2728_v34, 1  ;;  %v1353_v56 = vadd.f32 %v1352_v14, %v1351_v1  ;;  %v6999_v1 = vld [vmem:[#allocation31_spill] sm:$0xff] }
 0x51f   : > { %v1464_v11 = vadd.f32 %v1463_v20, %v1462_v18  ;;  %v1512_v16 = vrot.slane %v1511_v10, 2 }
 0x520   : > { %v1354_v27 = vrot.slane %v1353_v56, 1 }
 0x521   : > { %2612 = vrot.lane.b32.xlu0 %v2604_v40, %s4286_s16  ;;  %v2730_v40 = vadd.f32 %v2729_v62, %v2728_v34  ;;  %v1465_v5 = vrot.slane %v1464_v11, 1  ;;  %v5177_v36 = vpop.permute.xlu0 %808 }
 0x522   : > { %1125 = vrot.lane.b32.xlu1 %v1122_v39, %s4285_s19  ;;  %1165 = vrot.lane.b32.xlu2 %v1157_v31, %s4284_s15  ;;  %v1392_v39 = vrot.slane %v1391_v4, 4  ;;  %v1306_v31 = vadd.f32 %v1305_v37, %v1304_v17  ;;  %v1348_v17 = vadd.f32 %v1347_v44, %v1346_v49  ;;  %v7001_v49 = vld [vmem:[#allocation33_spill] sm:$0xff] }
 0x524   : > { %v1393_v21 = vadd.f32 %v1392_v39, %v1391_v4  ;;  %v1505_v4 = vrot.slane %v1504_v35, 2  ;;  %v1513_v39 = vadd.f32 %v1512_v16, %v1511_v10 }
 0x526   : > { %v1394_v25 = vrot.slane %v1393_v21, 2  ;;  %v1506_v14 = vadd.f32 %v1505_v4, %v1504_v35  ;;  %v1514_v18 = vrot.slane %v1513_v39, 1 }
 0x528   : > { %v1395_v34 = vadd.f32 %v1394_v25, %v1393_v21  ;;  %v1507_v21 = vrot.slane %v1506_v14, 1  ;;  %v1515_v44 = vadd.f32 %v1514_v18, %v1513_v39 }
 0x529   : > { %2656 = vrot.lane.b32.xlu0 %v2653_v19, %s4285_s19  ;;  %v1355_v19 = vadd.f32 %v1354_v27, %v1353_v56  ;;  %v1658_v56 = vsel %vm249_vm2, %v7001_v49, 0.0  ;;  %v882_v41 = vpop.permute.xlu0 %881 }
 0x52a   : > { %1207 = vrot.lane.b32.xlu1 %v1199_v15, %s4283_s29  ;;  %1209 = vrot.lane.b32.xlu2 %v1206_v50, %s4283_s29  ;;  %v1551_v15 = vsel %vm249_vm2, %v6999_v1, 0.0  ;;  %v7000_v50 = vld [vmem:[#allocation32_spill] sm:$0xff]  ;;  %v1396_v28 = vrot.slane %v1395_v34, 1  ;;  %v1659_v23 = vrot.slane %v1658_v56, 4  ;;  %v1508_v29 = vadd.f32 %v1507_v21, %v1506_v14 }
 0x52b   : > { %v1586_v54 = vsel %vm249_vm2, %v7000_v50, 0.0  ;;  %v1552_v62 = vrot.slane %v1551_v15, 4 }
 0x52c   : > { %v1587_v37 = vrot.slane %v1586_v54, 4  ;;  %v1397_v60 = vadd.f32 %v1396_v28, %v1395_v34  ;;  %v1660_v20 = vadd.f32 %v1659_v23, %v1658_v56 }
 0x531   : > { %2738 = vrot.lane.b32.xlu0 %v2730_v40, %s4283_s29  ;;  %v1553_v40 = vadd.f32 %v1552_v62, %v1551_v15  ;;  %v5197_v28 = vpop.permute.xlu0 %963 }
 0x532   : > { %1274 = vrot.lane.b32.xlu1 %v1271_v3, %s4290_s25  ;;  %1314 = vrot.lane.b32.xlu2 %v1306_v31, %s4289_s24  ;;  %v1466_v3 = vadd.f32 %v1465_v5, %v1464_v11  ;;  %v1588_v31 = vadd.f32 %v1587_v37, %v1586_v54 }
 0x533   : > { %v1554_v8 = vrot.slane %v1553_v40, 2 }
 0x534   : > { %v1589_v57 = vrot.slane %v1588_v31, 2 }
 0x535   : > { %v1555_v27 = vadd.f32 %v1554_v8, %v1553_v40 }
 0x536   : > { %v1590_v25 = vadd.f32 %v1589_v57, %v1588_v31 }
 0x537   : > { %v1556_v10 = vrot.slane %v1555_v27, 1 }
 0x539   : > { %v1557_v54 = vadd.f32 %v1556_v10, %v1555_v27 }
 0x53a   : > { %1356 = vrot.lane.b32.xlu1 %v1348_v17, %s4288_s23  ;;  %1358 = vrot.lane.b32.xlu2 %v1355_v19, %s4288_s23  ;;  %v1591_v17 = vrot.slane %v1590_v25, 1  ;;  %v1661_v19 = vrot.slane %v1660_v20, 2 }
 0x53c   : > { %v1592_v4 = vadd.f32 %v1591_v17, %v1590_v25  ;;  %v1662_v16 = vadd.f32 %v1661_v19, %v1660_v20 }
 0x53e   : > { %v1663_v14 = vrot.slane %v1662_v16, 1 }
 0x540   : > { %v1664_v39 = vadd.f32 %v1663_v14, %v1662_v16 }
 0x542   : > { %1400 = vrot.lane.b32.xlu1 %v1397_v60, %s4287_s18  ;;  %1474 = vrot.lane.b32.xlu2 %v1466_v3, %s4286_s16  ;;  %v1008_v60 = vpop.permute.xlu0 %1007 }
 0x544   : > { %v2766_v42 = vpop.permute.xlu2 %2765 }
 0x54a   : > { %1516 = vrot.lane.b32.xlu1 %v1508_v29, %s4285_s19  ;;  %1518 = vrot.lane.b32.xlu2 %v1515_v44, %s4285_s19  ;;  %v5230_v20 = vpop.permute.xlu0 %1123 }
 0x54c   : > { %v713_v35 = vpop.permute.xlu2 %712 }
 0x54d   : > { %v716_v34 = vsel %vm6904_vm4, %v713_v35, %v715_v24  ;;  %v717_v11 = vsel %vm6904_vm4, %v715_v24, %v713_v35  ;;  %vm672_vm4 = vcmp.lt.s32.totalorder %v4893_v12, 15 }
 0x54e   : > { %v726_v1 = vsel %vm724_vm0, %v716_v34, 0.0  ;;  %v727_v15 = vsel %vm6903_vm7, %v717_v11, 0.0  ;;  %vm2767_vm0 = vcmp.lt.s32.totalorder %v4456_v22, 96  ;;  %vm885_vm7 = vmand %vm846_vm14, %vm6907_vm13  ;;  %vm6911_vm13 = vcmp.lt.s32.totalorder %v4893_v12, 13 }
 0x54f   : > { %v729_v50 = vmul.f32 0.25, %v727_v15  ;;  %v728_v5 = vmul.f32 0.25, %v726_v1 }
 0x551   : > { %v732_v62 = vrot.slane %v729_v50, 7 }
 0x552   : > { %1560 = vrot.lane.b32.xlu1 %v1557_v54, %s4284_s15  ;;  %1600 = vrot.lane.b32.xlu2 %v1592_v4, %s4283_s29 }
 0x553   : > { %v733_v37 = vsel %vm455_vm11, %v728_v5, %v732_v62 }
 0x554   : > { %4044 = vst.msk [vmem:[%s4579_s5 + $0x6] ss:$8 sm:$0x3] %vm4582_vm12, %v733_v37  ;;  %v763_v24 = vpop.permute.xlu2 %762 }
 0x55a   : > { %1667 = vrot.lane.b32.xlu1 %v1664_v39, %s4290_s25 }
 0x55c   : > { %v2764_v3 = vpop.permute.xlu1 %2763  ;;  %v880_v40 = vpop.permute.xlu2 %879 }
 0x55d   : > { %v2769_v31 = vsel %vm2767_vm0, %v2766_v42, %v2764_v3  ;;  %v883_v49 = vsel %vm6905_vm9, %v880_v40, %v882_v41  ;;  %v884_v56 = vsel %vm6905_vm9, %v882_v41, %v880_v40  ;;  %v2768_v8 = vsel %vm2767_vm0, %v2764_v3, %v2766_v42  ;;  %vm676_vm0 = vmand %vm401_vm10, %vm672_vm4 }
 0x55e   : > { %v2779_v21 = vrot.slane %v2769_v31, 4  ;;  %v888_v18 = vsel %vm6906_vm3, %v883_v49, 0.0  ;;  %v887_v29 = vsel %vm885_vm7, %v884_v56, 0.0  ;;  %vm6909_vm9 = vcmp.lt.s32.totalorder %v4896_v53, 15 }
 0x55f   : > { %v890_v57 = vmul.f32 0.25, %v888_v18  ;;  %v889_v27 = vmul.f32 0.25, %v887_v29  ;;  %vm7002_vm7 = vcmp.lt.s32.totalorder %v4456_v22, 127 }
 0x560   : > { %v5218_v23 = vsel %vm249_vm2, %v2768_v8, %v2779_v21  ;;  %vm7003_vm3 = vmmov %vm7002_vm7 }
 0x561   : > { %v2782_v44 = vmul.f32 %v5218_v23, %v4470_v33  ;;  %v893_v25 = vrot.slane %v890_v57, 7  ;;  %v2824_v1 = vmul.f32 %v5218_v23, %v4485_v43  ;;  %v1168_v57 = vpop.permute.xlu0 %1167 }
 0x563   : > { %2784 = vst [vmem:[#allocation1] ss:$2 sm:$0xff] %v2782_v44  ;;  %v894_v35 = vsel %vm455_vm11, %v889_v27, %v893_v25 }
 0x564   : > { %v667_v42 = vpop.permute.xlu1 %666  ;;  %v5228_v41 = vpop.permute.xlu2 %923  ;;  %4047 = vst.msk [vmem:[%s4579_s5 + $0x11] ss:$8 sm:$0x3] %vm4582_vm12, %v894_v35 }
 0x565   : > { %v668_v10 = vsel %vm7002_vm7, %v5155_v55, %v667_v42  ;;  %v669_v17 = vsel %vm7003_vm3, %v667_v42, %v5155_v55  ;;  %vm5251_vm3 = vmand %vm401_vm10, %vm6911_vm13 }
 0x566   : > { %v678_v19 = vsel %vm676_vm0, %v668_v10, 0.0  ;;  %v679_v34 = vsel %vm6909_vm9, %v669_v17, 0.0  ;;  %vm6915_vm0 = vcmp.lt.s32.totalorder %v4896_v53, 13  ;;  %vm5263_vm7 = vmand %vm846_vm14, %vm6913_vm8  ;;  %vm7022_vm8 = vcmp.ge.s32.totalorder %v4896_v53, 3 }
 0x567   : > { %v681_v11 = vmul.f32 0.25, %v679_v34  ;;  %v680_v15 = vmul.f32 0.25, %v678_v19  ;;  %vm7009_vm9 = vmmov %vm7008_vm5 }
 0x569   : > { %v684_v50 = vrot.slane %v681_v11, 7 }
 0x56a   : > { %v5255_v54 = vld.sshfl [vmem:[#allocation1] sm:$0xff pattern:$0x75316420]  ;;  %v2786_v4 = vld.sshfl [vmem:[#allocation1 + $0x8] sm:$0xff pattern:$0x75316420] }
 0x56b   : > { %v685_v16 = vsel %vm455_vm11, %v680_v15, %v684_v50  ;;  %v2796_v62 = vsel %vm249_vm2, %v2786_v4, 0.0  ;;  %2826 = vst [vmem:[#allocation1] ss:$2 sm:$0xff] %v2824_v1  ;;  %v2866_v1 = vmul.f32 %v5218_v23, %v4499_v52 }
 0x56c   : > { %4043 = vst.msk [vmem:[%s4579_s5 + $0x5] ss:$8 sm:$0x3] %vm4582_vm12, %v685_v16  ;;  %v761_v37 = vpop.permute.xlu1 %760  ;;  %v1006_v14 = vpop.permute.xlu2 %1005  ;;  %v2797_v39 = vrot.slane %v2796_v62, 4 }
 0x56d   : > { %v764_v3 = vsel %vm7008_vm5, %v761_v37, %v763_v24  ;;  %v765_v40 = vsel %vm7009_vm9, %v763_v24, %v761_v37  ;;  %v1009_v31 = vsel %vm6912_vm6, %v1006_v14, %v1008_v60  ;;  %v1010_v49 = vsel %vm6912_vm6, %v1008_v60, %v1006_v14 }
 0x56e   : > { %v774_v56 = vsel %vm5251_vm3, %v764_v3, 0.0  ;;  %v775_v21 = vsel %vm6915_vm0, %v765_v40, 0.0  ;;  %v1013_v18 = vsel %vm5263_vm7, %v1010_v49, 0.0  ;;  %v1014_v8 = vsel %vm6910_vm1, %v1009_v31, 0.0  ;;  %v5323_v3 = vpop.permute.xlu0 %1272 }
 0x56f   : > { %v777_v24 = vmul.f32 0.25, %v775_v21  ;;  %v1016_v29 = vmul.f32 0.25, %v1014_v8  ;;  %vm816_vm9 = vcmp.lt.s32.totalorder %v4893_v12, 12  ;;  %v2798_v44 = vadd.f32 %v2797_v39, %v2796_v62 }
 0x570   : > { %v776_v60 = vmul.f32 0.25, %v774_v56  ;;  %v1015_v25 = vmul.f32 0.25, %v1013_v18  ;;  %vm817_vm5 = vcmp.lt.s32.totalorder %v4896_v53, 12  ;;  %vm5295_vm3 = vmand %vm401_vm10, %vm816_vm9  ;;  %vm7012_vm10 = vcmp.lt.s32.totalorder %v4456_v22, 124 }
 0x571   : > { %v780_v27 = vrot.slane %v777_v24, 7  ;;  %v1019_v42 = vrot.slane %v1016_v29, 7  ;;  %v2799_v35 = vrot.slane %v2798_v44, 2  ;;  %vm7013_vm7 = vmmov %vm7012_vm10  ;;  %v2908_v21 = vmul.f32 %v5218_v23, %v4510_v58 }
 0x572   : > { %v5299_v34 = vld.sshfl [vmem:[#allocation1] sm:$0xff pattern:$0x75316420]  ;;  %v5301_v11 = vld.sshfl [vmem:[#allocation1 + $0x8] sm:$0xff pattern:$0x75316420] }
 0x573   : > { %v781_v10 = vsel %vm455_vm11, %v776_v60, %v780_v27  ;;  %v1020_v17 = vsel %vm455_vm11, %v1015_v25, %v1019_v42  ;;  %v2800_v55 = vadd.f32 %v2799_v35, %v2798_v44  ;;  %2868 = vst [vmem:[#allocation1] ss:$2 sm:$0xff] %v2866_v1 }
 0x574   : > { %4045 = vst.msk [vmem:[%s4579_s5 + $0x7] ss:$8 sm:$0x3] %vm4582_vm12, %v781_v10  ;;  %v811_v15 = vpop.permute.xlu1 %810  ;;  %v5308_v50 = vpop.permute.xlu2 %1083 }
 0x575   : > { %4050 = vst.msk [vmem:[%s4579_s5 + $0x14] ss:$8 sm:$0x3] %vm4582_vm12, %v1020_v17  ;;  %v812_v4 = vsel %vm7012_vm10, %v5177_v36, %v811_v15  ;;  %v813_v16 = vsel %vm7013_vm7, %v811_v15, %v5177_v36  ;;  %v2801_v37 = vrot.slane %v2800_v55, 1  ;;  %vm5330_vm10 = vmand %vm846_vm14, %vm492_vm15  ;;  %vm7018_vm7 = vcmp.lt.s32.totalorder %v4456_v22, 3 }
 0x576   : > { %v822_v5 = vsel %vm5295_vm3, %v812_v4, 0.0  ;;  %v823_v62 = vsel %vm817_vm5, %v813_v16, 0.0  ;;  %vm5339_vm3 = vmand %vm846_vm14, %vm6911_vm13  ;;  %vm7020_vm13 = vcmp.lt.s32.totalorder %v4456_v22, 125 }
 0x577   : > { %v825_v14 = vmul.f32 0.25, %v823_v62  ;;  %v2802_v39 = vadd.f32 %v2801_v37, %v2800_v55  ;;  %v824_v40 = vmul.f32 0.25, %v822_v5  ;;  %vm7019_vm1 = vmmov %vm7018_vm7  ;;  %v1317_v5 = vpop.permute.xlu0 %1316 }
 0x578   : > { %vm7021_vm6 = vmmov %vm7020_vm13 }
 0x579   : > { %v828_v31 = vrot.slane %v825_v14, 7  ;;  %2805 = vrot.lane.b32.xlu0 %v2802_v39, %s4290_s25 }
 0x57a   : > { %v2869_v27 = vld.sshfl [vmem:[#allocation1] sm:$0xff pattern:$0x75316420]  ;;  %v5358_v25 = vld.sshfl [vmem:[#allocation1 + $0x8] sm:$0xff pattern:$0x75316420] }
 0x57b   : > { %v829_v49 = vsel %vm455_vm11, %v824_v40, %v828_v31  ;;  %2910 = vst [vmem:[#allocation1] ss:$2 sm:$0xff] %v2908_v21  ;;  %v2873_v1 = vsel %vm249_vm2, %v2869_v27, 0.0  ;;  %v2950_v21 = vmul.f32 %v5218_v23, %v4423_v0 }
 0x57c   : > { %4046 = vst.msk [vmem:[%s4579_s5 + $0x10] ss:$8 sm:$0x3] %vm4582_vm12, %v829_v49  ;;  %v922_v18 = vpop.permute.xlu1 %921  ;;  %v1166_v8 = vpop.permute.xlu2 %1165  ;;  %v2874_v16 = vrot.slane %v2873_v1, 4 }
 0x57d   : > { %v925_v24 = vsel %vm7018_vm7, %v922_v18, %v5228_v41  ;;  %v926_v29 = vsel %vm7019_vm1, %v5228_v41, %v922_v18  ;;  %v1169_v44 = vsel %vm7020_vm13, %v1166_v8, %v1168_v57  ;;  %v1170_v60 = vsel %vm7021_vm6, %v1168_v57, %v1166_v8 }
 0x57e   : > { %v929_v42 = vsel %vm5330_vm10, %v926_v29, 0.0  ;;  %v930_v35 = vsel %vm7022_vm8, %v925_v24, 0.0  ;;  %v1173_v10 = vsel %vm5339_vm3, %v1169_v44, 0.0  ;;  %v1174_v41 = vsel %vm6915_vm0, %v1170_v60, 0.0  ;;  %vm5406_vm3 = vmand %vm846_vm14, %vm672_vm4 }
 0x57f   : > { %v932_v17 = vmul.f32 0.25, %v930_v35  ;;  %v1176_v57 = vmul.f32 0.25, %v1174_v41  ;;  %v931_v19 = vmul.f32 0.25, %v929_v42  ;;  %v1175_v55 = vmul.f32 0.25, %v1173_v10 }
 0x580   : > { %vm7023_vm6 = vcmp.ge.s32.totalorder %v4893_v12, 2  ;;  %v2875_v39 = vadd.f32 %v2874_v16, %v2873_v1  ;;  %vm7026_vm13 = vcmp.lt.s32.totalorder %v4456_v22, 2  ;;  %vm7028_vm10 = vcmp.ge.s32.totalorder %v4896_v53, 2 }
 0x581   : > { %v935_v15 = vrot.slane %v932_v17, 7  ;;  %v1179_v4 = vrot.slane %v1176_v57, 7  ;;  %vm5375_vm8 = vmand %vm846_vm14, %vm7023_vm6  ;;  %vm7031_vm7 = vcmp.ge.s32.totalorder %v4456_v22, 32 }
 0x582   : > { %vm7027_vm1 = vmmov %vm7026_vm13  ;;  %v2876_v56 = vrot.slane %v2875_v39, 2  ;;  %v5399_v24 = vld.sshfl [vmem:[#allocation1] sm:$0xff pattern:$0x75316420] }
 0x583   : > { %v936_v62 = vsel %vm455_vm11, %v931_v19, %v935_v15  ;;  %v1180_v37 = vsel %vm455_vm11, %v1175_v55, %v1179_v4  ;;  %v2912_v60 = vld.sshfl [vmem:[#allocation1 + $0x8] sm:$0xff pattern:$0x75316420]  ;;  %vm5415_vm6 = vmand %vm7031_vm7, %vm492_vm15  ;;  %v5422_v4 = vpop.permute.xlu0 %1398  ;;  %vm7038_vm7 = vcmp.lt.s32.totalorder %v4896_v53, 15 }
 0x584   : > { %4048 = vst.msk [vmem:[%s4579_s5 + $0x12] ss:$8 sm:$0x3] %vm4582_vm12, %v936_v62  ;;  %v966_v40 = vpop.permute.xlu1 %965  ;;  %v5382_v31 = vpop.permute.xlu2 %1209  ;;  %v2877_v44 = vadd.f32 %v2876_v56, %v2875_v39  ;;  %v2922_v27 = vsel %vm249_vm2, %v2912_v60, 0.0 }
 0x585   : > { %4054 = vst.msk [vmem:[%s4579_s5 + $0x20] ss:$8 sm:$0x3] %vm4582_vm12, %v1180_v37  ;;  %v967_v36 = vsel %vm7026_vm13, %v5197_v28, %v966_v40  ;;  %v968_v49 = vsel %vm7027_vm1, %v966_v40, %v5197_v28  ;;  %v2923_v10 = vrot.slane %v2922_v27, 4  ;;  %vm7036_vm1 = vcmp.lt.s32.totalorder %v4456_v22, 3 }
 0x586   : > { %v971_v18 = vsel %vm5375_vm8, %v968_v49, 0.0  ;;  %v972_v8 = vsel %vm7028_vm10, %v967_v36, 0.0  ;;  %2952 = vst [vmem:[#allocation1] ss:$2 sm:$0xff] %v2950_v21  ;;  %v2878_v35 = vrot.slane %v2877_v44, 1  ;;  %vm7034_vm8 = vcmp.lt.s32.totalorder %v4456_v22, 127  ;;  %vm7037_vm10 = vmmov %vm7036_vm1 }
 0x587   : > { %v974_v29 = vmul.f32 0.25, %v972_v8  ;;  %v973_v28 = vmul.f32 0.25, %v971_v18  ;;  %v2924_v55 = vadd.f32 %v2923_v10, %v2922_v27  ;;  %vm7035_vm13 = vmmov %vm7034_vm8  ;;  %v2984_v21 = vmul.f32 %v5218_v23, %v4531_v9 }
 0x588   : > { %v2879_v57 = vadd.f32 %v2878_v35, %v2877_v44 }
 0x589   : > { %v977_v42 = vrot.slane %v974_v29, 7 }
 0x58a   : > { %2887 = vrot.lane.b32.xlu0 %v2879_v57, %s4288_s23 }
 0x58b   : > { %v978_v17 = vsel %vm455_vm11, %v973_v28, %v977_v42 }
 0x58c   : > { %4049 = vst.msk [vmem:[%s4579_s5 + $0x13] ss:$8 sm:$0x3] %vm4582_vm12, %v978_v17  ;;  %v1082_v1 = vpop.permute.xlu1 %1081  ;;  %v1315_v15 = vpop.permute.xlu2 %1314 }
 0x58d   : > { %v1085_v16 = vsel %vm7034_vm8, %v1082_v1, %v5308_v50  ;;  %v1086_v62 = vsel %vm7035_vm13, %v5308_v50, %v1082_v1  ;;  %v1318_v37 = vsel %vm7036_vm1, %v1315_v15, %v1317_v5  ;;  %v1319_v14 = vsel %vm7037_vm10, %v1317_v5, %v1315_v15  ;;  %v2953_v8 = vld.sshfl [vmem:[#allocation1] sm:$0xff pattern:$0x75316420]  ;;  %v2954_v27 = vld.sshfl [vmem:[#allocation1 + $0x8] sm:$0xff pattern:$0x75316420] }
 0x58e   : > { %v1089_v39 = vsel %vm5406_vm3, %v1085_v16, 0.0  ;;  %v1090_v40 = vsel %vm7038_vm7, %v1086_v62, 0.0  ;;  %v1322_v36 = vsel %vm5415_vm6, %v1319_v14, 0.0  ;;  %vm7039_vm8 = vcmp.ge.s32.totalorder %v4896_v53, 3  ;;  %2986 = vst [vmem:[#allocation1] ss:$2 sm:$0xff] %v2984_v21  ;;  %vm5486_vm7 = vmand %vm846_vm14, %vm816_vm9 }
 0x58f   : > { %v1323_v49 = vsel %vm7039_vm8, %v1318_v37, 0.0  ;;  %v1092_v56 = vmul.f32 0.25, %v1090_v40  ;;  %v1091_v18 = vmul.f32 0.25, %v1089_v39  ;;  %v2925_v5 = vrot.slane %v2924_v55, 2  ;;  %v1477_v39 = vpop.permute.xlu0 %1476 }
 0x590   : > { %v1325_v50 = vmul.f32 0.25, %v1323_v49  ;;  %v1324_v44 = vmul.f32 0.25, %v1322_v36  ;;  %v2964_v42 = vsel %vm249_vm2, %v2954_v27, 0.0  ;;  %vm7040_vm3 = vcmp.lt.s32.totalorder %v4893_v12, 14 }
 0x591   : > { %v1095_v29 = vrot.slane %v1092_v56, 7  ;;  %v2926_v28 = vadd.f32 %v2925_v5, %v2924_v55  ;;  %v2965_v41 = vrot.slane %v2964_v42, 4  ;;  %vm5455_vm6 = vmand %vm846_vm14, %vm7040_vm3  ;;  %vm7043_vm13 = vcmp.lt.s32.totalorder %v4456_v22, 126 }
 0x592   : > { %v1328_v60 = vrot.slane %v1325_v50, 7  ;;  %vm7044_vm1 = vmmov %vm7043_vm13  ;;  %v2957_v16 = vsel %vm249_vm2, %v2953_v8, 0.0  ;;  %vm7045_vm10 = vcmp.lt.s32.totalorder %v4896_v53, 14  ;;  %v3026_v49 = vmul.f32 %v5218_v23, %v4545_v26 }
 0x593   : > { %v1096_v35 = vsel %vm455_vm11, %v1091_v18, %v1095_v29  ;;  %v2927_v17 = vrot.slane %v2926_v28, 1  ;;  %v2966_v62 = vadd.f32 %v2965_v41, %v2964_v42  ;;  %v2958_v56 = vrot.slane %v2957_v16, 4 }
 0x594   : > { %v1329_v10 = vsel %vm455_vm11, %v1324_v44, %v1328_v60  ;;  %4052 = vst.msk [vmem:[%s4579_s5 + $0x16] ss:$8 sm:$0x3] %vm4582_vm12, %v1096_v35  ;;  %v1126_v19 = vpop.permute.xlu1 %1125  ;;  %v5459_v1 = vpop.permute.xlu2 %1358  ;;  %vm7048_vm8 = vcmp.ge.s32.totalorder %v4456_v22, 32  ;;  %vm7051_vm14 = vcmp.lt.s32.totalorder %v4456_v22, 124 }
 0x595   : > { %4057 = vst.msk [vmem:[%s4579_s5 + $0x23] ss:$8 sm:$0x3] %vm4582_vm12, %v1329_v10  ;;  %v1127_v15 = vsel %vm7043_vm13, %v5230_v20, %v1126_v19  ;;  %v1128_v55 = vsel %vm7044_vm1, %v1126_v19, %v5230_v20  ;;  %v2928_v37 = vadd.f32 %v2927_v17, %v2926_v28  ;;  %v2967_v20 = vrot.slane %v2966_v62, 2  ;;  %vm5494_vm3 = vmand %vm7048_vm8, %vm672_vm4 }
 0x596   : > { %v1132_v14 = vsel %vm7045_vm10, %v1128_v55, 0.0  ;;  %v1131_v40 = vsel %vm5455_vm6, %v1127_v15, 0.0  ;;  %v5478_v50 = vld.sshfl [vmem:[#allocation1] sm:$0xff pattern:$0x75316420]  ;;  %v2959_v28 = vadd.f32 %v2958_v56, %v2957_v16  ;;  %vm7052_vm6 = vmmov %vm7051_vm14  ;;  %vm7053_vm13 = vcmp.lt.s32.totalorder %v4456_v22, 127 }
 0x597   : > { %v1134_v36 = vmul.f32 0.25, %v1132_v14  ;;  %2931 = vrot.lane.b32.xlu0 %v2928_v37, %s4287_s18  ;;  %v5480_v21 = vld.sshfl [vmem:[#allocation1 + $0x8] sm:$0xff pattern:$0x75316420]  ;;  %v1133_v18 = vmul.f32 0.25, %v1131_v40  ;;  %v2968_v42 = vadd.f32 %v2967_v20, %v2966_v62  ;;  %vm7054_vm1 = vmmov %vm7053_vm13  ;;  %vm7055_vm10 = vcmp.lt.s32.totalorder %v4896_v53, 15  ;;  %v5520_v40 = vpop.permute.xlu0 %1558 }
 0x598   : > { %3028 = vst [vmem:[#allocation1] ss:$2 sm:$0xff] %v3026_v49  ;;  %v2960_v37 = vrot.slane %v2959_v28, 2 }
 0x599   : > { %v1137_v5 = vrot.slane %v1134_v36, 7  ;;  %v2969_v14 = vrot.slane %v2968_v42, 1 }
 0x59b   : > { %v1138_v44 = vsel %vm455_vm11, %v1133_v18, %v1137_v5 }
 0x59c   : > { %v1208_v60 = vpop.permute.xlu1 %1207  ;;  %v1475_v27 = vpop.permute.xlu2 %1474  ;;  %4053 = vst.msk [vmem:[%s4579_s5 + $0x17] ss:$8 sm:$0x3] %vm4582_vm12, %v1138_v44 }
 0x59d   : > { %v1211_v35 = vsel %vm7051_vm14, %v1208_v60, %v5382_v31  ;;  %v1212_v10 = vsel %vm7052_vm6, %v5382_v31, %v1208_v60  ;;  %v1478_v41 = vsel %vm7053_vm13, %v1475_v27, %v1477_v39  ;;  %v1479_v17 = vsel %vm7054_vm1, %v1477_v39, %v1475_v27 }
 0x59e   : > { %v1215_v57 = vsel %vm5486_vm7, %v1211_v35, 0.0  ;;  %v1216_v19 = vsel %vm817_vm5, %v1212_v10, 0.0  ;;  %v1482_v15 = vsel %vm5494_vm3, %v1478_v41, 0.0  ;;  %v1483_v55 = vsel %vm7055_vm10, %v1479_v17, 0.0 }
 0x59f   : > { %v1218_v16 = vmul.f32 0.25, %v1216_v19  ;;  %v1485_v31 = vmul.f32 0.25, %v1483_v55  ;;  %v1217_v62 = vmul.f32 0.25, %v1215_v57  ;;  %v3068_v39 = vmul.f32 %v5218_v23, %v4562_v45  ;;  %v3029_v20 = vld.sshfl [vmem:[#allocation1] sm:$0xff pattern:$0x75316420] }
 0x5a0   : > { %v1484_v49 = vmul.f32 0.25, %v1482_v15  ;;  %v5524_v18 = vld.sshfl [vmem:[#allocation1 + $0x8] sm:$0xff pattern:$0x75316420]  ;;  %v3033_v5 = vsel %vm249_vm2, %v3029_v20, 0.0  ;;  %vm7056_vm7 = vcmp.ge.s32.totalorder %v4893_v12, 4  ;;  %v2961_v10 = vadd.f32 %v2960_v37, %v2959_v28 }
 0x5a1   : > { %v1221_v36 = vrot.slane %v1218_v16, 7  ;;  %v1488_v56 = vrot.slane %v1485_v31, 7  ;;  %vm5533_vm3 = vmand %vm7048_vm8, %vm7056_vm7  ;;  %v3034_v60 = vrot.slane %v3033_v5, 4  ;;  %3070 = vst [vmem:[#allocation1] ss:$2 sm:$0xff] %v3068_v39  ;;  %vm7059_vm14 = vcmp.lt.s32.totalorder %v4456_v22, 4 }
 0x5a2   : > { %vm7060_vm6 = vmmov %vm7059_vm14  ;;  %v2970_v19 = vadd.f32 %v2969_v14, %v2968_v42  ;;  %vm7061_vm13 = vcmp.ge.s32.totalorder %v4896_v53, 4  ;;  %vm2773_vm1 = vcmp.lt.s32.totalorder %v4890_v30, 224  ;;  %v3110_v31 = vmul.f32 %v5218_v23, %v4588_v7 }
 0x5a3   : > { %v1222_v8 = vsel %vm455_vm11, %v1217_v62, %v1221_v36  ;;  %v1489_v29 = vsel %vm455_vm11, %v1484_v49, %v1488_v56  ;;  %v3035_v57 = vadd.f32 %v3034_v60, %v3033_v5  ;;  %v2962_v62 = vrot.slane %v2961_v10, 1  ;;  %v1603_v49 = vpop.permute.xlu0 %1602  ;;  %vm7063_vm7 = vmmov %vm7048_vm8 }
 0x5a4   : > { %4055 = vst.msk [vmem:[%s4579_s5 + $0x21] ss:$8 sm:$0x3] %vm4582_vm12, %v1222_v8  ;;  %v1275_v27 = vpop.permute.xlu1 %1274  ;;  %v5540_v35 = vpop.permute.xlu2 %1518  ;;  %v2972_v42 = vsel %vm2773_vm1, %v2970_v19, 0.0  ;;  %vm7062_vm10 = vcmp.ge.s32.totalorder %v4893_v12, 2  ;;  %v7066_v8 = vld [vmem:[#allocation34_spill] sm:$0xff] }
 0x5a5   : > { %4061 = vst.msk [vmem:[%s4579_s5 + $0x27] ss:$8 sm:$0x3] %vm4582_vm12, %v1489_v29  ;;  %v1276_v41 = vsel %vm7059_vm14, %v5323_v3, %v1275_v27  ;;  %v1277_v17 = vsel %vm7060_vm6, %v1275_v27, %v5323_v3  ;;  %v3036_v16 = vrot.slane %v3035_v57, 2  ;;  %vm5567_vm8 = vmand %vm7063_vm7, %vm7062_vm10  ;;  %v1693_v29 = vsel %vm249_vm2, %v7066_v8, 0.0 }
 0x5a6   : > { %v1280_v15 = vsel %vm5533_vm3, %v1277_v17, 0.0  ;;  %v1281_v55 = vsel %vm7061_vm13, %v1276_v41, 0.0  ;;  %vm7067_vm3 = vmmov %vm7063_vm7  ;;  %v7070_v17 = vld [vmem:[#allocation35_spill] sm:$0xff]  ;;  %v2974_v19 = vmul.f32 0.25, %v2972_v42  ;;  %vm7071_vm6 = vcmp.lt.s32.totalorder %v4456_v22, 2 }
 0x5a7   : > { %v1283_v28 = vmul.f32 0.25, %v1281_v55  ;;  %v1282_v37 = vmul.f32 0.25, %v1280_v15  ;;  %v3037_v3 = vadd.f32 %v3036_v16, %v3035_v57  ;;  %vm5581_vm14 = vmand %vm7067_vm3, %vm816_vm9  ;;  %v1735_v57 = vsel %vm249_vm2, %v7070_v17, 0.0 }
 0x5a8   : > { %v5560_v14 = vld.sshfl [vmem:[#allocation1] sm:$0xff pattern:$0x75316420]  ;;  %v3072_v36 = vld.sshfl [vmem:[#allocation1 + $0x8] sm:$0xff pattern:$0x75316420]  ;;  %vm7072_vm13 = vmmov %vm7071_vm6 }
 0x5a9   : > { %v1286_v39 = vrot.slane %v1283_v28, 7  ;;  %v3038_v20 = vrot.slane %v3037_v3, 1  ;;  %v3082_v5 = vsel %vm249_vm2, %v3072_v36, 0.0  ;;  %3112 = vst [vmem:[#allocation1] ss:$2 sm:$0xff] %v3110_v31  ;;  %vm7073_vm10 = vcmp.lt.s32.totalorder %v4456_v22, 124 }
 0x5aa   : > { %v3083_v41 = vrot.slane %v3082_v5, 4  ;;  %vm7074_vm7 = vcmp.ge.s32.totalorder %v4896_v53, 2  ;;  %vm7075_vm3 = vmmov %vm7073_vm10  ;;  %v1736_v8 = vrot.slane %v1735_v57, 4 }
 0x5ab   : > { %v1287_v56 = vsel %vm455_vm11, %v1282_v37, %v1286_v39  ;;  %v3039_v15 = vadd.f32 %v3038_v20, %v3037_v3  ;;  %v2963_v3 = vadd.f32 %v2962_v62, %v2961_v10 }
 0x5ac   : > { %4056 = vst.msk [vmem:[%s4579_s5 + $0x22] ss:$8 sm:$0x3] %vm4582_vm12, %v1287_v56  ;;  %v1357_v44 = vpop.permute.xlu1 %1356  ;;  %v1601_v27 = vpop.permute.xlu2 %1600  ;;  %v1694_v56 = vrot.slane %v1693_v29, 4  ;;  %v3084_v23 = vadd.f32 %v3083_v41, %v3082_v5 }
 0x5ad   : > { %v1360_v55 = vsel %vm7071_vm6, %v1357_v44, %v5459_v1  ;;  %v1361_v28 = vsel %vm7072_vm13, %v5459_v1, %v1357_v44  ;;  %v1604_v16 = vsel %vm7073_vm10, %v1601_v27, %v1603_v49  ;;  %v1605_v39 = vsel %vm7075_vm3, %v1603_v49, %v1601_v27  ;;  %3047 = vrot.lane.b32.xlu0 %v3039_v15, %s4285_s19 }
 0x5ae   : > { %v1364_v31 = vsel %vm5567_vm8, %v1361_v28, 0.0  ;;  %v1365_v37 = vsel %vm7074_vm7, %v1360_v55, 0.0  ;;  %v1608_v36 = vsel %vm5581_vm14, %v1604_v16, 0.0  ;;  %v1609_v1 = vsel %vm817_vm5, %v1605_v39, 0.0  ;;  %v7076_v28 = vld [vmem:[#allocation36_spill] sm:$0xff] }
 0x5af   : > { %v1367_v42 = vmul.f32 0.25, %v1365_v37  ;;  %v1611_v20 = vmul.f32 0.25, %v1609_v1  ;;  %v2977_v44 = vrot.slane %v2974_v19, 7  ;;  %v1366_v17 = vmul.f32 0.25, %v1364_v31  ;;  %v7083_v1 = vld [vmem:[#allocation37_spill] sm:$0xff] }
 0x5b0   : > { %v1742_v10 = vsel %vm249_vm2, %v7076_v28, 0.0  ;;  %v1610_v62 = vmul.f32 0.25, %v1608_v36  ;;  %v3085_v27 = vrot.slane %v3084_v23, 2  ;;  %v2973_v60 = vmul.f32 0.25, %v2963_v3 }
 0x5b1   : > { %v1370_v55 = vrot.slane %v1367_v42, 7  ;;  %v1614_v49 = vrot.slane %v1611_v20, 7  ;;  %v5609_v16 = vld.sshfl [vmem:[#allocation1] sm:$0xff pattern:$0x75316420]  ;;  %vm7077_vm8 = vcmp.ge.s32.totalorder %v4893_v12, 1  ;;  %v1695_v41 = vadd.f32 %v1694_v56, %v1693_v29 }
 0x5b2   : > { %v5611_v37 = vld.sshfl [vmem:[#allocation1 + $0x8] sm:$0xff pattern:$0x75316420]  ;;  %vm7078_vm14 = vcmp.ge.s32.totalorder %v4456_v22, 32  ;;  %v3086_v31 = vadd.f32 %v3085_v27, %v3084_v23  ;;  %v1737_v3 = vadd.f32 %v1736_v8, %v1735_v57  ;;  %v2978_v42 = vsel %vm455_vm11, %v2973_v60, %v2977_v44 }
 0x5b3   : > { %v1371_v15 = vsel %vm455_vm11, %v1366_v17, %v1370_v55  ;;  %vm5617_vm6 = vmand %vm7078_vm14, %vm7077_vm8  ;;  %v1615_v19 = vsel %vm455_vm11, %v1610_v62, %v1614_v49  ;;  %vm7081_vm13 = vcmp.lt.s32.totalorder %v4456_v22, 1  ;;  %v1784_v56 = vsel %vm249_vm2, %v7083_v1, 0.0  ;;  %3151 = vst [vmem:[#allocation1] ss:$2 sm:$0xff] %v6977_v47 }
 0x5b4   : > { %4058 = vst.msk [vmem:[%s4579_s5 + $0x24] ss:$8 sm:$0x3] %vm4582_vm12, %v1371_v15  ;;  %v1401_v39 = vpop.permute.xlu1 %1400  ;;  %vm7082_vm10 = vmmov %vm7081_vm13  ;;  %v3087_v20 = vrot.slane %v3086_v31, 1  ;;  %vm7084_vm7 = vcmp.ge.s32.totalorder %v4896_v53, 1  ;;  %v1696_v44 = vrot.slane %v1695_v41, 2 }
 0x5b5   : > { %4064 = vst.msk [vmem:[%s4579_s5 + $0x32] ss:$8 sm:$0x3] %vm4582_vm12, %v1615_v19  ;;  %v1402_v36 = vsel %vm7081_vm13, %v5422_v4, %v1401_v39  ;;  %v1403_v29 = vsel %vm7082_vm10, %v1401_v39, %v5422_v4  ;;  %v1743_v17 = vrot.slane %v1742_v10, 4  ;;  %v1738_v55 = vrot.slane %v1737_v3, 2  ;;  %vm7086_vm8 = vmmov %vm7078_vm14  ;;  %v7089_v19 = vld [vmem:[#allocation38_spill] sm:$0xff] }
 0x5b6   : > { %v1406_v57 = vsel %vm5617_vm6, %v1403_v29, 0.0  ;;  %v1407_v23 = vsel %vm7084_vm7, %v1402_v36, 0.0  ;;  %4096 = vst.msk [vmem:[%s4579_s5 + $0x72] ss:$8 sm:$0x3] %vm4582_vm12, %v2978_v42  ;;  %v3088_v4 = vadd.f32 %v3087_v20, %v3086_v31  ;;  %v1785_v28 = vrot.slane %v1784_v56, 4 }
 0x5b7   : > { %v1409_v8 = vmul.f32 0.25, %v1407_v23  ;;  %v1408_v62 = vmul.f32 0.25, %v1406_v57  ;;  %v1697_v60 = vadd.f32 %v1696_v44, %v1695_v41  ;;  %vm7085_vm3 = vcmp.lt.s32.totalorder %v4893_v12, 14  ;;  %v7090_v29 = vld [vmem:[#allocation39_spill] sm:$0xff] }
 0x5b8   : > { %3091 = vrot.lane.b32.xlu0 %v3088_v4, %s4284_s15  ;;  %vm5651_vm14 = vmand %vm7086_vm8, %vm7085_vm3  ;;  %v1744_v5 = vadd.f32 %v1743_v17, %v1742_v10  ;;  %v1853_v31 = vsel %vm249_vm2, %v7089_v19, 0.0  ;;  %v1739_v39 = vadd.f32 %v1738_v55, %v1737_v3  ;;  %v1786_v36 = vadd.f32 %v1785_v28, %v1784_v56 }
 0x5b9   : > { %v1412_v49 = vrot.slane %v1409_v8, 7  ;;  %v1895_v41 = vsel %vm249_vm2, %v7090_v29, 0.0  ;;  %vm7091_vm6 = vcmp.lt.s32.totalorder %v4456_v22, 126  ;;  %vm7093_vm10 = vcmp.lt.s32.totalorder %v4896_v53, 14  ;;  %vm7095_vm3 = vmmov %vm7086_vm8 }
 0x5ba   : > { %v3152_v1 = vld.sshfl [vmem:[#allocation1] sm:$0xff pattern:$0x75316420]  ;;  %v3153_v20 = vld.sshfl [vmem:[#allocation1 + $0x8] sm:$0xff pattern:$0x75316420]  ;;  %vm7092_vm13 = vmmov %vm7091_vm6 }
 0x5bb   : > { %v1413_v27 = vsel %vm455_vm11, %v1408_v62, %v1412_v49  ;;  %3156 = vrot.lane.b32.xlu1 %v3152_v1, %s4297_s20  ;;  %3158 = vrot.lane.b32.xlu2 %v3153_v20, %s4297_s20  ;;  %v1854_v23 = vrot.slane %v1853_v31, 4  ;;  %v1698_v8 = vrot.slane %v1697_v60, 1  ;;  %v1745_v17 = vrot.slane %v1744_v5, 2 }
 0x5bc   : > { %4059 = vst.msk [vmem:[%s4579_s5 + $0x25] ss:$8 sm:$0x3] %vm4582_vm12, %v1413_v27  ;;  %v1517_v42 = vpop.permute.xlu1 %1516  ;;  %v1896_v4 = vrot.slane %v1895_v41, 4  ;;  %v1740_v55 = vrot.slane %v1739_v39, 1  ;;  %v1787_v28 = vrot.slane %v1786_v36, 2 }
 0x5bd   : > { %v1520_v57 = vsel %vm7091_vm6, %v1517_v42, %v5540_v35  ;;  %v1521_v10 = vsel %vm7092_vm13, %v5540_v35, %v1517_v42  ;;  %v1855_v35 = vadd.f32 %v1854_v23, %v1853_v31  ;;  %v1699_v27 = vadd.f32 %v1698_v8, %v1697_v60  ;;  %v7098_v31 = vld [vmem:[#allocation41_spill] sm:$0xff] }
 0x5be   : > { %v1524_v3 = vsel %vm5651_vm14, %v1520_v57, 0.0  ;;  %v1525_v56 = vsel %vm7093_vm10, %v1521_v10, 0.0  ;;  %v1746_v42 = vadd.f32 %v1745_v17, %v1744_v5  ;;  %vm7094_vm7 = vcmp.lt.s32.totalorder %v4893_v12, 13  ;;  %v7099_v10 = vld [vmem:[#allocation40_spill] sm:$0xff] }
 0x5bf   : > { %v1527_v44 = vmul.f32 0.25, %v1525_v56  ;;  %v1526_v62 = vmul.f32 0.25, %v1524_v3  ;;  %vm5677_vm8 = vmand %vm7095_vm3, %vm7094_vm7  ;;  %v1897_v29 = vadd.f32 %v1896_v4, %v1895_v41  ;;  %v1741_v1 = vadd.f32 %v1740_v55, %v1739_v39 }
 0x5c0   : > { %v1788_v20 = vadd.f32 %v1787_v28, %v1786_v36  ;;  %v1944_v60 = vsel %vm249_vm2, %v7098_v31, 0.0  ;;  %v1902_v5 = vsel %vm249_vm2, %v7099_v10, 0.0  ;;  %vm7100_vm14 = vcmp.lt.s32.totalorder %v4456_v22, 125 }
 0x5c1   : > { %v1530_v49 = vrot.slane %v1527_v44, 7  ;;  %vm7101_vm6 = vmmov %vm7100_vm14  ;;  %v1856_v56 = vrot.slane %v1855_v35, 2  ;;  %v1898_v8 = vrot.slane %v1897_v29, 2  ;;  %v1945_v44 = vrot.slane %v1944_v60, 4 }
 0x5c2   : > { %v1903_v17 = vrot.slane %v1902_v5, 4  ;;  %v1789_v4 = vrot.slane %v1788_v20, 1  ;;  %v1747_v55 = vrot.slane %v1746_v42, 1  ;;  %vm7102_vm13 = vcmp.ge.s32.totalorder %v4893_v12, 4 }
 0x5c3   : > { %v1531_v19 = vsel %vm455_vm11, %v1526_v62, %v1530_v49  ;;  %1749 = vrot.lane.b32.xlu1 %v1741_v1, %s4288_s23  ;;  %1707 = vrot.lane.b32.xlu2 %v1699_v27, %s4289_s24  ;;  %v1857_v62 = vadd.f32 %v1856_v56, %v1855_v35  ;;  %v1899_v27 = vadd.f32 %v1898_v8, %v1897_v29  ;;  %vm7103_vm10 = vcmp.ge.s32.totalorder %v4456_v22, 16 }
 0x5c4   : > { %4062 = vst.msk [vmem:[%s4579_s5 + $0x30] ss:$8 sm:$0x3] %vm4582_vm12, %v1531_v19  ;;  %v1561_v57 = vpop.permute.xlu1 %1560  ;;  %vm5705_vm7 = vmand %vm7103_vm10, %vm7102_vm13  ;;  %v1946_v15 = vadd.f32 %v1945_v44, %v1944_v60  ;;  %v1904_v1 = vadd.f32 %v1903_v17, %v1902_v5  ;;  %v1790_v31 = vadd.f32 %v1789_v4, %v1788_v20  ;;  %v1748_v10 = vadd.f32 %v1747_v55, %v1746_v42 }
 0x5c5   : > { %v1562_v3 = vsel %vm7100_vm14, %v5520_v40, %v1561_v57  ;;  %v1563_v41 = vsel %vm7101_vm6, %v1561_v57, %v5520_v40  ;;  %v1666_v57 = vpop.permute.xlu0 %1665  ;;  %vm7106_vm3 = vcmp.lt.s32.totalorder %v4456_v22, 4  ;;  %v1858_v42 = vrot.slane %v1857_v62, 1  ;;  %vm7121_vm6 = vmmov %vm7103_vm10 }
 0x5c6   : > { %v1566_v39 = vsel %vm5677_vm8, %v1562_v3, 0.0  ;;  %v1567_v36 = vsel %vm6915_vm0, %v1563_v41, 0.0  ;;  %vm7107_vm8 = vmmov %vm7106_vm3  ;;  %v7108_v41 = vld [vmem:[#allocation43_spill] sm:$0xff]  ;;  %vm7110_vm14 = vcmp.ge.s32.totalorder %v4896_v53, 4  ;;  %v1900_v56 = vrot.slane %v1899_v27, 1 }
 0x5c7   : > { %v1569_v23 = vmul.f32 0.25, %v1567_v36  ;;  %v1568_v28 = vmul.f32 0.25, %v1566_v39  ;;  %v2021_v39 = vsel %vm249_vm2, %v7108_v41, 0.0  ;;  %v7109_v36 = vld [vmem:[#allocation42_spill] sm:$0xff]  ;;  %v1947_v8 = vrot.slane %v1946_v15, 2  ;;  %v7112_v41 = vld [vmem:[#allocation44_spill] sm:$0xff]  ;;  %vm5798_vm13 = vmand %vm7121_vm6, %vm492_vm15 }
 0x5c8   : > { %v1979_v60 = vsel %vm249_vm2, %v7109_v36, 0.0  ;;  %v1905_v44 = vrot.slane %v1904_v1, 2  ;;  %v2022_v17 = vrot.slane %v2021_v39, 4  ;;  %v2028_v36 = vsel %vm249_vm2, %v7112_v41, 0.0 }
 0x5c9   : > { %v1572_v40 = vrot.slane %v1569_v23, 7  ;;  %v1980_v4 = vrot.slane %v1979_v60, 4  ;;  %vm7124_vm10 = vcmp.lt.s32.totalorder %v4456_v22, 3 }
 0x5ca   : > { %v2023_v19 = vadd.f32 %v2022_v17, %v2021_v39 }
 0x5cb   : > { %v1573_v49 = vsel %vm455_vm11, %v1568_v28, %v1572_v40  ;;  %1793 = vrot.lane.b32.xlu1 %v1790_v31, %s4287_s18  ;;  %1751 = vrot.lane.b32.xlu2 %v1748_v10, %s4288_s23  ;;  %v1859_v40 = vadd.f32 %v1858_v42, %v1857_v62  ;;  %v1948_v31 = vadd.f32 %v1947_v8, %v1946_v15  ;;  %v2029_v42 = vrot.slane %v2028_v36, 4 }
 0x5cc   : > { %4063 = vst.msk [vmem:[%s4579_s5 + $0x31] ss:$8 sm:$0x3] %vm4582_vm12, %v1573_v49  ;;  %v1668_v35 = vpop.permute.xlu1 %1667  ;;  %v1901_v49 = vadd.f32 %v1900_v56, %v1899_v27  ;;  %v1906_v10 = vadd.f32 %v1905_v44, %v1904_v1  ;;  %v2024_v1 = vrot.slane %v2023_v19, 2  ;;  %v7113_v44 = vld [vmem:[#allocation46_spill] sm:$0xff] }
 0x5cd   : > { %v1669_v29 = vsel %vm7106_vm3, %v1666_v57, %v1668_v35  ;;  %v1670_v3 = vsel %vm7107_vm8, %v1668_v35, %v1666_v57  ;;  %v1981_v35 = vadd.f32 %v1980_v4, %v1979_v60  ;;  %v1949_v15 = vrot.slane %v1948_v31, 1  ;;  %v7114_v4 = vld [vmem:[#allocation47_spill] sm:$0xff] }
 0x5ce   : > { %v1673_v20 = vsel %vm5705_vm7, %v1670_v3, 0.0  ;;  %v1674_v5 = vsel %vm7110_vm14, %v1669_v29, 0.0  ;;  %v7111_v29 = vld [vmem:[#allocation45_spill] sm:$0xff]  ;;  %v1907_v62 = vrot.slane %v1906_v10, 1  ;;  %v2030_v39 = vadd.f32 %v2029_v42, %v2028_v36  ;;  %vm7125_vm7 = vmmov %vm7124_vm10 }
 0x5cf   : > { %v1676_v23 = vmul.f32 0.25, %v1674_v5  ;;  %v1675_v55 = vmul.f32 0.25, %v1673_v20  ;;  %v2068_v3 = vsel %vm249_vm2, %v7111_v29, 0.0  ;;  %v1982_v20 = vrot.slane %v1981_v35, 2  ;;  %v7116_v42 = vld [vmem:[#allocation49_spill] sm:$0xff]  ;;  %vm7127_vm14 = vmmov %vm7121_vm6 }
 0x5d0   : > { %v2069_v27 = vrot.slane %v2068_v3, 4  ;;  %v1908_v5 = vadd.f32 %v1907_v62, %v1906_v10  ;;  %v1950_v60 = vadd.f32 %v1949_v15, %v1948_v31  ;;  %v2101_v17 = vsel %vm249_vm2, %v7113_v44, 0.0  ;;  %v7115_v62 = vld [vmem:[#allocation48_spill] sm:$0xff]  ;;  %vm1873_vm6 = vmand %vm7127_vm14, %vm672_vm4 }
 0x5d1   : > { %v1679_v28 = vrot.slane %v1676_v23, 7  ;;  %v2025_v23 = vadd.f32 %v2024_v1, %v2023_v19  ;;  %v1983_v8 = vadd.f32 %v1982_v20, %v1981_v35  ;;  %v2220_v15 = vsel %vm249_vm2, %v7116_v42, 0.0 }
 0x5d2   : > { %v2070_v56 = vadd.f32 %v2069_v27, %v2068_v3  ;;  %v2148_v27 = vsel %vm249_vm2, %v7115_v62, 0.0  ;;  %vm7126_vm3 = vcmp.ge.s32.totalorder %v4896_v53, 3  ;;  %vm3160_vm8 = vcmp.lt.s32.totalorder %v4456_v22, 80 }
 0x5d3   : > { %v1680_v57 = vsel %vm455_vm11, %v1675_v55, %v1679_v28  ;;  %1909 = vrot.lane.b32.xlu1 %v1901_v49, %s4285_s19  ;;  %1867 = vrot.lane.b32.xlu2 %v1859_v40, %s4286_s16  ;;  %v2141_v55 = vsel %vm249_vm2, %v7114_v4, 0.0  ;;  %v2031_v40 = vrot.slane %v2030_v39, 2  ;;  %v2102_v49 = vrot.slane %v2101_v17, 4 }
 0x5d4   : > { %4065 = vst.msk [vmem:[%s4579_s5 + $0x33] ss:$8 sm:$0x3] %vm4582_vm12, %v1680_v57  ;;  %v2071_v28 = vrot.slane %v2070_v56, 2  ;;  %v2026_v57 = vrot.slane %v2025_v23, 1  ;;  %v1984_v10 = vrot.slane %v1983_v8, 1 }
 0x5d5   : > { %v2142_v29 = vrot.slane %v2141_v55, 4  ;;  %v2032_v31 = vadd.f32 %v2031_v40, %v2030_v39  ;;  %v2103_v19 = vadd.f32 %v2102_v49, %v2101_v17  ;;  %v2221_v39 = vrot.slane %v2220_v15, 4  ;;  %v7118_v49 = vld [vmem:[#allocation50_spill] sm:$0xff] }
 0x5d6   : > { %v2072_v3 = vadd.f32 %v2071_v28, %v2070_v56  ;;  %v2027_v35 = vadd.f32 %v2026_v57, %v2025_v23  ;;  %v1985_v41 = vadd.f32 %v1984_v10, %v1983_v8  ;;  %v7117_v28 = vld [vmem:[#allocation51_spill] sm:$0xff]  ;;  %v2253_v57 = vsel %vm249_vm2, %v7118_v49, 0.0 }
 0x5d7   : > { %v2143_v36 = vadd.f32 %v2142_v29, %v2141_v55  ;;  %v2033_v20 = vrot.slane %v2032_v31, 1  ;;  %v2222_v55 = vadd.f32 %v2221_v39, %v2220_v15  ;;  %v2293_v40 = vsel %vm249_vm2, %v7117_v28, 0.0  ;;  %v5760_v28 = vpop.permute.xlu0 %1709 }
 0x5d8   : > { %v2073_v1 = vrot.slane %v2072_v3, 1 }
 0x5d9   : > { %v2144_v56 = vrot.slane %v2143_v36, 2  ;;  %v2034_v23 = vadd.f32 %v2033_v20, %v2032_v31  ;;  %v2223_v31 = vrot.slane %v2222_v55, 2 }
 0x5da   : > { %v2074_v44 = vadd.f32 %v2073_v1, %v2072_v3  ;;  %v7119_v1 = vld [vmem:[#allocation54_spill] sm:$0xff] }
 0x5db   : > { %1953 = vrot.lane.b32.xlu1 %v1950_v60, %s4284_s15  ;;  %1911 = vrot.lane.b32.xlu2 %v1908_v5, %s4285_s19  ;;  %v2104_v5 = vrot.slane %v2103_v19, 2  ;;  %v2149_v60 = vrot.slane %v2148_v27, 4  ;;  %v2145_v4 = vadd.f32 %v2144_v56, %v2143_v36  ;;  %v2224_v15 = vadd.f32 %v2223_v31, %v2222_v55 }
 0x5dc   : > { %v2340_v20 = vsel %vm249_vm2, %v7119_v1, 0.0 }
 0x5dd   : > { %v2105_v8 = vadd.f32 %v2104_v5, %v2103_v19  ;;  %v2150_v17 = vadd.f32 %v2149_v60, %v2148_v27  ;;  %v2146_v3 = vrot.slane %v2145_v4, 1  ;;  %v7120_v5 = vld [vmem:[#allocation52_spill] sm:$0xff] }
 0x5de   : > { %v2300_v60 = vsel %vm249_vm2, %v7120_v5, 0.0 }
 0x5df   : > { %v2106_v10 = vrot.slane %v2105_v8, 1  ;;  %v2151_v29 = vrot.slane %v2150_v17, 2  ;;  %v2147_v42 = vadd.f32 %v2146_v3, %v2145_v4 }
 0x5e1   : > { %v2107_v19 = vadd.f32 %v2106_v10, %v2105_v8  ;;  %v2152_v62 = vadd.f32 %v2151_v29, %v2150_v17  ;;  %v2225_v8 = vrot.slane %v2224_v15, 1  ;;  %v2438_v29 = vsel %vm249_vm2, %v4983_v59, 0.0 }
 0x5e2   : > { %v2487_v59 = vsel %vm249_vm2, %v5015_v63, 0.0 }
 0x5e3   : > { %2035 = vrot.lane.b32.xlu1 %v2027_v35, %s4290_s25  ;;  %1993 = vrot.lane.b32.xlu2 %v1985_v41, %s4283_s29  ;;  %v2294_v35 = vrot.slane %v2293_v40, 4  ;;  %v2254_v41 = vrot.slane %v2253_v57, 4  ;;  %v2153_v17 = vrot.slane %v2152_v62, 1 }
 0x5e5   : > { %v2295_v36 = vadd.f32 %v2294_v35, %v2293_v40  ;;  %v2255_v27 = vadd.f32 %v2254_v41, %v2253_v57  ;;  %v2226_v57 = vadd.f32 %v2225_v8, %v2224_v15  ;;  %v2154_v10 = vadd.f32 %v2153_v17, %v2152_v62 }
 0x5e6   : > { %v2396_v35 = vsel %vm249_vm2, %v4948_v32, 0.0  ;;  %v2445_v32 = vsel %vm249_vm2, %v4985_v48, 0.0  ;;  %v2605_v48 = vsel %vm249_vm2, %v5044_v61, 0.0 }
 0x5e7   : > { %v2296_v56 = vrot.slane %v2295_v36, 2  ;;  %v2256_v39 = vrot.slane %v2255_v27, 2 }
 0x5e9   : > { %v2297_v4 = vadd.f32 %v2296_v56, %v2295_v36  ;;  %v2257_v55 = vadd.f32 %v2256_v39, %v2255_v27  ;;  %v2439_v36 = vrot.slane %v2438_v29, 4  ;;  %v2397_v27 = vrot.slane %v2396_v35, 4 }
 0x5ea   : > { %v2488_v56 = vrot.slane %v2487_v59, 4  ;;  %v2446_v39 = vrot.slane %v2445_v32, 4 }
 0x5eb   : > { %2077 = vrot.lane.b32.xlu1 %v2074_v44, %s4289_s24  ;;  %2037 = vrot.lane.b32.xlu2 %v2034_v23, %s4290_s25  ;;  %v2341_v44 = vrot.slane %v2340_v20, 4  ;;  %v2301_v23 = vrot.slane %v2300_v60, 4  ;;  %v2298_v41 = vrot.slane %v2297_v4, 1  ;;  %v2258_v3 = vrot.slane %v2257_v55, 1 }
 0x5ec   : > { %v2398_v5 = vadd.f32 %v2397_v27, %v2396_v35 }
 0x5ed   : > { %v2342_v40 = vadd.f32 %v2341_v44, %v2340_v20  ;;  %v2302_v49 = vadd.f32 %v2301_v23, %v2300_v60  ;;  %v2259_v1 = vadd.f32 %v2258_v3, %v2257_v55  ;;  %v2440_v20 = vadd.f32 %v2439_v36, %v2438_v29  ;;  %v5772_v60 = vpop.permute.xlu0 %1791 }
 0x5ee   : > { %v2399_v17 = vrot.slane %v2398_v5, 2  ;;  %v2447_v55 = vadd.f32 %v2446_v39, %v2445_v32 }
 0x5ef   : > { %v2343_v31 = vrot.slane %v2342_v40, 2  ;;  %v2441_v8 = vrot.slane %v2440_v20, 2 }
 0x5f1   : > { %v2344_v15 = vadd.f32 %v2343_v31, %v2342_v40  ;;  %v2442_v63 = vadd.f32 %v2441_v8, %v2440_v20  ;;  %v2640_v20 = vsel %vm249_vm2, %v5054_v13, 0.0 }
 0x5f3   : > { %2155 = vrot.lane.b32.xlu1 %v2147_v42, %s4287_s18  ;;  %2115 = vrot.lane.b32.xlu2 %v2107_v19, %s4288_s23  ;;  %v2303_v19 = vrot.slane %v2302_v49, 2  ;;  %v2299_v42 = vadd.f32 %v2298_v41, %v2297_v4  ;;  %v2345_v44 = vrot.slane %v2344_v15, 1  ;;  %v2489_v4 = vadd.f32 %v2488_v56, %v2487_v59 }
 0x5f4   : > { %v2448_v41 = vrot.slane %v2447_v55, 2  ;;  %v2443_v3 = vrot.slane %v2442_v63, 1 }
 0x5f5   : > { %v2304_v62 = vadd.f32 %v2303_v19, %v2302_v49  ;;  %v2346_v40 = vadd.f32 %v2345_v44, %v2344_v15  ;;  %v5782_v29 = vpop.permute.xlu0 %1869  ;;  %v2490_v35 = vrot.slane %v2489_v4, 2  ;;  %v2606_v19 = vrot.slane %v2605_v48, 4 }
 0x5f7   : > { %v2305_v23 = vrot.slane %v2304_v62, 1  ;;  %v2491_v27 = vadd.f32 %v2490_v35, %v2489_v4  ;;  %v2607_v61 = vadd.f32 %v2606_v19, %v2605_v48 }
 0x5f9   : > { %v2306_v49 = vadd.f32 %v2305_v23, %v2304_v62  ;;  %v2608_v56 = vrot.slane %v2607_v61, 2  ;;  %v2641_v23 = vrot.slane %v2640_v20, 4 }
 0x5fb   : > { %2229 = vrot.lane.b32.xlu1 %v2226_v57, %s4286_s16  ;;  %2157 = vrot.lane.b32.xlu2 %v2154_v10, %s4287_s18  ;;  %v2400_v57 = vadd.f32 %v2399_v17, %v2398_v5  ;;  %v2522_v10 = vsel %vm249_vm2, %v5026_v6, 0.0  ;;  %v2682_v6 = vsel %vm249_vm2, %v5071_v51, 0.0  ;;  %v2492_v5 = vrot.slane %v2491_v27, 1 }
 0x5fc   : > { %v2523_v36 = vrot.slane %v2522_v10, 4  ;;  %v2683_v44 = vrot.slane %v2682_v6, 4 }
 0x5fd   : > { %v2401_v31 = vrot.slane %v2400_v57, 1  ;;  %v5790_v8 = vpop.permute.xlu0 %1951  ;;  %v2493_v17 = vadd.f32 %v2492_v5, %v2491_v27 }
 0x5fe   : > { %v2524_v62 = vadd.f32 %v2523_v36, %v2522_v10 }
 0x5ff   : > { %v2402_v15 = vadd.f32 %v2401_v31, %v2400_v57 }
 0x600   : > { %v2525_v39 = vrot.slane %v2524_v62, 2 }
 0x602   : > { %v2526_v51 = vadd.f32 %v2525_v39, %v2524_v62 }
 0x603   : > { %2307 = vrot.lane.b32.xlu1 %v2299_v42, %s4284_s15  ;;  %2267 = vrot.lane.b32.xlu2 %v2259_v1, %s4285_s19  ;;  %v2449_v42 = vadd.f32 %v2448_v41, %v2447_v55  ;;  %v2444_v1 = vadd.f32 %v2443_v3, %v2442_v63  ;;  %v2609_v55 = vadd.f32 %v2608_v56, %v2607_v61 }
 0x604   : > { %v2527_v48 = vrot.slane %v2526_v51, 1 }
 0x605   : > { %v2450_v59 = vrot.slane %v2449_v42, 1  ;;  %v2610_v57 = vrot.slane %v2609_v55, 1  ;;  %v5812_v36 = vpop.permute.xlu0 %1995 }
 0x607   : > { %v2451_v4 = vadd.f32 %v2450_v59, %v2449_v42  ;;  %v2611_v42 = vadd.f32 %v2610_v57, %v2609_v55 }
 0x60b   : > { %2349 = vrot.lane.b32.xlu1 %v2346_v40, %s4283_s29  ;;  %2309 = vrot.lane.b32.xlu2 %v2306_v49, %s4284_s15  ;;  %v2684_v40 = vadd.f32 %v2683_v44, %v2682_v6  ;;  %v2642_v49 = vadd.f32 %v2641_v23, %v2640_v20 }
 0x60d   : > { %v2685_v10 = vrot.slane %v2684_v40, 2  ;;  %v2643_v35 = vrot.slane %v2642_v49, 2  ;;  %v5820_v44 = vpop.permute.xlu0 %2075 }
 0x60f   : > { %v2644_v61 = vadd.f32 %v2643_v35, %v2642_v49 }
 0x611   : > { %v2645_v59 = vrot.slane %v2644_v61, 1 }
 0x613   : > { %2452 = vrot.lane.b32.xlu1 %v2444_v1, %s4289_s24  ;;  %2410 = vrot.lane.b32.xlu2 %v2402_v15, %s4290_s25  ;;  %v2528_v1 = vadd.f32 %v2527_v48, %v2526_v51  ;;  %v2686_v15 = vadd.f32 %v2685_v10, %v2684_v40  ;;  %v2646_v39 = vadd.f32 %v2645_v59, %v2644_v61 }
 0x615   : > { %v3159_v32 = vpop.permute.xlu2 %3158  ;;  %v2687_v5 = vrot.slane %v2686_v15, 1  ;;  %v5842_v35 = vpop.permute.xlu0 %2117 }
 0x617   : > { %v2688_v56 = vadd.f32 %v2687_v5, %v2686_v15 }
 0x61b   : > { %2496 = vrot.lane.b32.xlu1 %v2493_v17, %s4288_s23  ;;  %2454 = vrot.lane.b32.xlu2 %v2451_v4, %s4289_s24 }
 0x61d   : > { %v1708_v63 = vpop.permute.xlu2 %1707 }
 0x61e   : > { %v1711_v41 = vsel %vm7124_vm10, %v1708_v63, %v5760_v28  ;;  %v1712_v3 = vsel %vm7125_vm7, %v5760_v28, %v1708_v63  ;;  %vm7130_vm7 = vcmp.lt.s32.totalorder %v4896_v53, 15 }
 0x61f   : > { %v1715_v31 = vsel %vm5798_vm13, %v1712_v3, 0.0  ;;  %v1716_v19 = vsel %vm7126_vm3, %v1711_v41, 0.0  ;;  %vm7128_vm13 = vcmp.lt.s32.totalorder %v4456_v22, 127  ;;  %vm7131_vm3 = vcmp.ge.s32.totalorder %v4893_v12, 2 }
 0x620   : > { %v1718_v27 = vmul.f32 0.25, %v1716_v19  ;;  %v1717_v62 = vmul.f32 0.25, %v1715_v31  ;;  %vm7129_vm10 = vmmov %vm7128_vm13 }
 0x622   : > { %v1721_v6 = vrot.slane %v1718_v27, 7 }
 0x623   : > { %2614 = vrot.lane.b32.xlu1 %v2611_v42, %s4286_s16  ;;  %2536 = vrot.lane.b32.xlu2 %v2528_v1, %s4287_s18 }
 0x624   : > { %v1722_v28 = vsel %vm455_vm11, %v1717_v62, %v1721_v6 }
 0x625   : > { %4066 = vst.msk [vmem:[%s4579_s5 + $0x34] ss:$8 sm:$0x3] %vm4582_vm12, %v1722_v28  ;;  %v1752_v20 = vpop.permute.xlu2 %1751 }
 0x62b   : > { %2696 = vrot.lane.b32.xlu1 %v2688_v56, %s4284_s15  ;;  %2654 = vrot.lane.b32.xlu2 %v2646_v39, %s4285_s19 }
 0x62d   : > { %v3157_v23 = vpop.permute.xlu1 %3156  ;;  %v1868_v17 = vpop.permute.xlu2 %1867 }
 0x62e   : > { %v3162_v4 = vsel %vm3160_vm8, %v3159_v32, %v3157_v23  ;;  %v1871_v55 = vsel %vm7128_vm13, %v1868_v17, %v5782_v29  ;;  %v1872_v51 = vsel %vm7129_vm10, %v5782_v29, %v1868_v17  ;;  %v3161_v13 = vsel %vm3160_vm8, %v3157_v23, %v3159_v32  ;;  %vm1755_vm13 = vmand %vm7127_vm14, %vm7131_vm3 }
 0x62f   : > { %v3172_v40 = vrot.slane %v3162_v4, 4  ;;  %v1876_v49 = vsel %vm7130_vm7, %v1872_v51, 0.0  ;;  %v1875_v48 = vsel %vm1873_vm6, %v1871_v55, 0.0  ;;  %vm7132_vm8 = vcmp.lt.s32.totalorder %v4456_v22, 2  ;;  %vm7136_vm3 = vmmov %vm7127_vm14  ;;  %v5883_v55 = vpop.permute.xlu0 %2227 }
 0x630   : > { %v1878_v63 = vmul.f32 0.25, %v1876_v49  ;;  %v1877_v41 = vmul.f32 0.25, %v1875_v48  ;;  %vm7133_vm6 = vmmov %vm7132_vm8  ;;  %vm7134_vm10 = vcmp.ge.s32.totalorder %v4896_v53, 2  ;;  %vm7135_vm7 = vcmp.ge.s32.totalorder %v4893_v12, 1 }
 0x631   : > { %v5838_v57 = vsel %vm249_vm2, %v3161_v13, %v3172_v40  ;;  %vm5864_vm14 = vmand %vm7136_vm3, %vm7135_vm7  ;;  %vm7144_vm7 = vcmp.lt.s32.totalorder %v4456_v22, 124 }
 0x632   : > { %v3175_v10 = vmul.f32 %v5838_v57, %v4470_v33  ;;  %v1881_v3 = vrot.slane %v1878_v63, 7  ;;  %v3217_v61 = vmul.f32 %v5838_v57, %v4485_v43  ;;  %v3259_v28 = vmul.f32 %v5838_v57, %v4499_v52 }
 0x634   : > { %3177 = vst [vmem:[#allocation1] ss:$2 sm:$0xff] %v3175_v10  ;;  %v1882_v31 = vsel %vm455_vm11, %v1877_v41, %v1881_v3 }
 0x635   : > { %v1750_v29 = vpop.permute.xlu1 %1749  ;;  %v1912_v32 = vpop.permute.xlu2 %1911  ;;  %4070 = vst.msk [vmem:[%s4579_s5 + $0x40] ss:$8 sm:$0x3] %vm4582_vm12, %v1882_v31 }
 0x636   : > { %v1753_v19 = vsel %vm7132_vm8, %v1750_v29, %v1752_v20  ;;  %v1754_v27 = vsel %vm7133_vm6, %v1752_v20, %v1750_v29  ;;  %vm7142_vm6 = vcmp.lt.s32.totalorder %v4456_v22, 1 }
 0x637   : > { %v1757_v42 = vsel %vm1755_vm13, %v1754_v27, 0.0  ;;  %v1758_v1 = vsel %vm7134_vm10, %v1753_v19, 0.0  ;;  %vm7139_vm13 = vmmov %vm7136_vm3 }
 0x638   : > { %v1760_v15 = vmul.f32 0.25, %v1758_v1  ;;  %v1759_v62 = vmul.f32 0.25, %v1757_v42  ;;  %vm5875_vm8 = vmand %vm7139_vm13, %vm816_vm9  ;;  %vm7146_vm13 = vcmp.ge.s32.totalorder %v4896_v53, 1 }
 0x639   : > { %vm7143_vm10 = vmmov %vm7142_vm6 }
 0x63a   : > { %v1763_v6 = vrot.slane %v1760_v15, 7  ;;  %vm7145_vm3 = vmmov %vm7144_vm7 }
 0x63b   : > { %v3178_v20 = vld.sshfl [vmem:[#allocation1] sm:$0xff pattern:$0x75316420]  ;;  %v5868_v5 = vld.sshfl [vmem:[#allocation1 + $0x8] sm:$0xff pattern:$0x75316420] }
 0x63c   : > { %v1764_v59 = vsel %vm455_vm11, %v1759_v62, %v1763_v6  ;;  %v3182_v39 = vsel %vm249_vm2, %v3178_v20, 0.0  ;;  %3219 = vst [vmem:[#allocation1] ss:$2 sm:$0xff] %v3217_v61 }
 0x63d   : > { %4067 = vst.msk [vmem:[%s4579_s5 + $0x35] ss:$8 sm:$0x3] %vm4582_vm12, %v1764_v59  ;;  %v1794_v23 = vpop.permute.xlu1 %1793  ;;  %v1994_v17 = vpop.permute.xlu2 %1993  ;;  %v3183_v4 = vrot.slane %v3182_v39, 4 }
 0x63e   : > { %v1795_v51 = vsel %vm7142_vm6, %v5772_v60, %v1794_v23  ;;  %v1796_v40 = vsel %vm7143_vm10, %v1794_v23, %v5772_v60  ;;  %v1997_v49 = vsel %vm7144_vm7, %v1994_v17, %v5812_v36  ;;  %v1998_v13 = vsel %vm7145_vm3, %v5812_v36, %v1994_v17 }
 0x63f   : > { %v1799_v63 = vsel %vm5864_vm14, %v1796_v40, 0.0  ;;  %v1800_v48 = vsel %vm7146_vm13, %v1795_v51, 0.0  ;;  %v2001_v10 = vsel %vm5875_vm8, %v1997_v49, 0.0  ;;  %v2002_v60 = vsel %vm817_vm5, %v1998_v13, 0.0  ;;  %v5934_v13 = vpop.permute.xlu0 %2269 }
 0x640   : > { %v1802_v41 = vmul.f32 0.25, %v1800_v48  ;;  %v2004_v3 = vmul.f32 0.25, %v2002_v60  ;;  %v3184_v29 = vadd.f32 %v3183_v4, %v3182_v39  ;;  %v1801_v31 = vmul.f32 0.25, %v1799_v63 }
 0x641   : > { %v2003_v36 = vmul.f32 0.25, %v2001_v10  ;;  %vm7147_vm14 = vcmp.lt.s32.totalorder %v4893_v12, 14  ;;  %vm7148_vm8 = vcmp.ge.s32.totalorder %v4456_v22, 16  ;;  %vm7151_vm10 = vcmp.lt.s32.totalorder %v4456_v22, 126 }
 0x642   : > { %v1805_v19 = vrot.slane %v1802_v41, 7  ;;  %v2007_v27 = vrot.slane %v2004_v3, 7  ;;  %v3185_v42 = vrot.slane %v3184_v29, 2  ;;  %vm5911_vm6 = vmand %vm7148_vm8, %vm7147_vm14  ;;  %vm7153_vm3 = vcmp.lt.s32.totalorder %v4896_v53, 14 }
 0x643   : > { %v5915_v62 = vld.sshfl [vmem:[#allocation1] sm:$0xff pattern:$0x75316420]  ;;  %v3221_v6 = vld.sshfl [vmem:[#allocation1 + $0x8] sm:$0xff pattern:$0x75316420]  ;;  %vm7152_vm7 = vmmov %vm7151_vm10 }
 0x644   : > { %v1806_v1 = vsel %vm455_vm11, %v1801_v31, %v1805_v19  ;;  %v2008_v15 = vsel %vm455_vm11, %v2003_v36, %v2007_v27  ;;  %v3186_v56 = vadd.f32 %v3185_v42, %v3184_v29  ;;  %v3231_v39 = vsel %vm249_vm2, %v3221_v6, 0.0  ;;  %3261 = vst [vmem:[#allocation1] ss:$2 sm:$0xff] %v3259_v28  ;;  %vm7155_vm14 = vmmov %vm7148_vm8 }
 0x645   : > { %4068 = vst.msk [vmem:[%s4579_s5 + $0x36] ss:$8 sm:$0x3] %vm4582_vm12, %v1806_v1  ;;  %v1910_v20 = vpop.permute.xlu1 %1909  ;;  %v2038_v59 = vpop.permute.xlu2 %2037  ;;  %v3232_v4 = vrot.slane %v3231_v39, 4  ;;  %vm7154_vm13 = vcmp.lt.s32.totalorder %v4893_v12, 13  ;;  %v3301_v31 = vmul.f32 %v5838_v57, %v4510_v58 }
 0x646   : > { %4073 = vst.msk [vmem:[%s4579_s5 + $0x43] ss:$8 sm:$0x3] %vm4582_vm12, %v2008_v15  ;;  %v1913_v23 = vsel %vm7151_vm10, %v1910_v20, %v1912_v32  ;;  %v1914_v17 = vsel %vm7152_vm7, %v1912_v32, %v1910_v20  ;;  %v3187_v49 = vrot.slane %v3186_v56, 1  ;;  %vm5942_vm8 = vmand %vm7155_vm14, %vm7154_vm13  ;;  %vm7160_vm7 = vcmp.lt.s32.totalorder %v4456_v22, 2 }
 0x647   : > { %v1917_v51 = vsel %vm5911_vm6, %v1913_v23, 0.0  ;;  %v1918_v40 = vsel %vm7153_vm3, %v1914_v17, 0.0  ;;  %v3233_v48 = vadd.f32 %v3232_v4, %v3231_v39  ;;  %vm7158_vm6 = vcmp.lt.s32.totalorder %v4456_v22, 125  ;;  %vm7161_vm3 = vmmov %vm7160_vm7  ;;  %v5975_v4 = vpop.permute.xlu0 %2347 }
 0x648   : > { %v1920_v63 = vmul.f32 0.25, %v1918_v40  ;;  %v3188_v10 = vadd.f32 %v3187_v49, %v3186_v56  ;;  %v1919_v60 = vmul.f32 0.25, %v1917_v51  ;;  %vm7159_vm10 = vmmov %vm7158_vm6  ;;  %vm7162_vm13 = vcmp.ge.s32.totalorder %v4893_v12, 2 }
 0x649   : > { %v3234_v3 = vrot.slane %v3233_v48, 2  ;;  %vm7163_vm14 = vcmp.ge.s32.totalorder %v4896_v53, 2 }
 0x64a   : > { %v1923_v41 = vrot.slane %v1920_v63, 7  ;;  %3196 = vrot.lane.b32.xlu0 %v3188_v10, %s4290_s25 }
 0x64b   : > { %v3235_v27 = vadd.f32 %v3234_v3, %v3233_v48  ;;  %v5963_v6 = vld.sshfl [vmem:[#allocation1] sm:$0xff pattern:$0x75316420]  ;;  %v5965_v28 = vld.sshfl [vmem:[#allocation1 + $0x8] sm:$0xff pattern:$0x75316420] }
 0x64c   : > { %v1924_v32 = vsel %vm455_vm11, %v1919_v60, %v1923_v41  ;;  %3303 = vst [vmem:[#allocation1] ss:$2 sm:$0xff] %v3301_v31 }
 0x64d   : > { %4071 = vst.msk [vmem:[%s4579_s5 + $0x41] ss:$8 sm:$0x3] %vm4582_vm12, %v1924_v32  ;;  %v1954_v19 = vpop.permute.xlu1 %1953  ;;  %v2116_v36 = vpop.permute.xlu2 %2115  ;;  %v3236_v17 = vrot.slane %v3235_v27, 1  ;;  %v3343_v32 = vmul.f32 %v5838_v57, %v4423_v0 }
 0x64e   : > { %v1955_v42 = vsel %vm7158_vm6, %v5790_v8, %v1954_v19  ;;  %v1956_v1 = vsel %vm7159_vm10, %v1954_v19, %v5790_v8  ;;  %v2119_v15 = vsel %vm7160_vm7, %v2116_v36, %v5842_v35  ;;  %v2120_v61 = vsel %vm7161_vm3, %v5842_v35, %v2116_v36 }
 0x64f   : > { %v1959_v20 = vsel %vm5942_vm8, %v1955_v42, 0.0  ;;  %v1960_v56 = vsel %vm6915_vm0, %v1956_v1, 0.0  ;;  %v2121_v8 = vsel %vm7162_vm13, %v2120_v61, 0.0  ;;  %v2122_v39 = vsel %vm7163_vm14, %v2119_v15, 0.0 }
 0x650   : > { %v1962_v23 = vmul.f32 0.25, %v1960_v56  ;;  %v2124_v35 = vmul.f32 0.25, %v2122_v39  ;;  %v1961_v51 = vmul.f32 0.25, %v1959_v20  ;;  %v2123_v49 = vmul.f32 0.25, %v2121_v8  ;;  %v5999_v39 = vpop.permute.xlu0 %2412 }
 0x651   : > { %v3237_v48 = vadd.f32 %v3236_v17, %v3235_v27  ;;  %vm7164_vm8 = vcmp.lt.s32.totalorder %v4456_v22, 4  ;;  %vm7166_vm10 = vcmp.ge.s32.totalorder %v4893_v12, 4  ;;  %vm7167_vm7 = vcmp.ge.s32.totalorder %v4896_v53, 4 }
 0x652   : > { %v1965_v40 = vrot.slane %v1962_v23, 7  ;;  %v2127_v63 = vrot.slane %v2124_v35, 7  ;;  %vm7165_vm6 = vmmov %vm7164_vm8  ;;  %vm7168_vm3 = vcmp.lt.s32.totalorder %v4456_v22, 3  ;;  %vm7170_vm14 = vcmp.lt.s32.totalorder %v4456_v22, 126 }
 0x653   : > { %3240 = vrot.lane.b32.xlu0 %v3237_v48, %s4289_s24  ;;  %v3304_v19 = vld.sshfl [vmem:[#allocation1] sm:$0xff pattern:$0x75316420]  ;;  %v5996_v42 = vld.sshfl [vmem:[#allocation1 + $0x8] sm:$0xff pattern:$0x75316420]  ;;  %vm7169_vm13 = vmmov %vm7168_vm3 }
 0x654   : > { %v1966_v10 = vsel %vm455_vm11, %v1961_v51, %v1965_v40  ;;  %v2128_v60 = vsel %vm455_vm11, %v2123_v49, %v2127_v63  ;;  %v3308_v1 = vsel %vm249_vm2, %v3304_v19, 0.0  ;;  %3345 = vst [vmem:[#allocation1] ss:$2 sm:$0xff] %v3343_v32 }
 0x655   : > { %4072 = vst.msk [vmem:[%s4579_s5 + $0x42] ss:$8 sm:$0x3] %vm4582_vm12, %v1966_v10  ;;  %v2036_v41 = vpop.permute.xlu1 %2035  ;;  %v2158_v3 = vpop.permute.xlu2 %2157  ;;  %v3309_v61 = vrot.slane %v3308_v1, 4 }
 0x656   : > { %4076 = vst.msk [vmem:[%s4579_s5 + $0x46] ss:$8 sm:$0x3] %vm4582_vm12, %v2128_v60  ;;  %v2039_v29 = vsel %vm7164_vm8, %v2036_v41, %v2038_v59  ;;  %v2040_v31 = vsel %vm7165_vm6, %v2038_v59, %v2036_v41  ;;  %vm7171_vm8 = vmmov %vm7170_vm14  ;;  %vm7172_vm6 = vcmp.ge.s32.totalorder %v4896_v53, 3  ;;  %v3377_v41 = vmul.f32 %v5838_v57, %v4531_v9 }
 0x657   : > { %v2041_v36 = vsel %vm7166_vm10, %v2040_v31, 0.0  ;;  %v2042_v27 = vsel %vm7167_vm7, %v2039_v29, 0.0  ;;  %v3310_v8 = vadd.f32 %v3309_v61, %v3308_v1  ;;  %vm7173_vm10 = vcmp.lt.s32.totalorder %v4893_v12, 14 }
 0x658   : > { %v2044_v15 = vmul.f32 0.25, %v2042_v27  ;;  %v2043_v20 = vmul.f32 0.25, %v2041_v36  ;;  %vm7174_vm7 = vcmp.lt.s32.totalorder %v4896_v53, 14 }
 0x659   : > { %v3311_v17 = vrot.slane %v3310_v8, 2 }
 0x65a   : > { %v2047_v56 = vrot.slane %v2044_v15, 7 }
 0x65b   : > { %v3346_v19 = vld.sshfl [vmem:[#allocation1] sm:$0xff pattern:$0x75316420]  ;;  %v3347_v36 = vld.sshfl [vmem:[#allocation1 + $0x8] sm:$0xff pattern:$0x75316420] }
 0x65c   : > { %v2048_v59 = vsel %vm455_vm11, %v2043_v20, %v2047_v56  ;;  %3379 = vst [vmem:[#allocation1] ss:$2 sm:$0xff] %v3377_v41  ;;  %v3350_v61 = vsel %vm249_vm2, %v3346_v19, 0.0 }
 0x65d   : > { %4074 = vst.msk [vmem:[%s4579_s5 + $0x44] ss:$8 sm:$0x3] %vm4582_vm12, %v2048_v59  ;;  %v2078_v23 = vpop.permute.xlu1 %2077  ;;  %v2268_v35 = vpop.permute.xlu2 %2267  ;;  %v3351_v56 = vrot.slane %v3350_v61, 4  ;;  %v3357_v59 = vsel %vm249_vm2, %v3347_v36, 0.0 }
 0x65e   : > { %v2079_v51 = vsel %vm7168_vm3, %v5820_v44, %v2078_v23  ;;  %v2080_v40 = vsel %vm7169_vm13, %v2078_v23, %v5820_v44  ;;  %v2271_v49 = vsel %vm7170_vm14, %v2268_v35, %v5934_v13  ;;  %v2272_v63 = vsel %vm7171_vm8, %v5934_v13, %v2268_v35 }
 0x65f   : > { %v2081_v48 = vsel %vm492_vm15, %v2080_v40, 0.0  ;;  %v2082_v10 = vsel %vm7172_vm6, %v2079_v51, 0.0  ;;  %v2273_v60 = vsel %vm7173_vm10, %v2271_v49, 0.0  ;;  %v2274_v44 = vsel %vm7174_vm7, %v2272_v63, 0.0  ;;  %v6036_v63 = vpop.permute.xlu0 %2494 }
 0x660   : > { %v2083_v32 = vmul.f32 0.25, %v2081_v48  ;;  %v2084_v29 = vmul.f32 0.25, %v2082_v10  ;;  %v2276_v31 = vmul.f32 0.25, %v2274_v44  ;;  %v3312_v13 = vadd.f32 %v3311_v17, %v3310_v8 }
 0x661   : > { %v2275_v1 = vmul.f32 0.25, %v2273_v60  ;;  %v3358_v51 = vrot.slane %v3357_v59, 4  ;;  %v3352_v49 = vadd.f32 %v3351_v56, %v3350_v61  ;;  %vm7175_vm3 = vcmp.lt.s32.totalorder %v4456_v22, 1 }
 0x662   : > { %v2087_v27 = vrot.slane %v2084_v29, 7  ;;  %v2279_v15 = vrot.slane %v2276_v31, 7  ;;  %v3313_v20 = vrot.slane %v3312_v13, 1  ;;  %vm7176_vm13 = vmmov %vm7175_vm3  ;;  %vm7177_vm14 = vcmp.ge.s32.totalorder %v4893_v12, 1 }
 0x663   : > { %v3359_v60 = vadd.f32 %v3358_v51, %v3357_v59  ;;  %vm7178_vm8 = vcmp.ge.s32.totalorder %v4896_v53, 1  ;;  %v3353_v31 = vrot.slane %v3352_v49, 2  ;;  %v6052_v19 = vld.sshfl [vmem:[#allocation1] sm:$0xff pattern:$0x75316420]  ;;  %vm7179_vm6 = vcmp.ge.s32.totalorder %v4896_v53, 4 }
 0x664   : > { %v2088_v23 = vsel %vm455_vm11, %v2083_v32, %v2087_v27  ;;  %v2280_v35 = vsel %vm455_vm11, %v2275_v1, %v2279_v15  ;;  %v3314_v8 = vadd.f32 %v3313_v20, %v3312_v13  ;;  %v3419_v32 = vmul.f32 %v5838_v57, %v4545_v26  ;;  %v3381_v36 = vld.sshfl [vmem:[#allocation1 + $0x8] sm:$0xff pattern:$0x75316420] }
 0x665   : > { %4075 = vst.msk [vmem:[%s4579_s5 + $0x45] ss:$8 sm:$0x3] %vm4582_vm12, %v2088_v23  ;;  %v2156_v17 = vpop.permute.xlu1 %2155  ;;  %v6034_v40 = vpop.permute.xlu2 %2309  ;;  %v3360_v13 = vrot.slane %v3359_v60, 2  ;;  %v3391_v1 = vsel %vm249_vm2, %v3381_v36, 0.0  ;;  %vm7180_vm10 = vcmp.lt.s32.totalorder %v4890_v30, 240  ;;  %v3354_v51 = vadd.f32 %v3353_v31, %v3352_v49 }
 0x666   : > { %4080 = vst.msk [vmem:[%s4579_s5 + $0x52] ss:$8 sm:$0x3] %vm4582_vm12, %v2280_v35  ;;  %v2159_v48 = vsel %vm7175_vm3, %v2156_v17, %v2158_v3  ;;  %v2160_v10 = vsel %vm7176_vm13, %v2158_v3, %v2156_v17  ;;  %3322 = vrot.lane.b32.xlu0 %v3314_v8, %s4287_s18  ;;  %v3392_v61 = vrot.slane %v3391_v1, 4  ;;  %vm6060_vm7 = vmand %vm7180_vm10, %vm7179_vm6  ;;  %vm7183_vm3 = vcmp.lt.s32.totalorder %v4456_v22, 127 }
 0x667   : > { %v2161_v44 = vsel %vm7177_vm14, %v2160_v10, 0.0  ;;  %v2162_v41 = vsel %vm7178_vm8, %v2159_v48, 0.0  ;;  %3421 = vst [vmem:[#allocation1] ss:$2 sm:$0xff] %v3419_v32  ;;  %v3361_v15 = vadd.f32 %v3360_v13, %v3359_v60  ;;  %vm7184_vm13 = vmmov %vm7183_vm3  ;;  %vm7185_vm14 = vcmp.lt.s32.totalorder %v4456_v22, 4  ;;  %v2539_v32 = vpop.permute.xlu0 %2538 }
 0x668   : > { %v2164_v29 = vmul.f32 0.25, %v2162_v41  ;;  %v2163_v3 = vmul.f32 0.25, %v2161_v44  ;;  %v3393_v35 = vadd.f32 %v3392_v61, %v3391_v1  ;;  %vm7186_vm8 = vmmov %vm7185_vm14  ;;  %vm7187_vm6 = vcmp.lt.s32.totalorder %v4896_v53, 15 }
 0x669   : > { %v3362_v8 = vrot.slane %v3361_v15, 1  ;;  %vm7188_vm10 = vcmp.ge.s32.totalorder %v4893_v12, 4 }
 0x66a   : > { %v2167_v27 = vrot.slane %v2164_v29, 7  ;;  %v3461_v29 = vmul.f32 %v5838_v57, %v4562_v45  ;;  %v3394_v36 = vrot.slane %v3393_v35, 2 }
 0x66b   : > { %v3363_v1 = vadd.f32 %v3362_v8, %v3361_v15 }
 0x66c   : > { %v2168_v20 = vsel %vm455_vm11, %v2163_v3, %v2167_v27  ;;  %v3355_v27 = vrot.slane %v3354_v51, 1 }
 0x66d   : > { %4077 = vst.msk [vmem:[%s4579_s5 + $0x47] ss:$8 sm:$0x3] %vm4582_vm12, %v2168_v20  ;;  %v2230_v59 = vpop.permute.xlu1 %2229  ;;  %v2411_v23 = vpop.permute.xlu2 %2410 }
 0x66e   : > { %v2231_v17 = vsel %vm7183_vm3, %v5883_v55, %v2230_v59  ;;  %v2232_v48 = vsel %vm7184_vm13, %v2230_v59, %v5883_v55  ;;  %v2414_v10 = vsel %vm7185_vm14, %v2411_v23, %v5999_v39  ;;  %v2415_v60 = vsel %vm7186_vm8, %v5999_v39, %v2411_v23  ;;  %v6090_v3 = vld.sshfl [vmem:[#allocation1] sm:$0xff pattern:$0x75316420]  ;;  %v6092_v59 = vld.sshfl [vmem:[#allocation1 + $0x8] sm:$0xff pattern:$0x75316420] }
 0x66f   : > { %v2233_v49 = vsel %vm672_vm4, %v2231_v17, 0.0  ;;  %v2234_v44 = vsel %vm7187_vm6, %v2232_v48, 0.0  ;;  %v2418_v41 = vsel %vm7188_vm10, %v2415_v60, 0.0  ;;  %v2419_v55 = vsel %vm6060_vm7, %v2414_v10, 0.0  ;;  %3463 = vst [vmem:[#allocation1] ss:$2 sm:$0xff] %v3461_v29 }
 0x670   : > { %v2236_v31 = vmul.f32 0.25, %v2234_v44  ;;  %v2421_v13 = vmul.f32 0.25, %v2419_v55  ;;  %vm6914_vm3 = vcmp.lt.s32.totalorder %v4890_v30, 208  ;;  %v2235_v39 = vmul.f32 0.25, %v2233_v49 }
 0x671   : > { %v2420_v20 = vmul.f32 0.25, %v2418_v41  ;;  %v3395_v23 = vadd.f32 %v3394_v36, %v3393_v35  ;;  %v3365_v10 = vsel %vm6914_vm3, %v3363_v1, 0.0  ;;  %v3356_v49 = vadd.f32 %v3355_v27, %v3354_v51  ;;  %v6119_v1 = vpop.permute.xlu0 %2612 }
 0x672   : > { %v2239_v61 = vrot.slane %v2236_v31, 7  ;;  %v2424_v56 = vrot.slane %v2421_v13, 7  ;;  %v3367_v44 = vmul.f32 0.25, %v3365_v10  ;;  %vm7189_vm7 = vcmp.lt.s32.totalorder %v4456_v22, 125 }
 0x673   : > { %v3396_v60 = vrot.slane %v3395_v23, 1  ;;  %vm7190_vm13 = vmmov %vm7189_vm7  ;;  %v2689_v55 = vsel %vm249_vm2, %v5073_v38, 0.0  ;;  %vm7191_vm14 = vcmp.lt.s32.totalorder %v4893_v12, 13  ;;  %v3366_v36 = vmul.f32 0.25, %v3356_v49 }
 0x674   : > { %v2240_v17 = vsel %vm455_vm11, %v2235_v39, %v2239_v61  ;;  %v2425_v48 = vsel %vm455_vm11, %v2420_v20, %v2424_v56  ;;  %v2690_v39 = vrot.slane %v2689_v55, 4  ;;  %v3370_v27 = vrot.slane %v3367_v44, 7 }
 0x675   : > { %4079 = vst.msk [vmem:[%s4579_s5 + $0x51] ss:$8 sm:$0x3] %vm4582_vm12, %v2240_v17  ;;  %v2308_v15 = vpop.permute.xlu1 %2307  ;;  %v6101_v8 = vpop.permute.xlu2 %2454  ;;  %v3397_v29 = vadd.f32 %v3396_v60, %v3395_v23  ;;  %v2731_v56 = vsel %vm249_vm2, %v5084_v46, 0.0  ;;  %vm7192_vm8 = vcmp.ge.s32.totalorder %v4896_v53, 1  ;;  %vm7193_vm6 = vcmp.lt.s32.totalorder %v4890_v30, 240 }
 0x676   : > { %4083 = vst.msk [vmem:[%s4579_s5 + $0x55] ss:$8 sm:$0x3] %vm4582_vm12, %v2425_v48  ;;  %v2311_v35 = vsel %vm7189_vm7, %v2308_v15, %v6034_v40  ;;  %v2312_v41 = vsel %vm7190_vm13, %v6034_v40, %v2308_v15  ;;  %v3503_v40 = vmul.f32 %v5838_v57, %v4588_v7  ;;  %v3464_v20 = vld.sshfl [vmem:[#allocation1] sm:$0xff pattern:$0x75316420]  ;;  %v3371_v48 = vsel %vm455_vm11, %v3366_v36, %v3370_v27  ;;  %vm6134_vm10 = vmand %vm7193_vm6, %vm7192_vm8 }
 0x677   : > { %v2313_v31 = vsel %vm7191_vm14, %v2311_v35, 0.0  ;;  %v2314_v51 = vsel %vm6915_vm0, %v2312_v41, 0.0  ;;  %3400 = vrot.lane.b32.xlu0 %v3397_v29, %s4286_s16  ;;  %v6125_v23 = vld.sshfl [vmem:[#allocation1 + $0x8] sm:$0xff pattern:$0x75316420]  ;;  %v3468_v17 = vsel %vm249_vm2, %v3464_v20, 0.0  ;;  %v2691_v49 = vadd.f32 %v2690_v39, %v2689_v55 }
 0x678   : > { %v2316_v13 = vmul.f32 0.25, %v2314_v51  ;;  %v2315_v38 = vmul.f32 0.25, %v2313_v31  ;;  %3505 = vst [vmem:[#allocation1] ss:$2 sm:$0xff] %v3503_v40  ;;  %v3469_v15 = vrot.slane %v3468_v17, 4  ;;  %v2732_v44 = vrot.slane %v2731_v56, 4 }
 0x679   : > { %vm7196_vm7 = vcmp.lt.s32.totalorder %v4456_v22, 124  ;;  %vm7198_vm14 = vcmp.lt.s32.totalorder %v4456_v22, 1  ;;  %4105 = vst.msk [vmem:[%s4579_s5 + $0x83] ss:$8 sm:$0x3] %vm4582_vm12, %v3371_v48  ;;  %vm7200_vm6 = vcmp.ge.s32.totalorder %v4893_v12, 1 }
 0x67a   : > { %v2319_v61 = vrot.slane %v2316_v13, 7  ;;  %vm7197_vm13 = vmmov %vm7196_vm7  ;;  %v3470_v27 = vadd.f32 %v3469_v15, %v3468_v17  ;;  %v2692_v48 = vrot.slane %v2691_v49, 2  ;;  %vm7240_vm3 = vcmp.lt.s32.totalorder %v4456_v22, 1 }
 0x67b   : > { %vm7199_vm8 = vmmov %vm7198_vm14 }
 0x67c   : > { %v2320_v10 = vsel %vm455_vm11, %v2315_v38, %v2319_v61  ;;  %v3471_v20 = vrot.slane %v3470_v27, 2 }
 0x67d   : > { %4081 = vst.msk [vmem:[%s4579_s5 + $0x53] ss:$8 sm:$0x3] %vm4582_vm12, %v2320_v10  ;;  %v2350_v46 = vpop.permute.xlu1 %2349  ;;  %v2537_v60 = vpop.permute.xlu2 %2536  ;;  %v2733_v10 = vadd.f32 %v2732_v44, %v2731_v56 }
 0x67e   : > { %v2351_v35 = vsel %vm7196_vm7, %v5975_v4, %v2350_v46  ;;  %v2352_v41 = vsel %vm7197_vm13, %v2350_v46, %v5975_v4  ;;  %v2540_v29 = vsel %vm7198_vm14, %v2537_v60, %v2539_v32  ;;  %v2541_v31 = vsel %vm7199_vm8, %v2539_v32, %v2537_v60  ;;  %v2657_v46 = vpop.permute.xlu0 %2656 }
 0x67f   : > { %v2353_v55 = vsel %vm816_vm9, %v2351_v35, 0.0  ;;  %v2354_v51 = vsel %vm817_vm5, %v2352_v41, 0.0  ;;  %v2544_v13 = vsel %vm7200_vm6, %v2541_v31, 0.0  ;;  %v2545_v4 = vsel %vm6134_vm10, %v2540_v29, 0.0 }
 0x680   : > { %v2356_v39 = vmul.f32 0.25, %v2354_v51  ;;  %v2547_v36 = vmul.f32 0.25, %v2545_v4  ;;  %v2355_v32 = vmul.f32 0.25, %v2353_v55  ;;  %v2546_v38 = vmul.f32 0.25, %v2544_v13 }
 0x681   : > { %v6164_v41 = vld.sshfl [vmem:[#allocation1] sm:$0xff pattern:$0x75316420]  ;;  %v3507_v57 = vld.sshfl [vmem:[#allocation1 + $0x8] sm:$0xff pattern:$0x75316420]  ;;  %v3472_v56 = vadd.f32 %v3471_v20, %v3470_v27 }
 0x682   : > { %v2359_v40 = vrot.slane %v2356_v39, 7  ;;  %v2550_v61 = vrot.slane %v2547_v36, 7  ;;  %vm7201_vm10 = vcmp.ge.s32.totalorder %v4896_v53, 3  ;;  %vm7202_vm7 = vcmp.lt.s32.totalorder %v4890_v30, 240  ;;  %3544 = vst [vmem:[#allocation1] ss:$2 sm:$0xff] %v6977_v47 }
 0x683   : > { %vm6170_vm13 = vmand %vm7202_vm7, %vm7201_vm10  ;;  %vm7205_vm14 = vcmp.lt.s32.totalorder %v4896_v53, 14  ;;  %v3517_v31 = vsel %vm249_vm2, %v3507_v57, 0.0  ;;  %v2789_v55 = vsel %vm249_vm2, %v5255_v54, 0.0  ;;  %v2831_v51 = vsel %vm249_vm2, %v5299_v34, 0.0 }
 0x684   : > { %v2360_v60 = vsel %vm455_vm11, %v2355_v32, %v2359_v40  ;;  %v2551_v35 = vsel %vm455_vm11, %v2546_v38, %v2550_v61  ;;  %vm7206_vm8 = vmmov %vm7202_vm7  ;;  %vm7209_vm10 = vcmp.lt.s32.totalorder %v4456_v22, 3  ;;  %v3473_v36 = vrot.slane %v3472_v56, 1 }
 0x685   : > { %4082 = vst.msk [vmem:[%s4579_s5 + $0x54] ss:$8 sm:$0x3] %vm4582_vm12, %v2360_v60  ;;  %v2453_v15 = vpop.permute.xlu1 %2452  ;;  %vm6181_vm6 = vmand %vm7206_vm8, %vm7205_vm14  ;;  %v2655_v29 = vpop.permute.xlu2 %2654  ;;  %vm7211_vm14 = vcmp.lt.s32.totalorder %v4456_v22, 126  ;;  %v2734_v32 = vrot.slane %v2733_v10, 2  ;;  %v2790_v61 = vrot.slane %v2789_v55, 4 }
 0x686   : > { %4086 = vst.msk [vmem:[%s4579_s5 + $0x60] ss:$8 sm:$0x3] %vm4582_vm12, %v2551_v35  ;;  %v2456_v13 = vsel %vm7209_vm10, %v2453_v15, %v6101_v8  ;;  %vm7210_vm7 = vmmov %vm7209_vm10  ;;  %v2658_v39 = vsel %vm7211_vm14, %v2655_v29, %v2657_v46  ;;  %vm7213_vm10 = vcmp.lt.s32.totalorder %v4893_v12, 14  ;;  %v3474_v20 = vadd.f32 %v3473_v36, %v3472_v56 }
 0x687   : > { %v2457_v4 = vsel %vm7210_vm7, %v6101_v8, %v2453_v15  ;;  %vm7212_vm8 = vmmov %vm7211_vm14  ;;  %v2461_v27 = vsel %vm6170_vm13, %v2456_v13, 0.0  ;;  %v2662_v8 = vsel %vm7213_vm10, %v2658_v39, 0.0  ;;  %v3518_v60 = vrot.slane %v3517_v31, 4 }
 0x688   : > { %v2659_v54 = vsel %vm7212_vm8, %v2657_v46, %v2655_v29  ;;  %v2460_v34 = vsel %vm492_vm15, %v2457_v4, 0.0  ;;  %v2463_v40 = vmul.f32 0.25, %v2461_v27  ;;  %v2832_v47 = vrot.slane %v2831_v51, 4  ;;  %3482 = vrot.lane.b32.xlu0 %v3474_v20, %s4284_s15 }
 0x689   : > { %v2663_v38 = vsel %vm6181_vm6, %v2659_v54, 0.0  ;;  %v2462_v35 = vmul.f32 0.25, %v2460_v34  ;;  %v2664_v17 = vmul.f32 0.25, %v2662_v8  ;;  %v3519_v29 = vadd.f32 %v3518_v60, %v3517_v31  ;;  %v3546_v34 = vld.sshfl [vmem:[#allocation1 + $0x8] sm:$0xff pattern:$0x75316420] }
 0x68a   : > { %v2665_v46 = vmul.f32 0.25, %v2663_v38  ;;  %v2466_v57 = vrot.slane %v2463_v40, 7  ;;  %v2693_v13 = vadd.f32 %v2692_v48, %v2691_v49  ;;  %v2735_v39 = vadd.f32 %v2734_v32, %v2733_v10  ;;  %v3545_v27 = vld.sshfl [vmem:[#allocation1] sm:$0xff pattern:$0x75316420]  ;;  %3551 = vrot.lane.b32.xlu2 %v3546_v34, %s4291_s26 }
 0x68b   : > { %vm7214_vm13 = vcmp.ge.s32.totalorder %v4896_v53, 2  ;;  %vm7215_vm6 = vcmp.lt.s32.totalorder %v4890_v30, 240  ;;  %v2791_v44 = vadd.f32 %v2790_v61, %v2789_v55  ;;  %v2838_v54 = vsel %vm249_vm2, %v5301_v11, 0.0  ;;  %3549 = vrot.lane.b32.xlu1 %v3545_v27, %s4291_s26 }
 0x68c   : > { %v2668_v15 = vrot.slane %v2665_v46, 7  ;;  %v2467_v4 = vsel %vm455_vm11, %v2462_v35, %v2466_v57  ;;  %vm6218_vm7 = vmand %vm7215_vm6, %vm7214_vm13  ;;  %v3520_v48 = vrot.slane %v3519_v29, 2  ;;  %v2833_v31 = vadd.f32 %v2832_v47, %v2831_v51 }
 0x68d   : > { %4084 = vst.msk [vmem:[%s4579_s5 + $0x56] ss:$8 sm:$0x3] %vm4582_vm12, %v2467_v4  ;;  %v2497_v10 = vpop.permute.xlu1 %2496  ;;  %v2880_v36 = vsel %vm249_vm2, %v5358_v25, 0.0  ;;  %vm7218_vm14 = vcmp.lt.s32.totalorder %v4456_v22, 2  ;;  %v2694_v32 = vrot.slane %v2693_v13, 1 }
 0x68e   : > { %v2669_v49 = vsel %vm455_vm11, %v2664_v17, %v2668_v15  ;;  %v2498_v55 = vsel %vm7218_vm14, %v6036_v63, %v2497_v10  ;;  %vm7219_vm8 = vmmov %vm7218_vm14  ;;  %v3521_v51 = vadd.f32 %v3520_v48, %v3519_v29  ;;  %vm7220_vm10 = vcmp.ge.s32.totalorder %v4893_v12, 2 }
 0x68f   : > { %v2499_v11 = vsel %vm7219_vm8, %v2497_v10, %v6036_v63  ;;  %4089 = vst.msk [vmem:[%s4579_s5 + $0x63] ss:$8 sm:$0x3] %vm4582_vm12, %v2669_v49  ;;  %v2503_v40 = vsel %vm6218_vm7, %v2498_v55, 0.0  ;;  %v2736_v8 = vrot.slane %v2735_v39, 1  ;;  %v2792_v61 = vrot.slane %v2791_v44, 2 }
 0x690   : > { %v2502_v25 = vsel %vm7220_vm10, %v2499_v11, 0.0  ;;  %v2505_v38 = vmul.f32 0.25, %v2503_v40  ;;  %v2839_v63 = vrot.slane %v2838_v54, 4  ;;  %v3522_v20 = vrot.slane %v3521_v51, 1  ;;  %vm7226_vm10 = vmmov %vm7215_vm6 }
 0x691   : > { %v2834_v46 = vrot.slane %v2833_v31, 2  ;;  %v2881_v60 = vrot.slane %v2880_v36, 4  ;;  %v2504_v47 = vmul.f32 0.25, %v2502_v25  ;;  %v2695_v17 = vadd.f32 %v2694_v32, %v2693_v13 }
 0x692   : > { %v2508_v35 = vrot.slane %v2505_v38, 7  ;;  %v3523_v57 = vadd.f32 %v3522_v20, %v3521_v51  ;;  %v2737_v15 = vadd.f32 %v2736_v8, %v2735_v39  ;;  %v2793_v4 = vadd.f32 %v2792_v61, %v2791_v44 }
 0x693   : > { %vm7221_vm13 = vcmp.lt.s32.totalorder %v4896_v53, 15  ;;  %v2840_v49 = vadd.f32 %v2839_v63, %v2838_v54  ;;  %v2835_v48 = vadd.f32 %v2834_v46, %v2833_v31  ;;  %v2882_v39 = vadd.f32 %v2881_v60, %v2880_v36  ;;  %2698 = vrot.lane.b32.xlu2 %v2695_v17, %s4284_s15 }
 0x694   : > { %v2509_v29 = vsel %vm455_vm11, %v2504_v47, %v2508_v35  ;;  %vm6250_vm7 = vmand %vm7215_vm6, %vm7221_vm13  ;;  %3526 = vrot.lane.b32.xlu0 %v3523_v57, %s4283_s29  ;;  %v2915_v44 = vsel %vm249_vm2, %v5399_v24, 0.0  ;;  %v2991_v10 = vsel %vm249_vm2, %v5478_v50, 0.0  ;;  %vm7224_vm14 = vcmp.lt.s32.totalorder %v4456_v22, 127  ;;  %2740 = vrot.lane.b32.xlu1 %v2737_v15, %s4283_s29 }
 0x695   : > { %4085 = vst.msk [vmem:[%s4579_s5 + $0x57] ss:$8 sm:$0x3] %vm4582_vm12, %v2509_v29  ;;  %v2615_v13 = vpop.permute.xlu1 %2614  ;;  %vm7225_vm8 = vmmov %vm7224_vm14  ;;  %v2794_v50 = vrot.slane %v2793_v4, 1  ;;  %v2916_v27 = vrot.slane %v2915_v44, 4  ;;  %v2992_v55 = vrot.slane %v2991_v10, 4 }
 0x696   : > { %v2616_v34 = vsel %vm7224_vm14, %v6119_v1, %v2615_v13  ;;  %v2617_v54 = vsel %vm7225_vm8, %v2615_v13, %v6119_v1  ;;  %v2836_v11 = vrot.slane %v2835_v48, 1  ;;  %v2841_v51 = vrot.slane %v2840_v49, 2  ;;  %vm2703_vm13 = vmand %vm7226_vm10, %vm6915_vm0 }
 0x697   : > { %v2620_v31 = vsel %vm672_vm4, %v2616_v34, 0.0  ;;  %v2621_v24 = vsel %vm6250_vm7, %v2617_v54, 0.0  ;;  %v2883_v32 = vrot.slane %v2882_v39, 2  ;;  %v2795_v40 = vadd.f32 %v2794_v50, %v2793_v4 }
 0x698   : > { %v2623_v36 = vmul.f32 0.25, %v2621_v24  ;;  %v2622_v25 = vmul.f32 0.25, %v2620_v31  ;;  %v2917_v38 = vadd.f32 %v2916_v27, %v2915_v44  ;;  %v2993_v61 = vadd.f32 %v2992_v55, %v2991_v10 }
 0x699   : > { %v2837_v63 = vadd.f32 %v2836_v11, %v2835_v48  ;;  %v2842_v20 = vadd.f32 %v2841_v51, %v2840_v49  ;;  %v2884_v46 = vadd.f32 %v2883_v32, %v2882_v39  ;;  %v2998_v60 = vsel %vm249_vm2, %v5480_v21, 0.0 }
 0x69a   : > { %v2626_v1 = vrot.slane %v2623_v36, 7  ;;  %v3040_v47 = vsel %vm249_vm2, %v5524_v18, 0.0  ;;  %v2918_v35 = vrot.slane %v2917_v38, 2  ;;  %v2994_v57 = vrot.slane %v2993_v61, 2 }
 0x69b   : > { %2803 = vrot.lane.b32.xlu2 %v2795_v40, %s4290_s25  ;;  %v2999_v17 = vrot.slane %v2998_v60, 4  ;;  %v2843_v15 = vrot.slane %v2842_v20, 1  ;;  %v2885_v29 = vrot.slane %v2884_v46, 1  ;;  %v3041_v4 = vrot.slane %v3040_v47, 4 }
 0x69c   : > { %v2627_v8 = vsel %vm455_vm11, %v2622_v25, %v2626_v1  ;;  %2845 = vrot.lane.b32.xlu1 %v2837_v63, %s4289_s24  ;;  %v2919_v56 = vadd.f32 %v2918_v35, %v2917_v38  ;;  %v2995_v48 = vadd.f32 %v2994_v57, %v2993_v61  ;;  %v3075_v21 = vsel %vm249_vm2, %v5560_v14, 0.0 }
 0x69d   : > { %4088 = vst.msk [vmem:[%s4579_s5 + $0x62] ss:$8 sm:$0x3] %vm4582_vm12, %v2627_v8  ;;  %v3000_v49 = vadd.f32 %v2999_v17, %v2998_v60  ;;  %v2844_v13 = vadd.f32 %v2843_v15, %v2842_v20  ;;  %v2886_v39 = vadd.f32 %v2885_v29, %v2884_v46  ;;  %v3042_v44 = vadd.f32 %v3041_v4, %v3040_v47 }
 0x69e   : > { %v3117_v18 = vsel %vm249_vm2, %v5609_v16, 0.0  ;;  %v2920_v10 = vrot.slane %v2919_v56, 1  ;;  %v2996_v34 = vrot.slane %v2995_v48, 1  ;;  %v3076_v31 = vrot.slane %v3075_v21, 4 }
 0x69f   : > { %v3001_v54 = vrot.slane %v3000_v49, 2  ;;  %v3043_v24 = vrot.slane %v3042_v44, 2  ;;  %v3118_v50 = vrot.slane %v3117_v18, 4  ;;  %v3124_v14 = vsel %vm249_vm2, %v5611_v37, 0.0 }
 0x6a0   : > { %v2921_v36 = vadd.f32 %v2920_v10, %v2919_v56  ;;  %v2997_v27 = vadd.f32 %v2996_v34, %v2995_v48  ;;  %v3077_v11 = vadd.f32 %v3076_v31, %v3075_v21  ;;  %v3189_v16 = vsel %vm249_vm2, %v5868_v5, 0.0 }
 0x6a1   : > { %v3002_v55 = vadd.f32 %v3001_v54, %v3000_v49  ;;  %v3044_v51 = vadd.f32 %v3043_v24, %v3042_v44  ;;  %v3119_v32 = vadd.f32 %v3118_v50, %v3117_v18  ;;  %v3125_v1 = vrot.slane %v3124_v14, 4 }
 0x6a2   : > { %v3078_v25 = vrot.slane %v3077_v11, 2  ;;  %v3190_v40 = vrot.slane %v3189_v16, 4  ;;  %v3266_v37 = vsel %vm249_vm2, %v5963_v6, 0.0  ;;  %v3224_v5 = vsel %vm249_vm2, %v5915_v62, 0.0 }
 0x6a3   : > { %2847 = vrot.lane.b32.xlu2 %v2844_v13, %s4289_s24  ;;  %v3003_v8 = vrot.slane %v3002_v55, 1  ;;  %v3045_v38 = vrot.slane %v3044_v51, 1  ;;  %v3120_v61 = vrot.slane %v3119_v32, 2  ;;  %v3126_v20 = vadd.f32 %v3125_v1, %v3124_v14 }
 0x6a4   : > { %2889 = vrot.lane.b32.xlu1 %v2886_v39, %s4288_s23  ;;  %v3079_v63 = vadd.f32 %v3078_v25, %v3077_v11  ;;  %v3191_v46 = vadd.f32 %v3190_v40, %v3189_v16  ;;  %v3267_v4 = vrot.slane %v3266_v37, 4  ;;  %v3225_v56 = vrot.slane %v3224_v5, 4 }
 0x6a5   : > { %v3004_v60 = vadd.f32 %v3003_v8, %v3002_v55  ;;  %v3046_v47 = vadd.f32 %v3045_v38, %v3044_v51  ;;  %v3121_v35 = vadd.f32 %v3120_v61, %v3119_v32  ;;  %v3127_v17 = vrot.slane %v3126_v20, 2 }
 0x6a6   : > { %v3080_v57 = vrot.slane %v3079_v63, 1  ;;  %v3192_v15 = vrot.slane %v3191_v46, 2  ;;  %v3268_v44 = vadd.f32 %v3267_v4, %v3266_v37  ;;  %v3226_v21 = vadd.f32 %v3225_v56, %v3224_v5 }
 0x6a7   : > { %v3122_v29 = vrot.slane %v3121_v35, 1  ;;  %v3128_v49 = vadd.f32 %v3127_v17, %v3126_v20  ;;  %v3273_v6 = vsel %vm249_vm2, %v5965_v28, 0.0  ;;  %v3315_v62 = vsel %vm249_vm2, %v5996_v42, 0.0 }
 0x6a8   : > { %v3081_v48 = vadd.f32 %v3080_v57, %v3079_v63  ;;  %v3193_v13 = vadd.f32 %v3192_v15, %v3191_v46  ;;  %v3274_v34 = vrot.slane %v3273_v6, 4  ;;  %v3269_v54 = vrot.slane %v3268_v44, 2 }
 0x6a9   : > { %v3123_v39 = vadd.f32 %v3122_v29, %v3121_v35  ;;  %v3129_v18 = vrot.slane %v3128_v49, 1  ;;  %v3227_v31 = vrot.slane %v3226_v21, 2  ;;  %v3316_v24 = vrot.slane %v3315_v62, 4 }
 0x6aa   : > { %v3194_v10 = vrot.slane %v3193_v13, 1  ;;  %v3270_v55 = vadd.f32 %v3269_v54, %v3268_v44  ;;  %v3384_v28 = vsel %vm249_vm2, %v6052_v19, 0.0  ;;  %v3426_v42 = vsel %vm249_vm2, %v6090_v3, 0.0 }
 0x6ab   : > { %2929 = vrot.lane.b32.xlu2 %v2921_v36, %s4287_s18  ;;  %v3130_v50 = vadd.f32 %v3129_v18, %v3128_v49  ;;  %v3228_v11 = vadd.f32 %v3227_v31, %v3226_v21  ;;  %v3317_v51 = vadd.f32 %v3316_v24, %v3315_v62  ;;  %v3385_v14 = vrot.slane %v3384_v28, 4 }
 0x6ac   : > { %3005 = vrot.lane.b32.xlu1 %v2997_v27, %s4286_s16  ;;  %v3195_v36 = vadd.f32 %v3194_v10, %v3193_v13  ;;  %v3275_v27 = vadd.f32 %v3274_v34, %v3273_v6  ;;  %v3271_v16 = vrot.slane %v3270_v55, 1  ;;  %v3427_v40 = vrot.slane %v3426_v42, 4 }
 0x6ad   : > { %v3229_v25 = vrot.slane %v3228_v11, 1  ;;  %v3318_v1 = vrot.slane %v3317_v51, 2  ;;  %v3386_v38 = vadd.f32 %v3385_v14, %v3384_v28  ;;  %v3475_v19 = vsel %vm249_vm2, %v6125_v23, 0.0  ;;  %v2697_v28 = vpop.permute.xlu1 %2696 }
 0x6ae   : > { %v3276_v32 = vrot.slane %v3275_v27, 2  ;;  %v3272_v61 = vadd.f32 %v3271_v16, %v3270_v55  ;;  %v3428_v46 = vadd.f32 %v3427_v40, %v3426_v42  ;;  %v3433_v3 = vsel %vm249_vm2, %v6092_v59, 0.0 }
 0x6af   : > { %v3230_v63 = vadd.f32 %v3229_v25, %v3228_v11  ;;  %v3319_v20 = vadd.f32 %v3318_v1, %v3317_v51  ;;  %v3476_v5 = vrot.slane %v3475_v19, 4  ;;  %v3434_v57 = vrot.slane %v3433_v3, 4 }
 0x6b0   : > { %v3277_v8 = vadd.f32 %v3276_v32, %v3275_v27  ;;  %v3429_v37 = vrot.slane %v3428_v46, 2  ;;  %v3510_v23 = vsel %vm249_vm2, %v6164_v41, 0.0  ;;  %vm7227_vm6 = vcmp.lt.s32.totalorder %v4456_v22, 125 }
 0x6b1   : > { %v3320_v35 = vrot.slane %v3319_v20, 1  ;;  %v3477_v56 = vadd.f32 %v3476_v5, %v3475_v19  ;;  %v3511_v44 = vrot.slane %v3510_v23, 4  ;;  %vm7228_vm7 = vmmov %vm7227_vm6  ;;  %vm7229_vm14 = vcmp.lt.s32.totalorder %v4893_v12, 13 }
 0x6b2   : > { %v3430_v4 = vadd.f32 %v3429_v37, %v3428_v46  ;;  %vm7230_vm8 = vcmp.ge.s32.totalorder %v4896_v53, 4 }
 0x6b3   : > { %3007 = vrot.lane.b32.xlu2 %v3004_v60, %s4286_s16  ;;  %v3278_v60 = vrot.slane %v3277_v8, 1  ;;  %v3321_v29 = vadd.f32 %v3320_v35, %v3319_v20  ;;  %v3478_v13 = vrot.slane %v3477_v56, 2  ;;  %v3512_v10 = vadd.f32 %v3511_v44, %v3510_v23  ;;  %vm2810_vm10 = vmand %vm2773_vm1, %vm7230_vm8 }
 0x6b4   : > { %3049 = vrot.lane.b32.xlu1 %v3046_v47, %s4285_s19  ;;  %v3387_v47 = vrot.slane %v3386_v38, 2  ;;  %v3431_v49 = vrot.slane %v3430_v4, 1 }
 0x6b5   : > { %v3279_v17 = vadd.f32 %v3278_v60, %v3277_v8  ;;  %v3479_v62 = vadd.f32 %v3478_v13, %v3477_v56  ;;  %v3513_v54 = vrot.slane %v3512_v10, 2 }
 0x6b6   : > { %v3388_v15 = vadd.f32 %v3387_v47, %v3386_v38  ;;  %v3432_v6 = vadd.f32 %v3431_v49, %v3430_v4 }
 0x6b7   : > { %v3480_v34 = vrot.slane %v3479_v62, 1 }
 0x6b8   : > { %v3389_v59 = vrot.slane %v3388_v15, 1 }
 0x6b9   : > { %v3481_v31 = vadd.f32 %v3480_v34, %v3479_v62 }
 0x6ba   : > { %v3390_v21 = vadd.f32 %v3389_v59, %v3388_v15 }
 0x6bb   : > { %3089 = vrot.lane.b32.xlu2 %v3081_v48, %s4284_s15  ;;  %v3435_v48 = vadd.f32 %v3434_v57, %v3433_v3 }
 0x6bc   : > { %3131 = vrot.lane.b32.xlu1 %v3123_v39, %s4283_s29 }
 0x6bd   : > { %v3436_v39 = vrot.slane %v3435_v48, 2 }
 0x6bf   : > { %v3437_v18 = vadd.f32 %v3436_v39, %v3435_v48 }
 0x6c1   : > { %v3438_v41 = vrot.slane %v3437_v18, 1 }
 0x6c3   : > { %3133 = vrot.lane.b32.xlu2 %v3130_v50, %s4283_s29  ;;  %v3439_v24 = vadd.f32 %v3438_v41, %v3437_v18  ;;  %v3514_v50 = vadd.f32 %v3513_v54, %v3512_v10 }
 0x6c4   : > { %3198 = vrot.lane.b32.xlu1 %v3195_v36, %s4290_s25  ;;  %v2739_v36 = vpop.permute.xlu0 %2738 }
 0x6c5   : > { %v3515_v55 = vrot.slane %v3514_v50, 1 }
 0x6c7   : > { %v3516_v11 = vadd.f32 %v3515_v55, %v3514_v50 }
 0x6cb   : > { %3238 = vrot.lane.b32.xlu2 %v3230_v63, %s4289_s24 }
 0x6cc   : > { %3280 = vrot.lane.b32.xlu1 %v3272_v61, %s4288_s23  ;;  %v2806_v51 = vpop.permute.xlu0 %2805 }
 0x6d3   : > { %3282 = vrot.lane.b32.xlu2 %v3279_v17, %s4288_s23 }
 0x6d4   : > { %3324 = vrot.lane.b32.xlu1 %v3321_v29, %s4287_s18  ;;  %v6339_v38 = vpop.permute.xlu0 %2887 }
 0x6db   : > { %3398 = vrot.lane.b32.xlu2 %v3390_v21, %s4286_s16 }
 0x6dc   : > { %3440 = vrot.lane.b32.xlu1 %v3432_v6, %s4285_s19  ;;  %v2932_v17 = vpop.permute.xlu0 %2931 }
 0x6e3   : > { %3442 = vrot.lane.b32.xlu2 %v3439_v24, %s4285_s19 }
 0x6e4   : > { %3484 = vrot.lane.b32.xlu1 %v3481_v31, %s4284_s15  ;;  %v3552_v27 = vpop.permute.xlu2 %3551  ;;  %v6376_v49 = vpop.permute.xlu0 %3047 }
 0x6eb   : > { %3524 = vrot.lane.b32.xlu2 %v3516_v11, %s4283_s29 }
 0x6ed   : > { %v2699_v42 = vpop.permute.xlu2 %2698 }
 0x6ee   : > { %v2700_v32 = vsel %vm7227_vm6, %v2697_v28, %v2699_v42  ;;  %v2701_v14 = vsel %vm7228_vm7, %v2699_v42, %v2697_v28  ;;  %vm7231_vm6 = vcmp.lt.s32.totalorder %v4456_v22, 4  ;;  %vm7233_vm7 = vcmp.ge.s32.totalorder %v4893_v12, 4 }
 0x6ef   : > { %v2704_v16 = vsel %vm7229_vm14, %v2700_v32, 0.0  ;;  %v2705_v25 = vsel %vm2703_vm13, %v2701_v14, 0.0  ;;  %vm7232_vm13 = vmmov %vm7231_vm6  ;;  %vm7234_vm14 = vcmp.lt.s32.totalorder %v4456_v22, 64 }
 0x6f0   : > { %v2707_v1 = vmul.f32 0.25, %v2705_v25  ;;  %v2706_v40 = vmul.f32 0.25, %v2704_v16  ;;  %vm7235_vm8 = vmmov %vm7234_vm14 }
 0x6f2   : > { %v2710_v8 = vrot.slane %v2707_v1, 7 }
 0x6f4   : > { %v2711_v61 = vsel %vm455_vm11, %v2706_v40, %v2710_v8 }
 0x6f5   : > { %4090 = vst.msk [vmem:[%s4579_s5 + $0x64] ss:$8 sm:$0x3] %vm4582_vm12, %v2711_v61  ;;  %v2804_v63 = vpop.permute.xlu2 %2803 }
 0x6f6   : > { %v2807_v20 = vsel %vm7231_vm6, %v2804_v63, %v2806_v51  ;;  %v2808_v46 = vsel %vm7232_vm13, %v2806_v51, %v2804_v63  ;;  %vm7237_vm13 = vcmp.ge.s32.totalorder %v4896_v53, 1 }
 0x6f7   : > { %v2811_v19 = vsel %vm7233_vm7, %v2808_v46, 0.0  ;;  %v2812_v3 = vsel %vm2810_vm10, %v2807_v20, 0.0  ;;  %vm7236_vm10 = vcmp.lt.s32.totalorder %v4890_v30, 240  ;;  %vm2936_vm7 = vmand %vm2773_vm1, %vm7237_vm13  ;;  %vm7242_vm13 = vcmp.ge.s32.totalorder %v4893_v12, 1  ;;  %v3092_v20 = vpop.permute.xlu0 %3091 }
 0x6f8   : > { %v2814_v60 = vmul.f32 0.25, %v2812_v3  ;;  %v2813_v47 = vmul.f32 0.25, %v2811_v19  ;;  %vm2745_vm6 = vmand %vm7236_vm10, %vm817_vm5 }
 0x6f9   : > { %vm7241_vm10 = vmmov %vm7240_vm3 }
 0x6fa   : > { %v2817_v35 = vrot.slane %v2814_v60, 7 }
 0x6fc   : > { %v2818_v37 = vsel %vm455_vm11, %v2813_v47, %v2817_v35 }
 0x6fd   : > { %4092 = vst.msk [vmem:[%s4579_s5 + $0x66] ss:$8 sm:$0x3] %vm4582_vm12, %v2818_v37  ;;  %v3550_v5 = vpop.permute.xlu1 %3549  ;;  %v2848_v57 = vpop.permute.xlu2 %2847 }
 0x6fe   : > { %v3554_v15 = vsel %vm7234_vm14, %v3552_v27, %v3550_v5  ;;  %v3553_v4 = vsel %vm7235_vm8, %v3550_v5, %v3552_v27  ;;  %vm7238_vm14 = vcmp.lt.s32.totalorder %v4456_v22, 124 }
 0x6ff   : > { %v3564_v29 = vrot.slane %v3554_v15, 4  ;;  %vm7239_vm8 = vmmov %vm7238_vm14 }
 0x701   : > { %v6364_v56 = vsel %vm249_vm2, %v3553_v4, %v3564_v29 }
 0x702   : > { %v3567_v48 = vmul.f32 %v6364_v56, %v4470_v33  ;;  %v3609_v41 = vmul.f32 %v6364_v56, %v4485_v43  ;;  %v3651_v60 = vmul.f32 %v6364_v56, %v4499_v52 }
 0x704   : > { %3569 = vst [vmem:[#allocation1] ss:$2 sm:$0xff] %v3567_v48 }
 0x705   : > { %v2930_v59 = vpop.permute.xlu2 %2929 }
 0x706   : > { %v2741_v23 = vpop.permute.xlu1 %2740  ;;  %v2933_v39 = vsel %vm7240_vm3, %v2930_v59, %v2932_v17  ;;  %v2934_v44 = vsel %vm7241_vm10, %v2932_v17, %v2930_v59  ;;  %vm7243_vm3 = vcmp.ge.s32.totalorder %v4896_v53, 3 }
 0x707   : > { %v2742_v13 = vsel %vm7238_vm14, %v2739_v36, %v2741_v23  ;;  %v2743_v33 = vsel %vm7239_vm8, %v2741_v23, %v2739_v36  ;;  %v2937_v62 = vsel %vm7242_vm13, %v2934_v44, 0.0  ;;  %v2938_v18 = vsel %vm2936_vm7, %v2933_v39, 0.0  ;;  %vm6435_vm13 = vmand %vm2773_vm1, %vm6915_vm0 }
 0x708   : > { %v2746_v21 = vsel %vm816_vm9, %v2742_v13, 0.0  ;;  %v2747_v6 = vsel %vm2745_vm6, %v2743_v33, 0.0  ;;  %v2940_v34 = vmul.f32 0.25, %v2938_v18  ;;  %v2939_v24 = vmul.f32 0.25, %v2937_v62  ;;  %vm6398_vm6 = vmand %vm2773_vm1, %vm7243_vm3 }
 0x709   : > { %v2749_v10 = vmul.f32 0.25, %v2747_v6  ;;  %v2748_v54 = vmul.f32 0.25, %v2746_v21  ;;  %vm7246_vm7 = vcmp.lt.s32.totalorder %v4456_v22, 3  ;;  %vm7248_vm8 = vcmp.ge.s32.totalorder %v4896_v53, 2 }
 0x70a   : > { %v2943_v50 = vrot.slane %v2940_v34, 7  ;;  %vm7247_vm14 = vmmov %vm7246_vm7  ;;  %vm7253_vm3 = vcmp.lt.s32.totalorder %v4456_v22, 2  ;;  %vm7258_vm0 = vcmp.lt.s32.totalorder %v4893_v12, 13 }
 0x70b   : > { %v2752_v31 = vrot.slane %v2749_v10, 7  ;;  %v3571_v36 = vld.sshfl [vmem:[#allocation1 + $0x8] sm:$0xff pattern:$0x75316420]  ;;  %vm6426_vm10 = vmand %vm2773_vm1, %vm7248_vm8  ;;  %vm7257_vm8 = vcmp.ge.s32.totalorder %v4893_v12, 2 }
 0x70c   : > { %v3570_v27 = vld.sshfl [vmem:[#allocation1] sm:$0xff pattern:$0x75316420]  ;;  %v2944_v11 = vsel %vm455_vm11, %v2939_v24, %v2943_v50  ;;  %v3581_v43 = vsel %vm249_vm2, %v3571_v36, 0.0 }
 0x70d   : > { %v2753_v55 = vsel %vm455_vm11, %v2748_v54, %v2752_v31  ;;  %v3574_v28 = vsel %vm249_vm2, %v3570_v27, 0.0  ;;  %3611 = vst [vmem:[#allocation1] ss:$2 sm:$0xff] %v3609_v41  ;;  %v6407_v32 = vpop.permute.xlu2 %3007  ;;  %v3582_v14 = vrot.slane %v3581_v43, 4  ;;  %v6462_v54 = vpop.permute.xlu0 %3196 }
 0x70e   : > { %4091 = vst.msk [vmem:[%s4579_s5 + $0x65] ss:$8 sm:$0x3] %vm4582_vm12, %v2753_v55  ;;  %v2846_v42 = vpop.permute.xlu1 %2845  ;;  %v3575_v16 = vrot.slane %v3574_v28, 4 }
 0x70f   : > { %4095 = vst.msk [vmem:[%s4579_s5 + $0x71] ss:$8 sm:$0x3] %vm4582_vm12, %v2944_v11  ;;  %v2849_v25 = vsel %vm7246_vm7, %v2846_v42, %v2848_v57  ;;  %v2850_v1 = vsel %vm7247_vm14, %v2848_v57, %v2846_v42  ;;  %v3583_v61 = vadd.f32 %v3582_v14, %v3581_v43  ;;  %vm7255_vm7 = vcmp.lt.s32.totalorder %v4456_v22, 125 }
 0x710   : > { %v2853_v40 = vsel %vm492_vm15, %v2850_v1, 0.0  ;;  %v2854_v8 = vsel %vm6398_vm6, %v2849_v25, 0.0  ;;  %v3576_v63 = vadd.f32 %v3575_v16, %v3574_v28  ;;  %vm7254_vm6 = vmmov %vm7253_vm3  ;;  %v3693_v16 = vmul.f32 %v6364_v56, %v4510_v58 }
 0x711   : > { %v2856_v46 = vmul.f32 0.25, %v2854_v8  ;;  %v3584_v19 = vrot.slane %v3583_v61, 2  ;;  %v2855_v47 = vmul.f32 0.25, %v2853_v40  ;;  %vm7256_vm14 = vmmov %vm7255_vm7 }
 0x712   : > { %v3577_v3 = vrot.slane %v3576_v63, 2 }
 0x713   : > { %v2859_v35 = vrot.slane %v2856_v46, 7  ;;  %v3585_v5 = vadd.f32 %v3584_v19, %v3583_v61 }
 0x714   : > { %v3578_v57 = vadd.f32 %v3577_v3, %v3576_v63  ;;  %v3613_v17 = vld.sshfl [vmem:[#allocation1 + $0x8] sm:$0xff pattern:$0x75316420]  ;;  %v3612_v15 = vld.sshfl [vmem:[#allocation1] sm:$0xff pattern:$0x75316420] }
 0x715   : > { %v2860_v29 = vsel %vm455_vm11, %v2855_v47, %v2859_v35  ;;  %v3623_v4 = vsel %vm249_vm2, %v3613_v17, 0.0  ;;  %v3616_v48 = vsel %vm249_vm2, %v3612_v15, 0.0  ;;  %3653 = vst [vmem:[#allocation1] ss:$2 sm:$0xff] %v3651_v60  ;;  %v3090_v59 = vpop.permute.xlu2 %3089  ;;  %v3586_v13 = vrot.slane %v3585_v5, 1 }
 0x716   : > { %4093 = vst.msk [vmem:[%s4579_s5 + $0x67] ss:$8 sm:$0x3] %vm4582_vm12, %v2860_v29  ;;  %v2890_v23 = vpop.permute.xlu1 %2889  ;;  %v3579_v33 = vrot.slane %v3578_v57, 1  ;;  %v3624_v39 = vrot.slane %v3623_v4, 4  ;;  %v3093_v6 = vsel %vm7255_vm7, %v3090_v59, %v3092_v20  ;;  %v3094_v62 = vsel %vm7256_vm14, %v3092_v20, %v3090_v59 }
 0x717   : > { %v2891_v44 = vsel %vm7253_vm3, %v6339_v38, %v2890_v23  ;;  %v2892_v21 = vsel %vm7254_vm6, %v2890_v23, %v6339_v38  ;;  %v3097_v34 = vsel %vm7258_vm0, %v3093_v6, 0.0  ;;  %v3098_v41 = vsel %vm6435_vm13, %v3094_v62, 0.0  ;;  %v3241_v23 = vpop.permute.xlu0 %3240 }
 0x718   : > { %v2895_v18 = vsel %vm7257_vm8, %v2892_v21, 0.0  ;;  %v2896_v10 = vsel %vm6426_vm10, %v2891_v44, 0.0  ;;  %v3100_v31 = vmul.f32 0.25, %v3098_v41  ;;  %v3587_v24 = vadd.f32 %v3586_v13, %v3585_v5 }
 0x719   : > { %v2898_v38 = vmul.f32 0.25, %v2896_v10  ;;  %v3580_v50 = vadd.f32 %v3579_v33, %v3578_v57  ;;  %v3625_v36 = vadd.f32 %v3624_v39, %v3623_v4  ;;  %v3617_v27 = vrot.slane %v3616_v48, 4 }
 0x71a   : > { %v2897_v55 = vmul.f32 0.25, %v2895_v18  ;;  %v3099_v51 = vmul.f32 0.25, %v3097_v34  ;;  %v3103_v43 = vrot.slane %v3100_v31, 7  ;;  %3590 = vrot.lane.b32.xlu2 %v3587_v24, %s4290_s25  ;;  %vm7259_vm0 = vcmp.lt.s32.totalorder %v4896_v53, 15 }
 0x71b   : > { %v2901_v11 = vrot.slane %v2898_v38, 7  ;;  %3588 = vrot.lane.b32.xlu1 %v3580_v50, %s4290_s25  ;;  %v3626_v28 = vrot.slane %v3625_v36, 2  ;;  %v3618_v42 = vadd.f32 %v3617_v27, %v3616_v48  ;;  %vm6474_vm10 = vmand %vm2773_vm1, %vm7259_vm0  ;;  %vm7262_vm13 = vcmp.lt.s32.totalorder %v4456_v22, 127 }
 0x71c   : > { %v3654_v14 = vld.sshfl [vmem:[#allocation1] sm:$0xff pattern:$0x75316420]  ;;  %v3104_v1 = vsel %vm455_vm11, %v3099_v51, %v3103_v43  ;;  %v3655_v61 = vld.sshfl [vmem:[#allocation1 + $0x8] sm:$0xff pattern:$0x75316420]  ;;  %vm7263_vm3 = vmmov %vm7262_vm13  ;;  %v3735_v62 = vmul.f32 %v6364_v56, %v4423_v0 }
 0x71d   : > { %v2902_v25 = vsel %vm455_vm11, %v2897_v55, %v2901_v11  ;;  %v3658_v8 = vsel %vm249_vm2, %v3654_v14, 0.0  ;;  %v6482_v58 = vpop.permute.xlu2 %3133  ;;  %v3627_v20 = vadd.f32 %v3626_v28, %v3625_v36  ;;  %v3619_v46 = vrot.slane %v3618_v42, 2  ;;  %4099 = vst.msk [vmem:[%s4579_s5 + $0x75] ss:$8 sm:$0x3] %vm4582_vm12, %v3104_v1 }
 0x71e   : > { %4094 = vst.msk [vmem:[%s4579_s5 + $0x70] ss:$8 sm:$0x3] %vm4582_vm12, %v2902_v25  ;;  %v3006_v63 = vpop.permute.xlu1 %3005  ;;  %v3659_v19 = vrot.slane %v3658_v8, 4  ;;  %v3665_v3 = vsel %vm249_vm2, %v3655_v61, 0.0  ;;  %vm7264_vm6 = vcmp.lt.s32.totalorder %v4896_v53, 14 }
 0x71f   : > { %v3009_v60 = vsel %vm7262_vm13, %v3006_v63, %v6407_v32  ;;  %v3010_v47 = vsel %vm7263_vm3, %v6407_v32, %v3006_v63  ;;  %v3666_v35 = vrot.slane %v3665_v3, 4  ;;  %v3628_v57 = vrot.slane %v3627_v20, 1  ;;  %3695 = vst [vmem:[#allocation1] ss:$2 sm:$0xff] %v3693_v16  ;;  %vm6503_vm7 = vmand %vm2773_vm1, %vm7264_vm6  ;;  %v6542_v40 = vpop.permute.xlu0 %3322 }
 0x720   : > { %v3013_v37 = vsel %vm672_vm4, %v3009_v60, 0.0  ;;  %v3014_v5 = vsel %vm6474_vm10, %v3010_v47, 0.0  ;;  %v3620_v17 = vadd.f32 %v3619_v46, %v3618_v42  ;;  %v3660_v29 = vadd.f32 %v3659_v19, %v3658_v8 }
 0x721   : > { %v3016_v15 = vmul.f32 0.25, %v3014_v5  ;;  %v3667_v52 = vadd.f32 %v3666_v35, %v3665_v3  ;;  %v3629_v4 = vadd.f32 %v3628_v57, %v3627_v20  ;;  %v3015_v59 = vmul.f32 0.25, %v3013_v37 }
 0x722   : > { %v3621_v48 = vrot.slane %v3620_v17, 1  ;;  %v3661_v32 = vrot.slane %v3660_v29, 2  ;;  %vm7267_vm14 = vcmp.ge.s32.totalorder %v4896_v53, 3  ;;  %vm7268_vm8 = vcmp.lt.s32.totalorder %v4890_v30, 208 }
 0x723   : > { %v3019_v13 = vrot.slane %v3016_v15, 7  ;;  %v3668_v33 = vrot.slane %v3667_v52, 2  ;;  %3632 = vrot.lane.b32.xlu1 %v3629_v4, %s4289_s24  ;;  %vm6512_vm0 = vmand %vm7268_vm8, %vm7267_vm14  ;;  %vm7271_vm10 = vcmp.lt.s32.totalorder %v4456_v22, 126  ;;  %vm7273_vm3 = vcmp.lt.s32.totalorder %v4456_v22, 3 }
 0x724   : > { %v3622_v39 = vadd.f32 %v3621_v48, %v3620_v17  ;;  %v3662_v34 = vadd.f32 %v3661_v32, %v3660_v29  ;;  %vm7272_vm13 = vmmov %vm7271_vm10  ;;  %vm7275_vm14 = vcmp.lt.s32.totalorder %v4893_v12, 14  ;;  %v3769_v4 = vmul.f32 %v6364_v56, %v4531_v9 }
 0x725   : > { %v3020_v21 = vsel %vm455_vm11, %v3015_v59, %v3019_v13  ;;  %v3239_v10 = vpop.permute.xlu2 %3238  ;;  %v3669_v41 = vadd.f32 %v3668_v33, %v3667_v52  ;;  %vm7274_vm6 = vmmov %vm7273_vm3 }
 0x726   : > { %4097 = vst.msk [vmem:[%s4579_s5 + $0x73] ss:$8 sm:$0x3] %vm4582_vm12, %v3020_v21  ;;  %3630 = vrot.lane.b32.xlu0 %v3622_v39, %s4289_s24  ;;  %v3050_v18 = vpop.permute.xlu1 %3049  ;;  %v3242_v0 = vsel %vm7273_vm3, %v3239_v10, %v3241_v23  ;;  %v3243_v24 = vsel %vm7274_vm6, %v3241_v23, %v3239_v10  ;;  %v3697_v50 = vld.sshfl [vmem:[#allocation1 + $0x8] sm:$0xff pattern:$0x75316420] }
 0x727   : > { %v3051_v38 = vsel %vm7271_vm10, %v6376_v49, %v3050_v18  ;;  %v3052_v31 = vsel %vm7272_vm13, %v3050_v18, %v6376_v49  ;;  %v3696_v36 = vld.sshfl [vmem:[#allocation1] sm:$0xff pattern:$0x75316420]  ;;  %v3246_v11 = vsel %vm492_vm15, %v3243_v24, 0.0  ;;  %v3247_v49 = vsel %vm6512_vm0, %v3242_v0, 0.0  ;;  %v3401_v6 = vpop.permute.xlu0 %3400 }
 0x728   : > { %v3055_v27 = vsel %vm7275_vm14, %v3051_v38, 0.0  ;;  %v3056_v55 = vsel %vm6503_vm7, %v3052_v31, 0.0  ;;  %3737 = vst [vmem:[#allocation1] ss:$2 sm:$0xff] %v3735_v62  ;;  %v3248_v28 = vmul.f32 0.25, %v3246_v11  ;;  %v3249_v42 = vmul.f32 0.25, %v3247_v49  ;;  %vm6550_vm7 = vmand %vm2773_vm1, %vm817_vm5 }
 0x729   : > { %v3057_v51 = vmul.f32 0.25, %v3055_v27  ;;  %v3058_v43 = vmul.f32 0.25, %v3056_v55  ;;  %v3663_v14 = vrot.slane %v3662_v34, 1  ;;  %v3670_v16 = vrot.slane %v3669_v41, 1 }
 0x72a   : > { %v3707_v25 = vsel %vm249_vm2, %v3697_v50, 0.0  ;;  %v3700_v1 = vsel %vm249_vm2, %v3696_v36, 0.0  ;;  %v3252_v61 = vrot.slane %v3249_v42, 7  ;;  %vm7278_vm1 = vcmp.lt.s32.totalorder %v4456_v22, 124 }
 0x72b   : > { %v3061_v8 = vrot.slane %v3058_v43, 7  ;;  %v3708_v63 = vrot.slane %v3707_v25, 4  ;;  %v3701_v20 = vrot.slane %v3700_v1, 4  ;;  %v3664_v46 = vadd.f32 %v3663_v14, %v3662_v34  ;;  %vm7279_vm8 = vmmov %vm7278_vm1 }
 0x72c   : > { %v3671_v19 = vadd.f32 %v3670_v16, %v3669_v41  ;;  %v3253_v60 = vsel %vm455_vm11, %v3248_v28, %v3252_v61  ;;  %vm7280_vm0 = vcmp.ge.s32.totalorder %v4896_v53, 4  ;;  %vm7281_vm10 = vcmp.lt.s32.totalorder %v4890_v30, 208 }
 0x72d   : > { %v3062_v3 = vsel %vm455_vm11, %v3057_v51, %v3061_v8  ;;  %v3709_v35 = vadd.f32 %v3708_v63, %v3707_v25  ;;  %v3702_v37 = vadd.f32 %v3701_v20, %v3700_v1  ;;  %3672 = vrot.lane.b32.xlu2 %v3664_v46, %s4288_s23  ;;  %v6559_v57 = vpop.permute.xlu2 %3282  ;;  %4102 = vst.msk [vmem:[%s4579_s5 + $0x80] ss:$8 sm:$0x3] %vm4582_vm12, %v3253_v60  ;;  %vm6583_vm13 = vmand %vm7281_vm10, %vm7280_vm0  ;;  %vm7284_vm3 = vcmp.lt.s32.totalorder %v4896_v53, 15 }
 0x72e   : > { %4098 = vst.msk [vmem:[%s4579_s5 + $0x74] ss:$8 sm:$0x3] %vm4582_vm12, %v3062_v3  ;;  %3674 = vrot.lane.b32.xlu0 %v3671_v19, %s4288_s23  ;;  %v3132_v5 = vpop.permute.xlu1 %3131  ;;  %vm7285_vm6 = vmmov %vm7281_vm10  ;;  %vm7291_vm0 = vcmp.ge.s32.totalorder %v4893_v12, 4  ;;  %v3811_v1 = vmul.f32 %v6364_v56, %v4545_v26 }
 0x72f   : > { %v3135_v17 = vsel %vm7278_vm1, %v3132_v5, %v6482_v58  ;;  %v3136_v15 = vsel %vm7279_vm8, %v6482_v58, %v3132_v5  ;;  %v3710_v29 = vrot.slane %v3709_v35, 2  ;;  %v3703_v52 = vrot.slane %v3702_v37, 2  ;;  %v3738_v59 = vld.sshfl [vmem:[#allocation1] sm:$0xff pattern:$0x75316420]  ;;  %vm6594_vm14 = vmand %vm7285_vm6, %vm7284_vm3  ;;  %v6620_v46 = vpop.permute.xlu0 %3482 }
 0x730   : > { %v3139_v48 = vsel %vm816_vm9, %v3135_v17, 0.0  ;;  %v3140_v23 = vsel %vm6550_vm7, %v3136_v15, 0.0  ;;  %v3739_v39 = vld.sshfl [vmem:[#allocation1 + $0x8] sm:$0xff pattern:$0x75316420]  ;;  %v3742_v58 = vsel %vm249_vm2, %v3738_v59, 0.0  ;;  %vm7294_vm3 = vmmov %vm7285_vm6 }
 0x731   : > { %v3142_v13 = vmul.f32 0.25, %v3140_v23  ;;  %v3711_v32 = vadd.f32 %v3710_v29, %v3709_v35  ;;  %v3704_v33 = vadd.f32 %v3703_v52, %v3702_v37  ;;  %v3141_v44 = vmul.f32 0.25, %v3139_v48  ;;  %3771 = vst [vmem:[#allocation1] ss:$2 sm:$0xff] %v3769_v4 }
 0x732   : > { %v3749_v21 = vsel %vm249_vm2, %v3739_v39, 0.0  ;;  %v3743_v10 = vrot.slane %v3742_v58, 4  ;;  %vm7288_vm7 = vcmp.lt.s32.totalorder %v4456_v22, 4  ;;  %vm7290_vm8 = vcmp.lt.s32.totalorder %v4456_v22, 127 }
 0x733   : > { %v3145_v9 = vrot.slane %v3142_v13, 7  ;;  %v3712_v62 = vrot.slane %v3711_v32, 1  ;;  %v3705_v18 = vrot.slane %v3704_v33, 1  ;;  %v3750_v34 = vrot.slane %v3749_v21, 4  ;;  %vm7289_vm1 = vmmov %vm7288_vm7 }
 0x734   : > { %v3744_v24 = vadd.f32 %v3743_v10, %v3742_v58  ;;  %vm7292_vm10 = vmmov %vm7290_vm8 }
 0x735   : > { %v3146_v41 = vsel %vm455_vm11, %v3141_v44, %v3145_v9  ;;  %v3713_v38 = vadd.f32 %v3712_v62, %v3711_v32  ;;  %v3706_v31 = vadd.f32 %v3705_v18, %v3704_v33  ;;  %v3399_v27 = vpop.permute.xlu2 %3398  ;;  %v3751_v55 = vadd.f32 %v3750_v34, %v3749_v21 }
 0x736   : > { %4100 = vst.msk [vmem:[%s4579_s5 + $0x76] ss:$8 sm:$0x3] %vm4582_vm12, %v3146_v41  ;;  %v3199_v50 = vpop.permute.xlu1 %3198  ;;  %v3402_v51 = vsel %vm7290_vm8, %v3399_v27, %v3401_v6  ;;  %v3745_v43 = vrot.slane %v3744_v24, 2  ;;  %v3403_v14 = vsel %vm7292_vm10, %v3401_v6, %v3399_v27  ;;  %vm3558_vm8 = vcmp.lt.s32.totalorder %v4890_v30, 192  ;;  %vm7301_vm10 = vmmov %vm7294_vm3 }
 0x737   : > { %3716 = vrot.lane.b32.xlu2 %v3713_v38, %s4287_s18  ;;  %3714 = vrot.lane.b32.xlu1 %v3706_v31, %s4287_s18  ;;  %v3200_v11 = vsel %vm7288_vm7, %v6462_v54, %v3199_v50  ;;  %v3201_v49 = vsel %vm7289_vm1, %v3199_v50, %v6462_v54  ;;  %v3406_v25 = vsel %vm672_vm4, %v3402_v51, 0.0  ;;  %v3407_v54 = vsel %vm6594_vm14, %v3403_v14, 0.0 }
 0x738   : > { %v3204_v28 = vsel %vm7291_vm0, %v3201_v49, 0.0  ;;  %v3205_v42 = vsel %vm6583_vm13, %v3200_v11, 0.0  ;;  %v3409_v8 = vmul.f32 0.25, %v3407_v54  ;;  %v3773_v61 = vld.sshfl [vmem:[#allocation1 + $0x8] sm:$0xff pattern:$0x75316420]  ;;  %v3746_v63 = vadd.f32 %v3745_v43, %v3744_v24  ;;  %v3527_v11 = vpop.permute.xlu0 %3526 }
 0x739   : > { %v3207_v16 = vmul.f32 0.25, %v3205_v42  ;;  %v3752_v20 = vrot.slane %v3751_v55, 2  ;;  %v3206_v19 = vmul.f32 0.25, %v3204_v28  ;;  %v3783_v60 = vsel %vm249_vm2, %v3773_v61, 0.0 }
 0x73a   : > { %v3772_v47 = vld.sshfl [vmem:[#allocation1] sm:$0xff pattern:$0x75316420]  ;;  %v3408_v35 = vmul.f32 0.25, %v3406_v25  ;;  %v3412_v37 = vrot.slane %v3409_v8, 7  ;;  %v3784_v5 = vrot.slane %v3783_v60, 4  ;;  %v3853_v34 = vmul.f32 %v6364_v56, %v4562_v45 }
 0x73b   : > { %v3210_v3 = vrot.slane %v3207_v16, 7  ;;  %v3776_v17 = vsel %vm249_vm2, %v3772_v47, 0.0  ;;  %3813 = vst [vmem:[#allocation1] ss:$2 sm:$0xff] %v3811_v1  ;;  %vm7293_vm13 = vcmp.ge.s32.totalorder %v4896_v53, 2  ;;  %v3747_v52 = vrot.slane %v3746_v63, 1 }
 0x73c   : > { %vm6629_vm6 = vmand %vm7294_vm3, %vm7293_vm13  ;;  %v3777_v29 = vrot.slane %v3776_v17, 4  ;;  %v3753_v4 = vadd.f32 %v3752_v20, %v3751_v55  ;;  %v3413_v48 = vsel %vm455_vm11, %v3408_v35, %v3412_v37  ;;  %v3785_v13 = vadd.f32 %v3784_v5, %v3783_v60 }
 0x73d   : > { %v3211_v26 = vsel %vm455_vm11, %v3206_v19, %v3210_v3  ;;  %v6637_v59 = vpop.permute.xlu2 %3442  ;;  %4106 = vst.msk [vmem:[%s4579_s5 + $0x84] ss:$8 sm:$0x3] %vm4582_vm12, %v3413_v48  ;;  %vm7297_vm14 = vcmp.lt.s32.totalorder %v4456_v22, 2  ;;  %vm7299_vm1 = vcmp.ge.s32.totalorder %v4893_v12, 2  ;;  %v3748_v18 = vadd.f32 %v3747_v52, %v3746_v63 }
 0x73e   : > { %4101 = vst.msk [vmem:[%s4579_s5 + $0x77] ss:$8 sm:$0x3] %vm4582_vm12, %v3211_v26  ;;  %v3281_v23 = vpop.permute.xlu1 %3280  ;;  %vm7298_vm7 = vmmov %vm7297_vm14  ;;  %v3778_v39 = vadd.f32 %v3777_v29, %v3776_v17  ;;  %v3754_v44 = vrot.slane %v3753_v4, 1  ;;  %v3786_v6 = vrot.slane %v3785_v13, 2  ;;  %vm7300_vm0 = vcmp.ge.s32.totalorder %v4896_v53, 1 }
 0x73f   : > { %v3284_v32 = vsel %vm7297_vm14, %v3281_v23, %v6559_v57  ;;  %v3285_v33 = vsel %vm7298_vm7, %v6559_v57, %v3281_v23  ;;  %vm6663_vm13 = vmand %vm7301_vm10, %vm7300_vm0  ;;  %v3758_v28 = vmul.f32 0.25, %v3748_v18  ;;  %vm7306_vm14 = vcmp.lt.s32.totalorder %v4456_v22, 1 }
 0x740   : > { %v3288_v58 = vsel %vm7299_vm1, %v3285_v33, 0.0  ;;  %v3289_v21 = vsel %vm6629_vm6, %v3284_v32, 0.0  ;;  %v3779_v62 = vrot.slane %v3778_v39, 2  ;;  %v3755_v10 = vadd.f32 %v3754_v44, %v3753_v4  ;;  %vm6675_vm6 = vmand %vm7294_vm3, %vm817_vm5 }
 0x741   : > { %v3291_v9 = vmul.f32 0.25, %v3289_v21  ;;  %v3787_v41 = vadd.f32 %v3786_v6, %v3785_v13  ;;  %v3290_v57 = vmul.f32 0.25, %v3288_v58  ;;  %vm7307_vm7 = vmmov %vm7306_vm14  ;;  %vm7308_vm1 = vcmp.lt.s32.totalorder %v4456_v22, 124 }
 0x742   : > { %v3780_v31 = vadd.f32 %v3779_v62, %v3778_v39  ;;  %v3814_v0 = vld.sshfl [vmem:[#allocation1] sm:$0xff pattern:$0x75316420]  ;;  %v3757_v24 = vsel %vm3558_vm8, %v3755_v10, 0.0  ;;  %vm7309_vm0 = vcmp.ge.s32.totalorder %v4893_v12, 1  ;;  %vm7310_vm10 = vmmov %vm7308_vm1  ;;  %v3895_v33 = vmul.f32 %v6364_v56, %v4588_v7 }
 0x743   : > { %v3294_v38 = vrot.slane %v3291_v9, 7  ;;  %v3788_v50 = vrot.slane %v3787_v41, 1  ;;  %v3818_v36 = vsel %vm249_vm2, %v3814_v0, 0.0  ;;  %v3815_v27 = vld.sshfl [vmem:[#allocation1 + $0x8] sm:$0xff pattern:$0x75316420] }
 0x744   : > { %v3759_v55 = vmul.f32 0.25, %v3757_v24  ;;  %v3781_v51 = vrot.slane %v3780_v31, 1  ;;  %v3825_v43 = vsel %vm249_vm2, %v3815_v27, 0.0  ;;  %3855 = vst [vmem:[#allocation1] ss:$2 sm:$0xff] %v3853_v34  ;;  %v3819_v54 = vrot.slane %v3818_v36, 4 }
 0x745   : > { %v3295_v49 = vsel %vm455_vm11, %v3290_v57, %v3294_v38  ;;  %v3789_v42 = vadd.f32 %v3788_v50, %v3787_v41  ;;  %v3525_v25 = vpop.permute.xlu2 %3524  ;;  %v3826_v1 = vrot.slane %v3825_v43, 4 }
 0x746   : > { %4103 = vst.msk [vmem:[%s4579_s5 + $0x81] ss:$8 sm:$0x3] %vm4582_vm12, %v3295_v49  ;;  %v3325_v14 = vpop.permute.xlu1 %3324  ;;  %v3762_v8 = vrot.slane %v3759_v55, 7  ;;  %v3782_v61 = vadd.f32 %v3781_v51, %v3780_v31  ;;  %v3528_v19 = vsel %vm7308_vm1, %v3525_v25, %v3527_v11  ;;  %v3529_v47 = vsel %vm7310_vm10, %v3527_v11, %v3525_v25  ;;  %vm7318_vm10 = vmmov %vm7294_vm3 }
 0x747   : > { %v3326_v63 = vsel %vm7306_vm14, %v6542_v40, %v3325_v14  ;;  %v3327_v20 = vsel %vm7307_vm7, %v3325_v14, %v6542_v40  ;;  %3792 = vrot.lane.b32.xlu1 %v3789_v42, %s4286_s16  ;;  %v3532_v35 = vsel %vm816_vm9, %v3528_v19, 0.0  ;;  %v3533_v37 = vsel %vm6675_vm6, %v3529_v47, 0.0 }
 0x748   : > { %v3330_v3 = vsel %vm7309_vm0, %v3327_v20, 0.0  ;;  %v3331_v60 = vsel %vm6663_vm13, %v3326_v63, 0.0  ;;  %3790 = vrot.lane.b32.xlu0 %v3782_v61, %s4286_s16  ;;  %v3535_v5 = vmul.f32 0.25, %v3533_v37  ;;  %v3820_v17 = vadd.f32 %v3819_v54, %v3818_v36 }
 0x749   : > { %v3333_v40 = vmul.f32 0.25, %v3331_v60  ;;  %v3827_v26 = vadd.f32 %v3826_v1, %v3825_v43  ;;  %v3763_v15 = vsel %vm455_vm11, %v3758_v28, %v3762_v8  ;;  %v3332_v29 = vmul.f32 0.25, %v3330_v3 }
 0x74a   : > { %v3534_v4 = vmul.f32 0.25, %v3532_v35  ;;  %4114 = vst.msk [vmem:[%s4579_s5 + $0x94] ss:$8 sm:$0x3] %vm4582_vm12, %v3763_v15  ;;  %v3538_v48 = vrot.slane %v3535_v5, 7  ;;  %v3821_v23 = vrot.slane %v3820_v17, 2 }
 0x74b   : > { %v3336_v52 = vrot.slane %v3333_v40, 7  ;;  %v3828_v13 = vrot.slane %v3827_v26, 2  ;;  %v3857_v32 = vld.sshfl [vmem:[#allocation1 + $0x8] sm:$0xff pattern:$0x75316420]  ;;  %vm7311_vm13 = vcmp.lt.s32.totalorder %v4896_v53, 14 }
 0x74c   : > { %vm6710_vm6 = vmand %vm7294_vm3, %vm7311_vm13  ;;  %v3867_v58 = vsel %vm249_vm2, %v3857_v32, 0.0  ;;  %v3856_v21 = vld.sshfl [vmem:[#allocation1] sm:$0xff pattern:$0x75316420]  ;;  %v3539_v6 = vsel %vm455_vm11, %v3534_v4, %v3538_v48  ;;  %v3822_v9 = vadd.f32 %v3821_v23, %v3820_v17  ;;  %vm7314_vm14 = vcmp.lt.s32.totalorder %v4456_v22, 126 }
 0x74d   : > { %v3337_v39 = vsel %vm455_vm11, %v3332_v29, %v3336_v52  ;;  %v3829_v7 = vadd.f32 %v3828_v13, %v3827_v26  ;;  %v3868_v62 = vrot.slane %v3867_v58, 4  ;;  %4109 = vst.msk [vmem:[%s4579_s5 + $0x87] ss:$8 sm:$0x3] %vm4582_vm12, %v3539_v6  ;;  %vm7315_vm7 = vmmov %vm7314_vm14  ;;  %v3860_v34 = vsel %vm249_vm2, %v3856_v21, 0.0 }
 0x74e   : > { %4104 = vst.msk [vmem:[%s4579_s5 + $0x82] ss:$8 sm:$0x3] %vm4582_vm12, %v3337_v39  ;;  %v3441_v56 = vpop.permute.xlu1 %3440  ;;  %v3823_v41 = vrot.slane %v3822_v9, 1  ;;  %vm7316_vm1 = vcmp.lt.s32.totalorder %v4893_v12, 14  ;;  %v3861_v50 = vrot.slane %v3860_v34, 4 }
 0x74f   : > { %v3444_v18 = vsel %vm7314_vm14, %v3441_v56, %v6637_v59  ;;  %v3445_v10 = vsel %vm7315_vm7, %v6637_v59, %v3441_v56  ;;  %v3830_v57 = vrot.slane %v3829_v7, 1  ;;  %3897 = vst [vmem:[#allocation1] ss:$2 sm:$0xff] %v3895_v33  ;;  %v3869_v24 = vadd.f32 %v3868_v62, %v3867_v58 }
 0x750   : > { %v3448_v38 = vsel %vm7316_vm1, %v3444_v18, 0.0  ;;  %v3449_v31 = vsel %vm6710_vm6, %v3445_v10, 0.0  ;;  %v3824_v36 = vadd.f32 %v3823_v41, %v3822_v9  ;;  %v3862_v49 = vadd.f32 %v3861_v50, %v3860_v34 }
 0x751   : > { %v3451_v0 = vmul.f32 0.25, %v3449_v31  ;;  %v3831_v27 = vadd.f32 %v3830_v57, %v3829_v7  ;;  %v3450_v55 = vmul.f32 0.25, %v3448_v38  ;;  %v3870_v59 = vrot.slane %v3869_v24, 2 }
 0x752   : > { %3832 = vrot.lane.b32.xlu2 %v3824_v36, %s4285_s19  ;;  %v3863_v43 = vrot.slane %v3862_v49, 2  ;;  %vm7317_vm0 = vcmp.lt.s32.totalorder %v4896_v53, 13  ;;  %vm7319_vm3 = vcmp.lt.s32.totalorder %v4456_v22, 125  ;;  %vm7321_vm14 = vcmp.lt.s32.totalorder %v4893_v12, 13 }
 0x753   : > { %v3454_v11 = vrot.slane %v3451_v0, 7  ;;  %3834 = vrot.lane.b32.xlu0 %v3831_v27, %s4285_s19  ;;  %v3871_v45 = vadd.f32 %v3870_v59, %v3869_v24  ;;  %vm3489_vm13 = vmand %vm7318_vm10, %vm7317_vm0  ;;  %vm7323_vm1 = vcmp.lt.s32.totalorder %v4456_v22, 4  ;;  %vm7325_vm10 = vcmp.ge.s32.totalorder %v4893_v12, 4 }
 0x754   : > { %v3864_v14 = vadd.f32 %v3863_v43, %v3862_v49  ;;  %vm7320_vm6 = vmmov %vm7319_vm3 }
 0x755   : > { %v3455_v51 = vsel %vm455_vm11, %v3450_v55, %v3454_v11  ;;  %v3872_v42 = vrot.slane %v3871_v45, 1  ;;  %vm7324_vm0 = vmmov %vm7323_vm1 }
 0x756   : > { %4107 = vst.msk [vmem:[%s4579_s5 + $0x85] ss:$8 sm:$0x3] %vm4582_vm12, %v3455_v51  ;;  %v3485_v28 = vpop.permute.xlu1 %3484  ;;  %v3899_v54 = vld.sshfl [vmem:[#allocation1 + $0x8] sm:$0xff pattern:$0x75316420] }
 0x757   : > { %v3486_v16 = vsel %vm7319_vm3, %v6620_v46, %v3485_v28  ;;  %v3487_v25 = vsel %vm7320_vm6, %v3485_v28, %v6620_v46  ;;  %v3909_v61 = vsel %vm249_vm2, %v3899_v54, 0.0  ;;  %v3898_v63 = vld.sshfl [vmem:[#allocation1] sm:$0xff pattern:$0x75316420]  ;;  %v3873_v20 = vadd.f32 %v3872_v42, %v3871_v45 }
 0x758   : > { %v3490_v1 = vsel %vm7321_vm14, %v3486_v16, 0.0  ;;  %v3491_v8 = vsel %vm3489_vm13, %v3487_v25, 0.0  ;;  %v3865_v19 = vrot.slane %v3864_v14, 1  ;;  %v3910_v60 = vrot.slane %v3909_v61, 4 }
 0x759   : > { %v3493_v3 = vmul.f32 0.25, %v3491_v8  ;;  %v3902_v47 = vsel %vm249_vm2, %v3898_v63, 0.0  ;;  %v3492_v40 = vmul.f32 0.25, %v3490_v1  ;;  %vm7322_vm2 = vcmp.ge.s32.totalorder %v4896_v53, 4 }
 0x75a   : > { %v3866_v35 = vadd.f32 %v3865_v19, %v3864_v14  ;;  %v3903_v5 = vrot.slane %v3902_v47, 4  ;;  %3876 = vrot.lane.b32.xlu2 %v3873_v20, %s4284_s15  ;;  %v3911_v46 = vadd.f32 %v3910_v60, %v3909_v61  ;;  %vm3595_vm7 = vmand %vm3558_vm8, %vm7322_vm2  ;;  %vm7326_vm13 = vcmp.ge.s32.totalorder %v4896_v53, 3 }
 0x75b   : > { %v3496_v37 = vrot.slane %v3493_v3, 7  ;;  %vm3637_vm3 = vmand %vm3558_vm8, %vm7326_vm13  ;;  %vm7327_vm6 = vcmp.lt.s32.totalorder %v4456_v22, 3  ;;  %vm7329_vm2 = vcmp.ge.s32.totalorder %v4896_v53, 2 }
 0x75c   : > { %3874 = vrot.lane.b32.xlu1 %v3866_v35, %s4284_s15  ;;  %v3904_v26 = vadd.f32 %v3903_v5, %v3902_v47  ;;  %v3912_v15 = vrot.slane %v3911_v46, 2  ;;  %vm7328_vm14 = vmmov %vm7327_vm6 }
 0x75d   : > { %v3497_v17 = vsel %vm455_vm11, %v3492_v40, %v3496_v37 }
 0x75e   : > { %4108 = vst.msk [vmem:[%s4579_s5 + $0x86] ss:$8 sm:$0x3] %vm4582_vm12, %v3497_v17  ;;  %v3905_v29 = vrot.slane %v3904_v26, 2  ;;  %v3913_v52 = vadd.f32 %v3912_v15, %v3911_v46 }
 0x760   : > { %v3906_v4 = vadd.f32 %v3905_v29, %v3904_v26  ;;  %v3914_v48 = vrot.slane %v3913_v52, 1 }
 0x762   : > { %v3907_v23 = vrot.slane %v3906_v4, 1  ;;  %v3915_v13 = vadd.f32 %v3914_v48, %v3913_v52 }
 0x764   : > { %v3908_v32 = vadd.f32 %v3907_v23, %v3906_v4  ;;  %3918 = vrot.lane.b32.xlu1 %v3915_v13, %s4283_s29 }
 0x766   : > { %3916 = vrot.lane.b32.xlu0 %v3908_v32, %s4283_s29 }
 0x774   : > { %v3591_v33 = vpop.permute.xlu2 %3590 }
 0x787   : > { %v3673_v50 = vpop.permute.xlu2 %3672 }
 0x78d   : > { %v3589_v39 = vpop.permute.xlu1 %3588 }
 0x78e   : > { %v3592_v44 = vsel %vm7323_vm1, %v3589_v39, %v3591_v33  ;;  %v3593_v58 = vsel %vm7324_vm0, %v3591_v33, %v3589_v39  ;;  %vm7330_vm1 = vcmp.lt.s32.totalorder %v4456_v22, 2  ;;  %vm7332_vm0 = vcmp.ge.s32.totalorder %v4893_v12, 2 }
 0x78f   : > { %v3596_v21 = vsel %vm7325_vm10, %v3593_v58, 0.0  ;;  %v3597_v6 = vsel %vm3595_vm7, %v3592_v44, 0.0  ;;  %vm3679_vm7 = vmand %vm3558_vm8, %vm7329_vm2  ;;  %vm7333_vm10 = vcmp.ge.s32.totalorder %v4896_v53, 1  ;;  %vm7337_vm2 = vcmp.lt.s32.totalorder %v4896_v53, 15 }
 0x790   : > { %v3599_v9 = vmul.f32 0.25, %v3597_v6  ;;  %v3598_v7 = vmul.f32 0.25, %v3596_v21  ;;  %vm3721_vm13 = vmand %vm3558_vm8, %vm7333_vm10 }
 0x791   : > { %v3717_v42 = vpop.permute.xlu2 %3716 }
 0x792   : > { %v3602_v56 = vrot.slane %v3599_v9, 7 }
 0x794   : > { %v3603_v62 = vsel %vm455_vm11, %v3598_v7, %v3602_v56 }
 0x795   : > { %4110 = vst.msk [vmem:[%s4579_s5 + $0x90] ss:$8 sm:$0x3] %vm4582_vm12, %v3603_v62  ;;  %v3633_v18 = vpop.permute.xlu1 %3632 }
 0x798   : > { %v3631_v10 = vpop.permute.xlu0 %3630 }
 0x799   : > { %v3634_v34 = vsel %vm7327_vm6, %v3631_v10, %v3633_v18  ;;  %v3635_v41 = vsel %vm7328_vm14, %v3633_v18, %v3631_v10  ;;  %vm7336_vm14 = vcmp.ge.s32.totalorder %v4893_v12, 1 }
 0x79a   : > { %v3638_v57 = vsel %vm492_vm15, %v3635_v41, 0.0  ;;  %v3639_v38 = vsel %vm3637_vm3, %v3634_v34, 0.0  ;;  %vm7331_vm15 = vmmov %vm7330_vm1  ;;  %vm7334_vm3 = vcmp.lt.s32.totalorder %v4456_v22, 1 }
 0x79b   : > { %v3641_v31 = vmul.f32 0.25, %v3639_v38  ;;  %v3640_v0 = vmul.f32 0.25, %v3638_v57  ;;  %vm7335_vm6 = vmmov %vm7334_vm3 }
 0x79d   : > { %v3644_v24 = vrot.slane %v3641_v31, 7 }
 0x79f   : > { %v3645_v36 = vsel %vm455_vm11, %v3640_v0, %v3644_v24 }
 0x7a0   : > { %4111 = vst.msk [vmem:[%s4579_s5 + $0x91] ss:$8 sm:$0x3] %vm4582_vm12, %v3645_v36  ;;  %v3675_v27 = vpop.permute.xlu0 %3674 }
 0x7a1   : > { %v3676_v55 = vsel %vm7330_vm1, %v3673_v50, %v3675_v27  ;;  %v3677_v11 = vsel %vm7331_vm15, %v3675_v27, %v3673_v50  ;;  %vm7338_vm1 = vcmp.lt.s32.totalorder %v4456_v22, 127 }
 0x7a2   : > { %v3680_v59 = vsel %vm7332_vm0, %v3677_v11, 0.0  ;;  %v3681_v49 = vsel %vm3679_vm7, %v3676_v55, 0.0  ;;  %vm3797_vm7 = vmand %vm3558_vm8, %vm7337_vm2  ;;  %vm7340_vm0 = vcmp.lt.s32.totalorder %v4896_v53, 14  ;;  %vm7345_vm2 = vcmp.lt.s32.totalorder %v4456_v22, 125 }
 0x7a3   : > { %v3683_v51 = vmul.f32 0.25, %v3681_v49  ;;  %v3682_v45 = vmul.f32 0.25, %v3680_v59  ;;  %vm7339_vm15 = vmmov %vm7338_vm1 }
 0x7a4   : > { %vm3839_vm10 = vmand %vm3558_vm8, %vm7340_vm0  ;;  %vm7348_vm0 = vcmp.lt.s32.totalorder %v4456_v22, 124 }
 0x7a5   : > { %v3686_v43 = vrot.slane %v3683_v51, 7 }
 0x7a7   : > { %v3687_v28 = vsel %vm455_vm11, %v3682_v45, %v3686_v43 }
 0x7a8   : > { %4112 = vst.msk [vmem:[%s4579_s5 + $0x92] ss:$8 sm:$0x3] %vm4582_vm12, %v3687_v28 }
 0x7a9   : > { %v3715_v14 = vpop.permute.xlu1 %3714 }
 0x7aa   : > { %v3718_v16 = vsel %vm7334_vm3, %v3715_v14, %v3717_v42  ;;  %v3719_v25 = vsel %vm7335_vm6, %v3717_v42, %v3715_v14  ;;  %vm7343_vm3 = vcmp.lt.s32.totalorder %v4893_v12, 14  ;;  %vm7344_vm6 = vcmp.lt.s32.totalorder %v4896_v53, 13 }
 0x7ab   : > { %v3722_v54 = vsel %vm7336_vm14, %v3719_v25, 0.0  ;;  %v3723_v1 = vsel %vm3721_vm13, %v3718_v16, 0.0  ;;  %vm7341_vm13 = vcmp.lt.s32.totalorder %v4456_v22, 126  ;;  %vm3881_vm14 = vmand %vm3558_vm8, %vm7344_vm6 }
 0x7ac   : > { %v3725_v8 = vmul.f32 0.25, %v3723_v1  ;;  %v3724_v61 = vmul.f32 0.25, %v3722_v54  ;;  %v3833_v26 = vpop.permute.xlu2 %3832 }
 0x7ae   : > { %v3728_v63 = vrot.slane %v3725_v8, 7 }
 0x7b0   : > { %v3729_v20 = vsel %vm455_vm11, %v3724_v61, %v3728_v63 }
 0x7b1   : > { %4113 = vst.msk [vmem:[%s4579_s5 + $0x93] ss:$8 sm:$0x3] %vm4582_vm12, %v3729_v20 }
 0x7b4   : > { %v3877_v39 = vpop.permute.xlu2 %3876 }
 0x7b9   : > { %v3793_v19 = vpop.permute.xlu1 %3792 }
 0x7ba   : > { %v3791_v3 = vpop.permute.xlu0 %3790 }
 0x7bb   : > { %v3794_v60 = vsel %vm7338_vm1, %v3791_v3, %v3793_v19  ;;  %v3795_v47 = vsel %vm7339_vm15, %v3793_v19, %v3791_v3  ;;  %vm7347_vm1 = vcmp.lt.s32.totalorder %v4893_v12, 13  ;;  %vm3923_vm15 = vmand %vm3558_vm8, %vm817_vm5 }
 0x7bc   : > { %v3798_v35 = vsel %vm672_vm4, %v3794_v60, 0.0  ;;  %v3799_v40 = vsel %vm3797_vm7, %v3795_v47, 0.0  ;;  %vm7342_vm4 = vmmov %vm7341_vm13 }
 0x7bd   : > { %v3801_v37 = vmul.f32 0.25, %v3799_v40  ;;  %v3800_v5 = vmul.f32 0.25, %v3798_v35  ;;  %vm7346_vm7 = vmmov %vm7345_vm2 }
 0x7bf   : > { %v3804_v46 = vrot.slane %v3801_v37, 7 }
 0x7c1   : > { %v3805_v17 = vsel %vm455_vm11, %v3800_v5, %v3804_v46 }
 0x7c2   : > { %4115 = vst.msk [vmem:[%s4579_s5 + $0x95] ss:$8 sm:$0x3] %vm4582_vm12, %v3805_v17 }
 0x7c5   : > { %v3835_v15 = vpop.permute.xlu0 %3834 }
 0x7c6   : > { %v3836_v29 = vsel %vm7341_vm13, %v3833_v26, %v3835_v15  ;;  %v3837_v52 = vsel %vm7342_vm4, %v3835_v15, %v3833_v26 }
 0x7c7   : > { %v3840_v4 = vsel %vm7343_vm3, %v3836_v29, 0.0  ;;  %v3841_v48 = vsel %vm3839_vm10, %v3837_v52, 0.0  ;;  %vm7349_vm10 = vmmov %vm7348_vm0 }
 0x7c8   : > { %v3843_v23 = vmul.f32 0.25, %v3841_v48  ;;  %v3842_v13 = vmul.f32 0.25, %v3840_v4 }
 0x7ca   : > { %v3846_v32 = vrot.slane %v3843_v23, 7 }
 0x7cc   : > { %v3847_v33 = vsel %vm455_vm11, %v3842_v13, %v3846_v32 }
 0x7cd   : > { %4116 = vst.msk [vmem:[%s4579_s5 + $0x96] ss:$8 sm:$0x3] %vm4582_vm12, %v3847_v33 }
 0x7ce   : > { %v3875_v44 = vpop.permute.xlu1 %3874 }
 0x7cf   : > { %v3878_v58 = vsel %vm7345_vm2, %v3875_v44, %v3877_v39  ;;  %v3879_v21 = vsel %vm7346_vm7, %v3877_v39, %v3875_v44 }
 0x7d0   : > { %v3882_v6 = vsel %vm7347_vm1, %v3878_v58, 0.0  ;;  %v3883_v9 = vsel %vm3881_vm14, %v3879_v21, 0.0 }
 0x7d1   : > { %v3885_v7 = vmul.f32 0.25, %v3883_v9  ;;  %v3884_v56 = vmul.f32 0.25, %v3882_v6 }
 0x7d3   : > { %v3888_v62 = vrot.slane %v3885_v7, 7 }
 0x7d5   : > { %v3889_v18 = vsel %vm455_vm11, %v3884_v56, %v3888_v62 }
 0x7d6   : > { %4117 = vst.msk [vmem:[%s4579_s5 + $0x97] ss:$8 sm:$0x3] %vm4582_vm12, %v3889_v18  ;;  %v3919_v10 = vpop.permute.xlu1 %3918 }
 0x7d8   : > { %v3917_v34 = vpop.permute.xlu0 %3916 }
 0x7d9   : > { %v3920_v41 = vsel %vm7348_vm0, %v3917_v34, %v3919_v10  ;;  %v3921_v57 = vsel %vm7349_vm10, %v3919_v10, %v3917_v34 }
 0x7da   : > { %v3924_v38 = vsel %vm816_vm9, %v3920_v41, 0.0  ;;  %v3925_v31 = vsel %vm3923_vm15, %v3921_v57, 0.0 }
 0x7db   : > { %v3927_v0 = vmul.f32 0.25, %v3925_v31  ;;  %v3926_v24 = vmul.f32 0.25, %v3924_v38 }
 0x7dd   : > { %v3930_v50 = vrot.slane %v3927_v0, 7 }
 0x7df   : > { %v3931_v36 = vsel %vm455_vm11, %v3926_v24, %v3930_v50 }
 0x7e0   : > { %4118 = vst.msk [vmem:[%s4579_s5 + $0xa0] ss:$8 sm:$0x3] %vm4582_vm12, %v3931_v36 }
 0x7e1 PF: > { %p15_p8 = scmp.ge.s32.totalorder %s4335_s14, 4   ;;  %s7350_s9 = smov %s4273_s10 }
 0x7e2   : > { %s7351_s10 = smov %s4277_s11  ;;  %s7352_s11 = smov %s4345_s17 }
 0x7e3   : > { %s7353_s12 = smov %s4335_s14  ;;  %17 = sbr.rel (!%p15_p8) target bundleno = 5 (0x5), region = 169 }
 0x7e8   :  { %3957 = vsyncpa [#allocation4], 1 }
 0x7e9   :  { %3959 = vsyncpa [#allocation4 + $0x1], 1 }
 0x7ea   :  { %3960 = vsyncpa [#allocation6], 1 }
 0x7eb   :  { %3962 = vsyncpa [#allocation6 + $0x1], 1 }

</bundles_post_ra>
